<compile_context>
chip_gen: v5e
topology: v5e:2x2
jax: 0.10.0
libtpu: 0.0.40
codegen_flags: <defaults>
</compile_context>

<pallas_src>
import functools
import numpy as np
import jax
import jax.numpy as jnp
from jax.experimental import pallas as pl
from jax.experimental.pallas import tpu as pltpu

EPS = 1e-5  # nn.BatchNorm2d default eps


# --------------------------------------------------------------------------------------
# host-side (numpy) construction of the fused upsample+shift matrices
# --------------------------------------------------------------------------------------
def _interp_matrix(n_in, n_out):
    """Bilinear, align_corners=True interpolation matrix A (n_out, n_in)."""
    A = np.zeros((n_out, n_in), np.float32)
    if n_out == 1 or n_in == 1:
        A[:, 0] = 1.0
        return A
    c = np.arange(n_out, dtype=np.float64) * (n_in - 1) / (n_out - 1)
    i0 = np.clip(np.floor(c).astype(np.int64), 0, n_in - 1)
    i1 = np.minimum(i0 + 1, n_in - 1)
    f = (c - i0).astype(np.float32)
    rows = np.arange(n_out)
    A[rows, i0] = 1.0 - f
    A[rows, i1] += f                    # i0 == i1 at exact grid points -> weight 1
    return A


def _shifted(A, offset):
    """B[o, :] = A[o + offset, :], zero rows where out of range (== conv zero padding)."""
    n_out = A.shape[0]
    B = np.zeros_like(A)
    lo = max(0, -offset)
    hi = min(n_out, n_out - offset)
    if hi > lo:
        B[lo:hi, :] = A[lo + offset:hi + offset, :]
    return B


def _tap_matrices_stacked(Hin, Win, Hout, Wout, k):
    """(Hout*Wout, k*k*Hin*Win): upsample composed with each conv tap's padded shift,
    stacked along the contraction axis (tap-major, kh outer / kw inner)."""
    p = (k - 1) // 2
    Ah = _interp_matrix(Hin, Hout)
    Aw = _interp_matrix(Win, Wout)
    taps = []
    for dh in range(k):
        Bh = _shifted(Ah, dh - p)
        for dw in range(k):
            Bw = _shifted(Aw, dw - p)
            taps.append(np.kron(Bh, Bw))                       # (HWout, HWin)
    return np.concatenate(taps, axis=1).astype(np.float32)     # (HWout, k2*HWin)


def _row_tile(hw_out, k2_hwin, max_block_bytes=8 << 20):
    """Largest row tile dividing hw_out whose tap block fits the VMEM budget."""
    for t in (512, 256, 128, 64, 32, 16, 8):
        if hw_out % t == 0 and t * k2_hwin * 2 <= max_block_bytes:
            return t
    assert hw_out * k2_hwin * 2 <= max_block_bytes, (
        "upconv_pallas: stacked tap block exceeds the VMEM budget for this spatial "
        "size; use the separable-tap path (see TODO).")
    return hw_out


# --------------------------------------------------------------------------------------
# fused Pallas kernel
# --------------------------------------------------------------------------------------
def _upconv_kernel(x_ref, m_ref, w_ref, s_ref, b_ref, o_ref, z_ref, *, n_taps, hw_in):
    # x_ref: (1, HWin, Cin)        input image, flattened spatial, channels-last (bf16)
    # m_ref: (TM, k2*HWin)         stacked (upsample o shift) tap matrices (bf16)
    # w_ref: (n_taps, Cin, Cout)   conv weights per tap (bf16)
    # s_ref/b_ref: (1, Cout)       folded BatchNorm scale / (conv-bias + BN) shift (f32)
    # o_ref: (1, TM, Cout)
    # z_ref: (k2*HWin, Cout)       VMEM scratch: per-batch cache of x @ W_t (bf16)

    # Per batch (row tile 0): fill the z-cache with the k*k small matmuls once.
    @pl.when(pl.program_id(1) == 0)
    def _():
        x = x_ref[0]                                            # (HWin, Cin) bf16
        for t in range(n_taps):                                 # unrolled, n_taps = k*k
            zt = jnp.dot(x, w_ref[t],                           # (HWin, Cin) x (Cin, Cout)
                         preferred_element_type=jnp.float32)
            z_ref[pl.ds(t * hw_in, hw_in), :] = zt.astype(z_ref.dtype)

    # Per tile: one big MXU matmul over the stacked contraction dim (K = k2*HWin).
    acc = jnp.dot(m_ref[...], z_ref[...],                       # (TM, K) x (K, Cout)
                  preferred_element_type=jnp.float32)
    y = acc * s_ref[...] + b_ref[...]                           # conv bias + BatchNorm (eval)
    # ELU(alpha=1): y if y > 0 else exp(y) - 1
    o_ref[0] = jnp.where(y > 0.0, y,
                         jnp.exp(jnp.minimum(y, 0.0)) - 1.0).astype(o_ref.dtype)


def upconv_pallas(x_nchw, params, *, scale, kernel_size, eps=EPS):
    assert kernel_size % 2 == 1, "only odd kernel_size supported"
    assert int(scale) == scale and scale >= 1
    B, Cin, Hin, Win = x_nchw.shape
    Cout = params['conv_w'].shape[0]
    Hout, Wout = Hin * scale, Win * scale
    HWin, HWout = Hin * Win, Hout * Wout
    k2 = kernel_size * kernel_size

    # static constants: bilinear upsample fused with padded conv shifts, stacked along K
    m_stacked = jnp.asarray(
        _tap_matrices_stacked(Hin, Win, Hout, Wout, kernel_size), jnp.bfloat16)

    # channels-last operands (bf16 in the wrapper: halves DMA, no per-step cast)
    x_cl = jnp.transpose(x_nchw, (0, 2, 3, 1)).reshape(B, HWin, Cin).astype(jnp.bfloat16)
    w_taps = jnp.transpose(params['conv_w'], (2, 3, 1, 0)).reshape(
        k2, Cin, Cout).astype(jnp.bfloat16)

    # fold conv bias + eval-mode BatchNorm into one per-channel scale/shift
    bn_scale = params['bn_gamma'] * jax.lax.rsqrt(params['bn_var'] + eps)
    bn_shift = params['bn_beta'] + (params['conv_b'] - params['bn_mean']) * bn_scale
    bn_scale = bn_scale.reshape(1, Cout).astype(jnp.float32)
    bn_shift = bn_shift.reshape(1, Cout).astype(jnp.float32)

    TM = _row_tile(HWout, k2 * HWin)           # lane-dense (TM, Cout) output tiles
    grid = (B, HWout // TM)                    # batch parallel, row tiles arbitrary

    out2d = pl.pallas_call(
        functools.partial(_upconv_kernel, n_taps=k2, hw_in=HWin),
        out_shape=jax.ShapeDtypeStruct((B, HWout, Cout), jnp.float32),
        grid=grid,
        in_specs=[
            pl.BlockSpec((1, HWin, Cin), lambda b, i: (b, 0, 0)),
            pl.BlockSpec((TM, k2 * HWin), lambda b, i: (i, 0)),
            pl.BlockSpec((k2, Cin, Cout), lambda b, i: (0, 0, 0)),
            pl.BlockSpec((1, Cout), lambda b, i: (0, 0)),
            pl.BlockSpec((1, Cout), lambda b, i: (0, 0)),
        ],
        out_specs=pl.BlockSpec((1, TM, Cout), lambda b, i: (b, i, 0)),
        scratch_shapes=[pltpu.VMEM((k2 * HWin, Cout), jnp.bfloat16)],
        compiler_params=pltpu.CompilerParams(
            dimension_semantics=("parallel", "arbitrary")),
    )(x_cl, m_stacked, w_taps, bn_scale, bn_shift)

    out = out2d.reshape(B, Hout, Wout, Cout)
    return jnp.transpose(out, (0, 3, 1, 2))    # back to NCHW


# --------------------------------------------------------------------------------------
# independent pure-JAX reference (bilinear gather + lax.conv + BN + ELU) for verification
# --------------------------------------------------------------------------------------
def upconv_ref(x_nchw, params, *, scale, kernel_size, eps=EPS):
    x = jnp.transpose(x_nchw, (0, 2, 3, 1)).astype(jnp.float32)
    B, Hin, Win, Cin = x.shape
    Hout, Wout = Hin * scale, Win * scale

    def axis_coords(n_in, n_out):
        if n_out == 1 or n_in == 1:
            z = jnp.zeros((n_out,), jnp.int32)
            return z, z, jnp.zeros((n_out,), jnp.float32)
        c = jnp.arange(n_out, dtype=jnp.float32) * ((n_in - 1) / (n_out - 1))
        i0 = jnp.clip(jnp.floor(c).astype(jnp.int32), 0, n_in - 1)
        i1 = jnp.minimum(i0 + 1, n_in - 1)
        return i0, i1, c - i0.astype(jnp.float32)

    h0, h1, fh = axis_coords(Hin, Hout)
    w0, w1, fw = axis_coords(Win, Wout)
    xh = (jnp.take(x, h0, axis=1) * (1.0 - fh)[None, :, None, None]
          + jnp.take(x, h1, axis=1) * fh[None, :, None, None])
    xu = (jnp.take(xh, w0, axis=2) * (1.0 - fw)[None, None, :, None]
          + jnp.take(xh, w1, axis=2) * fw[None, None, :, None])

    p = (kernel_size - 1) // 2
    wk = jnp.transpose(params['conv_w'], (2, 3, 1, 0))        # HWIO
    y = jax.lax.conv_general_dilated(xu, wk, (1, 1), ((p, p), (p, p)),
                                     dimension_numbers=('NHWC', 'HWIO', 'NHWC'))
    y = y + params['conv_b']
    y = ((y - params['bn_mean']) * jax.lax.rsqrt(params['bn_var'] + eps)
         * params['bn_gamma'] + params['bn_beta'])
    y = jnp.where(y > 0.0, y, jnp.expm1(y))
    return jnp.transpose(y, (0, 3, 1, 2))


# --------------------------------------------------------------------------------------
if __name__ == "__main__":
    key = jax.random.PRNGKey(0)
    kx, kw, kb, kg, kbt, km, kv = jax.random.split(key, 7)

    B, CIN, COUT = 2, 32, 128
    H = W = 16
    K, SCALE = 3, 2

    x = jax.random.normal(kx, (B, CIN, H, W), jnp.float32)
    params = {
        'conv_w': 0.05 * jax.random.normal(kw, (COUT, CIN, K, K), jnp.float32),
        'conv_b': 0.05 * jax.random.normal(kb, (COUT,), jnp.float32),
        'bn_gamma': 1.0 + 0.1 * jax.random.normal(kg, (COUT,), jnp.float32),
        'bn_beta': 0.05 * jax.random.normal(kbt, (COUT,), jnp.float32),
        'bn_mean': 0.1 * jax.random.normal(km, (COUT,), jnp.float32),
        'bn_var': 1.0 + 0.1 * jnp.abs(jax.random.normal(kv, (COUT,), jnp.float32)),
    }

    fwd = jax.jit(functools.partial(upconv_pallas, scale=SCALE, kernel_size=K))
    out = jax.block_until_ready(fwd(x, params))
    assert out.shape == (B, COUT, H * SCALE, W * SCALE)

    with jax.default_matmul_precision("highest"):
        ref = jax.block_until_ready(
            jax.jit(functools.partial(upconv_ref, scale=SCALE, kernel_size=K))(x, params))

    # bf16 matmul operands / bf16 z-cache with f32 accumulation -> allow ~1% relative error
    np.testing.assert_allclose(np.asarray(out), np.asarray(ref), atol=4e-2, rtol=4e-2)
    print("KERNEL_OK")
</pallas_src>

<mosaic_0001>
module attributes {stable_mosaic.version = 11 : i64} {
  func.func @_upconv_kernel(%arg0: i32, %arg1: i32, %arg2: memref<1x256x32xbf16, #tpu.memory_space<vmem>>, %arg3: memref<512x2304xbf16, #tpu.memory_space<vmem>>, %arg4: memref<9x32x128xbf16, #tpu.memory_space<vmem>>, %arg5: memref<1x128xf32, #tpu.memory_space<vmem>>, %arg6: memref<1x128xf32, #tpu.memory_space<vmem>>, %arg7: memref<1x512x128xf32, #tpu.memory_space<vmem>>, %arg8: memref<2304x128xbf16, #tpu.memory_space<vmem>>) attributes {dimension_semantics = [#tpu.dimension_semantics<parallel>, #tpu.dimension_semantics<arbitrary>], iteration_bounds = array<i64: 2, 2>, scalar_prefetch = 0 : i64, scratch_operands = 1 : i64, tpu.core_type = #tpu.core_type<tc>, window_params = [{transform_indices = @transform_0, window_bounds = array<i64: 1, 256, 32>}, {transform_indices = @transform_1, window_bounds = array<i64: 512, 2304>}, {pipeline_mode = #tpu.pipeline_mode<synchronous>, transform_indices = @transform_2, window_bounds = array<i64: 9, 32, 128>}, {pipeline_mode = #tpu.pipeline_mode<synchronous>, transform_indices = @transform_3, window_bounds = array<i64: 1, 128>}, {pipeline_mode = #tpu.pipeline_mode<synchronous>, transform_indices = @transform_4, window_bounds = array<i64: 1, 128>}, {transform_indices = @transform_5, window_bounds = array<i64: 1, 512, 128>}]} {
    %c0_i32 = arith.constant 0 : i32
    %0 = arith.cmpi eq, %arg1, %c0_i32 : i32
    %1 = arith.extui %0 : i1 to i32
    %c0_i32_0 = arith.constant 0 : i32
    %2 = arith.cmpi ne, %1, %c0_i32_0 : i32
    scf.if %2 {
      %c0_14 = arith.constant 0 : index
      %c0_15 = arith.constant 0 : index
      %c0_16 = arith.constant 0 : index
      %23 = vector.load %arg2[%c0_14, %c0_15, %c0_16] : memref<1x256x32xbf16, #tpu.memory_space<vmem>>, vector<1x256x32xbf16>
      %24 = vector.shape_cast %23 : vector<1x256x32xbf16> to vector<256x32xbf16>
      %c0_17 = arith.constant 0 : index
      %c0_18 = arith.constant 0 : index
      %c0_19 = arith.constant 0 : index
      %25 = vector.load %arg4[%c0_17, %c0_18, %c0_19] : memref<9x32x128xbf16, #tpu.memory_space<vmem>>, vector<1x32x128xbf16>
      %26 = vector.shape_cast %25 : vector<1x32x128xbf16> to vector<32x128xbf16>
      %cst_20 = arith.constant dense<0.000000e+00> : vector<256x128xf32>
      %27 = tpu.matmul %24, %26, %cst_20 {dimension_numbers = #tpu.dot_dimension_numbers<[1], [0], [0], [1], [0, 0, 1, 1], [], []>} : vector<256x32xbf16>, vector<32x128xbf16>, vector<256x128xf32> -> vector<256x128xf32>
      %28 = arith.truncf %27 : vector<256x128xf32> to vector<256x128xbf16>
      %c0_21 = arith.constant 0 : index
      %c0_22 = arith.constant 0 : index
      %29 = vector.load %arg8[%c0_21, %c0_22] : memref<2304x128xbf16, #tpu.memory_space<vmem>>, vector<256x128xbf16>
      tpu.vector_store %arg8[%c0_21, %c0_22], %28 {strides = array<i32>} : memref<2304x128xbf16, #tpu.memory_space<vmem>>, vector<256x128xbf16>,
      %c1 = arith.constant 1 : index
      %c0_23 = arith.constant 0 : index
      %c0_24 = arith.constant 0 : index
      %30 = vector.load %arg4[%c1, %c0_23, %c0_24] : memref<9x32x128xbf16, #tpu.memory_space<vmem>>, vector<1x32x128xbf16>
      %31 = vector.shape_cast %30 : vector<1x32x128xbf16> to vector<32x128xbf16>
      %cst_25 = arith.constant dense<0.000000e+00> : vector<256x128xf32>
      %32 = tpu.matmul %24, %31, %cst_25 {dimension_numbers = #tpu.dot_dimension_numbers<[1], [0], [0], [1], [0, 0, 1, 1], [], []>} : vector<256x32xbf16>, vector<32x128xbf16>, vector<256x128xf32> -> vector<256x128xf32>
      %33 = arith.truncf %32 : vector<256x128xf32> to vector<256x128xbf16>
      %c256 = arith.constant 256 : index
      %c0_26 = arith.constant 0 : index
      %34 = vector.load %arg8[%c256, %c0_26] : memref<2304x128xbf16, #tpu.memory_space<vmem>>, vector<256x128xbf16>
      tpu.vector_store %arg8[%c256, %c0_26], %33 {strides = array<i32>} : memref<2304x128xbf16, #tpu.memory_space<vmem>>, vector<256x128xbf16>,
      %c2 = arith.constant 2 : index
      %c0_27 = arith.constant 0 : index
      %c0_28 = arith.constant 0 : index
      %35 = vector.load %arg4[%c2, %c0_27, %c0_28] : memref<9x32x128xbf16, #tpu.memory_space<vmem>>, vector<1x32x128xbf16>
      %36 = vector.shape_cast %35 : vector<1x32x128xbf16> to vector<32x128xbf16>
      %cst_29 = arith.constant dense<0.000000e+00> : vector<256x128xf32>
      %37 = tpu.matmul %24, %36, %cst_29 {dimension_numbers = #tpu.dot_dimension_numbers<[1], [0], [0], [1], [0, 0, 1, 1], [], []>} : vector<256x32xbf16>, vector<32x128xbf16>, vector<256x128xf32> -> vector<256x128xf32>
      %38 = arith.truncf %37 : vector<256x128xf32> to vector<256x128xbf16>
      %c512 = arith.constant 512 : index
      %c0_30 = arith.constant 0 : index
      %39 = vector.load %arg8[%c512, %c0_30] : memref<2304x128xbf16, #tpu.memory_space<vmem>>, vector<256x128xbf16>
      tpu.vector_store %arg8[%c512, %c0_30], %38 {strides = array<i32>} : memref<2304x128xbf16, #tpu.memory_space<vmem>>, vector<256x128xbf16>,
      %c3 = arith.constant 3 : index
      %c0_31 = arith.constant 0 : index
      %c0_32 = arith.constant 0 : index
      %40 = vector.load %arg4[%c3, %c0_31, %c0_32] : memref<9x32x128xbf16, #tpu.memory_space<vmem>>, vector<1x32x128xbf16>
      %41 = vector.shape_cast %40 : vector<1x32x128xbf16> to vector<32x128xbf16>
      %cst_33 = arith.constant dense<0.000000e+00> : vector<256x128xf32>
      %42 = tpu.matmul %24, %41, %cst_33 {dimension_numbers = #tpu.dot_dimension_numbers<[1], [0], [0], [1], [0, 0, 1, 1], [], []>} : vector<256x32xbf16>, vector<32x128xbf16>, vector<256x128xf32> -> vector<256x128xf32>
      %43 = arith.truncf %42 : vector<256x128xf32> to vector<256x128xbf16>
      %c768 = arith.constant 768 : index
      %c0_34 = arith.constant 0 : index
      %44 = vector.load %arg8[%c768, %c0_34] : memref<2304x128xbf16, #tpu.memory_space<vmem>>, vector<256x128xbf16>
      tpu.vector_store %arg8[%c768, %c0_34], %43 {strides = array<i32>} : memref<2304x128xbf16, #tpu.memory_space<vmem>>, vector<256x128xbf16>,
      %c4 = arith.constant 4 : index
      %c0_35 = arith.constant 0 : index
      %c0_36 = arith.constant 0 : index
      %45 = vector.load %arg4[%c4, %c0_35, %c0_36] : memref<9x32x128xbf16, #tpu.memory_space<vmem>>, vector<1x32x128xbf16>
      %46 = vector.shape_cast %45 : vector<1x32x128xbf16> to vector<32x128xbf16>
      %cst_37 = arith.constant dense<0.000000e+00> : vector<256x128xf32>
      %47 = tpu.matmul %24, %46, %cst_37 {dimension_numbers = #tpu.dot_dimension_numbers<[1], [0], [0], [1], [0, 0, 1, 1], [], []>} : vector<256x32xbf16>, vector<32x128xbf16>, vector<256x128xf32> -> vector<256x128xf32>
      %48 = arith.truncf %47 : vector<256x128xf32> to vector<256x128xbf16>
      %c1024 = arith.constant 1024 : index
      %c0_38 = arith.constant 0 : index
      %49 = vector.load %arg8[%c1024, %c0_38] : memref<2304x128xbf16, #tpu.memory_space<vmem>>, vector<256x128xbf16>
      tpu.vector_store %arg8[%c1024, %c0_38], %48 {strides = array<i32>} : memref<2304x128xbf16, #tpu.memory_space<vmem>>, vector<256x128xbf16>,
      %c5 = arith.constant 5 : index
      %c0_39 = arith.constant 0 : index
      %c0_40 = arith.constant 0 : index
      %50 = vector.load %arg4[%c5, %c0_39, %c0_40] : memref<9x32x128xbf16, #tpu.memory_space<vmem>>, vector<1x32x128xbf16>
      %51 = vector.shape_cast %50 : vector<1x32x128xbf16> to vector<32x128xbf16>
      %cst_41 = arith.constant dense<0.000000e+00> : vector<256x128xf32>
      %52 = tpu.matmul %24, %51, %cst_41 {dimension_numbers = #tpu.dot_dimension_numbers<[1], [0], [0], [1], [0, 0, 1, 1], [], []>} : vector<256x32xbf16>, vector<32x128xbf16>, vector<256x128xf32> -> vector<256x128xf32>
      %53 = arith.truncf %52 : vector<256x128xf32> to vector<256x128xbf16>
      %c1280 = arith.constant 1280 : index
      %c0_42 = arith.constant 0 : index
      %54 = vector.load %arg8[%c1280, %c0_42] : memref<2304x128xbf16, #tpu.memory_space<vmem>>, vector<256x128xbf16>
      tpu.vector_store %arg8[%c1280, %c0_42], %53 {strides = array<i32>} : memref<2304x128xbf16, #tpu.memory_space<vmem>>, vector<256x128xbf16>,
      %c6 = arith.constant 6 : index
      %c0_43 = arith.constant 0 : index
      %c0_44 = arith.constant 0 : index
      %55 = vector.load %arg4[%c6, %c0_43, %c0_44] : memref<9x32x128xbf16, #tpu.memory_space<vmem>>, vector<1x32x128xbf16>
      %56 = vector.shape_cast %55 : vector<1x32x128xbf16> to vector<32x128xbf16>
      %cst_45 = arith.constant dense<0.000000e+00> : vector<256x128xf32>
      %57 = tpu.matmul %24, %56, %cst_45 {dimension_numbers = #tpu.dot_dimension_numbers<[1], [0], [0], [1], [0, 0, 1, 1], [], []>} : vector<256x32xbf16>, vector<32x128xbf16>, vector<256x128xf32> -> vector<256x128xf32>
      %58 = arith.truncf %57 : vector<256x128xf32> to vector<256x128xbf16>
      %c1536 = arith.constant 1536 : index
      %c0_46 = arith.constant 0 : index
      %59 = vector.load %arg8[%c1536, %c0_46] : memref<2304x128xbf16, #tpu.memory_space<vmem>>, vector<256x128xbf16>
      tpu.vector_store %arg8[%c1536, %c0_46], %58 {strides = array<i32>} : memref<2304x128xbf16, #tpu.memory_space<vmem>>, vector<256x128xbf16>,
      %c7 = arith.constant 7 : index
      %c0_47 = arith.constant 0 : index
      %c0_48 = arith.constant 0 : index
      %60 = vector.load %arg4[%c7, %c0_47, %c0_48] : memref<9x32x128xbf16, #tpu.memory_space<vmem>>, vector<1x32x128xbf16>
      %61 = vector.shape_cast %60 : vector<1x32x128xbf16> to vector<32x128xbf16>
      %cst_49 = arith.constant dense<0.000000e+00> : vector<256x128xf32>
      %62 = tpu.matmul %24, %61, %cst_49 {dimension_numbers = #tpu.dot_dimension_numbers<[1], [0], [0], [1], [0, 0, 1, 1], [], []>} : vector<256x32xbf16>, vector<32x128xbf16>, vector<256x128xf32> -> vector<256x128xf32>
      %63 = arith.truncf %62 : vector<256x128xf32> to vector<256x128xbf16>
      %c1792 = arith.constant 1792 : index
      %c0_50 = arith.constant 0 : index
      %64 = vector.load %arg8[%c1792, %c0_50] : memref<2304x128xbf16, #tpu.memory_space<vmem>>, vector<256x128xbf16>
      tpu.vector_store %arg8[%c1792, %c0_50], %63 {strides = array<i32>} : memref<2304x128xbf16, #tpu.memory_space<vmem>>, vector<256x128xbf16>,
      %c8 = arith.constant 8 : index
      %c0_51 = arith.constant 0 : index
      %c0_52 = arith.constant 0 : index
      %65 = vector.load %arg4[%c8, %c0_51, %c0_52] : memref<9x32x128xbf16, #tpu.memory_space<vmem>>, vector<1x32x128xbf16>
      %66 = vector.shape_cast %65 : vector<1x32x128xbf16> to vector<32x128xbf16>
      %cst_53 = arith.constant dense<0.000000e+00> : vector<256x128xf32>
      %67 = tpu.matmul %24, %66, %cst_53 {dimension_numbers = #tpu.dot_dimension_numbers<[1], [0], [0], [1], [0, 0, 1, 1], [], []>} : vector<256x32xbf16>, vector<32x128xbf16>, vector<256x128xf32> -> vector<256x128xf32>
      %68 = arith.truncf %67 : vector<256x128xf32> to vector<256x128xbf16>
      %c2048 = arith.constant 2048 : index
      %c0_54 = arith.constant 0 : index
      %69 = vector.load %arg8[%c2048, %c0_54] : memref<2304x128xbf16, #tpu.memory_space<vmem>>, vector<256x128xbf16>
      tpu.vector_store %arg8[%c2048, %c0_54], %68 {strides = array<i32>} : memref<2304x128xbf16, #tpu.memory_space<vmem>>, vector<256x128xbf16>,
    } else {
    }
    %c0 = arith.constant 0 : index
    %c0_1 = arith.constant 0 : index
    %3 = vector.load %arg3[%c0, %c0_1] : memref<512x2304xbf16, #tpu.memory_space<vmem>>, vector<512x2304xbf16>
    %c0_2 = arith.constant 0 : index
    %c0_3 = arith.constant 0 : index
    %4 = vector.load %arg8[%c0_2, %c0_3] : memref<2304x128xbf16, #tpu.memory_space<vmem>>, vector<2304x128xbf16>
    %cst = arith.constant dense<0.000000e+00> : vector<512x128xf32>
    %5 = tpu.matmul %3, %4, %cst {dimension_numbers = #tpu.dot_dimension_numbers<[1], [0], [0], [1], [0, 0, 1, 1], [], []>} : vector<512x2304xbf16>, vector<2304x128xbf16>, vector<512x128xf32> -> vector<512x128xf32>
    %c0_4 = arith.constant 0 : index
    %c0_5 = arith.constant 0 : index
    %6 = vector.load %arg5[%c0_4, %c0_5] : memref<1x128xf32, #tpu.memory_space<vmem>>, vector<1x128xf32>
    %7 = vector.broadcast %6 : vector<1x128xf32> to vector<512x128xf32>
    %8 = arith.mulf %5, %7 : vector<512x128xf32>
    %c0_6 = arith.constant 0 : index
    %c0_7 = arith.constant 0 : index
    %9 = vector.load %arg6[%c0_6, %c0_7] : memref<1x128xf32, #tpu.memory_space<vmem>>, vector<1x128xf32>
    %10 = vector.broadcast %9 : vector<1x128xf32> to vector<512x128xf32>
    %11 = arith.addf %8, %10 : vector<512x128xf32>
    %cst_8 = arith.constant 0.000000e+00 : f32
    %12 = vector.broadcast %cst_8 : f32 to vector<512x128xf32>
    %13 = arith.cmpf ogt, %11, %12 : vector<512x128xf32>
    %cst_9 = arith.constant 0.000000e+00 : f32
    %14 = vector.broadcast %cst_9 : f32 to vector<512x128xf32>
    %15 = arith.minimumf %11, %14 : vector<512x128xf32>
    %16 = math.exp %15 : vector<512x128xf32>
    %cst_10 = arith.constant 1.000000e+00 : f32
    %17 = vector.broadcast %cst_10 : f32 to vector<512x128xf32>
    %18 = arith.subf %16, %17 : vector<512x128xf32>
    %19 = arith.select %13, %11, %18 : vector<512x128xi1>, vector<512x128xf32>
    %c0_11 = arith.constant 0 : index
    %c0_12 = arith.constant 0 : index
    %c0_13 = arith.constant 0 : index
    %20 = vector.load %arg7[%c0_11, %c0_12, %c0_13] : memref<1x512x128xf32, #tpu.memory_space<vmem>>, vector<1x512x128xf32>
    %21 = vector.shape_cast %20 : vector<1x512x128xf32> to vector<512x128xf32>
    %22 = vector.shape_cast %19 : vector<512x128xf32> to vector<1x512x128xf32>
    tpu.vector_store %arg7[%c0_11, %c0_12, %c0_13], %22 {strides = array<i32>} : memref<1x512x128xf32, #tpu.memory_space<vmem>>, vector<1x512x128xf32>,
    return
  }
  func.func @transform_0(%arg0: i32, %arg1: i32) -> (i32, i32, i32) {
    %c0_i32 = arith.constant 0 : i32
    %c0_i32_0 = arith.constant 0 : i32
    %c0_i32_1 = arith.constant 0 : i32
    return %arg0, %c0_i32, %c0_i32_0 : i32, i32, i32
  }
  func.func @transform_1(%arg0: i32, %arg1: i32) -> (i32, i32) {
    %c0_i32 = arith.constant 0 : i32
    %c0_i32_0 = arith.constant 0 : i32
    return %arg1, %c0_i32 : i32, i32
  }
  func.func @transform_2(%arg0: i32, %arg1: i32) -> (i32, i32, i32) {
    %c0_i32 = arith.constant 0 : i32
    %c0_i32_0 = arith.constant 0 : i32
    %c0_i32_1 = arith.constant 0 : i32
    %c0_i32_2 = arith.constant 0 : i32
    return %c0_i32, %c0_i32_0, %c0_i32_1 : i32, i32, i32
  }
  func.func @transform_3(%arg0: i32, %arg1: i32) -> (i32, i32) {
    %c0_i32 = arith.constant 0 : i32
    %c0_i32_0 = arith.constant 0 : i32
    %c0_i32_1 = arith.constant 0 : i32
    return %c0_i32, %c0_i32_0 : i32, i32
  }
  func.func @transform_4(%arg0: i32, %arg1: i32) -> (i32, i32) {
    %c0_i32 = arith.constant 0 : i32
    %c0_i32_0 = arith.constant 0 : i32
    %c0_i32_1 = arith.constant 0 : i32
    return %c0_i32, %c0_i32_0 : i32, i32
  }
  func.func @transform_5(%arg0: i32, %arg1: i32) -> (i32, i32, i32) {
    %c0_i32 = arith.constant 0 : i32
    %c0_i32_0 = arith.constant 0 : i32
    return %arg0, %arg1, %c0_i32 : i32, i32, i32
  }
}

</mosaic_0001>

<bundles_post_ra>
// kernel: upconv_pallas.1
= control target key start
LH: loop header
LB: loop body
LE: loop exit
PB: predicated region body
PF: predicated region fallthrough
CT: control target
= control target key end

     0   :  { %10 = vsyncpa [#allocation4], 0  ;;  %s18380_s0 = inlined_call_operand.vmem [shape: bf16[2,256,32], index: 0, kind: input, shape index: {}]   ;;  %s18381_s1 = inlined_call_operand.hbm [shape: bf16[1024,2304], index: 1, kind: input, shape index: {}]   ;;  %s18382_s2 = inlined_call_operand.vmem [shape: bf16[9,32,128], index: 2, kind: input, shape index: {}]   ;;  %s18383_s3 = inlined_call_operand.vmem [shape: f32[1,128], index: 3, kind: input, shape index: {}]   ;;  %s18384_s4 = inlined_call_operand.vmem [shape: f32[1,128], index: 4, kind: input, shape index: {}]   ;;  %s18385_s5 = inlined_call_operand.hbm [shape: f32[2,1024,128], index: 5, kind: output, shape index: {}]  }
   0x1   :  { %12 = vsyncpa [#allocation4 + $0x1], 0 }
   0x2   :  { %13 = vsyncpa [#allocation5], 0 }
   0x3   :  { %15 = vsyncpa [#allocation5 + $0x1], 0  ;;  %s15677_s18 = smov 0   ;;  %s15679_s19 = smov 0  }
   0x4   :  { %s15681_s20 = smov 0   ;;  %s15683_s21 = smov 0  }
   0x5   :  { %s15685_s22 = smov 0   ;;  %s15687_s23 = smov 0  }
   0x6   :  { %s15689_s24 = smov 0   ;;  %s15691_s25 = smov 0  }
   0x7   :  { %s15693_s26 = smov 0   ;;  %s15695_s27 = smov 0  }
   0x8   :  { %s15697_s28 = smov 0  }
   0x9 LB: > { %18391 = sst [smem:[#allocation9_spill]] %s15621_s23  ;;  %s10328_s29 = sadd.s32 4294967295, %s15641_s28   ;;  %s15641_s28 = sphi %s15697_s28, %s21_s28   ;;  %s15637_s27 = sphi %s15695_s27, %s18610_s27   ;;  %s15633_s26 = sphi %s15693_s26, %s18609_s26   ;;  %s15629_s25 = sphi %s15691_s25, %s18608_s25   ;;  %s15625_s24 = sphi %s15689_s24, %s18607_s24   ;;  %s15621_s23 = sphi %s15687_s23, %s18616_s23   ;;  %s15617_s22 = sphi %s15685_s22, %s18615_s22   ;;  %s15613_s21 = sphi %s15683_s21, %s18614_s21   ;;  %s15609_s20 = sphi %s15681_s20, %s18613_s20   ;;  %s15605_s19 = sphi %s15679_s19, %s18612_s19   ;;  %s15601_s18 = sphi %s15677_s18, %s18611_s18  }
   0xa   : > { %18392 = sst [smem:[#allocation10_spill]] %s15633_s26  ;;  %s10329_s30 = sadd.s32 4294967294, %s15641_s28  }
   0xb   : > { %18393 = sst [smem:[#allocation11_spill]] %s15637_s27  ;;  %s30_s6 = sadd.s32 1, %s15633_s26 }
   0xc   : > { %s33_s7 = sadd.s32 1, %s15637_s27  ;;  %p31_p0 = scmp.ge.s32.totalorder %s30_s6, 2 }
   0xd   : > { %s66_s8 = sadd.s32 1, %s15621_s23  ;;  %p73_p1 = scmp.ne.s32.totalorder %s15621_s23, %s15617_s22 }
   0xe   : > { %p74_p2 = scmp.eq.s32.totalorder %s15641_s28, 0  ;;  %s18618_s6 = smov (%p31_p0, %s30_s6), 0 }
   0xf   : > { %18394 = sst [smem:[#allocation12_spill]] %s18618_s6  ;;  %s18620_s7 = smov (!%p31_p0, %s33_s7), %s15637_s27 }
  0x10   : > { %s63_s9 = ssub.s32 %s15633_s26, %s18618_s6  ;;  %p15743_p3 = por %p74_p2, %p73_p1 }
  0x11   : > { %p35_p4 = scmp.ge.s32.totalorder %s18620_s7, 2  ;;  %p64_p5 = scmp.eq.s32.totalorder %s63_s9, 0 }
  0x12   : > { %p79_p6 = scmp.ne.s32.totalorder %s15617_s22, %s15613_s21  ;;  %p80_p7 = scmp.eq.s32.totalorder %s10328_s29, 0 }
  0x13   : > { %s18622_s7 = smov (%p35_p4, %s18620_s7), 0  ;;  %s157_s15 = sadd.s32 1, %s15609_s20 }
  0x14   : > { %18396 = sst [smem:[#allocation13_spill]] %s18622_s7  ;;  %p15753_p8 = por %p80_p7, %p79_p6 }
  0x15   : > { %s15751_s11 = scalar_select %p64_p5, %s15621_s23, %s66_s8  }
  0x16   : > { %s152_s13 = ssub.s32 %s15637_s27, %s18622_s7  ;;  %p167_p10 = scmp.ne.s32.totalorder %s15609_s20, %s15605_s19 }
  0x17   : > { %18397 = sst [smem:[#allocation14_spill]] %s15751_s11  ;;  %s154_s14 = sor.u32 %s152_s13, %s63_s9 }
  0x18   : > { %p155_p9 = scmp.eq.s32.totalorder %s154_s14, 0  ;;  %p168_p11 = scmp.eq.s32.totalorder %s10328_s29, 3 }
  0x19   : > { %p173_p12 = scmp.ne.s32.totalorder %s15605_s19, %s15601_s18  ;;  %p174_p0 = scmp.eq.s32.totalorder %s10329_s30, 3 }
  0x1a   : > { %s15765_s16 = scalar_select %p155_p9, %s15609_s20, %s157_s15  }
  0x1b   : > { %p15767_p13 = por %p168_p11, %p167_p10  ;;  %p15257_p1 = scmp.lt.s32.totalorder %s15641_s28, 4 }
  0x1c   : > { %18399 = sst [smem:[#allocation15_spill]] %s15765_s16  ;;  %p15772_p2 = por %p174_p0, %p173_p12 }
  0x1d   : > { %s211_s8 = sand.u32 1, %s15621_s23   ;;  %s15243_s13 = smul.u32 4608, %s15633_s26 }
  0x1e   : > { %s15242_s9 = smul.u32 4608, %s211_s8  ;;  %p15250_p4 = pnand %p15257_p1, %p15743_p3 }
  0x1f   : > { %s221_s15 = scalar_lea.hbm %s18381_s1, %s15243_s13  ;;  %p10335_p5 = scmp.ge.s32.totalorder %s15641_s28, 1 }
  0x20   : > { %s215_s7 = scalar_lea.vmem [#allocation3], %s15242_s9  ;;  %s222_s27 = sshll.u32 %s221_s15, 4  ;;  %s223_s27 = int_to_ptr.hbm [resolvable:$true] %s222_s27 }
  0x21   : > { %s224_s6 = sshll.u32 %s215_s7, 4  ;;  %s212_s30 = scalar_lea.sflag [#allocation4], %s211_s8  ;;  %s225_s6 = int_to_ptr.vmem [resolvable:$true] %s224_s6 }
  0x22   : > { %s15643_s11 = smov 1152   ;;  %s15644_s16 = smov 72  }
  0x23   : > { %15252 = dma.hbm_to_vmem [thread:$0]  (!%p15250_p4), %s223_s27, 73728, %s225_s6, %s212_s30, %s15643_s11, %s15643_s11, %s15644_s16  }
  0x24   : > { %p232_p6 = scmp.lt.s32.totalorder %s15641_s28, 5 }
  0x26   : > { %p233_p7 = pnand %p10335_p5, %p232_p6 }
  0x28   : > { %236 = sbr.rel (%p233_p7) target bundleno = 3261 (0xcbd), region = 40 }
  0x2d   : > { %s238_s10 = sand.u32 1, %s15617_s22  }
  0x2e   : > { %s15244_s26 = smul.u32 4608, %s238_s10  ;;  %s239_s23 = scalar_lea.sflag [#allocation4], %s238_s10 }
  0x30   : > { %s15786_s29 = scalar_lea.vmem [#allocation3], %s15244_s26 }
  0x31   : > { %15592 = dma.done.wait (%p15753_p8), %s239_s23, 73728  }
  0x32   : > { %15594 = vsyncadd (%p15753_p8), %s239_s23, 4294893568  ;;  %s272_s27 = sand.u32 1, %s15605_s19   ;;  %p275_p3 = scmp.lt.s32.totalorder %s15629_s25, 1 }
  0x33   : > { %s10336_s6 = sshll.u32 %s272_s27, 9  ;;  %p10339_p9 = scmp.ne.s32.totalorder %s15625_s24, 0 }
  0x34   : > { %s276_s7 = scalar_select %p275_p3, %s15629_s25, 1 }
  0x35   : > { %s15802_s9 = scalar_lea.vmem [#allocation6], %s10336_s6  ;;  %286 = sbr.rel (%p10339_p9) target bundleno = 771 (0x303), region = 48 }
  0x36   : > { %s13602_s11 = sshll.u32 %s276_s7, 7 }
  0x37   : > { %s15800_s26 = scalar_lea.vmem %s18380_s0, %s13602_s11 }
  0x3a   : > { %v13620_v0 = vld [vmem:[%s18382_s2 + $0x8] sm:$0xff]  ;;  %v13619_v1 = vld [vmem:[%s18382_s2] sm:$0xff]  ;;  %v13626_v3 = vld [vmem:[%s18382_s2 + $0x38] sm:$0xff]  ;;  %vm415_vm0 = vcmask 261120  }
  0x3b   : > { %470 = vmatpush.bf16.msra.mxu0 %v13620_v0  ;;  %15220 = vmatpush.bf16.msra.mxu1 %v13620_v0  ;;  %v13624_v2 = vld [vmem:[%s18382_s2 + $0x28] sm:$0xff]  ;;  %v15818_v4 = vld [vmem:[%s15800_s26] sm:$0xff]  ;;  %v13622_v8 = vld [vmem:[%s18382_s2 + $0x18] sm:$0xff] }
  0x3c   : > { %15221 = vmatpush.bf16.msra.mxu2 %v13620_v0  ;;  %15222 = vmatpush.bf16.msra.mxu3 %v13620_v0  ;;  %v15821_v5 = vld [vmem:[%s15800_s26 + $0x20] sm:$0xff]  ;;  %v13628_v9 = vld [vmem:[%s18382_s2 + $0x48] sm:$0xff]  ;;  %v13625_v11 = vld [vmem:[%s18382_s2 + $0x30] sm:$0xff] }
  0x3d   : > { %v15824_v6 = vld [vmem:[%s15800_s26 + $0x40] sm:$0xff]  ;;  %v13621_v12 = vld [vmem:[%s18382_s2 + $0x10] sm:$0xff]  ;;  %v15856_v14 = vld [vmem:[%s15800_s26 + $0x8] sm:$0xff] }
  0x3e   : > { %v15827_v7 = vld [vmem:[%s15800_s26 + $0x60] sm:$0xff]  ;;  %v15859_v15 = vld [vmem:[%s15800_s26 + $0x28] sm:$0xff]  ;;  %v15876_v18 = vld [vmem:[%s15800_s26 + $0x10] sm:$0xff] }
  0x3f   : > { %471 = vmatpush.bf16.msra.mxu0 %v13619_v1  ;;  %15223 = vmatpush.bf16.msra.mxu1 %v13619_v1  ;;  %v13623_v10 = vld [vmem:[%s18382_s2 + $0x20] sm:$0xff]  ;;  %v15862_v16 = vld [vmem:[%s15800_s26 + $0x48] sm:$0xff]  ;;  %v15879_v19 = vld [vmem:[%s15800_s26 + $0x30] sm:$0xff] }
  0x40   : > { %15224 = vmatpush.bf16.msra.mxu2 %v13619_v1  ;;  %15225 = vmatpush.bf16.msra.mxu3 %v13619_v1  ;;  %v13627_v13 = vld [vmem:[%s18382_s2 + $0x40] sm:$0xff]  ;;  %v15865_v17 = vld [vmem:[%s15800_s26 + $0x68] sm:$0xff]  ;;  %v15882_v20 = vld [vmem:[%s15800_s26 + $0x50] sm:$0xff] }
  0x41   : > { %v15885_v21 = vld [vmem:[%s15800_s26 + $0x70] sm:$0xff]  ;;  %v13632_v22 = vld [vmem:[%s18382_s2 + $0x68] sm:$0xff]  ;;  %v13634_v23 = vld [vmem:[%s18382_s2 + $0x78] sm:$0xff] }
  0x42   : > { %10412 = vmatmul.msk.bf16.vlgmr.msra.gmra.mxu0 %vm415_vm0, %v15818_v4  ;;  %10416 = vmatmul.msk.bf16.vlgmr.msra.gmra.mxu1 %vm415_vm0, %v15821_v5  ;;  %v13630_v24 = vld [vmem:[%s18382_s2 + $0x58] sm:$0xff]  ;;  %v13636_v25 = vld [vmem:[%s18382_s2 + $0x88] sm:$0xff]  ;;  %v13631_v56 = vld [vmem:[%s18382_s2 + $0x60] sm:$0xff] }
  0x43   : > { %10420 = vmatmul.msk.bf16.vlgmr.msra.gmra.mxu2 %vm415_vm0, %v15824_v6  ;;  %10424 = vmatmul.msk.bf16.vlgmr.msra.gmra.mxu3 %vm415_vm0, %v15827_v7  ;;  %v15908_v26 = vld [vmem:[%s15800_s26 + $0x18] sm:$0xff]  ;;  %v13633_v57 = vld [vmem:[%s18382_s2 + $0x70] sm:$0xff]  ;;  %v13635_v1 = vld [vmem:[%s18382_s2 + $0x80] sm:$0xff] }
  0x44   : > { %810 = vmatpush.bf16.msrb.mxu2 %v13624_v2  ;;  %980 = vmatpush.bf16.msrb.mxu3 %v13626_v3  ;;  %v15911_v27 = vld [vmem:[%s15800_s26 + $0x38] sm:$0xff]  ;;  %v13629_v0 = vld [vmem:[%s18382_s2 + $0x50] sm:$0xff] }
  0x45   : > { %640 = vmatpush.bf16.msrb.mxu1 %v13622_v8  ;;  %1150 = vmatpush.bf16.msrb.mxu0 %v13628_v9  ;;  %v15914_v28 = vld [vmem:[%s15800_s26 + $0x58] sm:$0xff] }
  0x46   : > { %v15917_v29 = vld [vmem:[%s15800_s26 + $0x78] sm:$0xff] }
  0x48   : > { %811 = vmatpush.bf16.msrb.mxu2 %v13623_v10  ;;  %981 = vmatpush.bf16.msrb.mxu3 %v13625_v11 }
  0x49   : > { %641 = vmatpush.bf16.msrb.mxu1 %v13621_v12  ;;  %1151 = vmatpush.bf16.msrb.mxu0 %v13627_v13 }
  0x4c   : > { %1490 = vmatpush.bf16.msra.mxu2 %v13632_v22  ;;  %1660 = vmatpush.bf16.msra.mxu3 %v13634_v23 }
  0x4d   : > { %1320 = vmatpush.bf16.msra.mxu1 %v13630_v24  ;;  %1830 = vmatpush.bf16.msra.mxu0 %v13636_v25 }
  0x50   : > { %1491 = vmatpush.bf16.msra.mxu2 %v13631_v56  ;;  %1661 = vmatpush.bf16.msra.mxu3 %v13633_v57 }
  0x51   : > { %1321 = vmatpush.bf16.msra.mxu1 %v13629_v0  ;;  %1831 = vmatpush.bf16.msra.mxu0 %v13635_v1 }
  0x52   : > { %10413 = vmatmul.msk.bf16.gmra.mxu0 %vm415_vm0, %v15856_v14  ;;  %10417 = vmatmul.msk.bf16.gmra.mxu1 %vm415_vm0, %v15859_v15 }
  0x53   : > { %10421 = vmatmul.msk.bf16.gmra.mxu2 %vm415_vm0, %v15862_v16  ;;  %10425 = vmatmul.msk.bf16.gmra.mxu3 %vm415_vm0, %v15865_v17 }
  0x62   : > { %10414 = vmatmul.msk.bf16.gmra.mxu0 %vm415_vm0, %v15876_v18  ;;  %10418 = vmatmul.msk.bf16.gmra.mxu1 %vm415_vm0, %v15879_v19 }
  0x63   : > { %10422 = vmatmul.msk.bf16.gmra.mxu2 %vm415_vm0, %v15882_v20  ;;  %10426 = vmatmul.msk.bf16.gmra.mxu3 %vm415_vm0, %v15885_v21 }
  0x72   : > { %10415 = vmatmul.msk.bf16.gmra.mxu0 %vm415_vm0, %v15908_v26  ;;  %10419 = vmatmul.msk.bf16.gmra.mxu1 %vm415_vm0, %v15911_v27 }
  0x73   : > { %10423 = vmatmul.msk.bf16.gmra.mxu2 %vm415_vm0, %v15914_v28  ;;  %10427 = vmatmul.msk.bf16.gmra.mxu3 %vm415_vm0, %v15917_v29 }
  0x82   : > { %10440 = vmatmul.msk.bf16.vlgmr.msrb.gmra.mxu1 %vm415_vm0, %v15818_v4  ;;  %10524 = vmatmul.msk.bf16.vlgmr.msrb.gmra.mxu0 %vm415_vm0, %v15818_v4 }
  0x83   : > { %10468 = vmatmul.msk.bf16.vlgmr.msrb.gmra.mxu2 %vm415_vm0, %v15818_v4  ;;  %10496 = vmatmul.msk.bf16.vlgmr.msrb.gmra.mxu3 %vm415_vm0, %v15818_v4 }
  0x92   : > { %10441 = vmatmul.msk.bf16.gmra.mxu1 %vm415_vm0, %v15856_v14  ;;  %10525 = vmatmul.msk.bf16.gmra.mxu0 %vm415_vm0, %v15856_v14 }
  0x93   : > { %10469 = vmatmul.msk.bf16.gmra.mxu2 %vm415_vm0, %v15856_v14  ;;  %10497 = vmatmul.msk.bf16.gmra.mxu3 %vm415_vm0, %v15856_v14 }
  0xa2   : > { %10442 = vmatmul.msk.bf16.gmra.mxu1 %vm415_vm0, %v15876_v18  ;;  %10526 = vmatmul.msk.bf16.gmra.mxu0 %vm415_vm0, %v15876_v18 }
  0xa3   : > { %10470 = vmatmul.msk.bf16.gmra.mxu2 %vm415_vm0, %v15876_v18  ;;  %10498 = vmatmul.msk.bf16.gmra.mxu3 %vm415_vm0, %v15876_v18 }
  0xb2   : > { %10443 = vmatmul.msk.bf16.gmra.mxu1 %vm415_vm0, %v15908_v26  ;;  %10527 = vmatmul.msk.bf16.gmra.mxu0 %vm415_vm0, %v15908_v26 }
  0xb3   : > { %10471 = vmatmul.msk.bf16.gmra.mxu2 %vm415_vm0, %v15908_v26  ;;  %10499 = vmatmul.msk.bf16.gmra.mxu3 %vm415_vm0, %v15908_v26 }
  0xbf   : > { %v473_v30 = vpop.f32.mrf.mxu0  ;;  %v493_v31 = vpop.f32.mrf.mxu1 }
  0xc2   : > { %10444 = vmatmul.msk.bf16.gmra.mxu1 %vm415_vm0, %v15821_v5  ;;  %10528 = vmatmul.msk.bf16.gmra.mxu0 %vm415_vm0, %v15821_v5 }
  0xc3   : > { %10472 = vmatmul.msk.bf16.gmra.mxu2 %vm415_vm0, %v15821_v5  ;;  %10500 = vmatmul.msk.bf16.gmra.mxu3 %vm415_vm0, %v15821_v5 }
  0xc6   : > { %v513_v32 = vpop.f32.mrf.mxu2  ;;  %v533_v33 = vpop.f32.mrf.mxu3 }
  0xc7   : > { %v475_v34 = vpop.f32.mrf.mxu0  ;;  %v495_v35 = vpop.f32.mrf.mxu1 }
  0xc8   : > { %v14360_v36 = vpack.c.bf16 %v475_v34, %v473_v30  ;;  %v14380_v37 = vpack.c.bf16 %v495_v35, %v493_v31 }
  0xca   : > { %14361 = vst [vmem:[#allocation2 + $0x2b0] sm:$0xff] %v14360_v36  }
  0xcb   : > { %15080 = vst [vmem:[#allocation2 + $0x320] sm:$0xff] %v14380_v37  }
  0xce   : > { %v515_v38 = vpop.f32.mrf.mxu2  ;;  %v535_v39 = vpop.f32.mrf.mxu3 }
  0xcf   : > { %v14400_v40 = vpack.c.bf16 %v515_v38, %v513_v32  ;;  %v14420_v41 = vpack.c.bf16 %v535_v39, %v533_v33  ;;  %v478_v42 = vpop.f32.mrf.mxu0  ;;  %v498_v43 = vpop.f32.mrf.mxu1 }
  0xd1   : > { %15084 = vst [vmem:[#allocation2 + $0x300] sm:$0xff] %v14400_v40  }
  0xd2   : > { %15088 = vst [vmem:[#allocation2 + $0x48] sm:$0xff] %v14420_v41   ;;  %10445 = vmatmul.msk.bf16.gmra.mxu1 %vm415_vm0, %v15859_v15  ;;  %10529 = vmatmul.msk.bf16.gmra.mxu0 %vm415_vm0, %v15859_v15 }
  0xd3   : > { %10473 = vmatmul.msk.bf16.gmra.mxu2 %vm415_vm0, %v15859_v15  ;;  %10501 = vmatmul.msk.bf16.gmra.mxu3 %vm415_vm0, %v15859_v15 }
  0xd6   : > { %v518_v44 = vpop.f32.mrf.mxu2  ;;  %v538_v45 = vpop.f32.mrf.mxu3 }
  0xd7   : > { %v480_v46 = vpop.f32.mrf.mxu0  ;;  %v500_v47 = vpop.f32.mrf.mxu1 }
  0xd8   : > { %v14365_v48 = vpack.c.bf16 %v480_v46, %v478_v42  ;;  %v14385_v49 = vpack.c.bf16 %v500_v47, %v498_v43 }
  0xda   : > { %15077 = vst [vmem:[#allocation2 + $0x3b0] sm:$0xff] %v14365_v48  }
  0xdb   : > { %15081 = vst [vmem:[#allocation2 + $0x438] sm:$0xff] %v14385_v49  }
  0xde   : > { %v520_v50 = vpop.f32.mrf.mxu2  ;;  %v540_v51 = vpop.f32.mrf.mxu3 }
  0xdf   : > { %v14405_v52 = vpack.c.bf16 %v520_v50, %v518_v44  ;;  %v14425_v53 = vpack.c.bf16 %v540_v51, %v538_v45  ;;  %v483_v54 = vpop.f32.mrf.mxu0  ;;  %v503_v55 = vpop.f32.mrf.mxu1 }
  0xe1   : > { %15085 = vst [vmem:[#allocation2 + $0x2f0] sm:$0xff] %v14405_v52  }
  0xe2   : > { %15089 = vst [vmem:[#allocation2 + $0xc0] sm:$0xff] %v14425_v53   ;;  %10446 = vmatmul.msk.bf16.gmra.mxu1 %vm415_vm0, %v15879_v19  ;;  %10530 = vmatmul.msk.bf16.gmra.mxu0 %vm415_vm0, %v15879_v19 }
  0xe3   : > { %10474 = vmatmul.msk.bf16.gmra.mxu2 %vm415_vm0, %v15879_v19  ;;  %10502 = vmatmul.msk.bf16.gmra.mxu3 %vm415_vm0, %v15879_v19 }
  0xe6   : > { %v523_v58 = vpop.f32.mrf.mxu2  ;;  %v543_v59 = vpop.f32.mrf.mxu3 }
  0xe7   : > { %v485_v60 = vpop.f32.mrf.mxu0  ;;  %v505_v61 = vpop.f32.mrf.mxu1 }
  0xe8   : > { %v14370_v62 = vpack.c.bf16 %v485_v60, %v483_v54  ;;  %v14390_v63 = vpack.c.bf16 %v505_v61, %v503_v55 }
  0xea   : > { %15078 = vst [vmem:[#allocation2 + $0x10] sm:$0xff] %v14370_v62  }
  0xeb   : > { %15082 = vst [vmem:[#allocation2 + $0x370] sm:$0xff] %v14390_v63  }
  0xee   : > { %v525_v2 = vpop.f32.mrf.mxu2  ;;  %v545_v3 = vpop.f32.mrf.mxu3 }
  0xef   : > { %v14410_v8 = vpack.c.bf16 %v525_v2, %v523_v58  ;;  %v14430_v9 = vpack.c.bf16 %v545_v3, %v543_v59  ;;  %v488_v10 = vpop.f32.mrf.mxu0  ;;  %v508_v11 = vpop.f32.mrf.mxu1 }
  0xf1   : > { %15086 = vst [vmem:[#allocation2 + $0x290] sm:$0xff] %v14410_v8  }
  0xf2   : > { %15090 = vst [vmem:[#allocation2 + $0x30] sm:$0xff] %v14430_v9   ;;  %10447 = vmatmul.msk.bf16.gmra.mxu1 %vm415_vm0, %v15911_v27  ;;  %10531 = vmatmul.msk.bf16.gmra.mxu0 %vm415_vm0, %v15911_v27 }
  0xf3   : > { %10475 = vmatmul.msk.bf16.gmra.mxu2 %vm415_vm0, %v15911_v27  ;;  %10503 = vmatmul.msk.bf16.gmra.mxu3 %vm415_vm0, %v15911_v27 }
  0xf6   : > { %v528_v12 = vpop.f32.mrf.mxu2  ;;  %v548_v13 = vpop.f32.mrf.mxu3 }
  0xf7   : > { %v490_v22 = vpop.f32.mrf.mxu0  ;;  %v510_v23 = vpop.f32.mrf.mxu1 }
  0xf8   : > { %v14375_v24 = vpack.c.bf16 %v490_v22, %v488_v10  ;;  %v14395_v25 = vpack.c.bf16 %v510_v23, %v508_v11 }
  0xfa   : > { %15079 = vst [vmem:[#allocation2 + $0x448] sm:$0xff] %v14375_v24  }
  0xfb   : > { %15083 = vst [vmem:[#allocation2 + $0x100] sm:$0xff] %v14395_v25  }
  0xfe   : > { %v530_v30 = vpop.f32.mrf.mxu2  ;;  %v550_v31 = vpop.f32.mrf.mxu3 }
  0xff   : > { %v14415_v32 = vpack.c.bf16 %v530_v30, %v528_v12  ;;  %v14435_v33 = vpack.c.bf16 %v550_v31, %v548_v13  ;;  %v643_v34 = vpop.f32.mrf.mxu1  ;;  %v1153_v35 = vpop.f32.mrf.mxu0 }
 0x101   : > { %15087 = vst [vmem:[#allocation2 + $0x380] sm:$0xff] %v14415_v32  }
 0x102   : > { %15091 = vst [vmem:[#allocation2 + $0x148] sm:$0xff] %v14435_v33   ;;  %10448 = vmatmul.msk.bf16.gmra.mxu1 %vm415_vm0, %v15824_v6  ;;  %10532 = vmatmul.msk.bf16.gmra.mxu0 %vm415_vm0, %v15824_v6 }
 0x103   : > { %10476 = vmatmul.msk.bf16.gmra.mxu2 %vm415_vm0, %v15824_v6  ;;  %10504 = vmatmul.msk.bf16.gmra.mxu3 %vm415_vm0, %v15824_v6 }
 0x106   : > { %v813_v36 = vpop.f32.mrf.mxu2  ;;  %v983_v37 = vpop.f32.mrf.mxu3 }
 0x107   : > { %v645_v38 = vpop.f32.mrf.mxu1  ;;  %v1155_v39 = vpop.f32.mrf.mxu0 }
 0x108   : > { %v14440_v40 = vpack.c.bf16 %v645_v38, %v643_v34  ;;  %v14680_v41 = vpack.c.bf16 %v1155_v39, %v1153_v35 }
 0x10a   : > { %15092 = vst [vmem:[#allocation2 + $0x208] sm:$0xff] %v14440_v40  }
 0x10b   : > { %15140 = vst [vmem:[#allocation2 + $0x418] sm:$0xff] %v14680_v41  }
 0x10e   : > { %v815_v42 = vpop.f32.mrf.mxu2  ;;  %v985_v43 = vpop.f32.mrf.mxu3 }
 0x10f   : > { %v14520_v44 = vpack.c.bf16 %v815_v42, %v813_v36  ;;  %v14600_v45 = vpack.c.bf16 %v985_v43, %v983_v37  ;;  %v648_v46 = vpop.f32.mrf.mxu1  ;;  %v1158_v47 = vpop.f32.mrf.mxu0 }
 0x111   : > { %15108 = vst [vmem:[#allocation2 + $0x470] sm:$0xff] %v14520_v44  }
 0x112   : > { %15124 = vst [vmem:[#allocation2 + $0x408] sm:$0xff] %v14600_v45   ;;  %10449 = vmatmul.msk.bf16.gmra.mxu1 %vm415_vm0, %v15862_v16  ;;  %10533 = vmatmul.msk.bf16.gmra.mxu0 %vm415_vm0, %v15862_v16 }
 0x113   : > { %10477 = vmatmul.msk.bf16.gmra.mxu2 %vm415_vm0, %v15862_v16  ;;  %10505 = vmatmul.msk.bf16.gmra.mxu3 %vm415_vm0, %v15862_v16 }
 0x116   : > { %v818_v48 = vpop.f32.mrf.mxu2  ;;  %v988_v49 = vpop.f32.mrf.mxu3 }
 0x117   : > { %v650_v50 = vpop.f32.mrf.mxu1  ;;  %v1160_v51 = vpop.f32.mrf.mxu0 }
 0x118   : > { %v14445_v52 = vpack.c.bf16 %v650_v50, %v648_v46  ;;  %v14685_v53 = vpack.c.bf16 %v1160_v51, %v1158_v47 }
 0x11a   : > { %15093 = vst [vmem:[#allocation2 + $0x88] sm:$0xff] %v14445_v52  }
 0x11b   : > { %15141 = vst [vmem:[#allocation2 + $0x70] sm:$0xff] %v14685_v53  }
 0x11e   : > { %v820_v54 = vpop.f32.mrf.mxu2  ;;  %v990_v55 = vpop.f32.mrf.mxu3 }
 0x11f   : > { %v14525_v56 = vpack.c.bf16 %v820_v54, %v818_v48  ;;  %v14605_v57 = vpack.c.bf16 %v990_v55, %v988_v49  ;;  %v653_v58 = vpop.f32.mrf.mxu1  ;;  %v1163_v59 = vpop.f32.mrf.mxu0 }
 0x121   : > { %15109 = vst [vmem:[#allocation2 + $0x298] sm:$0xff] %v14525_v56  }
 0x122   : > { %15125 = vst [vmem:[#allocation2 + $0x2c0] sm:$0xff] %v14605_v57   ;;  %10450 = vmatmul.msk.bf16.gmra.mxu1 %vm415_vm0, %v15882_v20  ;;  %10534 = vmatmul.msk.bf16.gmra.mxu0 %vm415_vm0, %v15882_v20 }
 0x123   : > { %10478 = vmatmul.msk.bf16.gmra.mxu2 %vm415_vm0, %v15882_v20  ;;  %10506 = vmatmul.msk.bf16.gmra.mxu3 %vm415_vm0, %v15882_v20 }
 0x126   : > { %v823_v60 = vpop.f32.mrf.mxu2  ;;  %v993_v61 = vpop.f32.mrf.mxu3 }
 0x127   : > { %v655_v62 = vpop.f32.mrf.mxu1  ;;  %v1165_v63 = vpop.f32.mrf.mxu0 }
 0x128   : > { %v14450_v0 = vpack.c.bf16 %v655_v62, %v653_v58  ;;  %v14690_v1 = vpack.c.bf16 %v1165_v63, %v1163_v59 }
 0x12a   : > { %15094 = vst [vmem:[#allocation2 + $0x348] sm:$0xff] %v14450_v0  }
 0x12b   : > { %15142 = vst [vmem:[#allocation2 + $0x270] sm:$0xff] %v14690_v1  }
 0x12e   : > { %v825_v2 = vpop.f32.mrf.mxu2  ;;  %v995_v3 = vpop.f32.mrf.mxu3 }
 0x12f   : > { %v14530_v8 = vpack.c.bf16 %v825_v2, %v823_v60  ;;  %v14610_v9 = vpack.c.bf16 %v995_v3, %v993_v61  ;;  %v658_v10 = vpop.f32.mrf.mxu1  ;;  %v1168_v11 = vpop.f32.mrf.mxu0 }
 0x131   : > { %15110 = vst [vmem:[#allocation2 + $0x278] sm:$0xff] %v14530_v8  }
 0x132   : > { %15126 = vst [vmem:[#allocation2 + $0x3f8] sm:$0xff] %v14610_v9   ;;  %10451 = vmatmul.msk.bf16.gmra.mxu1 %vm415_vm0, %v15914_v28  ;;  %10535 = vmatmul.msk.bf16.gmra.mxu0 %vm415_vm0, %v15914_v28 }
 0x133   : > { %10479 = vmatmul.msk.bf16.gmra.mxu2 %vm415_vm0, %v15914_v28  ;;  %10507 = vmatmul.msk.bf16.gmra.mxu3 %vm415_vm0, %v15914_v28 }
 0x136   : > { %v828_v12 = vpop.f32.mrf.mxu2  ;;  %v998_v13 = vpop.f32.mrf.mxu3 }
 0x137   : > { %v660_v22 = vpop.f32.mrf.mxu1  ;;  %v1170_v23 = vpop.f32.mrf.mxu0 }
 0x138   : > { %v14455_v24 = vpack.c.bf16 %v660_v22, %v658_v10  ;;  %v14695_v25 = vpack.c.bf16 %v1170_v23, %v1168_v11 }
 0x13a   : > { %15095 = vst [vmem:[#allocation2 + $0xe0] sm:$0xff] %v14455_v24  }
 0x13b   : > { %15143 = vst [vmem:[#allocation2 + $0x200] sm:$0xff] %v14695_v25  }
 0x13e   : > { %v830_v30 = vpop.f32.mrf.mxu2  ;;  %v1000_v31 = vpop.f32.mrf.mxu3 }
 0x13f   : > { %v14535_v32 = vpack.c.bf16 %v830_v30, %v828_v12  ;;  %v14615_v33 = vpack.c.bf16 %v1000_v31, %v998_v13  ;;  %v663_v34 = vpop.f32.mrf.mxu1  ;;  %v1173_v35 = vpop.f32.mrf.mxu0 }
 0x141   : > { %15111 = vst [vmem:[#allocation2 + $0x170] sm:$0xff] %v14535_v32  }
 0x142   : > { %15127 = vst [vmem:[#allocation2 + $0x3f0] sm:$0xff] %v14615_v33   ;;  %10452 = vmatmul.msk.bf16.gmra.mxu1 %vm415_vm0, %v15827_v7  ;;  %10536 = vmatmul.msk.bf16.gmra.mxu0 %vm415_vm0, %v15827_v7 }
 0x143   : > { %10480 = vmatmul.msk.bf16.gmra.mxu2 %vm415_vm0, %v15827_v7  ;;  %10508 = vmatmul.msk.bf16.gmra.mxu3 %vm415_vm0, %v15827_v7 }
 0x146   : > { %v833_v36 = vpop.f32.mrf.mxu2  ;;  %v1003_v37 = vpop.f32.mrf.mxu3 }
 0x147   : > { %v665_v38 = vpop.f32.mrf.mxu1  ;;  %v1175_v39 = vpop.f32.mrf.mxu0 }
 0x148   : > { %v14460_v40 = vpack.c.bf16 %v665_v38, %v663_v34  ;;  %v14700_v41 = vpack.c.bf16 %v1175_v39, %v1173_v35 }
 0x14a   : > { %15096 = vst [vmem:[#allocation2 + $0x368] sm:$0xff] %v14460_v40  }
 0x14b   : > { %15144 = vst [vmem:[#allocation2 + $0x1a0] sm:$0xff] %v14700_v41  }
 0x14e   : > { %v835_v42 = vpop.f32.mrf.mxu2  ;;  %v1005_v43 = vpop.f32.mrf.mxu3 }
 0x14f   : > { %v14540_v44 = vpack.c.bf16 %v835_v42, %v833_v36  ;;  %v14620_v45 = vpack.c.bf16 %v1005_v43, %v1003_v37  ;;  %v668_v46 = vpop.f32.mrf.mxu1  ;;  %v1178_v47 = vpop.f32.mrf.mxu0 }
 0x151   : > { %15112 = vst [vmem:[#allocation2 + $0x198] sm:$0xff] %v14540_v44  }
 0x152   : > { %15128 = vst [vmem:[#allocation2 + $0x338] sm:$0xff] %v14620_v45   ;;  %10453 = vmatmul.msk.bf16.gmra.mxu1 %vm415_vm0, %v15865_v17  ;;  %10537 = vmatmul.msk.bf16.gmra.mxu0 %vm415_vm0, %v15865_v17 }
 0x153   : > { %10481 = vmatmul.msk.bf16.gmra.mxu2 %vm415_vm0, %v15865_v17  ;;  %10509 = vmatmul.msk.bf16.gmra.mxu3 %vm415_vm0, %v15865_v17 }
 0x156   : > { %v838_v7 = vpop.f32.mrf.mxu2  ;;  %v1008_v48 = vpop.f32.mrf.mxu3 }
 0x157   : > { %v670_v49 = vpop.f32.mrf.mxu1  ;;  %v1180_v50 = vpop.f32.mrf.mxu0 }
 0x158   : > { %v14465_v51 = vpack.c.bf16 %v670_v49, %v668_v46  ;;  %v14705_v52 = vpack.c.bf16 %v1180_v50, %v1178_v47 }
 0x15a   : > { %15097 = vst [vmem:[#allocation2 + $0x3e0] sm:$0xff] %v14465_v51  }
 0x15b   : > { %15145 = vst [vmem:[#allocation2 + $0x140] sm:$0xff] %v14705_v52  }
 0x15e   : > { %v840_v53 = vpop.f32.mrf.mxu2  ;;  %v1010_v54 = vpop.f32.mrf.mxu3 }
 0x15f   : > { %v14545_v55 = vpack.c.bf16 %v840_v53, %v838_v7  ;;  %v14625_v56 = vpack.c.bf16 %v1010_v54, %v1008_v48  ;;  %v673_v57 = vpop.f32.mrf.mxu1  ;;  %v1183_v58 = vpop.f32.mrf.mxu0 }
 0x161   : > { %15113 = vst [vmem:[#allocation2 + $0xb0] sm:$0xff] %v14545_v55  }
 0x162   : > { %15129 = vst [vmem:[#allocation2 + $0x248] sm:$0xff] %v14625_v56   ;;  %10454 = vmatmul.msk.bf16.gmra.mxu1 %vm415_vm0, %v15885_v21  ;;  %10538 = vmatmul.msk.bf16.gmra.mxu0 %vm415_vm0, %v15885_v21 }
 0x163   : > { %10482 = vmatmul.msk.bf16.gmra.mxu2 %vm415_vm0, %v15885_v21  ;;  %10510 = vmatmul.msk.bf16.gmra.mxu3 %vm415_vm0, %v15885_v21 }
 0x166   : > { %v843_v17 = vpop.f32.mrf.mxu2  ;;  %v1013_v59 = vpop.f32.mrf.mxu3 }
 0x167   : > { %v675_v60 = vpop.f32.mrf.mxu1  ;;  %v1185_v61 = vpop.f32.mrf.mxu0 }
 0x168   : > { %v14470_v62 = vpack.c.bf16 %v675_v60, %v673_v57  ;;  %v14710_v63 = vpack.c.bf16 %v1185_v61, %v1183_v58 }
 0x16a   : > { %15098 = vst [vmem:[#allocation2 + $0x1a8] sm:$0xff] %v14470_v62  }
 0x16b   : > { %15146 = vst [vmem:[#allocation2 + $0x3a0] sm:$0xff] %v14710_v63  }
 0x16e   : > { %v845_v0 = vpop.f32.mrf.mxu2  ;;  %v1015_v1 = vpop.f32.mrf.mxu3 }
 0x16f   : > { %v14550_v2 = vpack.c.bf16 %v845_v0, %v843_v17  ;;  %v14630_v3 = vpack.c.bf16 %v1015_v1, %v1013_v59  ;;  %v678_v8 = vpop.f32.mrf.mxu1  ;;  %v1188_v9 = vpop.f32.mrf.mxu0 }
 0x171   : > { %15114 = vst [vmem:[#allocation2 + $0x20] sm:$0xff] %v14550_v2  }
 0x172   : > { %15130 = vst [vmem:[#allocation2 + $0x330] sm:$0xff] %v14630_v3   ;;  %10455 = vmatmul.msk.bf16.gmra.mxu1 %vm415_vm0, %v15917_v29  ;;  %10539 = vmatmul.msk.bf16.gmra.mxu0 %vm415_vm0, %v15917_v29 }
 0x173   : > { %10483 = vmatmul.msk.bf16.gmra.mxu2 %vm415_vm0, %v15917_v29  ;;  %10511 = vmatmul.msk.bf16.gmra.mxu3 %vm415_vm0, %v15917_v29 }
 0x176   : > { %v848_v21 = vpop.f32.mrf.mxu2  ;;  %v1018_v10 = vpop.f32.mrf.mxu3 }
 0x177   : > { %v680_v11 = vpop.f32.mrf.mxu1  ;;  %v1190_v12 = vpop.f32.mrf.mxu0 }
 0x178   : > { %v14475_v13 = vpack.c.bf16 %v680_v11, %v678_v8  ;;  %v14715_v22 = vpack.c.bf16 %v1190_v12, %v1188_v9 }
 0x17a   : > { %15099 = vst [vmem:[#allocation2 + $0x450] sm:$0xff] %v14475_v13  }
 0x17b   : > { %15147 = vst [vmem:[#allocation2 + $0xf8] sm:$0xff] %v14715_v22  }
 0x17e   : > { %v850_v23 = vpop.f32.mrf.mxu2  ;;  %v1020_v24 = vpop.f32.mrf.mxu3 }
 0x17f   : > { %v14555_v25 = vpack.c.bf16 %v850_v23, %v848_v21  ;;  %v14635_v30 = vpack.c.bf16 %v1020_v24, %v1018_v10  ;;  %v683_v31 = vpop.f32.mrf.mxu1  ;;  %v1193_v32 = vpop.f32.mrf.mxu0 }
 0x181   : > { %15115 = vst [vmem:[#allocation2 + $0x1e8] sm:$0xff] %v14555_v25  }
 0x182   : > { %15131 = vst [vmem:[#allocation2 + $0x220] sm:$0xff] %v14635_v30   ;;  %10552 = vmatmul.msk.bf16.vlgmr.msra.gmra.mxu1 %vm415_vm0, %v15818_v4  ;;  %10636 = vmatmul.msk.bf16.vlgmr.msra.gmra.mxu0 %vm415_vm0, %v15818_v4 }
 0x183   : > { %10580 = vmatmul.msk.bf16.vlgmr.msra.gmra.mxu2 %vm415_vm0, %v15818_v4  ;;  %10608 = vmatmul.msk.bf16.vlgmr.msra.gmra.mxu3 %vm415_vm0, %v15818_v4 }
 0x186   : > { %v853_v29 = vpop.f32.mrf.mxu2  ;;  %v1023_v33 = vpop.f32.mrf.mxu3 }
 0x187   : > { %v685_v34 = vpop.f32.mrf.mxu1  ;;  %v1195_v35 = vpop.f32.mrf.mxu0 }
 0x188   : > { %v14480_v36 = vpack.c.bf16 %v685_v34, %v683_v31  ;;  %v14720_v37 = vpack.c.bf16 %v1195_v35, %v1193_v32 }
 0x18a   : > { %15100 = vst [vmem:[#allocation2 + $0x420] sm:$0xff] %v14480_v36  }
 0x18b   : > { %15148 = vst [vmem:[#allocation2 + $0x128] sm:$0xff] %v14720_v37  }
 0x18e   : > { %v855_v38 = vpop.f32.mrf.mxu2  ;;  %v1025_v39 = vpop.f32.mrf.mxu3 }
 0x18f   : > { %v14560_v40 = vpack.c.bf16 %v855_v38, %v853_v29  ;;  %v14640_v41 = vpack.c.bf16 %v1025_v39, %v1023_v33  ;;  %v688_v42 = vpop.f32.mrf.mxu1  ;;  %v1198_v43 = vpop.f32.mrf.mxu0 }
 0x191   : > { %15116 = vst [vmem:[#allocation2 + $0x1f8] sm:$0xff] %v14560_v40  }
 0x192   : > { %15132 = vst [vmem:[#allocation2 + $0x1b8] sm:$0xff] %v14640_v41   ;;  %10553 = vmatmul.msk.bf16.gmra.mxu1 %vm415_vm0, %v15856_v14  ;;  %10637 = vmatmul.msk.bf16.gmra.mxu0 %vm415_vm0, %v15856_v14 }
 0x193   : > { %10581 = vmatmul.msk.bf16.gmra.mxu2 %vm415_vm0, %v15856_v14  ;;  %10609 = vmatmul.msk.bf16.gmra.mxu3 %vm415_vm0, %v15856_v14 }
 0x196   : > { %v858_v4 = vpop.f32.mrf.mxu2  ;;  %v1028_v44 = vpop.f32.mrf.mxu3 }
 0x197   : > { %v690_v45 = vpop.f32.mrf.mxu1  ;;  %v1200_v46 = vpop.f32.mrf.mxu0 }
 0x198   : > { %v14485_v47 = vpack.c.bf16 %v690_v45, %v688_v42  ;;  %v14725_v7 = vpack.c.bf16 %v1200_v46, %v1198_v43 }
 0x19a   : > { %15101 = vst [vmem:[#allocation2 + $0x398] sm:$0xff] %v14485_v47  }
 0x19b   : > { %15149 = vst [vmem:[#allocation2 + $0x160] sm:$0xff] %v14725_v7  }
 0x19e   : > { %v860_v48 = vpop.f32.mrf.mxu2  ;;  %v1030_v49 = vpop.f32.mrf.mxu3 }
 0x19f   : > { %v14565_v50 = vpack.c.bf16 %v860_v48, %v858_v4  ;;  %v14645_v51 = vpack.c.bf16 %v1030_v49, %v1028_v44  ;;  %v693_v52 = vpop.f32.mrf.mxu1  ;;  %v1203_v53 = vpop.f32.mrf.mxu0 }
 0x1a1   : > { %15117 = vst [vmem:[#allocation2 + $0x60] sm:$0xff] %v14565_v50  }
 0x1a2   : > { %15133 = vst [vmem:[#allocation2 + $0x310] sm:$0xff] %v14645_v51   ;;  %10554 = vmatmul.msk.bf16.gmra.mxu1 %vm415_vm0, %v15876_v18  ;;  %10638 = vmatmul.msk.bf16.gmra.mxu0 %vm415_vm0, %v15876_v18 }
 0x1a3   : > { %10582 = vmatmul.msk.bf16.gmra.mxu2 %vm415_vm0, %v15876_v18  ;;  %10610 = vmatmul.msk.bf16.gmra.mxu3 %vm415_vm0, %v15876_v18 }
 0x1a6   : > { %v863_v14 = vpop.f32.mrf.mxu2  ;;  %v1033_v54 = vpop.f32.mrf.mxu3 }
 0x1a7   : > { %v695_v55 = vpop.f32.mrf.mxu1  ;;  %v1205_v56 = vpop.f32.mrf.mxu0 }
 0x1a8   : > { %v14490_v57 = vpack.c.bf16 %v695_v55, %v693_v52  ;;  %v14730_v58 = vpack.c.bf16 %v1205_v56, %v1203_v53 }
 0x1aa   : > { %15102 = vst [vmem:[#allocation2 + $0x350] sm:$0xff] %v14490_v57  }
 0x1ab   : > { %15150 = vst [vmem:[#allocation2 + $0x2a8] sm:$0xff] %v14730_v58  }
 0x1ae   : > { %v865_v17 = vpop.f32.mrf.mxu2  ;;  %v1035_v59 = vpop.f32.mrf.mxu3 }
 0x1af   : > { %v14570_v60 = vpack.c.bf16 %v865_v17, %v863_v14  ;;  %v14650_v61 = vpack.c.bf16 %v1035_v59, %v1033_v54  ;;  %v698_v62 = vpop.f32.mrf.mxu1  ;;  %v1208_v63 = vpop.f32.mrf.mxu0 }
 0x1b1   : > { %15118 = vst [vmem:[#allocation2 + $0x3c8] sm:$0xff] %v14570_v60  }
 0x1b2   : > { %15134 = vst [vmem:[#allocation2 + $0x280] sm:$0xff] %v14650_v61   ;;  %10555 = vmatmul.msk.bf16.gmra.mxu1 %vm415_vm0, %v15908_v26  ;;  %10639 = vmatmul.msk.bf16.gmra.mxu0 %vm415_vm0, %v15908_v26 }
 0x1b3   : > { %10583 = vmatmul.msk.bf16.gmra.mxu2 %vm415_vm0, %v15908_v26  ;;  %10611 = vmatmul.msk.bf16.gmra.mxu3 %vm415_vm0, %v15908_v26 }
 0x1b6   : > { %v868_v18 = vpop.f32.mrf.mxu2  ;;  %v1038_v0 = vpop.f32.mrf.mxu3 }
 0x1b7   : > { %v700_v1 = vpop.f32.mrf.mxu1  ;;  %v1210_v2 = vpop.f32.mrf.mxu0 }
 0x1b8   : > { %v14495_v3 = vpack.c.bf16 %v700_v1, %v698_v62  ;;  %v14735_v8 = vpack.c.bf16 %v1210_v2, %v1208_v63 }
 0x1ba   : > { %15103 = vst [vmem:[#allocation2 + $0xc8] sm:$0xff] %v14495_v3  }
 0x1bb   : > { %15151 = vst [vmem:[#allocation2 + $0x130] sm:$0xff] %v14735_v8  }
 0x1be   : > { %v870_v9 = vpop.f32.mrf.mxu2  ;;  %v1040_v21 = vpop.f32.mrf.mxu3 }
 0x1bf   : > { %v14575_v10 = vpack.c.bf16 %v870_v9, %v868_v18  ;;  %v14655_v11 = vpack.c.bf16 %v1040_v21, %v1038_v0  ;;  %v703_v12 = vpop.f32.mrf.mxu1  ;;  %v1213_v13 = vpop.f32.mrf.mxu0 }
 0x1c1   : > { %15119 = vst [vmem:[#allocation2 + $0x18] sm:$0xff] %v14575_v10  }
 0x1c2   : > { %15135 = vst [vmem:[#allocation2 + $0x288] sm:$0xff] %v14655_v11   ;;  %10556 = vmatmul.msk.bf16.gmra.mxu1 %vm415_vm0, %v15821_v5  ;;  %10640 = vmatmul.msk.bf16.gmra.mxu0 %vm415_vm0, %v15821_v5 }
 0x1c3   : > { %10584 = vmatmul.msk.bf16.gmra.mxu2 %vm415_vm0, %v15821_v5  ;;  %10612 = vmatmul.msk.bf16.gmra.mxu3 %vm415_vm0, %v15821_v5 }
 0x1c6   : > { %v873_v26 = vpop.f32.mrf.mxu2  ;;  %v1043_v22 = vpop.f32.mrf.mxu3 }
 0x1c7   : > { %v705_v23 = vpop.f32.mrf.mxu1  ;;  %v1215_v24 = vpop.f32.mrf.mxu0 }
 0x1c8   : > { %v14500_v25 = vpack.c.bf16 %v705_v23, %v703_v12  ;;  %v14740_v30 = vpack.c.bf16 %v1215_v24, %v1213_v13 }
 0x1ca   : > { %15104 = vst [vmem:[#allocation2 + $0x240] sm:$0xff] %v14500_v25  }
 0x1cb   : > { %15152 = vst [vmem:[#allocation2 + $0x318] sm:$0xff] %v14740_v30  }
 0x1ce   : > { %v875_v31 = vpop.f32.mrf.mxu2  ;;  %v1045_v32 = vpop.f32.mrf.mxu3 }
 0x1cf   : > { %v14580_v29 = vpack.c.bf16 %v875_v31, %v873_v26  ;;  %v14660_v33 = vpack.c.bf16 %v1045_v32, %v1043_v22  ;;  %v708_v34 = vpop.f32.mrf.mxu1  ;;  %v1218_v35 = vpop.f32.mrf.mxu0 }
 0x1d1   : > { %15120 = vst [vmem:[#allocation2 + $0xa0] sm:$0xff] %v14580_v29  }
 0x1d2   : > { %15136 = vst [vmem:[#allocation2 + $0x2e8] sm:$0xff] %v14660_v33   ;;  %10557 = vmatmul.msk.bf16.gmra.mxu1 %vm415_vm0, %v15859_v15  ;;  %10641 = vmatmul.msk.bf16.gmra.mxu0 %vm415_vm0, %v15859_v15 }
 0x1d3   : > { %10585 = vmatmul.msk.bf16.gmra.mxu2 %vm415_vm0, %v15859_v15  ;;  %10613 = vmatmul.msk.bf16.gmra.mxu3 %vm415_vm0, %v15859_v15 }
 0x1d6   : > { %v878_v5 = vpop.f32.mrf.mxu2  ;;  %v1048_v36 = vpop.f32.mrf.mxu3 }
 0x1d7   : > { %v710_v37 = vpop.f32.mrf.mxu1  ;;  %v1220_v38 = vpop.f32.mrf.mxu0 }
 0x1d8   : > { %v14505_v39 = vpack.c.bf16 %v710_v37, %v708_v34  ;;  %v14745_v40 = vpack.c.bf16 %v1220_v38, %v1218_v35 }
 0x1da   : > { %15105 = vst [vmem:[#allocation2 + $0x390] sm:$0xff] %v14505_v39  }
 0x1db   : > { %15153 = vst [vmem:[#allocation2 + $0x268] sm:$0xff] %v14745_v40  }
 0x1de   : > { %v880_v41 = vpop.f32.mrf.mxu2  ;;  %v1050_v42 = vpop.f32.mrf.mxu3 }
 0x1df   : > { %v14585_v43 = vpack.c.bf16 %v880_v41, %v878_v5  ;;  %v14665_v4 = vpack.c.bf16 %v1050_v42, %v1048_v36  ;;  %v713_v44 = vpop.f32.mrf.mxu1  ;;  %v1223_v45 = vpop.f32.mrf.mxu0 }
 0x1e1   : > { %15121 = vst [vmem:[#allocation2 + $0x1d0] sm:$0xff] %v14585_v43  }
 0x1e2   : > { %15137 = vst [vmem:[#allocation2 + $0x120] sm:$0xff] %v14665_v4   ;;  %10558 = vmatmul.msk.bf16.gmra.mxu1 %vm415_vm0, %v15879_v19  ;;  %10642 = vmatmul.msk.bf16.gmra.mxu0 %vm415_vm0, %v15879_v19 }
 0x1e3   : > { %10586 = vmatmul.msk.bf16.gmra.mxu2 %vm415_vm0, %v15879_v19  ;;  %10614 = vmatmul.msk.bf16.gmra.mxu3 %vm415_vm0, %v15879_v19 }
 0x1e6   : > { %v883_v15 = vpop.f32.mrf.mxu2  ;;  %v1053_v46 = vpop.f32.mrf.mxu3 }
 0x1e7   : > { %v715_v47 = vpop.f32.mrf.mxu1  ;;  %v1225_v7 = vpop.f32.mrf.mxu0 }
 0x1e8   : > { %v14510_v48 = vpack.c.bf16 %v715_v47, %v713_v44  ;;  %v14750_v49 = vpack.c.bf16 %v1225_v7, %v1223_v45 }
 0x1ea   : > { %15106 = vst [vmem:[#allocation2 + $0x458] sm:$0xff] %v14510_v48  }
 0x1eb   : > { %15154 = vst [vmem:[#allocation2 + $0x228] sm:$0xff] %v14750_v49  }
 0x1ee   : > { %v885_v50 = vpop.f32.mrf.mxu2  ;;  %v1055_v51 = vpop.f32.mrf.mxu3 }
 0x1ef   : > { %v14590_v52 = vpack.c.bf16 %v885_v50, %v883_v15  ;;  %v14670_v53 = vpack.c.bf16 %v1055_v51, %v1053_v46  ;;  %v718_v14 = vpop.f32.mrf.mxu1  ;;  %v1228_v54 = vpop.f32.mrf.mxu0 }
 0x1f1   : > { %15122 = vst [vmem:[#allocation2 + $0x258] sm:$0xff] %v14590_v52  }
 0x1f2   : > { %15138 = vst [vmem:[#allocation2 + $0x2c8] sm:$0xff] %v14670_v53   ;;  %10559 = vmatmul.msk.bf16.gmra.mxu1 %vm415_vm0, %v15911_v27  ;;  %10643 = vmatmul.msk.bf16.gmra.mxu0 %vm415_vm0, %v15911_v27  ;;  %v15351_v53 = vld [vmem:[%s15800_s26 + $0x60] sm:$0xff] }
 0x1f3   : > { %10587 = vmatmul.msk.bf16.gmra.mxu2 %vm415_vm0, %v15911_v27  ;;  %10615 = vmatmul.msk.bf16.gmra.mxu3 %vm415_vm0, %v15911_v27 }
 0x1f6   : > { %v888_v19 = vpop.f32.mrf.mxu2  ;;  %v1058_v55 = vpop.f32.mrf.mxu3 }
 0x1f7   : > { %v720_v56 = vpop.f32.mrf.mxu1  ;;  %v1230_v57 = vpop.f32.mrf.mxu0 }
 0x1f8   : > { %v14515_v58 = vpack.c.bf16 %v720_v56, %v718_v14  ;;  %v14755_v17 = vpack.c.bf16 %v1230_v57, %v1228_v54 }
 0x1fa   : > { %15107 = vst [vmem:[#allocation2 + $0x68] sm:$0xff] %v14515_v58  }
 0x1fb   : > { %15155 = vst [vmem:[#allocation2 + $0x410] sm:$0xff] %v14755_v17  }
 0x1fe   : > { %v890_v59 = vpop.f32.mrf.mxu2  ;;  %v1060_v60 = vpop.f32.mrf.mxu3 }
 0x1ff   : > { %v14595_v61 = vpack.c.bf16 %v890_v59, %v888_v19  ;;  %v14675_v62 = vpack.c.bf16 %v1060_v60, %v1058_v55  ;;  %v1323_v63 = vpop.f32.mrf.mxu1  ;;  %v1833_v18 = vpop.f32.mrf.mxu0 }
 0x201   : > { %15123 = vst [vmem:[#allocation2 + $0xd0] sm:$0xff] %v14595_v61  }
 0x202   : > { %15139 = vst [vmem:[#allocation2 + $0x3c0] sm:$0xff] %v14675_v62   ;;  %10560 = vmatmul.msk.bf16.gmra.mxu1 %vm415_vm0, %v15824_v6  ;;  %10644 = vmatmul.msk.bf16.gmra.mxu0 %vm415_vm0, %v15824_v6  ;;  %v15352_v62 = vld [vmem:[%s15800_s26 + $0x68] sm:$0xff] }
 0x203   : > { %10588 = vmatmul.msk.bf16.gmra.mxu2 %vm415_vm0, %v15824_v6  ;;  %10616 = vmatmul.msk.bf16.gmra.mxu3 %vm415_vm0, %v15824_v6 }
 0x206   : > { %v1493_v27 = vpop.f32.mrf.mxu2  ;;  %v1663_v0 = vpop.f32.mrf.mxu3 }
 0x207   : > { %v1325_v1 = vpop.f32.mrf.mxu1  ;;  %v1835_v2 = vpop.f32.mrf.mxu0 }
 0x208   : > { %v14760_v3 = vpack.c.bf16 %v1325_v1, %v1323_v63  ;;  %v15000_v8 = vpack.c.bf16 %v1835_v2, %v1833_v18 }
 0x20a   : > { %15156 = vst [vmem:[#allocation2 + $0x210] sm:$0xff] %v14760_v3  }
 0x20b   : > { %15204 = vst [vmem:[#allocation2 + $0x168] sm:$0xff] %v15000_v8  }
 0x20e   : > { %v1495_v9 = vpop.f32.mrf.mxu2  ;;  %v1665_v21 = vpop.f32.mrf.mxu3 }
 0x20f   : > { %v14840_v10 = vpack.c.bf16 %v1495_v9, %v1493_v27  ;;  %v14920_v11 = vpack.c.bf16 %v1665_v21, %v1663_v0  ;;  %v1328_v12 = vpop.f32.mrf.mxu1  ;;  %v1838_v13 = vpop.f32.mrf.mxu0 }
 0x211   : > { %15172 = vst [vmem:[#allocation2 + $0x110] sm:$0xff] %v14840_v10  }
 0x212   : > { %15188 = vst [vmem:[#allocation2 + $0x108] sm:$0xff] %v14920_v11   ;;  %10561 = vmatmul.msk.bf16.gmra.mxu1 %vm415_vm0, %v15862_v16  ;;  %10645 = vmatmul.msk.bf16.gmra.mxu0 %vm415_vm0, %v15862_v16 }
 0x213   : > { %10589 = vmatmul.msk.bf16.gmra.mxu2 %vm415_vm0, %v15862_v16  ;;  %10617 = vmatmul.msk.bf16.gmra.mxu3 %vm415_vm0, %v15862_v16 }
 0x216   : > { %v1498_v6 = vpop.f32.mrf.mxu2  ;;  %v1668_v26 = vpop.f32.mrf.mxu3 }
 0x217   : > { %v1330_v22 = vpop.f32.mrf.mxu1  ;;  %v1840_v23 = vpop.f32.mrf.mxu0 }
 0x218   : > { %v14765_v24 = vpack.c.bf16 %v1330_v22, %v1328_v12  ;;  %v15005_v25 = vpack.c.bf16 %v1840_v23, %v1838_v13  ;;  %v15353_v12 = vld [vmem:[%s15800_s26 + $0x70] sm:$0xff] }
 0x21a   : > { %15157 = vst [vmem:[#allocation2 + $0x1c0] sm:$0xff] %v14765_v24  }
 0x21b   : > { %15205 = vst [vmem:[#allocation2 + $0x90] sm:$0xff] %v15005_v25  }
 0x21e   : > { %v1500_v30 = vpop.f32.mrf.mxu2  ;;  %v1670_v31 = vpop.f32.mrf.mxu3 }
 0x21f   : > { %v14845_v32 = vpack.c.bf16 %v1500_v30, %v1498_v6  ;;  %v14925_v29 = vpack.c.bf16 %v1670_v31, %v1668_v26  ;;  %v1333_v33 = vpop.f32.mrf.mxu1  ;;  %v1843_v34 = vpop.f32.mrf.mxu0 }
 0x221   : > { %15173 = vst [vmem:[#allocation2 + $0x460] sm:$0xff] %v14845_v32  }
 0x222   : > { %15189 = vst [vmem:[#allocation2 + $0x378] sm:$0xff] %v14925_v29   ;;  %10562 = vmatmul.msk.bf16.gmra.mxu1 %vm415_vm0, %v15882_v20  ;;  %10646 = vmatmul.msk.bf16.gmra.mxu0 %vm415_vm0, %v15882_v20 }
 0x223   : > { %10590 = vmatmul.msk.bf16.gmra.mxu2 %vm415_vm0, %v15882_v20  ;;  %10618 = vmatmul.msk.bf16.gmra.mxu3 %vm415_vm0, %v15882_v20 }
 0x226   : > { %v1503_v16 = vpop.f32.mrf.mxu2  ;;  %v1673_v35 = vpop.f32.mrf.mxu3 }
 0x227   : > { %v1335_v5 = vpop.f32.mrf.mxu1  ;;  %v1845_v36 = vpop.f32.mrf.mxu0 }
 0x228   : > { %v14770_v37 = vpack.c.bf16 %v1335_v5, %v1333_v33  ;;  %v15010_v38 = vpack.c.bf16 %v1845_v36, %v1843_v34  ;;  %v15354_v34 = vld [vmem:[%s15800_s26 + $0x78] sm:$0xff] }
 0x22a   : > { %15158 = vst [vmem:[#allocation2 + $0x358] sm:$0xff] %v14770_v37  }
 0x22b   : > { %15206 = vst [vmem:[#allocation2 + $0x1e0] sm:$0xff] %v15010_v38  }
 0x22e   : > { %v1505_v39 = vpop.f32.mrf.mxu2  ;;  %v1675_v40 = vpop.f32.mrf.mxu3 }
 0x22f   : > { %v14850_v41 = vpack.c.bf16 %v1505_v39, %v1503_v16  ;;  %v14930_v42 = vpack.c.bf16 %v1675_v40, %v1673_v35  ;;  %v1338_v43 = vpop.f32.mrf.mxu1  ;;  %v1848_v4 = vpop.f32.mrf.mxu0 }
 0x231   : > { %15174 = vst [vmem:[#allocation2 + $0x2a0] sm:$0xff] %v14850_v41  }
 0x232   : > { %15190 = vst [vmem:[#allocation2 + $0x440] sm:$0xff] %v14930_v42   ;;  %10563 = vmatmul.msk.bf16.gmra.mxu1 %vm415_vm0, %v15914_v28  ;;  %10647 = vmatmul.msk.bf16.gmra.mxu0 %vm415_vm0, %v15914_v28 }
 0x233   : > { %10591 = vmatmul.msk.bf16.gmra.mxu2 %vm415_vm0, %v15914_v28  ;;  %10619 = vmatmul.msk.bf16.gmra.mxu3 %vm415_vm0, %v15914_v28 }
 0x236   : > { %v1508_v20 = vpop.f32.mrf.mxu2  ;;  %v1678_v44 = vpop.f32.mrf.mxu3 }
 0x237   : > { %v1340_v45 = vpop.f32.mrf.mxu1  ;;  %v1850_v15 = vpop.f32.mrf.mxu0 }
 0x238   : > { %v14775_v46 = vpack.c.bf16 %v1340_v45, %v1338_v43  ;;  %v15015_v47 = vpack.c.bf16 %v1850_v15, %v1848_v4 }
 0x23a   : > { %15159 = vst [vmem:[#allocation2 + $0x8] sm:$0xff] %v14775_v46  }
 0x23b   : > { %15207 = vst [vmem:[#allocation2 + $0x38] sm:$0xff] %v15015_v47  }
 0x23e   : > { %v1510_v7 = vpop.f32.mrf.mxu2  ;;  %v1680_v48 = vpop.f32.mrf.mxu3 }
 0x23f   : > { %v14855_v49 = vpack.c.bf16 %v1510_v7, %v1508_v20  ;;  %v14935_v50 = vpack.c.bf16 %v1680_v48, %v1678_v44  ;;  %v1343_v51 = vpop.f32.mrf.mxu1  ;;  %v1853_v52 = vpop.f32.mrf.mxu0 }
 0x241   : > { %15175 = vst [vmem:[#allocation2 + $0x3d8] sm:$0xff] %v14855_v49  }
 0x242   : > { %15191 = vst [vmem:[#allocation2 + $0x158] sm:$0xff] %v14935_v50   ;;  %10564 = vmatmul.msk.bf16.gmra.mxu1 %vm415_vm0, %v15351_v53  ;;  %10648 = vmatmul.msk.bf16.gmra.mxu0 %vm415_vm0, %v15351_v53 }
 0x243   : > { %10592 = vmatmul.msk.bf16.gmra.mxu2 %vm415_vm0, %v15351_v53  ;;  %10620 = vmatmul.msk.bf16.gmra.mxu3 %vm415_vm0, %v15351_v53 }
 0x246   : > { %v1513_v28 = vpop.f32.mrf.mxu2  ;;  %v1683_v14 = vpop.f32.mrf.mxu3 }
 0x247   : > { %v1345_v54 = vpop.f32.mrf.mxu1  ;;  %v1855_v19 = vpop.f32.mrf.mxu0 }
 0x248   : > { %v14780_v55 = vpack.c.bf16 %v1345_v54, %v1343_v51  ;;  %v15020_v56 = vpack.c.bf16 %v1855_v19, %v1853_v52 }
 0x24a   : > { %15160 = vst [vmem:[#allocation2 + $0x400] sm:$0xff] %v14780_v55  }
 0x24b   : > { %15208 = vst [vmem:[#allocation2 + $0x388] sm:$0xff] %v15020_v56  }
 0x24e   : > { %v1515_v57 = vpop.f32.mrf.mxu2  ;;  %v1685_v58 = vpop.f32.mrf.mxu3 }
 0x24f   : > { %v14860_v17 = vpack.c.bf16 %v1515_v57, %v1513_v28  ;;  %v14940_v59 = vpack.c.bf16 %v1685_v58, %v1683_v14  ;;  %v1348_v60 = vpop.f32.mrf.mxu1  ;;  %v1858_v61 = vpop.f32.mrf.mxu0 }
 0x251   : > { %15176 = vst [vmem:[#allocation2 + $0xa8] sm:$0xff] %v14860_v17  }
 0x252   : > { %15192 = vst [vmem:[#allocation2 + $0x360] sm:$0xff] %v14940_v59   ;;  %10565 = vmatmul.msk.bf16.gmra.mxu1 %vm415_vm0, %v15352_v62  ;;  %10649 = vmatmul.msk.bf16.gmra.mxu0 %vm415_vm0, %v15352_v62 }
 0x253   : > { %10593 = vmatmul.msk.bf16.gmra.mxu2 %vm415_vm0, %v15352_v62  ;;  %10621 = vmatmul.msk.bf16.gmra.mxu3 %vm415_vm0, %v15352_v62 }
 0x256   : > { %v1518_v63 = vpop.f32.mrf.mxu2  ;;  %v1688_v18 = vpop.f32.mrf.mxu3 }
 0x257   : > { %v1350_v27 = vpop.f32.mrf.mxu1  ;;  %v1860_v0 = vpop.f32.mrf.mxu0 }
 0x258   : > { %v14785_v1 = vpack.c.bf16 %v1350_v27, %v1348_v60  ;;  %v15025_v2 = vpack.c.bf16 %v1860_v0, %v1858_v61 }
 0x25a   : > { %15161 = vst [vmem:[#allocation2 + $0x1b0] sm:$0xff] %v14785_v1  }
 0x25b   : > { %15209 = vst [vmem:[#allocation2 + $0x430] sm:$0xff] %v15025_v2  }
 0x25e   : > { %v1520_v3 = vpop.f32.mrf.mxu2  ;;  %v1690_v8 = vpop.f32.mrf.mxu3 }
 0x25f   : > { %v14865_v9 = vpack.c.bf16 %v1520_v3, %v1518_v63  ;;  %v14945_v21 = vpack.c.bf16 %v1690_v8, %v1688_v18  ;;  %v1353_v10 = vpop.f32.mrf.mxu1  ;;  %v1863_v11 = vpop.f32.mrf.mxu0 }
 0x261   : > { %15177 = vst [vmem:[#allocation2 + $0x1d8] sm:$0xff] %v14865_v9  }
 0x262   : > { %15193 = vst [vmem:[#allocation2 + $0x50] sm:$0xff] %v14945_v21   ;;  %10566 = vmatmul.msk.bf16.gmra.mxu1 %vm415_vm0, %v15353_v12  ;;  %10650 = vmatmul.msk.bf16.gmra.mxu0 %vm415_vm0, %v15353_v12 }
 0x263   : > { %10594 = vmatmul.msk.bf16.gmra.mxu2 %vm415_vm0, %v15353_v12  ;;  %10622 = vmatmul.msk.bf16.gmra.mxu3 %vm415_vm0, %v15353_v12 }
 0x266   : > { %v1523_v13 = vpop.f32.mrf.mxu2  ;;  %v1693_v6 = vpop.f32.mrf.mxu3 }
 0x267   : > { %v1355_v26 = vpop.f32.mrf.mxu1  ;;  %v1865_v22 = vpop.f32.mrf.mxu0 }
 0x268   : > { %v14790_v23 = vpack.c.bf16 %v1355_v26, %v1353_v10  ;;  %v15030_v24 = vpack.c.bf16 %v1865_v22, %v1863_v11 }
 0x26a   : > { %15162 = vst [vmem:[#allocation2 + $0x328] sm:$0xff] %v14790_v23  }
 0x26b   : > { %15210 = vst [vmem:[#allocation2 + $0x80] sm:$0xff] %v15030_v24  }
 0x26e   : > { %v1525_v25 = vpop.f32.mrf.mxu2  ;;  %v1695_v30 = vpop.f32.mrf.mxu3 }
 0x26f   : > { %v14870_v31 = vpack.c.bf16 %v1525_v25, %v1523_v13  ;;  %v14950_v32 = vpack.c.bf16 %v1695_v30, %v1693_v6  ;;  %v1358_v29 = vpop.f32.mrf.mxu1  ;;  %v1868_v33 = vpop.f32.mrf.mxu0 }
 0x271   : > { %15178 = vst [vmem:[#allocation2 + $0x118] sm:$0xff] %v14870_v31  }
 0x272   : > { %15194 = vst [vmem:[#allocation2 + $0x308] sm:$0xff] %v14950_v32   ;;  %10567 = vmatmul.msk.bf16.gmra.mxu1 %vm415_vm0, %v15354_v34  ;;  %10651 = vmatmul.msk.bf16.gmra.mxu0 %vm415_vm0, %v15354_v34 }
 0x273   : > { %10595 = vmatmul.msk.bf16.gmra.mxu2 %vm415_vm0, %v15354_v34  ;;  %10623 = vmatmul.msk.bf16.gmra.mxu3 %vm415_vm0, %v15354_v34 }
 0x276   : > { %v1528_v16 = vpop.f32.mrf.mxu2  ;;  %v1698_v35 = vpop.f32.mrf.mxu3 }
 0x277   : > { %v1360_v5 = vpop.f32.mrf.mxu1  ;;  %v1870_v36 = vpop.f32.mrf.mxu0 }
 0x278   : > { %v14795_v37 = vpack.c.bf16 %v1360_v5, %v1358_v29  ;;  %v15035_v38 = vpack.c.bf16 %v1870_v36, %v1868_v33 }
 0x27a   : > { %15163 = vst [vmem:[#allocation2 + $0x230] sm:$0xff] %v14795_v37  }
 0x27b   : > { %15211 = vst [vmem:[#allocation2 + $0x428] sm:$0xff] %v15035_v38  }
 0x27e   : > { %v1530_v39 = vpop.f32.mrf.mxu2  ;;  %v1700_v40 = vpop.f32.mrf.mxu3 }
 0x27f   : > { %v14875_v41 = vpack.c.bf16 %v1530_v39, %v1528_v16  ;;  %v14955_v42 = vpack.c.bf16 %v1700_v40, %v1698_v35  ;;  %v1363_v43 = vpop.f32.mrf.mxu1  ;;  %v1873_v4 = vpop.f32.mrf.mxu0 }
 0x281   : > { %15179 = vst [vmem:[#allocation2] sm:$0xff] %v14875_v41  }
 0x282   : > { %15195 = vst [vmem:[#allocation2 + $0x340] sm:$0xff] %v14955_v42  }
 0x286   : > { %v1533_v20 = vpop.f32.mrf.mxu2  ;;  %v1703_v44 = vpop.f32.mrf.mxu3 }
 0x287   : > { %v1365_v45 = vpop.f32.mrf.mxu1  ;;  %v1875_v15 = vpop.f32.mrf.mxu0 }
 0x288   : > { %v14800_v46 = vpack.c.bf16 %v1365_v45, %v1363_v43  ;;  %v15040_v47 = vpack.c.bf16 %v1875_v15, %v1873_v4 }
 0x28a   : > { %15164 = vst [vmem:[#allocation2 + $0xb8] sm:$0xff] %v14800_v46  }
 0x28b   : > { %15212 = vst [vmem:[#allocation2 + $0x238] sm:$0xff] %v15040_v47  }
 0x28e   : > { %v1535_v7 = vpop.f32.mrf.mxu2  ;;  %v1705_v48 = vpop.f32.mrf.mxu3 }
 0x28f   : > { %v14880_v49 = vpack.c.bf16 %v1535_v7, %v1533_v20  ;;  %v14960_v50 = vpack.c.bf16 %v1705_v48, %v1703_v44  ;;  %v1368_v51 = vpop.f32.mrf.mxu1  ;;  %v1878_v52 = vpop.f32.mrf.mxu0 }
 0x291   : > { %15180 = vst [vmem:[#allocation2 + $0x478] sm:$0xff] %v14880_v49  }
 0x292   : > { %15196 = vst [vmem:[#allocation2 + $0x2e0] sm:$0xff] %v14960_v50  }
 0x296   : > { %v1538_v53 = vpop.f32.mrf.mxu2  ;;  %v1708_v28 = vpop.f32.mrf.mxu3 }
 0x297   : > { %v1370_v14 = vpop.f32.mrf.mxu1  ;;  %v1880_v54 = vpop.f32.mrf.mxu0 }
 0x298   : > { %v14805_v19 = vpack.c.bf16 %v1370_v14, %v1368_v51  ;;  %v15045_v55 = vpack.c.bf16 %v1880_v54, %v1878_v52 }
 0x29a   : > { %15165 = vst [vmem:[#allocation2 + $0x468] sm:$0xff] %v14805_v19  }
 0x29b   : > { %15213 = vst [vmem:[#allocation2 + $0x2b8] sm:$0xff] %v15045_v55  }
 0x29e   : > { %v1540_v56 = vpop.f32.mrf.mxu2  ;;  %v1710_v57 = vpop.f32.mrf.mxu3 }
 0x29f   : > { %v14885_v58 = vpack.c.bf16 %v1540_v56, %v1538_v53  ;;  %v14965_v17 = vpack.c.bf16 %v1710_v57, %v1708_v28  ;;  %v1373_v59 = vpop.f32.mrf.mxu1  ;;  %v1883_v60 = vpop.f32.mrf.mxu0 }
 0x2a1   : > { %15181 = vst [vmem:[#allocation2 + $0x138] sm:$0xff] %v14885_v58  }
 0x2a2   : > { %15197 = vst [vmem:[#allocation2 + $0x3e8] sm:$0xff] %v14965_v17  }
 0x2a6   : > { %v1543_v61 = vpop.f32.mrf.mxu2  ;;  %v1713_v62 = vpop.f32.mrf.mxu3 }
 0x2a7   : > { %v1375_v63 = vpop.f32.mrf.mxu1  ;;  %v1885_v18 = vpop.f32.mrf.mxu0 }
 0x2a8   : > { %v14810_v27 = vpack.c.bf16 %v1375_v63, %v1373_v59  ;;  %v15050_v0 = vpack.c.bf16 %v1885_v18, %v1883_v60 }
 0x2aa   : > { %15166 = vst [vmem:[#allocation2 + $0x2d0] sm:$0xff] %v14810_v27  }
 0x2ab   : > { %15214 = vst [vmem:[#allocation2 + $0x40] sm:$0xff] %v15050_v0  }
 0x2ae   : > { %v1545_v1 = vpop.f32.mrf.mxu2  ;;  %v1715_v2 = vpop.f32.mrf.mxu3 }
 0x2af   : > { %v14890_v3 = vpack.c.bf16 %v1545_v1, %v1543_v61  ;;  %v14970_v8 = vpack.c.bf16 %v1715_v2, %v1713_v62  ;;  %v1378_v9 = vpop.f32.mrf.mxu1  ;;  %v1888_v21 = vpop.f32.mrf.mxu0 }
 0x2b1   : > { %15182 = vst [vmem:[#allocation2 + $0xd8] sm:$0xff] %v14890_v3  }
 0x2b2   : > { %15198 = vst [vmem:[#allocation2 + $0x250] sm:$0xff] %v14970_v8  }
 0x2b6   : > { %v1548_v10 = vpop.f32.mrf.mxu2  ;;  %v1718_v11 = vpop.f32.mrf.mxu3 }
 0x2b7   : > { %v1380_v12 = vpop.f32.mrf.mxu1  ;;  %v1890_v13 = vpop.f32.mrf.mxu0 }
 0x2b8   : > { %v14815_v6 = vpack.c.bf16 %v1380_v12, %v1378_v9  ;;  %v15055_v26 = vpack.c.bf16 %v1890_v13, %v1888_v21 }
 0x2ba   : > { %15167 = vst [vmem:[#allocation2 + $0x78] sm:$0xff] %v14815_v6  }
 0x2bb   : > { %15215 = vst [vmem:[#allocation2 + $0x150] sm:$0xff] %v15055_v26  }
 0x2be   : > { %v1550_v22 = vpop.f32.mrf.mxu2  ;;  %v1720_v23 = vpop.f32.mrf.mxu3 }
 0x2bf   : > { %v14895_v24 = vpack.c.bf16 %v1550_v22, %v1548_v10  ;;  %v14975_v25 = vpack.c.bf16 %v1720_v23, %v1718_v11  ;;  %v1383_v30 = vpop.f32.mrf.mxu1  ;;  %v1893_v31 = vpop.f32.mrf.mxu0 }
 0x2c1   : > { %15183 = vst [vmem:[#allocation2 + $0x2d8] sm:$0xff] %v14895_v24  }
 0x2c2   : > { %15199 = vst [vmem:[#allocation2 + $0x1c8] sm:$0xff] %v14975_v25  }
 0x2c6   : > { %v1553_v32 = vpop.f32.mrf.mxu2  ;;  %v1723_v29 = vpop.f32.mrf.mxu3 }
 0x2c7   : > { %v1385_v33 = vpop.f32.mrf.mxu1  ;;  %v1895_v34 = vpop.f32.mrf.mxu0 }
 0x2c8   : > { %v14820_v16 = vpack.c.bf16 %v1385_v33, %v1383_v30  ;;  %v15060_v35 = vpack.c.bf16 %v1895_v34, %v1893_v31 }
 0x2ca   : > { %15168 = vst [vmem:[#allocation2 + $0x2f8] sm:$0xff] %v14820_v16  }
 0x2cb   : > { %15216 = vst [vmem:[#allocation2 + $0x3a8] sm:$0xff] %v15060_v35  }
 0x2ce   : > { %v1555_v5 = vpop.f32.mrf.mxu2  ;;  %v1725_v36 = vpop.f32.mrf.mxu3 }
 0x2cf   : > { %v14900_v37 = vpack.c.bf16 %v1555_v5, %v1553_v32  ;;  %v14980_v38 = vpack.c.bf16 %v1725_v36, %v1723_v29  ;;  %v1388_v39 = vpop.f32.mrf.mxu1  ;;  %v1898_v40 = vpop.f32.mrf.mxu0 }
 0x2d1   : > { %15184 = vst [vmem:[#allocation2 + $0x260] sm:$0xff] %v14900_v37  }
 0x2d2   : > { %15200 = vst [vmem:[#allocation2 + $0x190] sm:$0xff] %v14980_v38  }
 0x2d6   : > { %v1558_v41 = vpop.f32.mrf.mxu2  ;;  %v1728_v42 = vpop.f32.mrf.mxu3 }
 0x2d7   : > { %v1390_v43 = vpop.f32.mrf.mxu1  ;;  %v1900_v4 = vpop.f32.mrf.mxu0 }
 0x2d8   : > { %v14825_v20 = vpack.c.bf16 %v1390_v43, %v1388_v39  ;;  %v15065_v44 = vpack.c.bf16 %v1900_v4, %v1898_v40 }
 0x2da   : > { %15169 = vst [vmem:[#allocation2 + $0x218] sm:$0xff] %v14825_v20  }
 0x2db   : > { %15217 = vst [vmem:[#allocation2 + $0x98] sm:$0xff] %v15065_v44  }
 0x2de   : > { %v1560_v45 = vpop.f32.mrf.mxu2  ;;  %v1730_v15 = vpop.f32.mrf.mxu3 }
 0x2df   : > { %v14905_v46 = vpack.c.bf16 %v1560_v45, %v1558_v41  ;;  %v14985_v47 = vpack.c.bf16 %v1730_v15, %v1728_v42  ;;  %v1393_v7 = vpop.f32.mrf.mxu1  ;;  %v1903_v48 = vpop.f32.mrf.mxu0 }
 0x2e1   : > { %15185 = vst [vmem:[#allocation2 + $0x3b8] sm:$0xff] %v14905_v46  }
 0x2e2   : > { %15201 = vst [vmem:[#allocation2 + $0x3d0] sm:$0xff] %v14985_v47  }
 0x2e6   : > { %v1563_v49 = vpop.f32.mrf.mxu2  ;;  %v1733_v50 = vpop.f32.mrf.mxu3 }
 0x2e7   : > { %v1395_v51 = vpop.f32.mrf.mxu1  ;;  %v1905_v52 = vpop.f32.mrf.mxu0 }
 0x2e8   : > { %v14830_v53 = vpack.c.bf16 %v1395_v51, %v1393_v7  ;;  %v15070_v28 = vpack.c.bf16 %v1905_v52, %v1903_v48 }
 0x2ea   : > { %15170 = vst [vmem:[#allocation2 + $0x1f0] sm:$0xff] %v14830_v53  }
 0x2eb   : > { %15218 = vst [vmem:[#allocation2 + $0x58] sm:$0xff] %v15070_v28  }
 0x2ee   : > { %v1565_v14 = vpop.f32.mrf.mxu2  ;;  %v1735_v54 = vpop.f32.mrf.mxu3 }
 0x2ef   : > { %v14910_v19 = vpack.c.bf16 %v1565_v14, %v1563_v49  ;;  %v14990_v55 = vpack.c.bf16 %v1735_v54, %v1733_v50  ;;  %v1398_v56 = vpop.f32.mrf.mxu1  ;;  %v1908_v57 = vpop.f32.mrf.mxu0 }
 0x2f1   : > { %15186 = vst [vmem:[#allocation2 + $0x180] sm:$0xff] %v14910_v19  }
 0x2f2   : > { %15202 = vst [vmem:[#allocation2 + $0xe8] sm:$0xff] %v14990_v55  }
 0x2f6   : > { %v1568_v58 = vpop.f32.mrf.mxu2  ;;  %v1738_v17 = vpop.f32.mrf.mxu3 }
 0x2f7   : > { %v1400_v59 = vpop.f32.mrf.mxu1  ;;  %v1910_v60 = vpop.f32.mrf.mxu0 }
 0x2f8   : > { %v14835_v61 = vpack.c.bf16 %v1400_v59, %v1398_v56  ;;  %v15075_v62 = vpack.c.bf16 %v1910_v60, %v1908_v57 }
 0x2fa   : > { %15171 = vst [vmem:[#allocation2 + $0x178] sm:$0xff] %v14835_v61  }
 0x2fb   : > { %15219 = vst [vmem:[#allocation2 + $0x188] sm:$0xff] %v15075_v62  }
 0x2fe   : > { %v1570_v63 = vpop.f32.mrf.mxu2  ;;  %v1740_v18 = vpop.f32.mrf.mxu3 }
 0x2ff   : > { %v14915_v27 = vpack.c.bf16 %v1570_v63, %v1568_v58  ;;  %v14995_v0 = vpack.c.bf16 %v1740_v18, %v1738_v17 }
 0x301   : > { %15187 = vst [vmem:[#allocation2 + $0x28] sm:$0xff] %v14915_v27  }
 0x302   : > { %15203 = vst [vmem:[#allocation2 + $0xf0] sm:$0xff] %v14995_v0  }
 0x303 PF: > { %v14220_v1 = vld [vmem:[#allocation2 + $0x100] sm:$0xff]  ;;  %v14228_v2 = vld [vmem:[#allocation2 + $0x148] sm:$0xff]  ;;  %v14219_v3 = vld [vmem:[#allocation2 + $0x370] sm:$0xff]  ;;  %s13598_s8 = sshll.u32 %s15629_s25, 7  ;;  %s10226_s25 = sshll.u32 %s15802_s9, 4  ;;  %s10227_s25 = int_to_ptr.vmem [resolvable:$true] %s10226_s25 }
 0x304   : > { %15226 = vmatpush.bf16.msra.mxu2 %v14220_v1  ;;  %15234 = vmatpush.bf16.msra.mxu3 %v14228_v2  ;;  %v14227_v8 = vld [vmem:[#allocation2 + $0x30] sm:$0xff]  ;;  %v14218_v9 = vld [vmem:[#allocation2 + $0x438] sm:$0xff]  ;;  %v14226_v21 = vld [vmem:[#allocation2 + $0xc0] sm:$0xff]  ;;  %s10212_s15 = scalar_lea.sflag [#allocation5], %s272_s27  ;;  %s15539_s11 = scalar_lea.hbm %s18385_s5, 2048 }
 0x305   : > { %6585 = vmatpush.bf16.msra.mxu0 %v14220_v1  ;;  %6754 = vmatpush.bf16.msra.mxu1 %v14228_v2  ;;  %v14217_v10 = vld [vmem:[#allocation2 + $0x320] sm:$0xff]  ;;  %v14225_v11 = vld [vmem:[#allocation2 + $0x48] sm:$0xff]  ;;  %v14215_v6 = vld [vmem:[#allocation2 + $0x10] sm:$0xff] }
 0x306   : > { %v14216_v12 = vld [vmem:[#allocation2 + $0x448] sm:$0xff]  ;;  %v14224_v13 = vld [vmem:[#allocation2 + $0x380] sm:$0xff]  ;;  %v14223_v26 = vld [vmem:[#allocation2 + $0x290] sm:$0xff] }
 0x307   : > { %v14214_v22 = vld [vmem:[#allocation2 + $0x3b0] sm:$0xff]  ;;  %v14221_v25 = vld [vmem:[#allocation2 + $0x300] sm:$0xff]  ;;  %v13934_v31 = vld [vmem:[%s15786_s29 + $0x944] sm:$0xf0] }
 0x308   : > { %15227 = vmatpush.bf16.msra.mxu2 %v14219_v3  ;;  %15235 = vmatpush.bf16.msra.mxu3 %v14227_v8  ;;  %v14222_v23 = vld [vmem:[#allocation2 + $0x2f0] sm:$0xff]  ;;  %v11806_v30 = vld [vmem:[%s15786_s29 + $0x900] sm:$0xf]  ;;  %v13925_v32 = vld [vmem:[%s15786_s29 + $0x904] sm:$0xf] }
 0x309   : > { %6586 = vmatpush.bf16.msra.mxu0 %v14219_v3  ;;  %6755 = vmatpush.bf16.msra.mxu1 %v14227_v8  ;;  %v14213_v24 = vld [vmem:[#allocation2 + $0x2b0] sm:$0xff]  ;;  %v11808_v29 = vld [vmem:[%s15786_s29 + $0x948] sm:$0xf0]  ;;  %v10654_v33 = vld [vmem:[%s15786_s29] sm:$0xf]  ;;  %v11807_v37 = vor.u32 %v13934_v31, %v11806_v30 }
 0x30a   : > { %v13646_v34 = vld [vmem:[%s15786_s29 + $0x44] sm:$0xf0]  ;;  %v13637_v16 = vld [vmem:[%s15786_s29 + $0x4] sm:$0xf]  ;;  %v10656_v35 = vld [vmem:[%s15786_s29 + $0x48] sm:$0xf0]  ;;  %v11811_v38 = vor.u32 %v13925_v32, %v11808_v29 }
 0x30b   : > { %v14236_v5 = vld [vmem:[#allocation2 + $0x450] sm:$0xff]  ;;  %v14244_v36 = vld [vmem:[#allocation2 + $0x68] sm:$0xff]  ;;  %v10655_v39 = vor.u32 %v13646_v34, %v10654_v33  ;;  %v10659_v40 = vor.u32 %v13637_v16, %v10656_v35  ;;  %v14243_v4 = vld [vmem:[#allocation2 + $0x458] sm:$0xff] }
 0x30c   : > { %15228 = vmatpush.bf16.msra.mxu2 %v14218_v9  ;;  %15236 = vmatpush.bf16.msra.mxu3 %v14226_v21  ;;  %v14252_v41 = vld [vmem:[#allocation2 + $0x1e8] sm:$0xff]  ;;  %v14260_v42 = vld [vmem:[#allocation2 + $0xd0] sm:$0xff]  ;;  %v14251_v20 = vld [vmem:[#allocation2 + $0x20] sm:$0xff] }
 0x30d   : > { %6587 = vmatpush.bf16.msra.mxu0 %v14218_v9  ;;  %6756 = vmatpush.bf16.msra.mxu1 %v14226_v21  ;;  %v14235_v43 = vld [vmem:[#allocation2 + $0x1a8] sm:$0xff]  ;;  %v14259_v44 = vld [vmem:[#allocation2 + $0x258] sm:$0xff]  ;;  %v11878_v45 = vld [vmem:[%s15786_s29 + $0x990] sm:$0xf] }
 0x30e   : > { %v13952_v15 = vld [vmem:[%s15786_s29 + $0x9d4] sm:$0xf0]  ;;  %v13943_v46 = vld [vmem:[%s15786_s29 + $0x994] sm:$0xf]  ;;  %v11880_v47 = vld [vmem:[%s15786_s29 + $0x9d8] sm:$0xf0] }
 0x30f   : > { %v10726_v7 = vld [vmem:[%s15786_s29 + $0x90] sm:$0xf]  ;;  %v13664_v48 = vld [vmem:[%s15786_s29 + $0xd4] sm:$0xf0]  ;;  %v13655_v49 = vld [vmem:[%s15786_s29 + $0x94] sm:$0xf]  ;;  %v11879_v51 = vor.u32 %v13952_v15, %v11878_v45  ;;  %v11883_v52 = vor.u32 %v13943_v46, %v11880_v47 }
 0x310   : > { %15229 = vmatpush.bf16.msra.mxu2 %v14217_v10  ;;  %15237 = vmatpush.bf16.msra.mxu3 %v14225_v11  ;;  %v10728_v50 = vld [vmem:[%s15786_s29 + $0xd8] sm:$0xf0]  ;;  %v10727_v53 = vor.u32 %v13664_v48, %v10726_v7  ;;  %v11950_v14 = vld [vmem:[%s15786_s29 + $0xa20] sm:$0xf]  ;;  %v13970_v54 = vld [vmem:[%s15786_s29 + $0xa64] sm:$0xf0] }
 0x311   : > { %6588 = vmatpush.bf16.msra.mxu0 %v14217_v10  ;;  %6757 = vmatpush.bf16.msra.mxu1 %v14225_v11  ;;  %v10731_v28 = vor.u32 %v13655_v49, %v10728_v50  ;;  %v13961_v19 = vld [vmem:[%s15786_s29 + $0xa24] sm:$0xf]  ;;  %v11952_v55 = vld [vmem:[%s15786_s29 + $0xa68] sm:$0xf0]  ;;  %v10798_v56 = vld [vmem:[%s15786_s29 + $0x120] sm:$0xf]  ;;  %v11951_v59 = vor.u32 %v13970_v54, %v11950_v14 }
 0x312   : > { %v13682_v57 = vld [vmem:[%s15786_s29 + $0x164] sm:$0xf0]  ;;  %v13673_v58 = vld [vmem:[%s15786_s29 + $0x124] sm:$0xf]  ;;  %v10800_v17 = vld [vmem:[%s15786_s29 + $0x168] sm:$0xf0]  ;;  %v11955_v60 = vor.u32 %v13961_v19, %v11952_v55 }
 0x313   : > { %v10799_v61 = vor.u32 %v13682_v57, %v10798_v56  ;;  %v10803_v62 = vor.u32 %v13673_v58, %v10800_v17  ;;  %v14234_v63 = vld [vmem:[#allocation2 + $0x3e0] sm:$0xff]  ;;  %v14242_v18 = vld [vmem:[#allocation2 + $0x390] sm:$0xff]  ;;  %v13988_v2 = vld [vmem:[%s15786_s29 + $0xaf4] sm:$0xf0] }
 0x314   : > { %15230 = vmatpush.bf16.msra.mxu2 %v14216_v12  ;;  %15238 = vmatpush.bf16.msra.mxu3 %v14224_v13  ;;  %v14250_v27 = vld [vmem:[#allocation2 + $0xb0] sm:$0xff]  ;;  %v12024_v8 = vld [vmem:[%s15786_s29 + $0xaf8] sm:$0xf0]  ;;  %v13700_v21 = vld [vmem:[%s15786_s29 + $0x1f4] sm:$0xf0] }
 0x315   : > { %6589 = vmatpush.bf16.msra.mxu0 %v14216_v12  ;;  %6758 = vmatpush.bf16.msra.mxu1 %v14224_v13  ;;  %v14258_v0 = vld [vmem:[#allocation2 + $0x1d0] sm:$0xff]  ;;  %v10872_v11 = vld [vmem:[%s15786_s29 + $0x1f8] sm:$0xf0]  ;;  %v10942_v30 = vld [vmem:[%s15786_s29 + $0x240] sm:$0xf] }
 0x316   : > { %v12022_v1 = vld [vmem:[%s15786_s29 + $0xab0] sm:$0xf]  ;;  %v13979_v3 = vld [vmem:[%s15786_s29 + $0xab4] sm:$0xf]  ;;  %v13718_v31 = vld [vmem:[%s15786_s29 + $0x284] sm:$0xf0] }
 0x317   : > { %v10870_v9 = vld [vmem:[%s15786_s29 + $0x1b0] sm:$0xf]  ;;  %v13691_v10 = vld [vmem:[%s15786_s29 + $0x1b4] sm:$0xf]  ;;  %v12023_v12 = vor.u32 %v13988_v2, %v12022_v1  ;;  %v12027_v13 = vor.u32 %v13979_v3, %v12024_v8  ;;  %v13709_v32 = vld [vmem:[%s15786_s29 + $0x244] sm:$0xf]  ;;  %v10943_v16 = vor.u32 %v13718_v31, %v10942_v30 }
 0x318   : > { %15231 = vmatpush.bf16.msra.mxu2 %v14215_v6  ;;  %15239 = vmatpush.bf16.msra.mxu3 %v14223_v26  ;;  %v10944_v29 = vld [vmem:[%s15786_s29 + $0x288] sm:$0xf0]  ;;  %v12238_v7 = vld [vmem:[%s15786_s29 + $0xc60] sm:$0xf]  ;;  %v14042_v48 = vld [vmem:[%s15786_s29 + $0xca4] sm:$0xf0] }
 0x319   : > { %6590 = vmatpush.bf16.msra.mxu0 %v14215_v6  ;;  %6759 = vmatpush.bf16.msra.mxu1 %v14223_v26  ;;  %v10871_v6 = vor.u32 %v13700_v21, %v10870_v9  ;;  %v10875_v26 = vor.u32 %v13691_v10, %v10872_v11  ;;  %v10947_v35 = vor.u32 %v13709_v32, %v10944_v29  ;;  %v14033_v49 = vld [vmem:[%s15786_s29 + $0xc64] sm:$0xf]  ;;  %v12240_v50 = vld [vmem:[%s15786_s29 + $0xca8] sm:$0xf0]  ;;  %v14248_v58 = vld [vmem:[#allocation2 + $0x170] sm:$0xff] }
 0x31a   : > { %v12239_v14 = vor.u32 %v14042_v48, %v12238_v7  ;;  %v12243_v54 = vor.u32 %v14033_v49, %v12240_v50  ;;  %v14232_v56 = vld [vmem:[#allocation2 + $0xe0] sm:$0xff]  ;;  %v14240_v57 = vld [vmem:[#allocation2 + $0xc8] sm:$0xff]  ;;  %v12310_v17 = vld [vmem:[%s15786_s29 + $0xcf0] sm:$0xf] }
 0x31b   : > { %v14256_v2 = vld [vmem:[#allocation2 + $0x18] sm:$0xff]  ;;  %v12382_v9 = vld [vmem:[%s15786_s29 + $0xd80] sm:$0xf]  ;;  %v14078_v21 = vld [vmem:[%s15786_s29 + $0xdc4] sm:$0xf0] }
 0x31c   : > { %15232 = vmatpush.bf16.msra.mxu2 %v14214_v22  ;;  %15240 = vmatpush.bf16.msra.mxu3 %v14222_v23  ;;  %v14069_v10 = vld [vmem:[%s15786_s29 + $0xd84] sm:$0xf]  ;;  %v12384_v11 = vld [vmem:[%s15786_s29 + $0xdc8] sm:$0xf0] }
 0x31d   : > { %6591 = vmatpush.bf16.msra.mxu0 %v14214_v22  ;;  %6760 = vmatpush.bf16.msra.mxu1 %v14222_v23  ;;  %v12094_v22 = vld [vmem:[%s15786_s29 + $0xb40] sm:$0xf]  ;;  %v14006_v23 = vld [vmem:[%s15786_s29 + $0xb84] sm:$0xf0] }
 0x31e   : > { %v12095_v33 = vor.u32 %v14006_v23, %v12094_v22  ;;  %v12383_v22 = vor.u32 %v14078_v21, %v12382_v9  ;;  %v12387_v23 = vor.u32 %v14069_v10, %v12384_v11  ;;  %v14231_v29 = vld [vmem:[#allocation2 + $0x348] sm:$0xff] }
 0x31f   : > { %v14255_v48 = vld [vmem:[#allocation2 + $0x3c8] sm:$0xff] }
 0x320   : > { %15233 = vmatpush.bf16.msra.mxu2 %v14213_v24  ;;  %15241 = vmatpush.bf16.msra.mxu3 %v14221_v25  ;;  %v14230_v11 = vld [vmem:[#allocation2 + $0x88] sm:$0xff] }
 0x321   : > { %6592 = vmatpush.bf16.msra.mxu0 %v14213_v24  ;;  %6761 = vmatpush.bf16.msra.mxu1 %v14221_v25  ;;  %v13997_v24 = vld [vmem:[%s15786_s29 + $0xb44] sm:$0xf]  ;;  %v12096_v25 = vld [vmem:[%s15786_s29 + $0xb88] sm:$0xf0] }
 0x322   : > { %v12099_v34 = vor.u32 %v13997_v24, %v12096_v25 }
 0x323   : > { %6673 = vmatmul.bf16.vlgmr.msra.gmra.mxu2 %v11807_v37  ;;  %6842 = vmatmul.bf16.vlgmr.msra.gmra.mxu3 %v11811_v38  ;;  %v14249_v37 = vld [vmem:[#allocation2 + $0x198] sm:$0xff]  ;;  %v14257_v38 = vld [vmem:[#allocation2 + $0xa0] sm:$0xff] }
 0x324   : > { %6923 = vmatpush.bf16.msrb.mxu2 %v14236_v5  ;;  %7092 = vmatpush.bf16.msrb.mxu3 %v14244_v36  ;;  %v14233_v5 = vld [vmem:[#allocation2 + $0x368] sm:$0xff]  ;;  %v14241_v36 = vld [vmem:[#allocation2 + $0x240] sm:$0xff] }
 0x325   : > { %6593 = vmatmul.bf16.vlgmr.msra.gmra.mxu0 %v10655_v39  ;;  %6762 = vmatmul.bf16.vlgmr.msra.gmra.mxu1 %v10659_v40  ;;  %v12166_v39 = vld [vmem:[%s15786_s29 + $0xbd0] sm:$0xf]  ;;  %v14024_v40 = vld [vmem:[%s15786_s29 + $0xc14] sm:$0xf0] }
 0x326   : > { %7261 = vmatpush.bf16.msrb.mxu0 %v14252_v41  ;;  %7430 = vmatpush.bf16.msrb.mxu1 %v14260_v42  ;;  %v14015_v41 = vld [vmem:[%s15786_s29 + $0xbd4] sm:$0xf]  ;;  %v12168_v42 = vld [vmem:[%s15786_s29 + $0xc18] sm:$0xf0]  ;;  %v12167_v45 = vor.u32 %v14024_v40, %v12166_v39  ;;  %v12454_v39 = vld [vmem:[%s15786_s29 + $0xe10] sm:$0xf] }
 0x327   : > { %v12171_v15 = vor.u32 %v14015_v41, %v12168_v42  ;;  %v14096_v40 = vld [vmem:[%s15786_s29 + $0xe54] sm:$0xf0]  ;;  %v14087_v41 = vld [vmem:[%s15786_s29 + $0xe14] sm:$0xf]  ;;  %v12456_v42 = vld [vmem:[%s15786_s29 + $0xe58] sm:$0xf0] }
 0x328   : > { %6924 = vmatpush.bf16.msrb.mxu2 %v14235_v43  ;;  %7093 = vmatpush.bf16.msrb.mxu3 %v14243_v4  ;;  %v11014_v43 = vld [vmem:[%s15786_s29 + $0x2d0] sm:$0xf]  ;;  %v13736_v4 = vld [vmem:[%s15786_s29 + $0x314] sm:$0xf0]  ;;  %v12459_v7 = vor.u32 %v14087_v41, %v12456_v42 }
 0x329   : > { %v11015_v46 = vor.u32 %v13736_v4, %v11014_v43  ;;  %v11302_v43 = vld [vmem:[%s15786_s29 + $0x510] sm:$0xf]  ;;  %v13808_v4 = vld [vmem:[%s15786_s29 + $0x554] sm:$0xf0] }
 0x32a   : > { %7262 = vmatpush.bf16.msrb.mxu0 %v14251_v20  ;;  %7431 = vmatpush.bf16.msrb.mxu1 %v14259_v44  ;;  %v13727_v20 = vld [vmem:[%s15786_s29 + $0x2d4] sm:$0xf]  ;;  %v11016_v44 = vld [vmem:[%s15786_s29 + $0x318] sm:$0xf0]  ;;  %v11303_v49 = vor.u32 %v13808_v4, %v11302_v43  ;;  %v14254_v43 = vld [vmem:[#allocation2 + $0x60] sm:$0xff] }
 0x32b   : > { %v11019_v47 = vor.u32 %v13727_v20, %v11016_v44  ;;  %v13799_v20 = vld [vmem:[%s15786_s29 + $0x514] sm:$0xf]  ;;  %v11304_v44 = vld [vmem:[%s15786_s29 + $0x558] sm:$0xf0] }
 0x32c   : > { %6925 = vmatpush.bf16.msrb.mxu2 %v14234_v63  ;;  %7094 = vmatpush.bf16.msrb.mxu3 %v14242_v18  ;;  %v13772_v63 = vld [vmem:[%s15786_s29 + $0x434] sm:$0xf0]  ;;  %v13763_v18 = vld [vmem:[%s15786_s29 + $0x3f4] sm:$0xf]  ;;  %v11307_v50 = vor.u32 %v13799_v20, %v11304_v44 }
 0x32e   : > { %7263 = vmatpush.bf16.msrb.mxu0 %v14250_v27  ;;  %7432 = vmatpush.bf16.msrb.mxu1 %v14258_v0  ;;  %v11160_v27 = vld [vmem:[%s15786_s29 + $0x438] sm:$0xf0] }
 0x32f   : > { %v11163_v8 = vor.u32 %v13763_v18, %v11160_v27 }
 0x330   : > { %6926 = vmatpush.bf16.msrb.mxu2 %v14233_v5  ;;  %7095 = vmatpush.bf16.msrb.mxu3 %v14241_v36 }
 0x332   : > { %7264 = vmatpush.bf16.msrb.mxu0 %v14249_v37  ;;  %7433 = vmatpush.bf16.msrb.mxu1 %v14257_v38  ;;  %v14247_v38 = vld [vmem:[#allocation2 + $0x278] sm:$0xff] }
 0x333   : > { %6678 = vmatmul.bf16.gmra.mxu2 %v11879_v51  ;;  %6847 = vmatmul.bf16.gmra.mxu3 %v11883_v52  ;;  %v11086_v51 = vld [vmem:[%s15786_s29 + $0x360] sm:$0xf]  ;;  %v13754_v52 = vld [vmem:[%s15786_s29 + $0x3a4] sm:$0xf0] }
 0x334   : > { %v11087_v19 = vor.u32 %v13754_v52, %v11086_v51  ;;  %6927 = vmatpush.bf16.msrb.mxu2 %v14232_v56  ;;  %7096 = vmatpush.bf16.msrb.mxu3 %v14240_v57  ;;  %v12526_v57 = vld [vmem:[%s15786_s29 + $0xea0] sm:$0xf] }
 0x335   : > { %6598 = vmatmul.bf16.gmra.mxu0 %v10727_v53  ;;  %6767 = vmatmul.bf16.gmra.mxu1 %v10731_v28  ;;  %v13745_v53 = vld [vmem:[%s15786_s29 + $0x364] sm:$0xf]  ;;  %v11088_v28 = vld [vmem:[%s15786_s29 + $0x3a8] sm:$0xf0] }
 0x336   : > { %v11091_v55 = vor.u32 %v13745_v53, %v11088_v28  ;;  %7265 = vmatpush.bf16.msrb.mxu0 %v14248_v58  ;;  %7434 = vmatpush.bf16.msrb.mxu1 %v14256_v2  ;;  %v14114_v58 = vld [vmem:[%s15786_s29 + $0xee4] sm:$0xf0] }
 0x338   : > { %6928 = vmatpush.bf16.msrb.mxu2 %v14231_v29  ;;  %v14123_v29 = vld [vmem:[%s15786_s29 + $0xf34] sm:$0xf] }
 0x33a   : > { %7266 = vmatpush.bf16.msrb.mxu0 %v14247_v38  ;;  %7435 = vmatpush.bf16.msrb.mxu1 %v14255_v48 }
 0x33c   : > { %6929 = vmatpush.bf16.msrb.mxu2 %v14230_v11 }
 0x33e   : > { %7436 = vmatpush.bf16.msrb.mxu1 %v14254_v43  ;;  %v14253_v43 = vld [vmem:[#allocation2 + $0x1f8] sm:$0xff] }
 0x342   : > { %7437 = vmatpush.bf16.msrb.mxu1 %v14253_v43  ;;  %v13916_v43 = vld [vmem:[%s15786_s29 + $0x8b4] sm:$0xf0] }
 0x343   : > { %6683 = vmatmul.bf16.gmra.mxu2 %v11951_v59  ;;  %6852 = vmatmul.bf16.gmra.mxu3 %v11955_v60  ;;  %v14060_v59 = vld [vmem:[%s15786_s29 + $0xd34] sm:$0xf0]  ;;  %v14051_v60 = vld [vmem:[%s15786_s29 + $0xcf4] sm:$0xf] }
 0x344   : > { %v12311_v0 = vor.u32 %v14060_v59, %v12310_v17  ;;  %v14105_v17 = vld [vmem:[%s15786_s29 + $0xea4] sm:$0xf]  ;;  %v12528_v59 = vld [vmem:[%s15786_s29 + $0xee8] sm:$0xf0] }
 0x345   : > { %6603 = vmatmul.bf16.gmra.mxu0 %v10799_v61  ;;  %6772 = vmatmul.bf16.gmra.mxu1 %v10803_v62  ;;  %v12312_v61 = vld [vmem:[%s15786_s29 + $0xd38] sm:$0xf0]  ;;  %v11158_v62 = vld [vmem:[%s15786_s29 + $0x3f0] sm:$0xf]  ;;  %v12531_v2 = vor.u32 %v14105_v17, %v12528_v59  ;;  %v11520_v17 = vld [vmem:[%s15786_s29 + $0x708] sm:$0xf0] }
 0x346   : > { %v12315_v1 = vor.u32 %v14051_v60, %v12312_v61  ;;  %v11159_v3 = vor.u32 %v13772_v63, %v11158_v62  ;;  %v11374_v60 = vld [vmem:[%s15786_s29 + $0x5a0] sm:$0xf]  ;;  %v13826_v61 = vld [vmem:[%s15786_s29 + $0x5e4] sm:$0xf0]  ;;  %v13817_v62 = vld [vmem:[%s15786_s29 + $0x5a4] sm:$0xf] }
 0x347   : > { %v11376_v63 = vld [vmem:[%s15786_s29 + $0x5e8] sm:$0xf0] }
 0x353   : > { %6688 = vmatmul.bf16.gmra.mxu2 %v12023_v12  ;;  %6857 = vmatmul.bf16.gmra.mxu3 %v12027_v13  ;;  %v11230_v12 = vld [vmem:[%s15786_s29 + $0x480] sm:$0xf]  ;;  %v13790_v13 = vld [vmem:[%s15786_s29 + $0x4c4] sm:$0xf0] }
 0x354   : > { %v11231_v24 = vor.u32 %v13790_v13, %v11230_v12  ;;  %v14238_v12 = vld [vmem:[#allocation2 + $0x398] sm:$0xff] }
 0x355   : > { %6608 = vmatmul.bf16.gmra.mxu0 %v10871_v6  ;;  %6777 = vmatmul.bf16.gmra.mxu1 %v10875_v26  ;;  %v13781_v6 = vld [vmem:[%s15786_s29 + $0x484] sm:$0xf]  ;;  %v11232_v26 = vld [vmem:[%s15786_s29 + $0x4c8] sm:$0xf0] }
 0x356   : > { %v11235_v25 = vor.u32 %v13781_v6, %v11232_v26 }
 0x363   : > { %6693 = vmatmul.bf16.gmra.mxu2 %v12095_v33  ;;  %6862 = vmatmul.bf16.gmra.mxu3 %v12099_v34  ;;  %v14239_v33 = vld [vmem:[#allocation2 + $0x350] sm:$0xff] }
 0x364   : > { %7097 = vmatpush.bf16.msrb.mxu3 %v14239_v33  ;;  %v12600_v33 = vld [vmem:[%s15786_s29 + $0xf78] sm:$0xf0] }
 0x365   : > { %6613 = vmatmul.bf16.gmra.mxu0 %v10943_v16  ;;  %6782 = vmatmul.bf16.gmra.mxu1 %v10947_v35  ;;  %v12603_v42 = vor.u32 %v14123_v29, %v12600_v33  ;;  %v12744_v29 = vld [vmem:[%s15786_s29 + $0x1098] sm:$0xf0]  ;;  %v11590_v33 = vld [vmem:[%s15786_s29 + $0x750] sm:$0xf] }
 0x368   : > { %7098 = vmatpush.bf16.msrb.mxu3 %v14238_v12 }
 0x373   : > { %6698 = vmatmul.bf16.gmra.mxu2 %v12167_v45  ;;  %6867 = vmatmul.bf16.gmra.mxu3 %v12171_v15 }
 0x375   : > { %6618 = vmatmul.bf16.gmra.mxu0 %v11015_v46  ;;  %6787 = vmatmul.bf16.gmra.mxu1 %v11019_v47  ;;  %v12455_v47 = vor.u32 %v14096_v40, %v12454_v39 }
 0x383   : > { %6703 = vmatmul.bf16.gmra.mxu2 %v12239_v14  ;;  %6872 = vmatmul.bf16.gmra.mxu3 %v12243_v54 }
 0x385   : > { %6623 = vmatmul.bf16.gmra.mxu0 %v11087_v19  ;;  %6792 = vmatmul.bf16.gmra.mxu1 %v11091_v55 }
 0x393   : > { %6708 = vmatmul.bf16.gmra.mxu2 %v12311_v0  ;;  %6877 = vmatmul.bf16.gmra.mxu3 %v12315_v1  ;;  %v12527_v1 = vor.u32 %v14114_v58, %v12526_v57  ;;  %v13862_v57 = vld [vmem:[%s15786_s29 + $0x704] sm:$0xf0]  ;;  %v13853_v58 = vld [vmem:[%s15786_s29 + $0x6c4] sm:$0xf] }
 0x395   : > { %6628 = vmatmul.bf16.gmra.mxu0 %v11159_v3  ;;  %6797 = vmatmul.bf16.gmra.mxu1 %v11163_v8  ;;  %v11375_v3 = vor.u32 %v13826_v61, %v11374_v60  ;;  %v11379_v8 = vor.u32 %v13817_v62, %v11376_v63 }
 0x3a2   : > { %v6594_v30 = vpop.f32.mrf.mxu0  ;;  %v6763_v31 = vpop.f32.mrf.mxu1 }
 0x3a3   : > { %v16255_v32 = vadd.f32 %v6763_v31, %v6594_v30  ;;  %6713 = vmatmul.bf16.gmra.mxu2 %v12383_v22  ;;  %6882 = vmatmul.bf16.gmra.mxu3 %v12387_v23  ;;  %v12598_v30 = vld [vmem:[%s15786_s29 + $0xf30] sm:$0xf]  ;;  %v14132_v31 = vld [vmem:[%s15786_s29 + $0xf74] sm:$0xf0] }
 0x3a4   : > { %v12599_v41 = vor.u32 %v14132_v31, %v12598_v30  ;;  %v14168_v30 = vld [vmem:[%s15786_s29 + $0x1094] sm:$0xf0]  ;;  %v14159_v31 = vld [vmem:[%s15786_s29 + $0x1054] sm:$0xf] }
 0x3a5   : > { %6633 = vmatmul.bf16.gmra.mxu0 %v11231_v24  ;;  %6802 = vmatmul.bf16.gmra.mxu1 %v11235_v25  ;;  %v14246_v25 = vld [vmem:[#allocation2 + $0x298] sm:$0xff] }
 0x3a6   : > { %v6674_v34 = vpop.f32.mrf.mxu2  ;;  %v6843_v16 = vpop.f32.mrf.mxu3  ;;  %7267 = vmatpush.bf16.msrb.mxu0 %v14246_v25  ;;  %v12742_v25 = vld [vmem:[%s15786_s29 + $0x1050] sm:$0xf] }
 0x3a7   : > { %v16257_v35 = vadd.f32 %v6843_v16, %v6674_v34  ;;  %v11446_v34 = vld [vmem:[%s15786_s29 + $0x630] sm:$0xf]  ;;  %v13844_v16 = vld [vmem:[%s15786_s29 + $0x674] sm:$0xf0] }
 0x3a8   : > { %v11447_v4 = vor.u32 %v13844_v16, %v11446_v34  ;;  %v13880_v34 = vld [vmem:[%s15786_s29 + $0x794] sm:$0xf0]  ;;  %v13871_v16 = vld [vmem:[%s15786_s29 + $0x754] sm:$0xf] }
 0x3aa   : > { %v6596_v5 = vpop.f32.mrf.mxu0  ;;  %v6765_v36 = vpop.f32.mrf.mxu1 }
 0x3ab   : > { %v16259_v37 = vadd.f32 %v6765_v36, %v6596_v5  ;;  %v13835_v5 = vld [vmem:[%s15786_s29 + $0x634] sm:$0xf]  ;;  %v11448_v36 = vld [vmem:[%s15786_s29 + $0x678] sm:$0xf0] }
 0x3ac   : > { %v11451_v20 = vor.u32 %v13835_v5, %v11448_v36  ;;  %v11592_v5 = vld [vmem:[%s15786_s29 + $0x798] sm:$0xf0] }
 0x3ae   : > { %v6676_v45 = vpop.f32.mrf.mxu2  ;;  %v6845_v15 = vpop.f32.mrf.mxu3 }
 0x3af   : > { %v16269_v46 = vadd.f32 %v6845_v15, %v6676_v45 }
 0x3b2   : > { %v6599_v51 = vpop.f32.mrf.mxu0  ;;  %v6768_v52 = vpop.f32.mrf.mxu1 }
 0x3b3   : > { %v16271_v53 = vadd.f32 %v6768_v52, %v6599_v51  ;;  %6718 = vmatmul.bf16.gmra.mxu2 %v12455_v47  ;;  %6887 = vmatmul.bf16.gmra.mxu3 %v12459_v7  ;;  %v12670_v52 = vld [vmem:[%s15786_s29 + $0xfc0] sm:$0xf] }
 0x3b5   : > { %6638 = vmatmul.bf16.gmra.mxu0 %v11303_v49  ;;  %6807 = vmatmul.bf16.gmra.mxu1 %v11307_v50 }
 0x3b6   : > { %v6679_v28 = vpop.f32.mrf.mxu2  ;;  %v6848_v14 = vpop.f32.mrf.mxu3 }
 0x3b7   : > { %v16273_v54 = vadd.f32 %v6848_v14, %v6679_v28  ;;  %v14150_v28 = vld [vmem:[%s15786_s29 + $0x1004] sm:$0xf0]  ;;  %v14141_v14 = vld [vmem:[%s15786_s29 + $0xfc4] sm:$0xf] }
 0x3b8   : > { %v12671_v62 = vor.u32 %v14150_v28, %v12670_v52 }
 0x3ba   : > { %v6601_v19 = vpop.f32.mrf.mxu0  ;;  %v6770_v55 = vpop.f32.mrf.mxu1 }
 0x3bb   : > { %v16275_v56 = vadd.f32 %v6770_v55, %v6601_v19  ;;  %v12672_v19 = vld [vmem:[%s15786_s29 + $0x1008] sm:$0xf0]  ;;  %v11518_v55 = vld [vmem:[%s15786_s29 + $0x6c0] sm:$0xf] }
 0x3bc   : > { %v12675_v63 = vor.u32 %v14141_v14, %v12672_v19  ;;  %v12814_v19 = vld [vmem:[%s15786_s29 + $0x10e0] sm:$0xf] }
 0x3be   : > { %v6681_v18 = vpop.f32.mrf.mxu2  ;;  %v6850_v27 = vpop.f32.mrf.mxu3 }
 0x3bf   : > { %v16285_v0 = vadd.f32 %v6850_v27, %v6681_v18  ;;  %v11519_v18 = vor.u32 %v13862_v57, %v11518_v55  ;;  %v11523_v27 = vor.u32 %v13853_v58, %v11520_v17  ;;  %v14186_v55 = vld [vmem:[%s15786_s29 + $0x1124] sm:$0xf0]  ;;  %v14177_v57 = vld [vmem:[%s15786_s29 + $0x10e4] sm:$0xf]  ;;  %v12816_v58 = vld [vmem:[%s15786_s29 + $0x1128] sm:$0xf0] }
 0x3c0   : > { %v11662_v17 = vld [vmem:[%s15786_s29 + $0x7e0] sm:$0xf] }
 0x3c2   : > { %v6604_v9 = vpop.f32.mrf.mxu0  ;;  %v6773_v21 = vpop.f32.mrf.mxu1 }
 0x3c3   : > { %v16287_v10 = vadd.f32 %v6773_v21, %v6604_v9  ;;  %6723 = vmatmul.bf16.gmra.mxu2 %v12527_v1  ;;  %6892 = vmatmul.bf16.gmra.mxu3 %v12531_v2  ;;  %v14237_v9 = vld [vmem:[#allocation2 + $0x420] sm:$0xff] }
 0x3c4   : > { %7099 = vmatpush.bf16.msrb.mxu3 %v14237_v9 }
 0x3c5   : > { %6643 = vmatmul.bf16.gmra.mxu0 %v11375_v3  ;;  %6812 = vmatmul.bf16.gmra.mxu1 %v11379_v8  ;;  %v14229_v8 = vld [vmem:[#allocation2 + $0x208] sm:$0xff] }
 0x3c6   : > { %v6684_v13 = vpop.f32.mrf.mxu2  ;;  %v6853_v6 = vpop.f32.mrf.mxu3  ;;  %6930 = vmatpush.bf16.msrb.mxu2 %v14229_v8 }
 0x3c7   : > { %v16289_v26 = vadd.f32 %v6853_v6, %v6684_v13 }
 0x3ca   : > { %v6606_v22 = vpop.f32.mrf.mxu0  ;;  %v6775_v23 = vpop.f32.mrf.mxu1 }
 0x3cb   : > { %v16291_v24 = vadd.f32 %v6775_v23, %v6606_v22  ;;  %v14245_v23 = vld [vmem:[#allocation2 + $0x470] sm:$0xff] }
 0x3cc   : > { %7268 = vmatpush.bf16.msrb.mxu0 %v14245_v23  ;;  %v14276_v23 = vld [vmem:[#allocation2 + $0x3c0] sm:$0xff] }
 0x3cd   : > { %7768 = vmatpush.bf16.msra.mxu3 %v14276_v23  ;;  %v13639_v23 = vld [vmem:[%s15786_s29 + $0x14] sm:$0xf] }
 0x3ce   : > { %v6686_v38 = vpop.f32.mrf.mxu2  ;;  %v6855_v39 = vpop.f32.mrf.mxu3 }
 0x3cf   : > { %v16301_v40 = vadd.f32 %v6855_v39, %v6686_v38 }
 0x3d2   : > { %v6609_v44 = vpop.f32.mrf.mxu0  ;;  %v6778_v45 = vpop.f32.mrf.mxu1 }
 0x3d3   : > { %v16303_v15 = vadd.f32 %v6778_v45, %v6609_v44  ;;  %6728 = vmatmul.bf16.gmra.mxu2 %v12599_v41  ;;  %6897 = vmatmul.bf16.gmra.mxu3 %v12603_v42  ;;  %v12743_v41 = vor.u32 %v14168_v30, %v12742_v25  ;;  %v12747_v42 = vor.u32 %v14159_v31, %v12744_v29 }
 0x3d5   : > { %6648 = vmatmul.bf16.gmra.mxu0 %v11447_v4  ;;  %6817 = vmatmul.bf16.gmra.mxu1 %v11451_v20  ;;  %v11591_v4 = vor.u32 %v13880_v34, %v11590_v33  ;;  %v11595_v20 = vor.u32 %v13871_v16, %v11592_v5  ;;  %v14284_v16 = vld [vmem:[#allocation2 + $0xf8] sm:$0xff]  ;;  %v12886_v5 = vld [vmem:[%s15786_s29 + $0x1170] sm:$0xf] }
 0x3d6   : > { %v6689_v47 = vpop.f32.mrf.mxu2  ;;  %v6858_v7 = vpop.f32.mrf.mxu3  ;;  %7937 = vmatpush.bf16.msra.mxu0 %v14284_v16 }
 0x3d7   : > { %v16305_v48 = vadd.f32 %v6858_v7, %v6689_v47 }
 0x3da   : > { %v6611_v49 = vpop.f32.mrf.mxu0  ;;  %v6780_v50 = vpop.f32.mrf.mxu1 }
 0x3db   : > { %v16307_v51 = vadd.f32 %v6780_v50, %v6611_v49 }
 0x3de   : > { %v6691_v59 = vpop.f32.mrf.mxu2  ;;  %v6860_v60 = vpop.f32.mrf.mxu3 }
 0x3df   : > { %v16317_v61 = vadd.f32 %v6860_v60, %v6691_v59  ;;  %v13898_v59 = vld [vmem:[%s15786_s29 + $0x824] sm:$0xf0]  ;;  %v13889_v60 = vld [vmem:[%s15786_s29 + $0x7e4] sm:$0xf] }
 0x3e0   : > { %v11663_v8 = vor.u32 %v13898_v59, %v11662_v17 }
 0x3e2   : > { %v6614_v1 = vpop.f32.mrf.mxu0  ;;  %v6783_v2 = vpop.f32.mrf.mxu1 }
 0x3e3   : > { %v16319_v3 = vadd.f32 %v6783_v2, %v6614_v1  ;;  %6733 = vmatmul.bf16.gmra.mxu2 %v12671_v62  ;;  %6902 = vmatmul.bf16.gmra.mxu3 %v12675_v63  ;;  %v11664_v62 = vld [vmem:[%s15786_s29 + $0x828] sm:$0xf0]  ;;  %v12815_v1 = vor.u32 %v14186_v55, %v12814_v19  ;;  %v12819_v2 = vor.u32 %v14177_v57, %v12816_v58 }
 0x3e4   : > { %v11667_v9 = vor.u32 %v13889_v60, %v11664_v62 }
 0x3e5   : > { %6653 = vmatmul.bf16.gmra.mxu0 %v11519_v18  ;;  %6822 = vmatmul.bf16.gmra.mxu1 %v11523_v27 }
 0x3e6   : > { %v6694_v21 = vpop.f32.mrf.mxu2  ;;  %v6863_v11 = vpop.f32.mrf.mxu3 }
 0x3e7   : > { %v16321_v12 = vadd.f32 %v6863_v11, %v6694_v21 }
 0x3ea   : > { %v6616_v13 = vpop.f32.mrf.mxu0  ;;  %v6785_v6 = vpop.f32.mrf.mxu1 }
 0x3eb   : > { %v16323_v22 = vadd.f32 %v6785_v6, %v6616_v13  ;;  %v14268_v6 = vld [vmem:[#allocation2 + $0x220] sm:$0xff] }
 0x3ec   : > { %7599 = vmatpush.bf16.msra.mxu2 %v14268_v6  ;;  %v13648_v6 = vld [vmem:[%s15786_s29 + $0x54] sm:$0xf0] }
 0x3ee   : > { %v6696_v36 = vpop.f32.mrf.mxu2  ;;  %v6865_v38 = vpop.f32.mrf.mxu3 }
 0x3ef   : > { %v16333_v39 = vadd.f32 %v6865_v38, %v6696_v36  ;;  %v14204_v36 = vld [vmem:[%s15786_s29 + $0x11b4] sm:$0xf0]  ;;  %v14195_v38 = vld [vmem:[%s15786_s29 + $0x1174] sm:$0xf] }
 0x3f1   : > { %18402 = vst [vmem:[#allocation16_spill] sm:$0xff] %v16333_v39 }
 0x3f2   : > { %v6619_v44 = vpop.f32.mrf.mxu0  ;;  %v6788_v45 = vpop.f32.mrf.mxu1 }
 0x3f3   : > { %v16335_v47 = vadd.f32 %v6788_v45, %v6619_v44  ;;  %6738 = vmatmul.bf16.gmra.mxu2 %v12743_v41  ;;  %6907 = vmatmul.bf16.gmra.mxu3 %v12747_v42  ;;  %v12888_v41 = vld [vmem:[%s15786_s29 + $0x11b8] sm:$0xf0]  ;;  %v11734_v42 = vld [vmem:[%s15786_s29 + $0x870] sm:$0xf] }
 0x3f4   : > { %v11735_v19 = vor.u32 %v13916_v43, %v11734_v42 }
 0x3f5   : > { %6658 = vmatmul.bf16.gmra.mxu0 %v11591_v4  ;;  %6827 = vmatmul.bf16.gmra.mxu1 %v11595_v20  ;;  %v13907_v4 = vld [vmem:[%s15786_s29 + $0x874] sm:$0xf]  ;;  %v11736_v20 = vld [vmem:[%s15786_s29 + $0x8b8] sm:$0xf0] }
 0x3f6   : > { %v6699_v7 = vpop.f32.mrf.mxu2  ;;  %v6868_v49 = vpop.f32.mrf.mxu3  ;;  %v11739_v55 = vor.u32 %v13907_v4, %v11736_v20 }
 0x3f7   : > { %v16337_v50 = vadd.f32 %v6868_v49, %v6699_v7  ;;  %v12887_v49 = vor.u32 %v14204_v36, %v12886_v5 }
 0x3f9   : > { %18403 = vst [vmem:[#allocation17_spill] sm:$0xff] %v16337_v50 }
 0x3fa   : > { %v6621_v52 = vpop.f32.mrf.mxu0  ;;  %v6790_v28 = vpop.f32.mrf.mxu1 }
 0x3fb   : > { %v16339_v14 = vadd.f32 %v6790_v28, %v6621_v52  ;;  %v12891_v52 = vor.u32 %v14195_v38, %v12888_v41  ;;  %v14292_v28 = vld [vmem:[#allocation2 + $0x410] sm:$0xff] }
 0x3fc   : > { %8106 = vmatpush.bf16.msra.mxu1 %v14292_v28  ;;  %v10734_v28 = vld [vmem:[%s15786_s29 + $0x98] sm:$0xf] }
 0x3fe   : > { %v6701_v63 = vpop.f32.mrf.mxu2  ;;  %v6870_v18 = vpop.f32.mrf.mxu3 }
 0x3ff   : > { %v16349_v27 = vadd.f32 %v6870_v18, %v6701_v63 }
 0x401   : > { %18404 = vst [vmem:[#allocation18_spill] sm:$0xff] %v16349_v27 }
 0x402   : > { %v6624_v21 = vpop.f32.mrf.mxu0  ;;  %v6793_v11 = vpop.f32.mrf.mxu1 }
 0x403   : > { %v16351_v13 = vadd.f32 %v6793_v11, %v6624_v21  ;;  %6743 = vmatmul.bf16.gmra.mxu2 %v12815_v1  ;;  %6912 = vmatmul.bf16.gmra.mxu3 %v12819_v2  ;;  %v10662_v2 = vld [vmem:[%s15786_s29 + $0x8] sm:$0xf]  ;;  %v10664_v21 = vld [vmem:[%s15786_s29 + $0x50] sm:$0xf0]  ;;  %v10670_v11 = vld [vmem:[%s15786_s29 + $0x10] sm:$0xf] }
 0x404   : > { %v10671_v36 = vor.u32 %v13648_v6, %v10670_v11 }
 0x405   : > { %6663 = vmatmul.bf16.gmra.mxu0 %v11663_v8  ;;  %6832 = vmatmul.bf16.gmra.mxu1 %v11667_v9  ;;  %v13647_v8 = vld [vmem:[%s15786_s29 + $0x4c] sm:$0xf0]  ;;  %v13638_v9 = vld [vmem:[%s15786_s29 + $0xc] sm:$0xf] }
 0x406   : > { %v6704_v25 = vpop.f32.mrf.mxu2  ;;  %v6873_v30 = vpop.f32.mrf.mxu3  ;;  %v10663_v16 = vor.u32 %v13647_v8, %v10662_v2  ;;  %v10667_v5 = vor.u32 %v13638_v9, %v10664_v21 }
 0x407   : > { %v16353_v31 = vadd.f32 %v6873_v30, %v6704_v25  ;;  %v10672_v25 = vld [vmem:[%s15786_s29 + $0x58] sm:$0xf0] }
 0x408   : > { %v10675_v38 = vor.u32 %v13639_v23, %v10672_v25 }
 0x409   : > { %18405 = vst [vmem:[#allocation19_spill] sm:$0xff] %v16353_v31 }
 0x40a   : > { %v6626_v29 = vpop.f32.mrf.mxu0  ;;  %v6795_v33 = vpop.f32.mrf.mxu1 }
 0x40b   : > { %v16355_v34 = vadd.f32 %v6795_v33, %v6626_v29 }
 0x40e   : > { %v6706_v44 = vpop.f32.mrf.mxu2  ;;  %v6875_v45 = vpop.f32.mrf.mxu3 }
 0x40f   : > { %v16365_v7 = vadd.f32 %v6875_v45, %v6706_v44 }
 0x411   : > { %18406 = vst [vmem:[#allocation20_spill] sm:$0xff] %v16365_v7  ;;  %v13801_v7 = vld [vmem:[%s15786_s29 + $0x524] sm:$0xf] }
 0x412   : > { %v6629_v57 = vpop.f32.mrf.mxu0  ;;  %v6798_v58 = vpop.f32.mrf.mxu1 }
 0x413   : > { %v16367_v17 = vadd.f32 %v6798_v58, %v6629_v57  ;;  %6748 = vmatmul.bf16.gmra.mxu2 %v12887_v49  ;;  %6917 = vmatmul.bf16.gmra.mxu3 %v12891_v52  ;;  %v10736_v57 = vld [vmem:[%s15786_s29 + $0xe0] sm:$0xf0]  ;;  %v10742_v58 = vld [vmem:[%s15786_s29 + $0xa0] sm:$0xf] }
 0x415   : > { %6668 = vmatmul.bf16.gmra.mxu0 %v11735_v19  ;;  %6837 = vmatmul.bf16.gmra.mxu1 %v11739_v55  ;;  %v13665_v19 = vld [vmem:[%s15786_s29 + $0xdc] sm:$0xf0]  ;;  %v13656_v55 = vld [vmem:[%s15786_s29 + $0x9c] sm:$0xf] }
 0x416   : > { %v6709_v59 = vpop.f32.mrf.mxu2  ;;  %v6878_v60 = vpop.f32.mrf.mxu3  ;;  %v10735_v9 = vor.u32 %v13665_v19, %v10734_v28  ;;  %v10739_v21 = vor.u32 %v13656_v55, %v10736_v57  ;;  %v13684_v28 = vld [vmem:[%s15786_s29 + $0x174] sm:$0xf0]  ;;  %v13675_v19 = vld [vmem:[%s15786_s29 + $0x134] sm:$0xf]  ;;  %v10816_v55 = vld [vmem:[%s15786_s29 + $0x178] sm:$0xf0] }
 0x417   : > { %v16369_v62 = vadd.f32 %v6878_v60, %v6709_v59  ;;  %v13666_v59 = vld [vmem:[%s15786_s29 + $0xe4] sm:$0xf0]  ;;  %v13657_v60 = vld [vmem:[%s15786_s29 + $0xa4] sm:$0xf] }
 0x418   : > { %v10743_v11 = vor.u32 %v13666_v59, %v10742_v58 }
 0x419   : > { %18407 = vst [vmem:[#allocation21_spill] sm:$0xff] %v16369_v62 }
 0x41a   : > { %v6631_v63 = vpop.f32.mrf.mxu0  ;;  %v6800_v18 = vpop.f32.mrf.mxu1 }
 0x41b   : > { %v16371_v1 = vadd.f32 %v6800_v18, %v6631_v63  ;;  %v10744_v63 = vld [vmem:[%s15786_s29 + $0xe8] sm:$0xf0] }
 0x41c   : > { %v10747_v6 = vor.u32 %v13657_v60, %v10744_v63 }
 0x41e   : > { %v6711_v30 = vpop.f32.mrf.mxu2  ;;  %v6880_v29 = vpop.f32.mrf.mxu3 }
 0x41f   : > { %v16381_v33 = vadd.f32 %v6880_v29, %v6711_v30 }
 0x421   : > { %18408 = vst [vmem:[#allocation22_spill] sm:$0xff] %v16381_v33 }
 0x422   : > { %v6634_v41 = vpop.f32.mrf.mxu0  ;;  %v6803_v42 = vpop.f32.mrf.mxu1 }
 0x423   : > { %v16383_v43 = vadd.f32 %v6803_v42, %v6634_v41  ;;  %6931 = vmatmul.bf16.vlgmr.msrb.gmra.mxu2 %v10663_v16  ;;  %7100 = vmatmul.bf16.vlgmr.msrb.gmra.mxu3 %v10667_v5  ;;  %v10806_v42 = vld [vmem:[%s15786_s29 + $0x128] sm:$0xf] }
 0x425   : > { %7269 = vmatmul.bf16.vlgmr.msrb.gmra.mxu0 %v10671_v36  ;;  %7438 = vmatmul.bf16.vlgmr.msrb.gmra.mxu1 %v10675_v38 }
 0x426   : > { %v6714_v4 = vpop.f32.mrf.mxu2  ;;  %v6883_v20 = vpop.f32.mrf.mxu3 }
 0x427   : > { %v16385_v44 = vadd.f32 %v6883_v20, %v6714_v4  ;;  %v13683_v4 = vld [vmem:[%s15786_s29 + $0x16c] sm:$0xf0]  ;;  %v13674_v20 = vld [vmem:[%s15786_s29 + $0x12c] sm:$0xf] }
 0x428   : > { %v10807_v60 = vor.u32 %v13683_v4, %v10806_v42  ;;  %v14283_v4 = vld [vmem:[#allocation2 + $0x3a0] sm:$0xff] }
 0x429   : > { %18409 = vst [vmem:[#allocation23_spill] sm:$0xff] %v16385_v44  ;;  %7938 = vmatpush.bf16.msra.mxu0 %v14283_v4 }
 0x42a   : > { %v6636_v45 = vpop.f32.mrf.mxu0  ;;  %v6805_v49 = vpop.f32.mrf.mxu1 }
 0x42b   : > { %v16387_v52 = vadd.f32 %v6805_v49, %v6636_v45  ;;  %v10808_v45 = vld [vmem:[%s15786_s29 + $0x170] sm:$0xf0]  ;;  %v10814_v49 = vld [vmem:[%s15786_s29 + $0x130] sm:$0xf] }
 0x42c   : > { %v10811_v63 = vor.u32 %v13674_v20, %v10808_v45  ;;  %v10878_v20 = vld [vmem:[%s15786_s29 + $0x1b8] sm:$0xf]  ;;  %v13701_v45 = vld [vmem:[%s15786_s29 + $0x1fc] sm:$0xf0] }
 0x42e   : > { %v6716_v18 = vpop.f32.mrf.mxu2  ;;  %v6885_v2 = vpop.f32.mrf.mxu3 }
 0x42f   : > { %v16397_v8 = vadd.f32 %v6885_v2, %v6716_v18  ;;  %v10815_v18 = vor.u32 %v13684_v28, %v10814_v49  ;;  %v10819_v2 = vor.u32 %v13675_v19, %v10816_v55  ;;  %v13692_v49 = vld [vmem:[%s15786_s29 + $0x1bc] sm:$0xf]  ;;  %v10880_v28 = vld [vmem:[%s15786_s29 + $0x200] sm:$0xf0]  ;;  %v10886_v19 = vld [vmem:[%s15786_s29 + $0x1c0] sm:$0xf] }
 0x430   : > { %v13702_v55 = vld [vmem:[%s15786_s29 + $0x204] sm:$0xf0] }
 0x431   : > { %18410 = vst [vmem:[#allocation24_spill] sm:$0xff] %v16397_v8 }
 0x432   : > { %v6639_v23 = vpop.f32.mrf.mxu0  ;;  %v6808_v25 = vpop.f32.mrf.mxu1 }
 0x433   : > { %v16399_v30 = vadd.f32 %v6808_v25, %v6639_v23  ;;  %6936 = vmatmul.bf16.gmra.mxu2 %v10735_v9  ;;  %7105 = vmatmul.bf16.gmra.mxu3 %v10739_v21  ;;  %v14275_v23 = vld [vmem:[#allocation2 + $0x2c8] sm:$0xff] }
 0x434   : > { %7769 = vmatpush.bf16.msra.mxu3 %v14275_v23 }
 0x435   : > { %7274 = vmatmul.bf16.gmra.mxu0 %v10743_v11  ;;  %7443 = vmatmul.bf16.gmra.mxu1 %v10747_v6  ;;  %v14267_v6 = vld [vmem:[#allocation2 + $0x330] sm:$0xff] }
 0x436   : > { %v6719_v29 = vpop.f32.mrf.mxu2  ;;  %v6888_v16 = vpop.f32.mrf.mxu3  ;;  %7600 = vmatpush.bf16.msra.mxu2 %v14267_v6  ;;  %v10887_v6 = vor.u32 %v13702_v55, %v10886_v19  ;;  %v10950_v19 = vld [vmem:[%s15786_s29 + $0x248] sm:$0xf]  ;;  %v13719_v55 = vld [vmem:[%s15786_s29 + $0x28c] sm:$0xf0] }
 0x437   : > { %v16401_v5 = vadd.f32 %v6888_v16, %v6719_v29 }
 0x439   : > { %18411 = vst [vmem:[#allocation25_spill] sm:$0xff] %v16401_v5 }
 0x43a   : > { %v6641_v36 = vpop.f32.mrf.mxu0  ;;  %v6810_v38 = vpop.f32.mrf.mxu1 }
 0x43b   : > { %v16403_v41 = vadd.f32 %v6810_v38, %v6641_v36 }
 0x43e   : > { %v6721_v57 = vpop.f32.mrf.mxu2  ;;  %v6890_v58 = vpop.f32.mrf.mxu3 }
 0x43f   : > { %v16413_v59 = vadd.f32 %v6890_v58, %v6721_v57  ;;  %v13693_v57 = vld [vmem:[%s15786_s29 + $0x1c4] sm:$0xf]  ;;  %v10888_v58 = vld [vmem:[%s15786_s29 + $0x208] sm:$0xf0] }
 0x440   : > { %v10891_v23 = vor.u32 %v13693_v57, %v10888_v58  ;;  %v13710_v57 = vld [vmem:[%s15786_s29 + $0x24c] sm:$0xf]  ;;  %v10952_v58 = vld [vmem:[%s15786_s29 + $0x290] sm:$0xf0] }
 0x441   : > { %18412 = vst [vmem:[#allocation26_spill] sm:$0xff] %v16413_v59 }
 0x442   : > { %v6644_v9 = vpop.f32.mrf.mxu0  ;;  %v6813_v21 = vpop.f32.mrf.mxu1 }
 0x443   : > { %v16415_v11 = vadd.f32 %v6813_v21, %v6644_v9  ;;  %6941 = vmatmul.bf16.gmra.mxu2 %v10807_v60  ;;  %7110 = vmatmul.bf16.gmra.mxu3 %v10811_v63  ;;  %v10883_v9 = vor.u32 %v13692_v49, %v10880_v28  ;;  %v14291_v21 = vld [vmem:[#allocation2 + $0x228] sm:$0xff] }
 0x444   : > { %8107 = vmatpush.bf16.msra.mxu1 %v14291_v21  ;;  %v10960_v21 = vld [vmem:[%s15786_s29 + $0x298] sm:$0xf0] }
 0x445   : > { %7279 = vmatmul.bf16.gmra.mxu0 %v10815_v18  ;;  %7448 = vmatmul.bf16.gmra.mxu1 %v10819_v2  ;;  %v10879_v2 = vor.u32 %v13701_v45, %v10878_v20 }
 0x446   : > { %v6724_v25 = vpop.f32.mrf.mxu2  ;;  %v6893_v29 = vpop.f32.mrf.mxu3 }
 0x447   : > { %v16417_v16 = vadd.f32 %v6893_v29, %v6724_v25 }
 0x449   : > { %18413 = vst [vmem:[#allocation27_spill] sm:$0xff] %v16417_v16 }
 0x44a   : > { %v6646_v36 = vpop.f32.mrf.mxu0  ;;  %v6815_v38 = vpop.f32.mrf.mxu1 }
 0x44b   : > { %v16419_v42 = vadd.f32 %v6815_v38, %v6646_v36 }
 0x44e   : > { %v6726_v60 = vpop.f32.mrf.mxu2  ;;  %v6895_v63 = vpop.f32.mrf.mxu3 }
 0x44f   : > { %v16429_v18 = vadd.f32 %v6895_v63, %v6726_v60  ;;  %v10958_v60 = vld [vmem:[%s15786_s29 + $0x250] sm:$0xf]  ;;  %v13720_v63 = vld [vmem:[%s15786_s29 + $0x294] sm:$0xf0] }
 0x451   : > { %18414 = vst [vmem:[#allocation28_spill] sm:$0xff] %v16429_v18 }
 0x452   : > { %v6649_v25 = vpop.f32.mrf.mxu0  ;;  %v6818_v29 = vpop.f32.mrf.mxu1 }
 0x453   : > { %v16431_v36 = vadd.f32 %v6818_v29, %v6649_v25  ;;  %6946 = vmatmul.bf16.gmra.mxu2 %v10879_v2  ;;  %7115 = vmatmul.bf16.gmra.mxu3 %v10883_v9  ;;  %v13711_v2 = vld [vmem:[%s15786_s29 + $0x254] sm:$0xf]  ;;  %v10955_v29 = vor.u32 %v13710_v57, %v10952_v58 }
 0x455   : > { %7284 = vmatmul.bf16.gmra.mxu0 %v10887_v6  ;;  %7453 = vmatmul.bf16.gmra.mxu1 %v10891_v23  ;;  %v10951_v23 = vor.u32 %v13719_v55, %v10950_v19 }
 0x456   : > { %v6729_v38 = vpop.f32.mrf.mxu2  ;;  %v6898_v4 = vpop.f32.mrf.mxu3 }
 0x457   : > { %v16433_v20 = vadd.f32 %v6898_v4, %v6729_v38  ;;  %v10959_v38 = vor.u32 %v13720_v63, %v10958_v60  ;;  %v10963_v4 = vor.u32 %v13711_v2, %v10960_v21  ;;  %v11022_v2 = vld [vmem:[%s15786_s29 + $0x2d8] sm:$0xf]  ;;  %v13737_v21 = vld [vmem:[%s15786_s29 + $0x31c] sm:$0xf0] }
 0x459   : > { %18415 = vst [vmem:[#allocation29_spill] sm:$0xff] %v16433_v20 }
 0x45a   : > { %v6651_v45 = vpop.f32.mrf.mxu0  ;;  %v6820_v49 = vpop.f32.mrf.mxu1 }
 0x45b   : > { %v16435_v28 = vadd.f32 %v6820_v49, %v6651_v45 }
 0x45e   : > { %v6731_v9 = vpop.f32.mrf.mxu2  ;;  %v6900_v25 = vpop.f32.mrf.mxu3 }
 0x45f   : > { %v16445_v6 = vadd.f32 %v6900_v25, %v6731_v9  ;;  %v13728_v9 = vld [vmem:[%s15786_s29 + $0x2dc] sm:$0xf]  ;;  %v11024_v25 = vld [vmem:[%s15786_s29 + $0x320] sm:$0xf0] }
 0x460   : > { %v11027_v16 = vor.u32 %v13728_v9, %v11024_v25 }
 0x461   : > { %18416 = vst [vmem:[#allocation30_spill] sm:$0xff] %v16445_v6  ;;  %v11032_v6 = vld [vmem:[%s15786_s29 + $0x328] sm:$0xf0] }
 0x462   : > { %v6654_v45 = vpop.f32.mrf.mxu0  ;;  %v6823_v49 = vpop.f32.mrf.mxu1 }
 0x463   : > { %v16447_v20 = vadd.f32 %v6823_v49, %v6654_v45  ;;  %6951 = vmatmul.bf16.gmra.mxu2 %v10951_v23  ;;  %7120 = vmatmul.bf16.gmra.mxu3 %v10955_v29  ;;  %v11030_v45 = vld [vmem:[%s15786_s29 + $0x2e0] sm:$0xf]  ;;  %v13738_v49 = vld [vmem:[%s15786_s29 + $0x324] sm:$0xf0]  ;;  %v13729_v23 = vld [vmem:[%s15786_s29 + $0x2e4] sm:$0xf] }
 0x465   : > { %7289 = vmatmul.bf16.gmra.mxu0 %v10959_v38  ;;  %7458 = vmatmul.bf16.gmra.mxu1 %v10963_v4  ;;  %v11023_v4 = vor.u32 %v13737_v21, %v11022_v2 }
 0x466   : > { %v6734_v19 = vpop.f32.mrf.mxu2  ;;  %v6903_v55 = vpop.f32.mrf.mxu3 }
 0x467   : > { %v16449_v57 = vadd.f32 %v6903_v55, %v6734_v19  ;;  %v11031_v19 = vor.u32 %v13738_v49, %v11030_v45  ;;  %v11035_v55 = vor.u32 %v13729_v23, %v11032_v6  ;;  %v11094_v45 = vld [vmem:[%s15786_s29 + $0x368] sm:$0xf]  ;;  %v13755_v49 = vld [vmem:[%s15786_s29 + $0x3ac] sm:$0xf0]  ;;  %v13746_v23 = vld [vmem:[%s15786_s29 + $0x36c] sm:$0xf] }
 0x469   : > { %18417 = vst [vmem:[#allocation31_spill] sm:$0xff] %v16449_v57 }
 0x46a   : > { %v6656_v58 = vpop.f32.mrf.mxu0  ;;  %v6825_v60 = vpop.f32.mrf.mxu1 }
 0x46b   : > { %v16451_v63 = vadd.f32 %v6825_v60, %v6656_v58 }
 0x46e   : > { %v6736_v29 = vpop.f32.mrf.mxu2  ;;  %v6905_v18 = vpop.f32.mrf.mxu3 }
 0x46f   : > { %v16461_v38 = vadd.f32 %v6905_v18, %v6736_v29  ;;  %v11096_v29 = vld [vmem:[%s15786_s29 + $0x3b0] sm:$0xf0] }
 0x470   : > { %v11099_v5 = vor.u32 %v13746_v23, %v11096_v29  ;;  %v13773_v29 = vld [vmem:[%s15786_s29 + $0x43c] sm:$0xf0] }
 0x471   : > { %18418 = vst [vmem:[#allocation32_spill] sm:$0xff] %v16461_v38  ;;  %v11104_v38 = vld [vmem:[%s15786_s29 + $0x3b8] sm:$0xf0] }
 0x472   : > { %v6659_v58 = vpop.f32.mrf.mxu0  ;;  %v6828_v60 = vpop.f32.mrf.mxu1 }
 0x473   : > { %v16463_v57 = vadd.f32 %v6828_v60, %v6659_v58  ;;  %6956 = vmatmul.bf16.gmra.mxu2 %v11023_v4  ;;  %7125 = vmatmul.bf16.gmra.mxu3 %v11027_v16  ;;  %v11102_v58 = vld [vmem:[%s15786_s29 + $0x370] sm:$0xf]  ;;  %v13756_v60 = vld [vmem:[%s15786_s29 + $0x3b4] sm:$0xf0]  ;;  %v13747_v4 = vld [vmem:[%s15786_s29 + $0x374] sm:$0xf] }
 0x475   : > { %7294 = vmatmul.bf16.gmra.mxu0 %v11031_v19  ;;  %7463 = vmatmul.bf16.gmra.mxu1 %v11035_v55  ;;  %v11095_v55 = vor.u32 %v13755_v49, %v11094_v45 }
 0x476   : > { %v6739_v18 = vpop.f32.mrf.mxu2  ;;  %v6908_v2 = vpop.f32.mrf.mxu3 }
 0x477   : > { %v16465_v21 = vadd.f32 %v6908_v2, %v6739_v18  ;;  %v11103_v18 = vor.u32 %v13756_v60, %v11102_v58  ;;  %v11107_v2 = vor.u32 %v13747_v4, %v11104_v38  ;;  %v14282_v58 = vld [vmem:[#allocation2 + $0x140] sm:$0xff]  ;;  %v13764_v60 = vld [vmem:[%s15786_s29 + $0x3fc] sm:$0xf] }
 0x478   : > { %v11168_v4 = vld [vmem:[%s15786_s29 + $0x440] sm:$0xf0]  ;;  %7939 = vmatpush.bf16.msra.mxu0 %v14282_v58  ;;  %v14290_v58 = vld [vmem:[#allocation2 + $0x268] sm:$0xff] }
 0x479   : > { %18419 = vst [vmem:[#allocation33_spill] sm:$0xff] %v16465_v21  ;;  %8108 = vmatpush.bf16.msra.mxu1 %v14290_v58 }
 0x47a   : > { %v6661_v9 = vpop.f32.mrf.mxu0  ;;  %v6830_v6 = vpop.f32.mrf.mxu1 }
 0x47b   : > { %v16467_v25 = vadd.f32 %v6830_v6, %v6661_v9  ;;  %v14266_v6 = vld [vmem:[#allocation2 + $0x248] sm:$0xff] }
 0x47c   : > { %7601 = vmatpush.bf16.msra.mxu2 %v14266_v6 }
 0x47e   : > { %v6741_v16 = vpop.f32.mrf.mxu2  ;;  %v6910_v59 = vpop.f32.mrf.mxu3 }
 0x47f   : > { %v16477_v19 = vadd.f32 %v6910_v59, %v6741_v16  ;;  %v14274_v59 = vld [vmem:[#allocation2 + $0x120] sm:$0xff] }
 0x480   : > { %7770 = vmatpush.bf16.msra.mxu3 %v14274_v59  ;;  %v11174_v16 = vld [vmem:[%s15786_s29 + $0x400] sm:$0xf] }
 0x481   : > { %18420 = vst [vmem:[#allocation34_spill] sm:$0xff] %v16477_v19 }
 0x482   : > { %v6664_v21 = vpop.f32.mrf.mxu0  ;;  %v6833_v8 = vpop.f32.mrf.mxu1 }
 0x483   : > { %v16479_v9 = vadd.f32 %v6833_v8, %v6664_v21  ;;  %6961 = vmatmul.bf16.gmra.mxu2 %v11095_v55  ;;  %7130 = vmatmul.bf16.gmra.mxu3 %v11099_v5  ;;  %v11166_v5 = vld [vmem:[%s15786_s29 + $0x3f8] sm:$0xf]  ;;  %v13774_v55 = vld [vmem:[%s15786_s29 + $0x444] sm:$0xf0] }
 0x484   : > { %v11167_v59 = vor.u32 %v13773_v29, %v11166_v5 }
 0x485   : > { %7299 = vmatmul.bf16.gmra.mxu0 %v11103_v18  ;;  %7468 = vmatmul.bf16.gmra.mxu1 %v11107_v2  ;;  %v13765_v18 = vld [vmem:[%s15786_s29 + $0x404] sm:$0xf]  ;;  %v11176_v2 = vld [vmem:[%s15786_s29 + $0x448] sm:$0xf0] }
 0x486   : > { %v6744_v38 = vpop.f32.mrf.mxu2  ;;  %v6913_v45 = vpop.f32.mrf.mxu3 }
 0x487   : > { %v16481_v49 = vadd.f32 %v6913_v45, %v6744_v38  ;;  %v11171_v38 = vor.u32 %v13764_v60, %v11168_v4  ;;  %v11175_v45 = vor.u32 %v13774_v55, %v11174_v16  ;;  %v11238_v55 = vld [vmem:[%s15786_s29 + $0x488] sm:$0xf] }
 0x489   : > { %18421 = vst [vmem:[#allocation35_spill] sm:$0xff] %v16481_v49  ;;  %v11179_v49 = vor.u32 %v13765_v18, %v11176_v2  ;;  %v13791_v18 = vld [vmem:[%s15786_s29 + $0x4cc] sm:$0xf0]  ;;  %v13782_v2 = vld [vmem:[%s15786_s29 + $0x48c] sm:$0xf] }
 0x48a   : > { %v6666_v8 = vpop.f32.mrf.mxu0  ;;  %v6835_v21 = vpop.f32.mrf.mxu1  ;;  %v11239_v58 = vor.u32 %v13791_v18, %v11238_v55 }
 0x48b   : > { %v16483_v23 = vadd.f32 %v6835_v21, %v6666_v8 }
 0x48e   : > { %v6746_v6 = vpop.f32.mrf.mxu2  ;;  %v6915_v19 = vpop.f32.mrf.mxu3 }
 0x48f   : > { %v16493_v44 = vadd.f32 %v6915_v19, %v6746_v6  ;;  %v11240_v6 = vld [vmem:[%s15786_s29 + $0x4d0] sm:$0xf0] }
 0x490   : > { %v11243_v62 = vor.u32 %v13782_v2, %v11240_v6 }
 0x491   : > { %18422 = vst [vmem:[#allocation36_spill] sm:$0xff] %v16493_v44 }
 0x492   : > { %v6669_v8 = vpop.f32.mrf.mxu0  ;;  %v6838_v21 = vpop.f32.mrf.mxu1 }
 0x493   : > { %v16495_v33 = vadd.f32 %v6838_v21, %v6669_v8  ;;  %6966 = vmatmul.bf16.gmra.mxu2 %v11167_v59  ;;  %7135 = vmatmul.bf16.gmra.mxu3 %v11171_v38  ;;  %v11246_v59 = vld [vmem:[%s15786_s29 + $0x490] sm:$0xf]  ;;  %v13792_v38 = vld [vmem:[%s15786_s29 + $0x4d4] sm:$0xf0]  ;;  %v13783_v8 = vld [vmem:[%s15786_s29 + $0x494] sm:$0xf] }
 0x494   : > { %v11248_v21 = vld [vmem:[%s15786_s29 + $0x4d8] sm:$0xf0] }
 0x495   : > { %7304 = vmatmul.bf16.gmra.mxu0 %v11175_v45  ;;  %7473 = vmatmul.bf16.gmra.mxu1 %v11179_v49 }
 0x496   : > { %v6749_v19 = vpop.f32.mrf.mxu2  ;;  %v6918_v5 = vpop.f32.mrf.mxu3 }
 0x497   : > { %v16497_v29 = vadd.f32 %v6918_v5, %v6749_v19  ;;  %v11247_v19 = vor.u32 %v13792_v38, %v11246_v59  ;;  %v11251_v5 = vor.u32 %v13783_v8, %v11248_v21  ;;  %v11310_v38 = vld [vmem:[%s15786_s29 + $0x518] sm:$0xf]  ;;  %v13809_v8 = vld [vmem:[%s15786_s29 + $0x55c] sm:$0xf0]  ;;  %v13800_v21 = vld [vmem:[%s15786_s29 + $0x51c] sm:$0xf] }
 0x498   : > { %v11311_v50 = vor.u32 %v13809_v8, %v11310_v38  ;;  %v13827_v8 = vld [vmem:[%s15786_s29 + $0x5ec] sm:$0xf0] }
 0x499   : > { %18423 = vst [vmem:[#allocation37_spill] sm:$0xff] %v16497_v29  ;;  %v11318_v29 = vld [vmem:[%s15786_s29 + $0x520] sm:$0xf] }
 0x49a   : > { %v6671_v60 = vpop.f32.mrf.mxu0  ;;  %v6840_v4 = vpop.f32.mrf.mxu1 }
 0x49b   : > { %v16499_v16 = vadd.f32 %v6840_v4, %v6671_v60 }
 0x49e   : > { %v6751_v45 = vpop.f32.mrf.mxu2  ;;  %v6920_v44 = vpop.f32.mrf.mxu3 }
 0x49f   : > { %v16509_v49 = vadd.f32 %v6920_v44, %v6751_v45 }
 0x4a1   : > { %18424 = vst [vmem:[#allocation38_spill] sm:$0xff] %v16509_v49  ;;  %v11312_v49 = vld [vmem:[%s15786_s29 + $0x560] sm:$0xf0] }
 0x4a2   : > { %v7270_v60 = vpop.f32.mrf.mxu0  ;;  %v7439_v4 = vpop.f32.mrf.mxu1 }
 0x4a3   : > { %6971 = vmatmul.bf16.gmra.mxu2 %v11239_v58  ;;  %7140 = vmatmul.bf16.gmra.mxu3 %v11243_v62  ;;  %v13810_v58 = vld [vmem:[%s15786_s29 + $0x564] sm:$0xf0]  ;;  %v11320_v62 = vld [vmem:[%s15786_s29 + $0x568] sm:$0xf0] }
 0x4a5   : > { %7309 = vmatmul.bf16.gmra.mxu0 %v11247_v19  ;;  %7478 = vmatmul.bf16.gmra.mxu1 %v11251_v5 }
 0x4a6   : > { %v6932_v44 = vpop.f32.mrf.mxu2  ;;  %v7101_v45 = vpop.f32.mrf.mxu3 }
 0x4a7   : > { %v6933_v55 = vadd.f32 %v6932_v44, %v16255_v32  ;;  %v11315_v32 = vor.u32 %v13800_v21, %v11312_v49  ;;  %v11319_v44 = vor.u32 %v13810_v58, %v11318_v29  ;;  %v11384_v21 = vld [vmem:[%s15786_s29 + $0x5f0] sm:$0xf0]  ;;  %v11390_v58 = vld [vmem:[%s15786_s29 + $0x5b0] sm:$0xf] }
 0x4a9   : > { %v7102_v18 = vadd.f32 %v7101_v45, %v6933_v55  ;;  %v11323_v45 = vor.u32 %v13801_v7, %v11320_v62  ;;  %v13828_v62 = vld [vmem:[%s15786_s29 + $0x5f4] sm:$0xf0] }
 0x4aa   : > { %v7272_v2 = vpop.f32.mrf.mxu0  ;;  %v7441_v6 = vpop.f32.mrf.mxu1 }
 0x4ab   : > { %v7271_v59 = vadd.f32 %v7270_v60, %v7102_v18 }
 0x4ad   : > { %v16520_v31 = vadd.f32 %v7439_v4, %v7271_v59 }
 0x4ae   : > { %v6934_v19 = vpop.f32.mrf.mxu2  ;;  %v7103_v5 = vpop.f32.mrf.mxu3 }
 0x4af   : > { %v6935_v27 = vadd.f32 %v6934_v19, %v16259_v37  ;;  %v13819_v19 = vld [vmem:[%s15786_s29 + $0x5b4] sm:$0xf] }
 0x4b1   : > { %v7104_v55 = vadd.f32 %v7103_v5, %v6935_v27  ;;  %v11392_v5 = vld [vmem:[%s15786_s29 + $0x5f8] sm:$0xf0] }
 0x4b2   : > { %v7275_v60 = vpop.f32.mrf.mxu0  ;;  %v7444_v18 = vpop.f32.mrf.mxu1 }
 0x4b3   : > { %v7273_v39 = vadd.f32 %v7272_v2, %v7104_v55  ;;  %6976 = vmatmul.bf16.gmra.mxu2 %v11311_v50  ;;  %7145 = vmatmul.bf16.gmra.mxu3 %v11315_v32  ;;  %v11382_v2 = vld [vmem:[%s15786_s29 + $0x5a8] sm:$0xf]  ;;  %v13818_v50 = vld [vmem:[%s15786_s29 + $0x5ac] sm:$0xf]  ;;  %v11391_v55 = vor.u32 %v13828_v62, %v11390_v58  ;;  %v11454_v62 = vld [vmem:[%s15786_s29 + $0x638] sm:$0xf] }
 0x4b5   : > { %7314 = vmatmul.bf16.gmra.mxu0 %v11319_v44  ;;  %7483 = vmatmul.bf16.gmra.mxu1 %v11323_v45  ;;  %v16523_v37 = vadd.f32 %v7441_v6, %v7273_v39  ;;  %v11383_v45 = vor.u32 %v13827_v8, %v11382_v2 }
 0x4b6   : > { %v6937_v29 = vpop.f32.mrf.mxu2  ;;  %v7106_v7 = vpop.f32.mrf.mxu3 }
 0x4b7   : > { %18425 = vst [vmem:[#allocation39_spill] sm:$0xff] %v16523_v37  ;;  %v6938_v27 = vadd.f32 %v6937_v29, %v16271_v53  ;;  %v11387_v53 = vor.u32 %v13818_v50, %v11384_v21  ;;  %v11395_v29 = vor.u32 %v13819_v19, %v11392_v5  ;;  %v14265_v37 = vld [vmem:[#allocation2 + $0x338] sm:$0xff]  ;;  %v13845_v19 = vld [vmem:[%s15786_s29 + $0x67c] sm:$0xf0] }
 0x4b8   : > { %7602 = vmatpush.bf16.msra.mxu2 %v14265_v37  ;;  %v14281_v5 = vld [vmem:[#allocation2 + $0x1a0] sm:$0xff] }
 0x4b9   : > { %v7107_v49 = vadd.f32 %v7106_v7, %v6938_v27  ;;  %v11462_v37 = vld [vmem:[%s15786_s29 + $0x640] sm:$0xf]  ;;  %7940 = vmatpush.bf16.msra.mxu0 %v14281_v5 }
 0x4ba   : > { %v7277_v4 = vpop.f32.mrf.mxu0  ;;  %v7446_v59 = vpop.f32.mrf.mxu1 }
 0x4bb   : > { %v7276_v38 = vadd.f32 %v7275_v60, %v7107_v49 }
 0x4bd   : > { %v16534_v32 = vadd.f32 %v7444_v18, %v7276_v38  ;;  %v14273_v18 = vld [vmem:[#allocation2 + $0x2e8] sm:$0xff] }
 0x4be   : > { %v6939_v39 = vpop.f32.mrf.mxu2  ;;  %v7108_v6 = vpop.f32.mrf.mxu3  ;;  %7771 = vmatpush.bf16.msra.mxu3 %v14273_v18 }
 0x4bf   : > { %v6940_v44 = vadd.f32 %v6939_v39, %v16275_v56  ;;  %v13836_v39 = vld [vmem:[%s15786_s29 + $0x63c] sm:$0xf] }
 0x4c1   : > { %v7109_v7 = vadd.f32 %v7108_v6, %v6940_v44  ;;  %v11456_v6 = vld [vmem:[%s15786_s29 + $0x680] sm:$0xf0]  ;;  %v13846_v44 = vld [vmem:[%s15786_s29 + $0x684] sm:$0xf0] }
 0x4c2   : > { %v7280_v60 = vpop.f32.mrf.mxu0  ;;  %v7449_v27 = vpop.f32.mrf.mxu1  ;;  %v11463_v18 = vor.u32 %v13846_v44, %v11462_v37  ;;  %v11526_v37 = vld [vmem:[%s15786_s29 + $0x6c8] sm:$0xf]  ;;  %v13863_v44 = vld [vmem:[%s15786_s29 + $0x70c] sm:$0xf0] }
 0x4c3   : > { %v7278_v49 = vadd.f32 %v7277_v4, %v7109_v7  ;;  %6981 = vmatmul.bf16.gmra.mxu2 %v11383_v45  ;;  %7150 = vmatmul.bf16.gmra.mxu3 %v11387_v53  ;;  %v11464_v45 = vld [vmem:[%s15786_s29 + $0x688] sm:$0xf0]  ;;  %v11455_v7 = vor.u32 %v13845_v19, %v11454_v62 }
 0x4c5   : > { %7319 = vmatmul.bf16.gmra.mxu0 %v11391_v55  ;;  %7488 = vmatmul.bf16.gmra.mxu1 %v11395_v29  ;;  %v16537_v56 = vadd.f32 %v7446_v59, %v7278_v49  ;;  %v13837_v59 = vld [vmem:[%s15786_s29 + $0x644] sm:$0xf]  ;;  %v11459_v49 = vor.u32 %v13836_v39, %v11456_v6 }
 0x4c6   : > { %v6942_v38 = vpop.f32.mrf.mxu2  ;;  %v7111_v2 = vpop.f32.mrf.mxu3 }
 0x4c7   : > { %v6943_v4 = vadd.f32 %v6942_v38, %v16287_v10 }
 0x4c9   : > { %v7112_v8 = vadd.f32 %v7111_v2, %v6943_v4 }
 0x4ca   : > { %v7282_v50 = vpop.f32.mrf.mxu0  ;;  %v7451_v21 = vpop.f32.mrf.mxu1 }
 0x4cb   : > { %v7281_v58 = vadd.f32 %v7280_v60, %v7112_v8  ;;  %v11467_v60 = vor.u32 %v13837_v59, %v11464_v45  ;;  %v13854_v59 = vld [vmem:[%s15786_s29 + $0x6cc] sm:$0xf]  ;;  %v11528_v45 = vld [vmem:[%s15786_s29 + $0x710] sm:$0xf0] }
 0x4cd   : > { %v16548_v53 = vadd.f32 %v7449_v27, %v7281_v58  ;;  %v14289_v27 = vld [vmem:[#allocation2 + $0x318] sm:$0xff] }
 0x4ce   : > { %v6944_v55 = vpop.f32.mrf.mxu2  ;;  %v7113_v29 = vpop.f32.mrf.mxu3  ;;  %8109 = vmatpush.bf16.msra.mxu1 %v14289_v27 }
 0x4cf   : > { %v6945_v10 = vadd.f32 %v6944_v55, %v16291_v24  ;;  %v11534_v55 = vld [vmem:[%s15786_s29 + $0x6d0] sm:$0xf] }
 0x4d1   : > { %v7114_v38 = vadd.f32 %v7113_v29, %v6945_v10  ;;  %v13864_v29 = vld [vmem:[%s15786_s29 + $0x714] sm:$0xf0]  ;;  %v13855_v10 = vld [vmem:[%s15786_s29 + $0x6d4] sm:$0xf] }
 0x4d2   : > { %v7285_v2 = vpop.f32.mrf.mxu0  ;;  %v7454_v4 = vpop.f32.mrf.mxu1 }
 0x4d3   : > { %v7283_v8 = vadd.f32 %v7282_v50, %v7114_v38  ;;  %6986 = vmatmul.bf16.gmra.mxu2 %v11455_v7  ;;  %7155 = vmatmul.bf16.gmra.mxu3 %v11459_v49  ;;  %v11536_v7 = vld [vmem:[%s15786_s29 + $0x718] sm:$0xf0]  ;;  %v11527_v38 = vor.u32 %v13863_v44, %v11526_v37 }
 0x4d4   : > { %v11539_v27 = vor.u32 %v13855_v10, %v11536_v7  ;;  %v11600_v10 = vld [vmem:[%s15786_s29 + $0x7a0] sm:$0xf0]  ;;  %v11606_v7 = vld [vmem:[%s15786_s29 + $0x760] sm:$0xf] }
 0x4d5   : > { %7324 = vmatmul.bf16.gmra.mxu0 %v11463_v18  ;;  %7493 = vmatmul.bf16.gmra.mxu1 %v11467_v60  ;;  %v16551_v24 = vadd.f32 %v7451_v21, %v7283_v8  ;;  %v11535_v8 = vor.u32 %v13864_v29, %v11534_v55  ;;  %v13881_v55 = vld [vmem:[%s15786_s29 + $0x79c] sm:$0xf0]  ;;  %v13872_v29 = vld [vmem:[%s15786_s29 + $0x75c] sm:$0xf] }
 0x4d6   : > { %v6947_v58 = vpop.f32.mrf.mxu2  ;;  %v7116_v62 = vpop.f32.mrf.mxu3 }
 0x4d7   : > { %v6948_v19 = vadd.f32 %v6947_v58, %v16303_v15  ;;  %v11531_v15 = vor.u32 %v13854_v59, %v11528_v45 }
 0x4d9   : > { %v7117_v50 = vadd.f32 %v7116_v62, %v6948_v19 }
 0x4da   : > { %v7287_v5 = vpop.f32.mrf.mxu0  ;;  %v7456_v39 = vpop.f32.mrf.mxu1 }
 0x4db   : > { %v7286_v6 = vadd.f32 %v7285_v2, %v7117_v50 }
 0x4dd   : > { %v16562_v49 = vadd.f32 %v7454_v4, %v7286_v6 }
 0x4de   : > { %v6949_v21 = vpop.f32.mrf.mxu2  ;;  %v7118_v18 = vpop.f32.mrf.mxu3 }
 0x4df   : > { %v6950_v60 = vadd.f32 %v6949_v21, %v16307_v51  ;;  %v13882_v21 = vld [vmem:[%s15786_s29 + $0x7a4] sm:$0xf0] }
 0x4e1   : > { %v7119_v58 = vadd.f32 %v7118_v18, %v6950_v60  ;;  %v13873_v18 = vld [vmem:[%s15786_s29 + $0x764] sm:$0xf]  ;;  %v11608_v60 = vld [vmem:[%s15786_s29 + $0x7a8] sm:$0xf0] }
 0x4e2   : > { %v7290_v2 = vpop.f32.mrf.mxu0  ;;  %v7459_v62 = vpop.f32.mrf.mxu1 }
 0x4e3   : > { %v7288_v19 = vadd.f32 %v7287_v5, %v7119_v58  ;;  %6991 = vmatmul.bf16.gmra.mxu2 %v11527_v38  ;;  %7160 = vmatmul.bf16.gmra.mxu3 %v11531_v15  ;;  %v11598_v5 = vld [vmem:[%s15786_s29 + $0x758] sm:$0xf]  ;;  %v11607_v58 = vor.u32 %v13882_v21, %v11606_v7  ;;  %v13899_v7 = vld [vmem:[%s15786_s29 + $0x82c] sm:$0xf0]  ;;  %v13890_v21 = vld [vmem:[%s15786_s29 + $0x7ec] sm:$0xf] }
 0x4e5   : > { %7329 = vmatmul.bf16.gmra.mxu0 %v11535_v8  ;;  %7498 = vmatmul.bf16.gmra.mxu1 %v11539_v27  ;;  %v16565_v51 = vadd.f32 %v7456_v39, %v7288_v19  ;;  %v11599_v27 = vor.u32 %v13881_v55, %v11598_v5  ;;  %v11611_v19 = vor.u32 %v13873_v18, %v11608_v60  ;;  %v11672_v18 = vld [vmem:[%s15786_s29 + $0x830] sm:$0xf0]  ;;  %v11678_v60 = vld [vmem:[%s15786_s29 + $0x7f0] sm:$0xf] }
 0x4e6   : > { %v6952_v4 = vpop.f32.mrf.mxu2  ;;  %v7121_v50 = vpop.f32.mrf.mxu3 }
 0x4e7   : > { %v6953_v6 = vadd.f32 %v6952_v4, %v16319_v3  ;;  %v11603_v3 = vor.u32 %v13872_v29, %v11600_v10 }
 0x4e9   : > { %v7122_v37 = vadd.f32 %v7121_v50, %v6953_v6 }
 0x4ea   : > { %v7292_v44 = vpop.f32.mrf.mxu0  ;;  %v7461_v59 = vpop.f32.mrf.mxu1 }
 0x4eb   : > { %v7291_v45 = vadd.f32 %v7290_v2, %v7122_v37 }
 0x4ed   : > { %v16576_v38 = vadd.f32 %v7459_v62, %v7291_v45 }
 0x4ee   : > { %v6954_v39 = vpop.f32.mrf.mxu2  ;;  %v7123_v15 = vpop.f32.mrf.mxu3 }
 0x4ef   : > { %v6955_v8 = vadd.f32 %v6954_v39, %v16323_v22  ;;  %v13900_v39 = vld [vmem:[%s15786_s29 + $0x834] sm:$0xf0] }
 0x4f1   : > { %v7124_v4 = vadd.f32 %v7123_v15, %v6955_v8  ;;  %v13891_v15 = vld [vmem:[%s15786_s29 + $0x7f4] sm:$0xf]  ;;  %v11680_v8 = vld [vmem:[%s15786_s29 + $0x838] sm:$0xf0] }
 0x4f2   : > { %v7295_v2 = vpop.f32.mrf.mxu0  ;;  %v7464_v50 = vpop.f32.mrf.mxu1 }
 0x4f3   : > { %v7293_v6 = vadd.f32 %v7292_v44, %v7124_v4  ;;  %6996 = vmatmul.bf16.gmra.mxu2 %v11599_v27  ;;  %7165 = vmatmul.bf16.gmra.mxu3 %v11603_v3  ;;  %v11670_v44 = vld [vmem:[%s15786_s29 + $0x7e8] sm:$0xf]  ;;  %v11679_v4 = vor.u32 %v13900_v39, %v11678_v60  ;;  %v11742_v39 = vld [vmem:[%s15786_s29 + $0x878] sm:$0xf] }
 0x4f5   : > { %7334 = vmatmul.bf16.gmra.mxu0 %v11607_v58  ;;  %7503 = vmatmul.bf16.gmra.mxu1 %v11611_v19  ;;  %v16579_v22 = vadd.f32 %v7461_v59, %v7293_v6  ;;  %v11671_v19 = vor.u32 %v13899_v7, %v11670_v44  ;;  %v11683_v6 = vor.u32 %v13891_v15, %v11680_v8  ;;  %v13917_v15 = vld [vmem:[%s15786_s29 + $0x8bc] sm:$0xf0] }
 0x4f6   : > { %v6957_v62 = vpop.f32.mrf.mxu2  ;;  %v7126_v37 = vpop.f32.mrf.mxu3  ;;  %v14280_v8 = vld [vmem:[#allocation2 + $0x200] sm:$0xff] }
 0x4f7   : > { %v6958_v45 = vadd.f32 %v6957_v62, %v16335_v47  ;;  %v11675_v47 = vor.u32 %v13890_v21, %v11672_v18  ;;  %7941 = vmatpush.bf16.msra.mxu0 %v14280_v8 }
 0x4f9   : > { %v7127_v5 = vadd.f32 %v7126_v37, %v6958_v45 }
 0x4fa   : > { %v7297_v55 = vpop.f32.mrf.mxu0  ;;  %v7466_v29 = vpop.f32.mrf.mxu1 }
 0x4fb   : > { %v7296_v10 = vadd.f32 %v7295_v2, %v7127_v5  ;;  %v14264_v5 = vld [vmem:[#allocation2 + $0x3f0] sm:$0xff] }
 0x4fc   : > { %7603 = vmatpush.bf16.msra.mxu2 %v14264_v5 }
 0x4fd   : > { %v16590_v27 = vadd.f32 %v7464_v50, %v7296_v10  ;;  %v14272_v50 = vld [vmem:[#allocation2 + $0x288] sm:$0xff] }
 0x4fe   : > { %v6959_v59 = vpop.f32.mrf.mxu2  ;;  %v7128_v3 = vpop.f32.mrf.mxu3  ;;  %7772 = vmatpush.bf16.msra.mxu3 %v14272_v50 }
 0x4ff   : > { %v6960_v58 = vadd.f32 %v6959_v59, %v16339_v14  ;;  %v13908_v59 = vld [vmem:[%s15786_s29 + $0x87c] sm:$0xf] }
 0x501   : > { %v7129_v62 = vadd.f32 %v7128_v3, %v6960_v58  ;;  %v11744_v3 = vld [vmem:[%s15786_s29 + $0x8c0] sm:$0xf0]  ;;  %v11750_v58 = vld [vmem:[%s15786_s29 + $0x880] sm:$0xf] }
 0x502   : > { %v7300_v2 = vpop.f32.mrf.mxu0  ;;  %v7469_v37 = vpop.f32.mrf.mxu1  ;;  %v11747_v5 = vor.u32 %v13908_v59, %v11744_v3 }
 0x503   : > { %v7298_v45 = vadd.f32 %v7297_v55, %v7129_v62  ;;  %7001 = vmatmul.bf16.gmra.mxu2 %v11671_v19  ;;  %7170 = vmatmul.bf16.gmra.mxu3 %v11675_v47  ;;  %v13918_v19 = vld [vmem:[%s15786_s29 + $0x8c4] sm:$0xf0]  ;;  %v11752_v47 = vld [vmem:[%s15786_s29 + $0x8c8] sm:$0xf0] }
 0x504   : > { %v11751_v50 = vor.u32 %v13918_v19, %v11750_v58  ;;  %v11814_v58 = vld [vmem:[%s15786_s29 + $0x908] sm:$0xf]  ;;  %v13935_v19 = vld [vmem:[%s15786_s29 + $0x94c] sm:$0xf0] }
 0x505   : > { %7339 = vmatmul.bf16.gmra.mxu0 %v11679_v4  ;;  %7508 = vmatmul.bf16.gmra.mxu1 %v11683_v6  ;;  %v16593_v14 = vadd.f32 %v7466_v29, %v7298_v45  ;;  %v13909_v29 = vld [vmem:[%s15786_s29 + $0x884] sm:$0xf]  ;;  %v11743_v45 = vor.u32 %v13917_v15, %v11742_v39 }
 0x506   : > { %v6962_v10 = vpop.f32.mrf.mxu2  ;;  %v7131_v44 = vpop.f32.mrf.mxu3 }
 0x507   : > { %v6963_v55 = vadd.f32 %v6962_v10, %v16351_v13 }
 0x509   : > { %v7132_v7 = vadd.f32 %v7131_v44, %v6963_v55 }
 0x50a   : > { %v7302_v21 = vpop.f32.mrf.mxu0  ;;  %v7471_v18 = vpop.f32.mrf.mxu1 }
 0x50b   : > { %v7301_v60 = vadd.f32 %v7300_v2, %v7132_v7  ;;  %v11755_v2 = vor.u32 %v13909_v29, %v11752_v47  ;;  %v13926_v29 = vld [vmem:[%s15786_s29 + $0x90c] sm:$0xf]  ;;  %v11816_v47 = vld [vmem:[%s15786_s29 + $0x950] sm:$0xf0] }
 0x50d   : > { %v16604_v4 = vadd.f32 %v7469_v37, %v7301_v60  ;;  %v14288_v37 = vld [vmem:[#allocation2 + $0x130] sm:$0xff] }
 0x50e   : > { %v6964_v6 = vpop.f32.mrf.mxu2  ;;  %v7133_v62 = vpop.f32.mrf.mxu3  ;;  %8110 = vmatpush.bf16.msra.mxu1 %v14288_v37 }
 0x50f   : > { %v6965_v13 = vadd.f32 %v6964_v6, %v16355_v34  ;;  %v11822_v6 = vld [vmem:[%s15786_s29 + $0x910] sm:$0xf] }
 0x511   : > { %v7134_v10 = vadd.f32 %v7133_v62, %v6965_v13  ;;  %v13936_v62 = vld [vmem:[%s15786_s29 + $0x954] sm:$0xf0]  ;;  %v13927_v13 = vld [vmem:[%s15786_s29 + $0x914] sm:$0xf] }
 0x512   : > { %v7305_v44 = vpop.f32.mrf.mxu0  ;;  %v7474_v55 = vpop.f32.mrf.mxu1 }
 0x513   : > { %v7303_v7 = vadd.f32 %v7302_v21, %v7134_v10  ;;  %7006 = vmatmul.bf16.gmra.mxu2 %v11743_v45  ;;  %7175 = vmatmul.bf16.gmra.mxu3 %v11747_v5  ;;  %v11824_v45 = vld [vmem:[%s15786_s29 + $0x958] sm:$0xf0]  ;;  %v11815_v10 = vor.u32 %v13935_v19, %v11814_v58 }
 0x514   : > { %v11827_v37 = vor.u32 %v13927_v13, %v11824_v45  ;;  %v11888_v13 = vld [vmem:[%s15786_s29 + $0x9e0] sm:$0xf0]  ;;  %v11894_v45 = vld [vmem:[%s15786_s29 + $0x9a0] sm:$0xf] }
 0x515   : > { %7344 = vmatmul.bf16.gmra.mxu0 %v11751_v50  ;;  %7513 = vmatmul.bf16.gmra.mxu1 %v11755_v2  ;;  %v16607_v34 = vadd.f32 %v7471_v18, %v7303_v7  ;;  %v11823_v7 = vor.u32 %v13936_v62, %v11822_v6  ;;  %v13953_v6 = vld [vmem:[%s15786_s29 + $0x9dc] sm:$0xf0]  ;;  %v13944_v62 = vld [vmem:[%s15786_s29 + $0x99c] sm:$0xf] }
 0x516   : > { %v6967_v60 = vpop.f32.mrf.mxu2  ;;  %v7136_v39 = vpop.f32.mrf.mxu3 }
 0x517   : > { %v6968_v15 = vadd.f32 %v6967_v60, %v16367_v17  ;;  %v11819_v17 = vor.u32 %v13926_v29, %v11816_v47 }
 0x519   : > { %v7137_v21 = vadd.f32 %v7136_v39, %v6968_v15 }
 0x51a   : > { %v7307_v8 = vpop.f32.mrf.mxu0  ;;  %v7476_v59 = vpop.f32.mrf.mxu1 }
 0x51b   : > { %v7306_v3 = vadd.f32 %v7305_v44, %v7137_v21 }
 0x51d   : > { %v16618_v5 = vadd.f32 %v7474_v55, %v7306_v3 }
 0x51e   : > { %v6969_v18 = vpop.f32.mrf.mxu2  ;;  %v7138_v50 = vpop.f32.mrf.mxu3 }
 0x51f   : > { %v6970_v2 = vadd.f32 %v6969_v18, %v16371_v1  ;;  %v13954_v18 = vld [vmem:[%s15786_s29 + $0x9e4] sm:$0xf0] }
 0x521   : > { %v7139_v60 = vadd.f32 %v7138_v50, %v6970_v2  ;;  %v13945_v50 = vld [vmem:[%s15786_s29 + $0x9a4] sm:$0xf]  ;;  %v11896_v2 = vld [vmem:[%s15786_s29 + $0x9e8] sm:$0xf0] }
 0x522   : > { %v7310_v44 = vpop.f32.mrf.mxu0  ;;  %v7479_v39 = vpop.f32.mrf.mxu1 }
 0x523   : > { %v7308_v15 = vadd.f32 %v7307_v8, %v7139_v60  ;;  %7011 = vmatmul.bf16.gmra.mxu2 %v11815_v10  ;;  %7180 = vmatmul.bf16.gmra.mxu3 %v11819_v17  ;;  %v11886_v8 = vld [vmem:[%s15786_s29 + $0x998] sm:$0xf]  ;;  %v11895_v60 = vor.u32 %v13954_v18, %v11894_v45  ;;  %v13971_v45 = vld [vmem:[%s15786_s29 + $0xa6c] sm:$0xf0]  ;;  %v13962_v18 = vld [vmem:[%s15786_s29 + $0xa2c] sm:$0xf] }
 0x525   : > { %7349 = vmatmul.bf16.gmra.mxu0 %v11823_v7  ;;  %7518 = vmatmul.bf16.gmra.mxu1 %v11827_v37  ;;  %v16621_v1 = vadd.f32 %v7476_v59, %v7308_v15  ;;  %v11887_v37 = vor.u32 %v13953_v6, %v11886_v8  ;;  %v11899_v15 = vor.u32 %v13945_v50, %v11896_v2  ;;  %v11960_v50 = vld [vmem:[%s15786_s29 + $0xa70] sm:$0xf0]  ;;  %v11966_v2 = vld [vmem:[%s15786_s29 + $0xa30] sm:$0xf] }
 0x526   : > { %v6972_v55 = vpop.f32.mrf.mxu2  ;;  %v7141_v21 = vpop.f32.mrf.mxu3 }
 0x527   : > { %v6973_v3 = vadd.f32 %v6972_v55, %v16383_v43  ;;  %v11891_v43 = vor.u32 %v13944_v62, %v11888_v13 }
 0x529   : > { %v7142_v58 = vadd.f32 %v7141_v21, %v6973_v3 }
 0x52a   : > { %v7312_v19 = vpop.f32.mrf.mxu0  ;;  %v7481_v29 = vpop.f32.mrf.mxu1 }
 0x52b   : > { %v7311_v47 = vadd.f32 %v7310_v44, %v7142_v58 }
 0x52d   : > { %v16632_v10 = vadd.f32 %v7479_v39, %v7311_v47 }
 0x52e   : > { %v6974_v59 = vpop.f32.mrf.mxu2  ;;  %v7143_v17 = vpop.f32.mrf.mxu3 }
 0x52f   : > { %v6975_v7 = vadd.f32 %v6974_v59, %v16387_v52  ;;  %v13972_v59 = vld [vmem:[%s15786_s29 + $0xa74] sm:$0xf0] }
 0x531   : > { %v7144_v55 = vadd.f32 %v7143_v17, %v6975_v7  ;;  %v13963_v17 = vld [vmem:[%s15786_s29 + $0xa34] sm:$0xf]  ;;  %v11968_v7 = vld [vmem:[%s15786_s29 + $0xa78] sm:$0xf0] }
 0x532   : > { %v7315_v44 = vpop.f32.mrf.mxu0  ;;  %v7484_v21 = vpop.f32.mrf.mxu1 }
 0x533   : > { %v7313_v3 = vadd.f32 %v7312_v19, %v7144_v55  ;;  %7016 = vmatmul.bf16.gmra.mxu2 %v11887_v37  ;;  %7185 = vmatmul.bf16.gmra.mxu3 %v11891_v43  ;;  %v11958_v19 = vld [vmem:[%s15786_s29 + $0xa28] sm:$0xf]  ;;  %v11967_v55 = vor.u32 %v13972_v59, %v11966_v2  ;;  %v12030_v59 = vld [vmem:[%s15786_s29 + $0xab8] sm:$0xf] }
 0x535   : > { %7354 = vmatmul.bf16.gmra.mxu0 %v11895_v60  ;;  %7523 = vmatmul.bf16.gmra.mxu1 %v11899_v15  ;;  %v16635_v52 = vadd.f32 %v7481_v29, %v7313_v3  ;;  %v11959_v15 = vor.u32 %v13971_v45, %v11958_v19  ;;  %v11971_v3 = vor.u32 %v13963_v17, %v11968_v7  ;;  %v13989_v17 = vld [vmem:[%s15786_s29 + $0xafc] sm:$0xf0]  ;;  %v14279_v7 = vld [vmem:[#allocation2 + $0x270] sm:$0xff] }
 0x536   : > { %v6977_v39 = vpop.f32.mrf.mxu2  ;;  %v7146_v58 = vpop.f32.mrf.mxu3  ;;  %7942 = vmatpush.bf16.msra.mxu0 %v14279_v7 }
 0x537   : > { %v6978_v47 = vadd.f32 %v6977_v39, %v16399_v30  ;;  %v11963_v30 = vor.u32 %v13962_v18, %v11960_v50 }
 0x539   : > { %v7147_v8 = vadd.f32 %v7146_v58, %v6978_v47 }
 0x53a   : > { %v7317_v6 = vpop.f32.mrf.mxu0  ;;  %v7486_v62 = vpop.f32.mrf.mxu1 }
 0x53b   : > { %v7316_v13 = vadd.f32 %v7315_v44, %v7147_v8  ;;  %v14263_v8 = vld [vmem:[#allocation2 + $0x3f8] sm:$0xff] }
 0x53c   : > { %7604 = vmatpush.bf16.msra.mxu2 %v14263_v8 }
 0x53d   : > { %v16646_v37 = vadd.f32 %v7484_v21, %v7316_v13  ;;  %v14271_v21 = vld [vmem:[#allocation2 + $0x280] sm:$0xff] }
 0x53e   : > { %v6979_v29 = vpop.f32.mrf.mxu2  ;;  %v7148_v43 = vpop.f32.mrf.mxu3  ;;  %7773 = vmatpush.bf16.msra.mxu3 %v14271_v21 }
 0x53f   : > { %v6980_v60 = vadd.f32 %v6979_v29, %v16403_v41  ;;  %v13980_v29 = vld [vmem:[%s15786_s29 + $0xabc] sm:$0xf] }
 0x541   : > { %v7149_v39 = vadd.f32 %v7148_v43, %v6980_v60  ;;  %v12032_v43 = vld [vmem:[%s15786_s29 + $0xb00] sm:$0xf0]  ;;  %v12038_v60 = vld [vmem:[%s15786_s29 + $0xac0] sm:$0xf] }
 0x542   : > { %v7320_v44 = vpop.f32.mrf.mxu0  ;;  %v7489_v58 = vpop.f32.mrf.mxu1  ;;  %v12035_v8 = vor.u32 %v13980_v29, %v12032_v43 }
 0x543   : > { %v7318_v47 = vadd.f32 %v7317_v6, %v7149_v39  ;;  %7021 = vmatmul.bf16.gmra.mxu2 %v11959_v15  ;;  %7190 = vmatmul.bf16.gmra.mxu3 %v11963_v30  ;;  %v13990_v15 = vld [vmem:[%s15786_s29 + $0xb04] sm:$0xf0]  ;;  %v12040_v30 = vld [vmem:[%s15786_s29 + $0xb08] sm:$0xf0] }
 0x544   : > { %v12039_v21 = vor.u32 %v13990_v15, %v12038_v60  ;;  %v12102_v60 = vld [vmem:[%s15786_s29 + $0xb48] sm:$0xf]  ;;  %v14007_v15 = vld [vmem:[%s15786_s29 + $0xb8c] sm:$0xf0] }
 0x545   : > { %7359 = vmatmul.bf16.gmra.mxu0 %v11967_v55  ;;  %7528 = vmatmul.bf16.gmra.mxu1 %v11971_v3  ;;  %v16649_v41 = vadd.f32 %v7486_v62, %v7318_v47  ;;  %v13981_v62 = vld [vmem:[%s15786_s29 + $0xac4] sm:$0xf]  ;;  %v12031_v47 = vor.u32 %v13989_v17, %v12030_v59 }
 0x546   : > { %v6982_v13 = vpop.f32.mrf.mxu2  ;;  %v7151_v19 = vpop.f32.mrf.mxu3 }
 0x547   : > { %v6983_v6 = vadd.f32 %v6982_v13, %v16415_v11 }
 0x549   : > { %v7152_v45 = vadd.f32 %v7151_v19, %v6983_v6 }
 0x54a   : > { %v7322_v18 = vpop.f32.mrf.mxu0  ;;  %v7491_v50 = vpop.f32.mrf.mxu1 }
 0x54b   : > { %v7321_v2 = vadd.f32 %v7320_v44, %v7152_v45  ;;  %v12043_v44 = vor.u32 %v13981_v62, %v12040_v30  ;;  %v13998_v62 = vld [vmem:[%s15786_s29 + $0xb4c] sm:$0xf]  ;;  %v12104_v30 = vld [vmem:[%s15786_s29 + $0xb90] sm:$0xf0] }
 0x54d   : > { %v16660_v55 = vadd.f32 %v7489_v58, %v7321_v2  ;;  %v14287_v58 = vld [vmem:[#allocation2 + $0x2a8] sm:$0xff] }
 0x54e   : > { %v6984_v3 = vpop.f32.mrf.mxu2  ;;  %v7153_v39 = vpop.f32.mrf.mxu3  ;;  %8111 = vmatpush.bf16.msra.mxu1 %v14287_v58 }
 0x54f   : > { %v6985_v11 = vadd.f32 %v6984_v3, %v16419_v42  ;;  %v12110_v3 = vld [vmem:[%s15786_s29 + $0xb50] sm:$0xf] }
 0x551   : > { %v7154_v13 = vadd.f32 %v7153_v39, %v6985_v11  ;;  %v14008_v39 = vld [vmem:[%s15786_s29 + $0xb94] sm:$0xf0]  ;;  %v13999_v11 = vld [vmem:[%s15786_s29 + $0xb54] sm:$0xf] }
 0x552   : > { %v7325_v19 = vpop.f32.mrf.mxu0  ;;  %v7494_v6 = vpop.f32.mrf.mxu1 }
 0x553   : > { %v7323_v45 = vadd.f32 %v7322_v18, %v7154_v13  ;;  %7026 = vmatmul.bf16.gmra.mxu2 %v12031_v47  ;;  %7195 = vmatmul.bf16.gmra.mxu3 %v12035_v8  ;;  %v12112_v47 = vld [vmem:[%s15786_s29 + $0xb98] sm:$0xf0]  ;;  %v12103_v13 = vor.u32 %v14007_v15, %v12102_v60 }
 0x554   : > { %v12115_v58 = vor.u32 %v13999_v11, %v12112_v47  ;;  %v12176_v11 = vld [vmem:[%s15786_s29 + $0xc20] sm:$0xf0]  ;;  %v12182_v47 = vld [vmem:[%s15786_s29 + $0xbe0] sm:$0xf] }
 0x555   : > { %7364 = vmatmul.bf16.gmra.mxu0 %v12039_v21  ;;  %7533 = vmatmul.bf16.gmra.mxu1 %v12043_v44  ;;  %v16663_v42 = vadd.f32 %v7491_v50, %v7323_v45  ;;  %v12111_v45 = vor.u32 %v14008_v39, %v12110_v3  ;;  %v14025_v3 = vld [vmem:[%s15786_s29 + $0xc1c] sm:$0xf0]  ;;  %v14016_v39 = vld [vmem:[%s15786_s29 + $0xbdc] sm:$0xf] }
 0x556   : > { %v6987_v2 = vpop.f32.mrf.mxu2  ;;  %v7156_v59 = vpop.f32.mrf.mxu3 }
 0x557   : > { %v6988_v17 = vadd.f32 %v6987_v2, %v16431_v36  ;;  %v12107_v36 = vor.u32 %v13998_v62, %v12104_v30 }
 0x559   : > { %v7157_v18 = vadd.f32 %v7156_v59, %v6988_v17 }
 0x55a   : > { %v7327_v7 = vpop.f32.mrf.mxu0  ;;  %v7496_v29 = vpop.f32.mrf.mxu1 }
 0x55b   : > { %v7326_v43 = vadd.f32 %v7325_v19, %v7157_v18 }
 0x55d   : > { %v16674_v8 = vadd.f32 %v7494_v6, %v7326_v43 }
 0x55e   : > { %v6989_v50 = vpop.f32.mrf.mxu2  ;;  %v7158_v21 = vpop.f32.mrf.mxu3 }
 0x55f   : > { %v6990_v44 = vadd.f32 %v6989_v50, %v16435_v28  ;;  %v14026_v50 = vld [vmem:[%s15786_s29 + $0xc24] sm:$0xf0] }
 0x561   : > { %v7159_v2 = vadd.f32 %v7158_v21, %v6990_v44  ;;  %v14017_v21 = vld [vmem:[%s15786_s29 + $0xbe4] sm:$0xf]  ;;  %v12184_v44 = vld [vmem:[%s15786_s29 + $0xc28] sm:$0xf0] }
 0x562   : > { %v7330_v19 = vpop.f32.mrf.mxu0  ;;  %v7499_v59 = vpop.f32.mrf.mxu1 }
 0x563   : > { %v7328_v17 = vadd.f32 %v7327_v7, %v7159_v2  ;;  %7031 = vmatmul.bf16.gmra.mxu2 %v12103_v13  ;;  %7200 = vmatmul.bf16.gmra.mxu3 %v12107_v36  ;;  %v12174_v7 = vld [vmem:[%s15786_s29 + $0xbd8] sm:$0xf]  ;;  %v12183_v2 = vor.u32 %v14026_v50, %v12182_v47  ;;  %v14043_v47 = vld [vmem:[%s15786_s29 + $0xcac] sm:$0xf0]  ;;  %v14034_v50 = vld [vmem:[%s15786_s29 + $0xc6c] sm:$0xf] }
 0x565   : > { %7369 = vmatmul.bf16.gmra.mxu0 %v12111_v45  ;;  %7538 = vmatmul.bf16.gmra.mxu1 %v12115_v58  ;;  %v16677_v28 = vadd.f32 %v7496_v29, %v7328_v17  ;;  %v12175_v58 = vor.u32 %v14025_v3, %v12174_v7  ;;  %v12187_v17 = vor.u32 %v14017_v21, %v12184_v44  ;;  %v12248_v21 = vld [vmem:[%s15786_s29 + $0xcb0] sm:$0xf0]  ;;  %v12254_v44 = vld [vmem:[%s15786_s29 + $0xc70] sm:$0xf] }
 0x566   : > { %v6992_v6 = vpop.f32.mrf.mxu2  ;;  %v7161_v18 = vpop.f32.mrf.mxu3 }
 0x567   : > { %v6993_v43 = vadd.f32 %v6992_v6, %v16447_v20  ;;  %v12179_v20 = vor.u32 %v14016_v39, %v12176_v11 }
 0x569   : > { %v7162_v60 = vadd.f32 %v7161_v18, %v6993_v43 }
 0x56a   : > { %v7332_v15 = vpop.f32.mrf.mxu0  ;;  %v7501_v62 = vpop.f32.mrf.mxu1 }
 0x56b   : > { %v7331_v30 = vadd.f32 %v7330_v19, %v7162_v60 }
 0x56d   : > { %v16688_v13 = vadd.f32 %v7499_v59, %v7331_v30 }
 0x56e   : > { %v6994_v29 = vpop.f32.mrf.mxu2  ;;  %v7163_v36 = vpop.f32.mrf.mxu3 }
 0x56f   : > { %v6995_v45 = vadd.f32 %v6994_v29, %v16451_v63  ;;  %v14044_v29 = vld [vmem:[%s15786_s29 + $0xcb4] sm:$0xf0] }
 0x571   : > { %v7164_v6 = vadd.f32 %v7163_v36, %v6995_v45  ;;  %v14035_v36 = vld [vmem:[%s15786_s29 + $0xc74] sm:$0xf]  ;;  %v12256_v45 = vld [vmem:[%s15786_s29 + $0xcb8] sm:$0xf0] }
 0x572   : > { %v7335_v19 = vpop.f32.mrf.mxu0  ;;  %v7504_v18 = vpop.f32.mrf.mxu1 }
 0x573   : > { %v7333_v43 = vadd.f32 %v7332_v15, %v7164_v6  ;;  %7036 = vmatmul.bf16.gmra.mxu2 %v12175_v58  ;;  %7205 = vmatmul.bf16.gmra.mxu3 %v12179_v20  ;;  %v12246_v15 = vld [vmem:[%s15786_s29 + $0xc68] sm:$0xf]  ;;  %v12255_v6 = vor.u32 %v14044_v29, %v12254_v44  ;;  %v12318_v29 = vld [vmem:[%s15786_s29 + $0xcf8] sm:$0xf] }
 0x575   : > { %7374 = vmatmul.bf16.gmra.mxu0 %v12183_v2  ;;  %7543 = vmatmul.bf16.gmra.mxu1 %v12187_v17  ;;  %v16691_v63 = vadd.f32 %v7501_v62, %v7333_v43  ;;  %v12247_v17 = vor.u32 %v14043_v47, %v12246_v15  ;;  %v12259_v43 = vor.u32 %v14035_v36, %v12256_v45  ;;  %v14061_v36 = vld [vmem:[%s15786_s29 + $0xd3c] sm:$0xf0]  ;;  %v14278_v45 = vld [vmem:[#allocation2 + $0x70] sm:$0xff] }
 0x576   : > { %v6997_v59 = vpop.f32.mrf.mxu2  ;;  %v7166_v60 = vpop.f32.mrf.mxu3  ;;  %7943 = vmatpush.bf16.msra.mxu0 %v14278_v45 }
 0x577   : > { %v6998_v30 = vadd.f32 %v6997_v59, %v16463_v57  ;;  %v12251_v57 = vor.u32 %v14034_v50, %v12248_v21 }
 0x579   : > { %v7167_v7 = vadd.f32 %v7166_v60, %v6998_v30 }
 0x57a   : > { %v7337_v3 = vpop.f32.mrf.mxu0  ;;  %v7506_v39 = vpop.f32.mrf.mxu1 }
 0x57b   : > { %v7336_v11 = vadd.f32 %v7335_v19, %v7167_v7  ;;  %v14262_v7 = vld [vmem:[#allocation2 + $0x2c0] sm:$0xff] }
 0x57c   : > { %7605 = vmatpush.bf16.msra.mxu2 %v14262_v7 }
 0x57d   : > { %v16702_v58 = vadd.f32 %v7504_v18, %v7336_v11  ;;  %v14270_v18 = vld [vmem:[#allocation2 + $0x310] sm:$0xff] }
 0x57e   : > { %v6999_v62 = vpop.f32.mrf.mxu2  ;;  %v7168_v20 = vpop.f32.mrf.mxu3  ;;  %7774 = vmatpush.bf16.msra.mxu3 %v14270_v18 }
 0x57f   : > { %v7000_v2 = vadd.f32 %v6999_v62, %v16467_v25  ;;  %v14052_v62 = vld [vmem:[%s15786_s29 + $0xcfc] sm:$0xf] }
 0x581   : > { %v7169_v59 = vadd.f32 %v7168_v20, %v7000_v2  ;;  %v12320_v20 = vld [vmem:[%s15786_s29 + $0xd40] sm:$0xf0]  ;;  %v12326_v2 = vld [vmem:[%s15786_s29 + $0xd00] sm:$0xf] }
 0x582   : > { %v7340_v19 = vpop.f32.mrf.mxu0  ;;  %v7509_v60 = vpop.f32.mrf.mxu1  ;;  %v12323_v7 = vor.u32 %v14052_v62, %v12320_v20 }
 0x583   : > { %v7338_v30 = vadd.f32 %v7337_v3, %v7169_v59  ;;  %7041 = vmatmul.bf16.gmra.mxu2 %v12247_v17  ;;  %7210 = vmatmul.bf16.gmra.mxu3 %v12251_v57  ;;  %v14062_v17 = vld [vmem:[%s15786_s29 + $0xd44] sm:$0xf0]  ;;  %v12328_v57 = vld [vmem:[%s15786_s29 + $0xd48] sm:$0xf0] }
 0x584   : > { %v12327_v18 = vor.u32 %v14062_v17, %v12326_v2  ;;  %v12390_v2 = vld [vmem:[%s15786_s29 + $0xd88] sm:$0xf]  ;;  %v14079_v17 = vld [vmem:[%s15786_s29 + $0xdcc] sm:$0xf0] }
 0x585   : > { %7379 = vmatmul.bf16.gmra.mxu0 %v12255_v6  ;;  %7548 = vmatmul.bf16.gmra.mxu1 %v12259_v43  ;;  %v16705_v25 = vadd.f32 %v7506_v39, %v7338_v30  ;;  %v14053_v39 = vld [vmem:[%s15786_s29 + $0xd04] sm:$0xf]  ;;  %v12319_v30 = vor.u32 %v14061_v36, %v12318_v29 }
 0x586   : > { %v7002_v11 = vpop.f32.mrf.mxu2  ;;  %v7171_v15 = vpop.f32.mrf.mxu3 }
 0x587   : > { %v7003_v3 = vadd.f32 %v7002_v11, %v16479_v9 }
 0x589   : > { %v7172_v47 = vadd.f32 %v7171_v15, %v7003_v3 }
 0x58a   : > { %v7342_v50 = vpop.f32.mrf.mxu0  ;;  %v7511_v21 = vpop.f32.mrf.mxu1 }
 0x58b   : > { %v7341_v44 = vadd.f32 %v7340_v19, %v7172_v47  ;;  %v12331_v19 = vor.u32 %v14053_v39, %v12328_v57  ;;  %v14070_v39 = vld [vmem:[%s15786_s29 + $0xd8c] sm:$0xf]  ;;  %v12392_v57 = vld [vmem:[%s15786_s29 + $0xdd0] sm:$0xf0] }
 0x58d   : > { %v16716_v6 = vadd.f32 %v7509_v60, %v7341_v44  ;;  %v14286_v60 = vld [vmem:[#allocation2 + $0x160] sm:$0xff] }
 0x58e   : > { %v7004_v43 = vpop.f32.mrf.mxu2  ;;  %v7173_v59 = vpop.f32.mrf.mxu3  ;;  %8112 = vmatpush.bf16.msra.mxu1 %v14286_v60 }
 0x58f   : > { %v7005_v9 = vadd.f32 %v7004_v43, %v16483_v23  ;;  %v12398_v43 = vld [vmem:[%s15786_s29 + $0xd90] sm:$0xf] }
 0x591   : > { %v7174_v11 = vadd.f32 %v7173_v59, %v7005_v9  ;;  %v14080_v59 = vld [vmem:[%s15786_s29 + $0xdd4] sm:$0xf0]  ;;  %v14071_v9 = vld [vmem:[%s15786_s29 + $0xd94] sm:$0xf] }
 0x592   : > { %v7345_v15 = vpop.f32.mrf.mxu0  ;;  %v7514_v3 = vpop.f32.mrf.mxu1 }
 0x593   : > { %v7343_v47 = vadd.f32 %v7342_v50, %v7174_v11  ;;  %7046 = vmatmul.bf16.gmra.mxu2 %v12319_v30  ;;  %7215 = vmatmul.bf16.gmra.mxu3 %v12323_v7  ;;  %v12400_v30 = vld [vmem:[%s15786_s29 + $0xdd8] sm:$0xf0]  ;;  %v12391_v11 = vor.u32 %v14079_v17, %v12390_v2 }
 0x594   : > { %v12403_v60 = vor.u32 %v14071_v9, %v12400_v30  ;;  %v12464_v9 = vld [vmem:[%s15786_s29 + $0xe60] sm:$0xf0]  ;;  %v12470_v30 = vld [vmem:[%s15786_s29 + $0xe20] sm:$0xf] }
 0x595   : > { %7384 = vmatmul.bf16.gmra.mxu0 %v12327_v18  ;;  %7553 = vmatmul.bf16.gmra.mxu1 %v12331_v19  ;;  %v16719_v23 = vadd.f32 %v7511_v21, %v7343_v47  ;;  %v12399_v47 = vor.u32 %v14080_v59, %v12398_v43  ;;  %v14097_v43 = vld [vmem:[%s15786_s29 + $0xe5c] sm:$0xf0]  ;;  %v14088_v59 = vld [vmem:[%s15786_s29 + $0xe1c] sm:$0xf] }
 0x596   : > { %v7007_v44 = vpop.f32.mrf.mxu2  ;;  %v7176_v29 = vpop.f32.mrf.mxu3 }
 0x597   : > { %v7008_v36 = vadd.f32 %v7007_v44, %v16495_v33  ;;  %v12395_v33 = vor.u32 %v14070_v39, %v12392_v57 }
 0x599   : > { %v7177_v50 = vadd.f32 %v7176_v29, %v7008_v36 }
 0x59a   : > { %v7347_v45 = vpop.f32.mrf.mxu0  ;;  %v7516_v62 = vpop.f32.mrf.mxu1 }
 0x59b   : > { %v7346_v20 = vadd.f32 %v7345_v15, %v7177_v50 }
 0x59d   : > { %v16730_v7 = vadd.f32 %v7514_v3, %v7346_v20 }
 0x59e   : > { %v7009_v21 = vpop.f32.mrf.mxu2  ;;  %v7178_v18 = vpop.f32.mrf.mxu3 }
 0x59f   : > { %v7010_v19 = vadd.f32 %v7009_v21, %v16499_v16  ;;  %v14098_v21 = vld [vmem:[%s15786_s29 + $0xe64] sm:$0xf0] }
 0x5a1   : > { %v7179_v44 = vadd.f32 %v7178_v18, %v7010_v19  ;;  %v14089_v18 = vld [vmem:[%s15786_s29 + $0xe24] sm:$0xf]  ;;  %v12472_v19 = vld [vmem:[%s15786_s29 + $0xe68] sm:$0xf0] }
 0x5a2   : > { %v7350_v15 = vpop.f32.mrf.mxu0  ;;  %v7519_v29 = vpop.f32.mrf.mxu1 }
 0x5a3   : > { %v7348_v36 = vadd.f32 %v7347_v45, %v7179_v44  ;;  %7051 = vmatmul.bf16.gmra.mxu2 %v12391_v11  ;;  %7220 = vmatmul.bf16.gmra.mxu3 %v12395_v33  ;;  %v12462_v45 = vld [vmem:[%s15786_s29 + $0xe18] sm:$0xf]  ;;  %v12471_v44 = vor.u32 %v14098_v21, %v12470_v30  ;;  %v14115_v30 = vld [vmem:[%s15786_s29 + $0xeec] sm:$0xf0]  ;;  %v14106_v21 = vld [vmem:[%s15786_s29 + $0xeac] sm:$0xf] }
 0x5a5   : > { %7389 = vmatmul.bf16.gmra.mxu0 %v12399_v47  ;;  %7558 = vmatmul.bf16.gmra.mxu1 %v12403_v60  ;;  %v16733_v16 = vadd.f32 %v7516_v62, %v7348_v36  ;;  %v12463_v60 = vor.u32 %v14097_v43, %v12462_v45  ;;  %v12475_v36 = vor.u32 %v14089_v18, %v12472_v19  ;;  %v12536_v18 = vld [vmem:[%s15786_s29 + $0xef0] sm:$0xf0]  ;;  %v12542_v19 = vld [vmem:[%s15786_s29 + $0xeb0] sm:$0xf] }
 0x5a6   : > { %v7012_v3 = vpop.f32.mrf.mxu2  ;;  %v7181_v50 = vpop.f32.mrf.mxu3 }
 0x5a7   : > { %v7013_v20 = vadd.f32 %v7012_v3, %v16257_v35  ;;  %v12467_v35 = vor.u32 %v14088_v59, %v12464_v9 }
 0x5a9   : > { %v7182_v2 = vadd.f32 %v7181_v50, %v7013_v20 }
 0x5aa   : > { %v7352_v17 = vpop.f32.mrf.mxu0  ;;  %v7521_v39 = vpop.f32.mrf.mxu1 }
 0x5ab   : > { %v7351_v57 = vadd.f32 %v7350_v15, %v7182_v2 }
 0x5ad   : > { %v16744_v11 = vadd.f32 %v7519_v29, %v7351_v57 }
 0x5ae   : > { %v7014_v62 = vpop.f32.mrf.mxu2  ;;  %v7183_v33 = vpop.f32.mrf.mxu3 }
 0x5af   : > { %v7015_v47 = vadd.f32 %v7014_v62, %v16269_v46  ;;  %v14116_v62 = vld [vmem:[%s15786_s29 + $0xef4] sm:$0xf0] }
 0x5b1   : > { %v7184_v3 = vadd.f32 %v7183_v33, %v7015_v47  ;;  %v14107_v33 = vld [vmem:[%s15786_s29 + $0xeb4] sm:$0xf]  ;;  %v12544_v47 = vld [vmem:[%s15786_s29 + $0xef8] sm:$0xf0] }
 0x5b2   : > { %v7355_v15 = vpop.f32.mrf.mxu0  ;;  %v7524_v50 = vpop.f32.mrf.mxu1 }
 0x5b3   : > { %v7353_v20 = vadd.f32 %v7352_v17, %v7184_v3  ;;  %7056 = vmatmul.bf16.gmra.mxu2 %v12463_v60  ;;  %7225 = vmatmul.bf16.gmra.mxu3 %v12467_v35  ;;  %v12534_v17 = vld [vmem:[%s15786_s29 + $0xea8] sm:$0xf]  ;;  %v12543_v3 = vor.u32 %v14116_v62, %v12542_v19  ;;  %v12606_v62 = vld [vmem:[%s15786_s29 + $0xf38] sm:$0xf] }
 0x5b5   : > { %7394 = vmatmul.bf16.gmra.mxu0 %v12471_v44  ;;  %7563 = vmatmul.bf16.gmra.mxu1 %v12475_v36  ;;  %v16747_v46 = vadd.f32 %v7521_v39, %v7353_v20  ;;  %v12535_v36 = vor.u32 %v14115_v30, %v12534_v17  ;;  %v12547_v20 = vor.u32 %v14107_v33, %v12544_v47  ;;  %v14133_v33 = vld [vmem:[%s15786_s29 + $0xf7c] sm:$0xf0]  ;;  %v14277_v47 = vld [vmem:[#allocation2 + $0x418] sm:$0xff] }
 0x5b6   : > { %v7017_v29 = vpop.f32.mrf.mxu2  ;;  %v7186_v2 = vpop.f32.mrf.mxu3  ;;  %7944 = vmatpush.bf16.msra.mxu0 %v14277_v47 }
 0x5b7   : > { %v7018_v57 = vadd.f32 %v7017_v29, %v16273_v54  ;;  %v12539_v54 = vor.u32 %v14106_v21, %v12536_v18 }
 0x5b9   : > { %v7187_v45 = vadd.f32 %v7186_v2, %v7018_v57 }
 0x5ba   : > { %v7357_v43 = vpop.f32.mrf.mxu0  ;;  %v7526_v59 = vpop.f32.mrf.mxu1 }
 0x5bb   : > { %v7356_v9 = vadd.f32 %v7355_v15, %v7187_v45  ;;  %v14261_v45 = vld [vmem:[#allocation2 + $0x408] sm:$0xff] }
 0x5bc   : > { %7606 = vmatpush.bf16.msra.mxu2 %v14261_v45 }
 0x5bd   : > { %v16758_v60 = vadd.f32 %v7524_v50, %v7356_v9  ;;  %v14269_v50 = vld [vmem:[#allocation2 + $0x1b8] sm:$0xff] }
 0x5be   : > { %v7019_v39 = vpop.f32.mrf.mxu2  ;;  %v7188_v35 = vpop.f32.mrf.mxu3  ;;  %7775 = vmatpush.bf16.msra.mxu3 %v14269_v50 }
 0x5bf   : > { %v7020_v44 = vadd.f32 %v7019_v39, %v16285_v0  ;;  %v14124_v39 = vld [vmem:[%s15786_s29 + $0xf3c] sm:$0xf] }
 0x5c1   : > { %v7189_v29 = vadd.f32 %v7188_v35, %v7020_v44  ;;  %v12608_v35 = vld [vmem:[%s15786_s29 + $0xf80] sm:$0xf0]  ;;  %v12614_v44 = vld [vmem:[%s15786_s29 + $0xf40] sm:$0xf] }
 0x5c2   : > { %v7360_v15 = vpop.f32.mrf.mxu0  ;;  %v7529_v2 = vpop.f32.mrf.mxu1  ;;  %v12611_v45 = vor.u32 %v14124_v39, %v12608_v35 }
 0x5c3   : > { %v7358_v57 = vadd.f32 %v7357_v43, %v7189_v29  ;;  %7061 = vmatmul.bf16.gmra.mxu2 %v12535_v36  ;;  %7230 = vmatmul.bf16.gmra.mxu3 %v12539_v54  ;;  %v14134_v36 = vld [vmem:[%s15786_s29 + $0xf84] sm:$0xf0]  ;;  %v12616_v54 = vld [vmem:[%s15786_s29 + $0xf88] sm:$0xf0] }
 0x5c4   : > { %v12615_v50 = vor.u32 %v14134_v36, %v12614_v44  ;;  %v12678_v44 = vld [vmem:[%s15786_s29 + $0xfc8] sm:$0xf]  ;;  %v14151_v36 = vld [vmem:[%s15786_s29 + $0x100c] sm:$0xf0] }
 0x5c5   : > { %7399 = vmatmul.bf16.gmra.mxu0 %v12543_v3  ;;  %7568 = vmatmul.bf16.gmra.mxu1 %v12547_v20  ;;  %v16761_v0 = vadd.f32 %v7526_v59, %v7358_v57  ;;  %v14125_v59 = vld [vmem:[%s15786_s29 + $0xf44] sm:$0xf]  ;;  %v12607_v57 = vor.u32 %v14133_v33, %v12606_v62 }
 0x5c6   : > { %v7022_v9 = vpop.f32.mrf.mxu2  ;;  %v7191_v17 = vpop.f32.mrf.mxu3 }
 0x5c7   : > { %v7023_v43 = vadd.f32 %v7022_v9, %v16289_v26 }
 0x5c9   : > { %v7192_v30 = vadd.f32 %v7191_v17, %v7023_v43 }
 0x5ca   : > { %v7362_v21 = vpop.f32.mrf.mxu0  ;;  %v7531_v18 = vpop.f32.mrf.mxu1 }
 0x5cb   : > { %v7361_v19 = vadd.f32 %v7360_v15, %v7192_v30  ;;  %v12619_v15 = vor.u32 %v14125_v59, %v12616_v54  ;;  %v14142_v59 = vld [vmem:[%s15786_s29 + $0xfcc] sm:$0xf]  ;;  %v12680_v54 = vld [vmem:[%s15786_s29 + $0x1010] sm:$0xf0] }
 0x5cd   : > { %v16772_v3 = vadd.f32 %v7529_v2, %v7361_v19  ;;  %v14285_v2 = vld [vmem:[#allocation2 + $0x128] sm:$0xff] }
 0x5ce   : > { %v7024_v20 = vpop.f32.mrf.mxu2  ;;  %v7193_v29 = vpop.f32.mrf.mxu3  ;;  %8113 = vmatpush.bf16.msra.mxu1 %v14285_v2 }
 0x5cf   : > { %v7025_v26 = vadd.f32 %v7024_v20, %v16301_v40  ;;  %v12686_v20 = vld [vmem:[%s15786_s29 + $0xfd0] sm:$0xf] }
 0x5d1   : > { %v7194_v9 = vadd.f32 %v7193_v29, %v7025_v26  ;;  %v14152_v29 = vld [vmem:[%s15786_s29 + $0x1014] sm:$0xf0]  ;;  %v14143_v26 = vld [vmem:[%s15786_s29 + $0xfd4] sm:$0xf] }
 0x5d2   : > { %v7365_v17 = vpop.f32.mrf.mxu0  ;;  %v7534_v43 = vpop.f32.mrf.mxu1 }
 0x5d3   : > { %v7363_v30 = vadd.f32 %v7362_v21, %v7194_v9  ;;  %7066 = vmatmul.bf16.gmra.mxu2 %v12607_v57  ;;  %7235 = vmatmul.bf16.gmra.mxu3 %v12611_v45  ;;  %v12688_v57 = vld [vmem:[%s15786_s29 + $0x1018] sm:$0xf0]  ;;  %v12679_v9 = vor.u32 %v14151_v36, %v12678_v44 }
 0x5d4   : > { %v12691_v2 = vor.u32 %v14143_v26, %v12688_v57  ;;  %v12752_v26 = vld [vmem:[%s15786_s29 + $0x10a0] sm:$0xf0]  ;;  %v12758_v57 = vld [vmem:[%s15786_s29 + $0x1060] sm:$0xf] }
 0x5d5   : > { %7404 = vmatmul.bf16.gmra.mxu0 %v12615_v50  ;;  %7573 = vmatmul.bf16.gmra.mxu1 %v12619_v15  ;;  %v16775_v40 = vadd.f32 %v7531_v18, %v7363_v30  ;;  %v12687_v30 = vor.u32 %v14152_v29, %v12686_v20  ;;  %v14169_v20 = vld [vmem:[%s15786_s29 + $0x109c] sm:$0xf0]  ;;  %v14160_v29 = vld [vmem:[%s15786_s29 + $0x105c] sm:$0xf] }
 0x5d6   : > { %v7027_v19 = vpop.f32.mrf.mxu2  ;;  %v7196_v62 = vpop.f32.mrf.mxu3 }
 0x5d7   : > { %v7028_v33 = vadd.f32 %v7027_v19, %v16305_v48  ;;  %v12683_v48 = vor.u32 %v14142_v59, %v12680_v54 }
 0x5d9   : > { %v7197_v21 = vadd.f32 %v7196_v62, %v7028_v33 }
 0x5da   : > { %v7367_v47 = vpop.f32.mrf.mxu0  ;;  %v7536_v39 = vpop.f32.mrf.mxu1 }
 0x5db   : > { %v7366_v35 = vadd.f32 %v7365_v17, %v7197_v21 }
 0x5dd   : > { %v16786_v45 = vadd.f32 %v7534_v43, %v7366_v35 }
 0x5de   : > { %v7029_v18 = vpop.f32.mrf.mxu2  ;;  %v7198_v50 = vpop.f32.mrf.mxu3 }
 0x5df   : > { %v7030_v15 = vadd.f32 %v7029_v18, %v16317_v61  ;;  %v14170_v18 = vld [vmem:[%s15786_s29 + $0x10a4] sm:$0xf0] }
 0x5e1   : > { %v7199_v19 = vadd.f32 %v7198_v50, %v7030_v15  ;;  %v14161_v50 = vld [vmem:[%s15786_s29 + $0x1064] sm:$0xf]  ;;  %v12760_v15 = vld [vmem:[%s15786_s29 + $0x10a8] sm:$0xf0] }
 0x5e2   : > { %v7370_v17 = vpop.f32.mrf.mxu0  ;;  %v7539_v62 = vpop.f32.mrf.mxu1 }
 0x5e3   : > { %v7368_v33 = vadd.f32 %v7367_v47, %v7199_v19  ;;  %7071 = vmatmul.bf16.gmra.mxu2 %v12679_v9  ;;  %7240 = vmatmul.bf16.gmra.mxu3 %v12683_v48  ;;  %v12750_v47 = vld [vmem:[%s15786_s29 + $0x1058] sm:$0xf] }
 0x5e4   : > { %v12751_v19 = vor.u32 %v14169_v20, %v12750_v47  ;;  %v18430_v20 = vld [vmem:[#allocation17_spill] sm:$0xff] }
 0x5e5   : > { %7409 = vmatmul.bf16.gmra.mxu0 %v12687_v30  ;;  %7578 = vmatmul.bf16.gmra.mxu1 %v12691_v2  ;;  %v16789_v61 = vadd.f32 %v7536_v39, %v7368_v33  ;;  %v18428_v30 = vld [vmem:[#allocation16_spill] sm:$0xff]  ;;  %v12759_v33 = vor.u32 %v14170_v18, %v12758_v57 }
 0x5e6   : > { %v7032_v43 = vpop.f32.mrf.mxu2  ;;  %v7201_v21 = vpop.f32.mrf.mxu3 }
 0x5e7   : > { %18426 = vst [vmem:[#allocation40_spill] sm:$0xff] %v16789_v61  ;;  %v7033_v35 = vadd.f32 %v7032_v43, %v16321_v12  ;;  %v12755_v12 = vor.u32 %v14160_v29, %v12752_v26  ;;  %v12763_v43 = vor.u32 %v14161_v50, %v12760_v15  ;;  %v14187_v15 = vld [vmem:[%s15786_s29 + $0x112c] sm:$0xf0] }
 0x5e8   : > { %v14300_v61 = vld [vmem:[#allocation2 + $0x230] sm:$0xff] }
 0x5e9   : > { %v7202_v44 = vadd.f32 %v7201_v21, %v7033_v35  ;;  %8275 = vmatpush.bf16.msrb.mxu2 %v14300_v61  ;;  %v12902_v61 = vld [vmem:[%s15786_s29 + $0x1180] sm:$0xf] }
 0x5ea   : > { %v7372_v36 = vpop.f32.mrf.mxu0  ;;  %v7541_v59 = vpop.f32.mrf.mxu1 }
 0x5eb   : > { %v7371_v54 = vadd.f32 %v7370_v17, %v7202_v44 }
 0x5ed   : > { %v16800_v9 = vadd.f32 %v7539_v62, %v7371_v54 }
 0x5ee   : > { %v7034_v39 = vpop.f32.mrf.mxu2  ;;  %v7203_v48 = vpop.f32.mrf.mxu3 }
 0x5ef   : > { %18427 = vst [vmem:[#allocation41_spill] sm:$0xff] %v16800_v9  ;;  %v7035_v2 = vadd.f32 %v7034_v39, %v18428_v30  ;;  %v14178_v39 = vld [vmem:[%s15786_s29 + $0x10ec] sm:$0xf]  ;;  %v12830_v30 = vld [vmem:[%s15786_s29 + $0x10f0] sm:$0xf] }
 0x5f1   : > { %v7204_v21 = vadd.f32 %v7203_v48, %v7035_v2  ;;  %v12824_v48 = vld [vmem:[%s15786_s29 + $0x1130] sm:$0xf0]  ;;  %v14188_v2 = vld [vmem:[%s15786_s29 + $0x1134] sm:$0xf0] }
 0x5f2   : > { %v7375_v17 = vpop.f32.mrf.mxu0  ;;  %v7544_v35 = vpop.f32.mrf.mxu1 }
 0x5f3   : > { %v7373_v44 = vadd.f32 %v7372_v36, %v7204_v21  ;;  %7076 = vmatmul.bf16.gmra.mxu2 %v12751_v19  ;;  %7245 = vmatmul.bf16.gmra.mxu3 %v12755_v12  ;;  %v12822_v36 = vld [vmem:[%s15786_s29 + $0x10e8] sm:$0xf]  ;;  %v14179_v19 = vld [vmem:[%s15786_s29 + $0x10f4] sm:$0xf]  ;;  %v12832_v12 = vld [vmem:[%s15786_s29 + $0x1138] sm:$0xf0] }
 0x5f4   : > { %v18432_v21 = vld [vmem:[#allocation18_spill] sm:$0xff] }
 0x5f5   : > { %7414 = vmatmul.bf16.gmra.mxu0 %v12759_v33  ;;  %7583 = vmatmul.bf16.gmra.mxu1 %v12763_v43  ;;  %v16803_v62 = vadd.f32 %v7541_v59, %v7373_v44 }
 0x5f6   : > { %v7037_v54 = vpop.f32.mrf.mxu2  ;;  %v7206_v47 = vpop.f32.mrf.mxu3 }
 0x5f7   : > { %18429 = vst [vmem:[#allocation16_spill] sm:$0xff] %v16803_v62  ;;  %v7038_v29 = vadd.f32 %v7037_v54, %v18430_v20  ;;  %v12823_v62 = vor.u32 %v14187_v15, %v12822_v36  ;;  %v12827_v54 = vor.u32 %v14178_v39, %v12824_v48  ;;  %v12835_v20 = vor.u32 %v14179_v19, %v12832_v12  ;;  %v12894_v19 = vld [vmem:[%s15786_s29 + $0x1178] sm:$0xf]  ;;  %v14205_v12 = vld [vmem:[%s15786_s29 + $0x11bc] sm:$0xf0] }
 0x5f9   : > { %v7207_v26 = vadd.f32 %v7206_v47, %v7038_v29  ;;  %v12831_v47 = vor.u32 %v14188_v2, %v12830_v30 }
 0x5fa   : > { %v7377_v57 = vpop.f32.mrf.mxu0  ;;  %v7546_v18 = vpop.f32.mrf.mxu1 }
 0x5fb   : > { %v7376_v50 = vadd.f32 %v7375_v17, %v7207_v26 }
 0x5fd   : > { %v16814_v33 = vadd.f32 %v7544_v35, %v7376_v50  ;;  %v14308_v35 = vld [vmem:[#allocation2 + $0x178] sm:$0xff] }
 0x5fe   : > { %v7039_v59 = vpop.f32.mrf.mxu2  ;;  %v7208_v43 = vpop.f32.mrf.mxu3  ;;  %8444 = vmatpush.bf16.msrb.mxu3 %v14308_v35 }
 0x5ff   : > { %18431 = vst [vmem:[#allocation17_spill] sm:$0xff] %v16814_v33  ;;  %v7040_v44 = vadd.f32 %v7039_v59, %v18432_v21  ;;  %v14316_v59 = vld [vmem:[#allocation2] sm:$0xff] }
 0x600   : > { %v12896_v21 = vld [vmem:[%s15786_s29 + $0x11c0] sm:$0xf0]  ;;  %8613 = vmatpush.bf16.msrb.mxu0 %v14316_v59  ;;  %v18438_v59 = vld [vmem:[#allocation21_spill] sm:$0xff] }
 0x601   : > { %v7209_v29 = vadd.f32 %v7208_v43, %v7040_v44  ;;  %v14196_v43 = vld [vmem:[%s15786_s29 + $0x117c] sm:$0xf]  ;;  %v14206_v44 = vld [vmem:[%s15786_s29 + $0x11c4] sm:$0xf0] }
 0x602   : > { %v7380_v17 = vpop.f32.mrf.mxu0  ;;  %v7549_v26 = vpop.f32.mrf.mxu1 }
 0x603   : > { %v7378_v9 = vadd.f32 %v7377_v57, %v7209_v29  ;;  %7081 = vmatmul.bf16.gmra.mxu2 %v12823_v62  ;;  %7250 = vmatmul.bf16.gmra.mxu3 %v12827_v54  ;;  %v18434_v62 = vld [vmem:[#allocation19_spill] sm:$0xff]  ;;  %v18436_v29 = vld [vmem:[#allocation20_spill] sm:$0xff] }
 0x605   : > { %7419 = vmatmul.bf16.gmra.mxu0 %v12831_v47  ;;  %7588 = vmatmul.bf16.gmra.mxu1 %v12835_v20  ;;  %v16817_v50 = vadd.f32 %v7546_v18, %v7378_v9  ;;  %v14197_v9 = vld [vmem:[%s15786_s29 + $0x1184] sm:$0xf]  ;;  %v12904_v18 = vld [vmem:[%s15786_s29 + $0x11c8] sm:$0xf0] }
 0x606   : > { %v7042_v36 = vpop.f32.mrf.mxu2  ;;  %v7211_v15 = vpop.f32.mrf.mxu3 }
 0x607   : > { %18433 = vst [vmem:[#allocation18_spill] sm:$0xff] %v16817_v50  ;;  %v7043_v57 = vadd.f32 %v7042_v36, %v18434_v62  ;;  %v12895_v36 = vor.u32 %v14205_v12, %v12894_v19  ;;  %v12903_v62 = vor.u32 %v14206_v44, %v12902_v61 }
 0x609   : > { %v7212_v39 = vadd.f32 %v7211_v15, %v7043_v57  ;;  %v12899_v15 = vor.u32 %v14196_v43, %v12896_v21 }
 0x60a   : > { %v7382_v48 = vpop.f32.mrf.mxu0  ;;  %v7551_v30 = vpop.f32.mrf.mxu1 }
 0x60b   : > { %v7381_v2 = vadd.f32 %v7380_v17, %v7212_v39  ;;  %v12907_v17 = vor.u32 %v14197_v9, %v12904_v18  ;;  %v10678_v9 = vld [vmem:[%s15786_s29 + $0x18] sm:$0xf]  ;;  %v13649_v18 = vld [vmem:[%s15786_s29 + $0x5c] sm:$0xf0] }
 0x60d   : > { %v16828_v54 = vadd.f32 %v7549_v26, %v7381_v2  ;;  %v14324_v26 = vld [vmem:[#allocation2 + $0x28] sm:$0xff] }
 0x60e   : > { %v7044_v47 = vpop.f32.mrf.mxu2  ;;  %v7213_v20 = vpop.f32.mrf.mxu3  ;;  %8782 = vmatpush.bf16.msrb.mxu1 %v14324_v26  ;;  %v10679_v26 = vor.u32 %v13649_v18, %v10678_v9  ;;  %v18442_v18 = vld [vmem:[#allocation23_spill] sm:$0xff] }
 0x60f   : > { %18435 = vst [vmem:[#allocation19_spill] sm:$0xff] %v16828_v54  ;;  %v7045_v35 = vadd.f32 %v7044_v47, %v18436_v29  ;;  %v13640_v47 = vld [vmem:[%s15786_s29 + $0x1c] sm:$0xf]  ;;  %v10686_v29 = vld [vmem:[%s15786_s29 + $0x20] sm:$0xf]  ;;  %v14299_v54 = vld [vmem:[#allocation2 + $0x328] sm:$0xff] }
 0x610   : > { %8276 = vmatpush.bf16.msrb.mxu2 %v14299_v54  ;;  %v10902_v54 = vld [vmem:[%s15786_s29 + $0x1d0] sm:$0xf] }
 0x611   : > { %v7214_v57 = vadd.f32 %v7213_v20, %v7045_v35  ;;  %v10680_v20 = vld [vmem:[%s15786_s29 + $0x60] sm:$0xf0]  ;;  %v13650_v35 = vld [vmem:[%s15786_s29 + $0x64] sm:$0xf0] }
 0x612   : > { %v7385_v39 = vpop.f32.mrf.mxu0  ;;  %v7554_v50 = vpop.f32.mrf.mxu1 }
 0x613   : > { %v7383_v33 = vadd.f32 %v7382_v48, %v7214_v57  ;;  %7086 = vmatmul.bf16.gmra.mxu2 %v12895_v36  ;;  %7255 = vmatmul.bf16.gmra.mxu3 %v12899_v15  ;;  %v13641_v36 = vld [vmem:[%s15786_s29 + $0x24] sm:$0xf]  ;;  %v10688_v15 = vld [vmem:[%s15786_s29 + $0x68] sm:$0xf0] }
 0x615   : > { %7424 = vmatmul.bf16.gmra.mxu0 %v12903_v62  ;;  %7593 = vmatmul.bf16.gmra.mxu1 %v12907_v17  ;;  %v16831_v2 = vadd.f32 %v7551_v30, %v7383_v33  ;;  %v18440_v17 = vld [vmem:[#allocation22_spill] sm:$0xff] }
 0x616   : > { %v7047_v19 = vpop.f32.mrf.mxu2  ;;  %v7216_v12 = vpop.f32.mrf.mxu3 }
 0x617   : > { %18437 = vst [vmem:[#allocation20_spill] sm:$0xff] %v16831_v2  ;;  %v7048_v43 = vadd.f32 %v7047_v19, %v18438_v59  ;;  %v10683_v19 = vor.u32 %v13640_v47, %v10680_v20  ;;  %v10691_v59 = vor.u32 %v13641_v36, %v10688_v15  ;;  %v13667_v15 = vld [vmem:[%s15786_s29 + $0xec] sm:$0xf0] }
 0x619   : > { %v7217_v48 = vadd.f32 %v7216_v12, %v7048_v43  ;;  %v10687_v12 = vor.u32 %v13650_v35, %v10686_v29 }
 0x61a   : > { %v7387_v21 = vpop.f32.mrf.mxu0  ;;  %v7556_v61 = vpop.f32.mrf.mxu1 }
 0x61b   : > { %v7386_v44 = vadd.f32 %v7385_v39, %v7217_v48 }
 0x61d   : > { %v16842_v62 = vadd.f32 %v7554_v50, %v7386_v44 }
 0x61e   : > { %v7049_v33 = vpop.f32.mrf.mxu2  ;;  %v7218_v30 = vpop.f32.mrf.mxu3 }
 0x61f   : > { %18439 = vst [vmem:[#allocation21_spill] sm:$0xff] %v16842_v62  ;;  %v7050_v57 = vadd.f32 %v7049_v33, %v18440_v17  ;;  %v13658_v33 = vld [vmem:[%s15786_s29 + $0xac] sm:$0xf]  ;;  %v10758_v17 = vld [vmem:[%s15786_s29 + $0xb0] sm:$0xf] }
 0x621   : > { %v7219_v43 = vadd.f32 %v7218_v30, %v7050_v57  ;;  %v10752_v30 = vld [vmem:[%s15786_s29 + $0xf0] sm:$0xf0]  ;;  %v13668_v57 = vld [vmem:[%s15786_s29 + $0xf4] sm:$0xf0] }
 0x622   : > { %v7390_v39 = vpop.f32.mrf.mxu0  ;;  %v7559_v48 = vpop.f32.mrf.mxu1 }
 0x623   : > { %v7388_v2 = vadd.f32 %v7387_v21, %v7219_v43  ;;  %7607 = vmatmul.bf16.vlgmr.msra.gmra.mxu2 %v10679_v26  ;;  %7776 = vmatmul.bf16.vlgmr.msra.gmra.mxu3 %v10683_v19  ;;  %v10750_v21 = vld [vmem:[%s15786_s29 + $0xa8] sm:$0xf]  ;;  %v13659_v26 = vld [vmem:[%s15786_s29 + $0xb4] sm:$0xf]  ;;  %v10760_v19 = vld [vmem:[%s15786_s29 + $0xf8] sm:$0xf0] }
 0x625   : > { %7945 = vmatmul.bf16.vlgmr.msra.gmra.mxu0 %v10687_v12  ;;  %8114 = vmatmul.bf16.vlgmr.msra.gmra.mxu1 %v10691_v59  ;;  %v16845_v50 = vadd.f32 %v7556_v61, %v7388_v2  ;;  %v18444_v59 = vld [vmem:[#allocation24_spill] sm:$0xff] }
 0x626   : > { %v7052_v44 = vpop.f32.mrf.mxu2  ;;  %v7221_v9 = vpop.f32.mrf.mxu3 }
 0x627   : > { %18441 = vst [vmem:[#allocation22_spill] sm:$0xff] %v16845_v50  ;;  %v7053_v47 = vadd.f32 %v7052_v44, %v18442_v18  ;;  %v10751_v50 = vor.u32 %v13667_v15, %v10750_v21  ;;  %v10755_v44 = vor.u32 %v13658_v33, %v10752_v30  ;;  %v10763_v18 = vor.u32 %v13659_v26, %v10760_v19  ;;  %v18446_v15 = vld [vmem:[#allocation25_spill] sm:$0xff]  ;;  %v13685_v19 = vld [vmem:[%s15786_s29 + $0x17c] sm:$0xf0] }
 0x629   : > { %v7222_v20 = vadd.f32 %v7221_v9, %v7053_v47  ;;  %v10759_v9 = vor.u32 %v13668_v57, %v10758_v17 }
 0x62a   : > { %v7392_v29 = vpop.f32.mrf.mxu0  ;;  %v7561_v35 = vpop.f32.mrf.mxu1 }
 0x62b   : > { %v7391_v36 = vadd.f32 %v7390_v39, %v7222_v20 }
 0x62d   : > { %v16856_v12 = vadd.f32 %v7559_v48, %v7391_v36 }
 0x62e   : > { %v7054_v2 = vpop.f32.mrf.mxu2  ;;  %v7223_v61 = vpop.f32.mrf.mxu3 }
 0x62f   : > { %18443 = vst [vmem:[#allocation23_spill] sm:$0xff] %v16856_v12  ;;  %v7055_v43 = vadd.f32 %v7054_v2, %v18444_v59  ;;  %v10824_v2 = vld [vmem:[%s15786_s29 + $0x180] sm:$0xf0]  ;;  %v13686_v59 = vld [vmem:[%s15786_s29 + $0x184] sm:$0xf0] }
 0x631   : > { %v7224_v47 = vadd.f32 %v7223_v61, %v7055_v43  ;;  %v10830_v61 = vld [vmem:[%s15786_s29 + $0x140] sm:$0xf]  ;;  %v13677_v43 = vld [vmem:[%s15786_s29 + $0x144] sm:$0xf] }
 0x632   : > { %v7395_v39 = vpop.f32.mrf.mxu0  ;;  %v7564_v20 = vpop.f32.mrf.mxu1 }
 0x633   : > { %v7393_v62 = vadd.f32 %v7392_v29, %v7224_v47  ;;  %7612 = vmatmul.bf16.gmra.mxu2 %v10751_v50  ;;  %7781 = vmatmul.bf16.gmra.mxu3 %v10755_v44  ;;  %v10822_v29 = vld [vmem:[%s15786_s29 + $0x138] sm:$0xf]  ;;  %v13676_v50 = vld [vmem:[%s15786_s29 + $0x13c] sm:$0xf]  ;;  %v10832_v44 = vld [vmem:[%s15786_s29 + $0x188] sm:$0xf0] }
 0x635   : > { %7950 = vmatmul.bf16.gmra.mxu0 %v10759_v9  ;;  %8119 = vmatmul.bf16.gmra.mxu1 %v10763_v18  ;;  %v16859_v48 = vadd.f32 %v7561_v35, %v7393_v62  ;;  %v18448_v18 = vld [vmem:[#allocation26_spill] sm:$0xff] }
 0x636   : > { %v7057_v36 = vpop.f32.mrf.mxu2  ;;  %v7226_v21 = vpop.f32.mrf.mxu3 }
 0x637   : > { %18445 = vst [vmem:[#allocation24_spill] sm:$0xff] %v16859_v48  ;;  %v7058_v33 = vadd.f32 %v7057_v36, %v18446_v15  ;;  %v10823_v48 = vor.u32 %v13685_v19, %v10822_v29  ;;  %v10827_v36 = vor.u32 %v13676_v50, %v10824_v2  ;;  %v10835_v15 = vor.u32 %v13677_v43, %v10832_v44  ;;  %v10894_v43 = vld [vmem:[%s15786_s29 + $0x1c8] sm:$0xf]  ;;  %v13703_v44 = vld [vmem:[%s15786_s29 + $0x20c] sm:$0xf0] }
 0x639   : > { %v7227_v30 = vadd.f32 %v7226_v21, %v7058_v33  ;;  %v10831_v21 = vor.u32 %v13686_v59, %v10830_v61 }
 0x63a   : > { %v7397_v17 = vpop.f32.mrf.mxu0  ;;  %v7566_v57 = vpop.f32.mrf.mxu1 }
 0x63b   : > { %v7396_v26 = vadd.f32 %v7395_v39, %v7227_v30 }
 0x63d   : > { %v16870_v9 = vadd.f32 %v7564_v20, %v7396_v26  ;;  %v14307_v20 = vld [vmem:[#allocation2 + $0x1f0] sm:$0xff] }
 0x63e   : > { %v7059_v62 = vpop.f32.mrf.mxu2  ;;  %v7228_v35 = vpop.f32.mrf.mxu3  ;;  %8445 = vmatpush.bf16.msrb.mxu3 %v14307_v20 }
 0x63f   : > { %18447 = vst [vmem:[#allocation25_spill] sm:$0xff] %v16870_v9  ;;  %v7060_v47 = vadd.f32 %v7059_v62, %v18448_v18  ;;  %v14315_v62 = vld [vmem:[#allocation2 + $0x118] sm:$0xff]  ;;  %v10896_v18 = vld [vmem:[%s15786_s29 + $0x210] sm:$0xf0] }
 0x640   : > { %8614 = vmatpush.bf16.msrb.mxu0 %v14315_v62  ;;  %v18454_v62 = vld [vmem:[#allocation29_spill] sm:$0xff] }
 0x641   : > { %v7229_v33 = vadd.f32 %v7228_v35, %v7060_v47  ;;  %v13694_v35 = vld [vmem:[%s15786_s29 + $0x1cc] sm:$0xf]  ;;  %v13704_v47 = vld [vmem:[%s15786_s29 + $0x214] sm:$0xf0] }
 0x642   : > { %v7400_v39 = vpop.f32.mrf.mxu0  ;;  %v7569_v30 = vpop.f32.mrf.mxu1 }
 0x643   : > { %v7398_v12 = vadd.f32 %v7397_v17, %v7229_v33  ;;  %7617 = vmatmul.bf16.gmra.mxu2 %v10823_v48  ;;  %7786 = vmatmul.bf16.gmra.mxu3 %v10827_v36  ;;  %v18450_v48 = vld [vmem:[#allocation27_spill] sm:$0xff]  ;;  %v18452_v33 = vld [vmem:[#allocation28_spill] sm:$0xff] }
 0x645   : > { %7955 = vmatmul.bf16.gmra.mxu0 %v10831_v21  ;;  %8124 = vmatmul.bf16.gmra.mxu1 %v10835_v15  ;;  %v16873_v26 = vadd.f32 %v7566_v57, %v7398_v12  ;;  %v13695_v12 = vld [vmem:[%s15786_s29 + $0x1d4] sm:$0xf]  ;;  %v10904_v57 = vld [vmem:[%s15786_s29 + $0x218] sm:$0xf0] }
 0x646   : > { %v7062_v29 = vpop.f32.mrf.mxu2  ;;  %v7231_v19 = vpop.f32.mrf.mxu3 }
 0x647   : > { %18449 = vst [vmem:[#allocation26_spill] sm:$0xff] %v16873_v26  ;;  %v7063_v17 = vadd.f32 %v7062_v29, %v18450_v48  ;;  %v10895_v29 = vor.u32 %v13703_v44, %v10894_v43  ;;  %v10903_v48 = vor.u32 %v13704_v47, %v10902_v54 }
 0x649   : > { %v7232_v50 = vadd.f32 %v7231_v19, %v7063_v17  ;;  %v10899_v19 = vor.u32 %v13694_v35, %v10896_v18 }
 0x64a   : > { %v7402_v2 = vpop.f32.mrf.mxu0  ;;  %v7571_v61 = vpop.f32.mrf.mxu1 }
 0x64b   : > { %v7401_v59 = vadd.f32 %v7400_v39, %v7232_v50  ;;  %v10907_v39 = vor.u32 %v13695_v12, %v10904_v57  ;;  %v10966_v12 = vld [vmem:[%s15786_s29 + $0x258] sm:$0xf]  ;;  %v13721_v57 = vld [vmem:[%s15786_s29 + $0x29c] sm:$0xf0] }
 0x64d   : > { %v16884_v36 = vadd.f32 %v7569_v30, %v7401_v59  ;;  %v14323_v30 = vld [vmem:[#allocation2 + $0x180] sm:$0xff] }
 0x64e   : > { %v7064_v21 = vpop.f32.mrf.mxu2  ;;  %v7233_v15 = vpop.f32.mrf.mxu3  ;;  %8783 = vmatpush.bf16.msrb.mxu1 %v14323_v30  ;;  %v10967_v30 = vor.u32 %v13721_v57, %v10966_v12  ;;  %v18458_v57 = vld [vmem:[#allocation31_spill] sm:$0xff] }
 0x64f   : > { %18451 = vst [vmem:[#allocation27_spill] sm:$0xff] %v16884_v36  ;;  %v7065_v20 = vadd.f32 %v7064_v21, %v18452_v33  ;;  %v13712_v21 = vld [vmem:[%s15786_s29 + $0x25c] sm:$0xf]  ;;  %v10974_v33 = vld [vmem:[%s15786_s29 + $0x260] sm:$0xf]  ;;  %v14298_v36 = vld [vmem:[#allocation2 + $0x1b0] sm:$0xff] }
 0x650   : > { %8277 = vmatpush.bf16.msrb.mxu2 %v14298_v36  ;;  %v11190_v36 = vld [vmem:[%s15786_s29 + $0x410] sm:$0xf] }
 0x651   : > { %v7234_v17 = vadd.f32 %v7233_v15, %v7065_v20  ;;  %v10968_v15 = vld [vmem:[%s15786_s29 + $0x2a0] sm:$0xf0]  ;;  %v13722_v20 = vld [vmem:[%s15786_s29 + $0x2a4] sm:$0xf0] }
 0x652   : > { %v7405_v50 = vpop.f32.mrf.mxu0  ;;  %v7574_v26 = vpop.f32.mrf.mxu1 }
 0x653   : > { %v7403_v9 = vadd.f32 %v7402_v2, %v7234_v17  ;;  %7622 = vmatmul.bf16.gmra.mxu2 %v10895_v29  ;;  %7791 = vmatmul.bf16.gmra.mxu3 %v10899_v19  ;;  %v13713_v29 = vld [vmem:[%s15786_s29 + $0x264] sm:$0xf]  ;;  %v10976_v19 = vld [vmem:[%s15786_s29 + $0x2a8] sm:$0xf0] }
 0x655   : > { %7960 = vmatmul.bf16.gmra.mxu0 %v10903_v48  ;;  %8129 = vmatmul.bf16.gmra.mxu1 %v10907_v39  ;;  %v16887_v59 = vadd.f32 %v7571_v61, %v7403_v9  ;;  %v18456_v39 = vld [vmem:[#allocation30_spill] sm:$0xff] }
 0x656   : > { %v7067_v43 = vpop.f32.mrf.mxu2  ;;  %v7236_v44 = vpop.f32.mrf.mxu3 }
 0x657   : > { %18453 = vst [vmem:[#allocation28_spill] sm:$0xff] %v16887_v59  ;;  %v7068_v35 = vadd.f32 %v7067_v43, %v18454_v62  ;;  %v10971_v43 = vor.u32 %v13712_v21, %v10968_v15  ;;  %v10979_v62 = vor.u32 %v13713_v29, %v10976_v19  ;;  %v13739_v19 = vld [vmem:[%s15786_s29 + $0x32c] sm:$0xf0] }
 0x659   : > { %v7237_v2 = vadd.f32 %v7236_v44, %v7068_v35  ;;  %v10975_v44 = vor.u32 %v13722_v20, %v10974_v33 }
 0x65a   : > { %v7407_v18 = vpop.f32.mrf.mxu0  ;;  %v7576_v54 = vpop.f32.mrf.mxu1 }
 0x65b   : > { %v7406_v47 = vadd.f32 %v7405_v50, %v7237_v2 }
 0x65d   : > { %v16898_v48 = vadd.f32 %v7574_v26, %v7406_v47 }
 0x65e   : > { %v7069_v9 = vpop.f32.mrf.mxu2  ;;  %v7238_v61 = vpop.f32.mrf.mxu3 }
 0x65f   : > { %18455 = vst [vmem:[#allocation29_spill] sm:$0xff] %v16898_v48  ;;  %v7070_v17 = vadd.f32 %v7069_v9, %v18456_v39  ;;  %v13730_v9 = vld [vmem:[%s15786_s29 + $0x2ec] sm:$0xf]  ;;  %v11046_v39 = vld [vmem:[%s15786_s29 + $0x2f0] sm:$0xf] }
 0x661   : > { %v7239_v35 = vadd.f32 %v7238_v61, %v7070_v17  ;;  %v11040_v61 = vld [vmem:[%s15786_s29 + $0x330] sm:$0xf0]  ;;  %v13740_v17 = vld [vmem:[%s15786_s29 + $0x334] sm:$0xf0] }
 0x662   : > { %v7410_v50 = vpop.f32.mrf.mxu0  ;;  %v7579_v2 = vpop.f32.mrf.mxu1 }
 0x663   : > { %v7408_v59 = vadd.f32 %v7407_v18, %v7239_v35  ;;  %7627 = vmatmul.bf16.gmra.mxu2 %v10967_v30  ;;  %7796 = vmatmul.bf16.gmra.mxu3 %v10971_v43  ;;  %v11038_v18 = vld [vmem:[%s15786_s29 + $0x2e8] sm:$0xf]  ;;  %v13731_v30 = vld [vmem:[%s15786_s29 + $0x2f4] sm:$0xf]  ;;  %v11048_v43 = vld [vmem:[%s15786_s29 + $0x338] sm:$0xf0] }
 0x665   : > { %7965 = vmatmul.bf16.gmra.mxu0 %v10975_v44  ;;  %8134 = vmatmul.bf16.gmra.mxu1 %v10979_v62  ;;  %v16901_v26 = vadd.f32 %v7576_v54, %v7408_v59  ;;  %v18460_v62 = vld [vmem:[#allocation32_spill] sm:$0xff] }
 0x666   : > { %v7072_v47 = vpop.f32.mrf.mxu2  ;;  %v7241_v12 = vpop.f32.mrf.mxu3 }
 0x667   : > { %18457 = vst [vmem:[#allocation30_spill] sm:$0xff] %v16901_v26  ;;  %v7073_v21 = vadd.f32 %v7072_v47, %v18458_v57  ;;  %v11039_v26 = vor.u32 %v13739_v19, %v11038_v18  ;;  %v11043_v47 = vor.u32 %v13730_v9, %v11040_v61  ;;  %v11051_v57 = vor.u32 %v13731_v30, %v11048_v43  ;;  %v18462_v19 = vld [vmem:[#allocation33_spill] sm:$0xff]  ;;  %v13757_v43 = vld [vmem:[%s15786_s29 + $0x3bc] sm:$0xf0] }
 0x669   : > { %v7242_v15 = vadd.f32 %v7241_v12, %v7073_v21  ;;  %v11047_v12 = vor.u32 %v13740_v17, %v11046_v39 }
 0x66a   : > { %v7412_v33 = vpop.f32.mrf.mxu0  ;;  %v7581_v20 = vpop.f32.mrf.mxu1 }
 0x66b   : > { %v7411_v29 = vadd.f32 %v7410_v50, %v7242_v15 }
 0x66d   : > { %v16912_v44 = vadd.f32 %v7579_v2, %v7411_v29 }
 0x66e   : > { %v7074_v59 = vpop.f32.mrf.mxu2  ;;  %v7243_v54 = vpop.f32.mrf.mxu3 }
 0x66f   : > { %18459 = vst [vmem:[#allocation31_spill] sm:$0xff] %v16912_v44  ;;  %v7075_v35 = vadd.f32 %v7074_v59, %v18460_v62  ;;  %v11112_v59 = vld [vmem:[%s15786_s29 + $0x3c0] sm:$0xf0]  ;;  %v13758_v62 = vld [vmem:[%s15786_s29 + $0x3c4] sm:$0xf0] }
 0x671   : > { %v7244_v21 = vadd.f32 %v7243_v54, %v7075_v35  ;;  %v11118_v54 = vld [vmem:[%s15786_s29 + $0x380] sm:$0xf]  ;;  %v13749_v35 = vld [vmem:[%s15786_s29 + $0x384] sm:$0xf] }
 0x672   : > { %v7415_v50 = vpop.f32.mrf.mxu0  ;;  %v7584_v15 = vpop.f32.mrf.mxu1 }
 0x673   : > { %v7413_v48 = vadd.f32 %v7412_v33, %v7244_v21  ;;  %7632 = vmatmul.bf16.gmra.mxu2 %v11039_v26  ;;  %7801 = vmatmul.bf16.gmra.mxu3 %v11043_v47  ;;  %v11110_v33 = vld [vmem:[%s15786_s29 + $0x378] sm:$0xf]  ;;  %v13748_v26 = vld [vmem:[%s15786_s29 + $0x37c] sm:$0xf]  ;;  %v11120_v47 = vld [vmem:[%s15786_s29 + $0x3c8] sm:$0xf0] }
 0x675   : > { %7970 = vmatmul.bf16.gmra.mxu0 %v11047_v12  ;;  %8139 = vmatmul.bf16.gmra.mxu1 %v11051_v57  ;;  %v16915_v2 = vadd.f32 %v7581_v20, %v7413_v48  ;;  %v18464_v57 = vld [vmem:[#allocation34_spill] sm:$0xff] }
 0x676   : > { %v7077_v29 = vpop.f32.mrf.mxu2  ;;  %v7246_v18 = vpop.f32.mrf.mxu3 }
 0x677   : > { %18461 = vst [vmem:[#allocation32_spill] sm:$0xff] %v16915_v2  ;;  %v7078_v9 = vadd.f32 %v7077_v29, %v18462_v19  ;;  %v11111_v2 = vor.u32 %v13757_v43, %v11110_v33  ;;  %v11115_v29 = vor.u32 %v13748_v26, %v11112_v59  ;;  %v11123_v19 = vor.u32 %v13749_v35, %v11120_v47  ;;  %v11182_v35 = vld [vmem:[%s15786_s29 + $0x408] sm:$0xf]  ;;  %v13775_v47 = vld [vmem:[%s15786_s29 + $0x44c] sm:$0xf0] }
 0x679   : > { %v7247_v61 = vadd.f32 %v7246_v18, %v7078_v9  ;;  %v11119_v18 = vor.u32 %v13758_v62, %v11118_v54 }
 0x67a   : > { %v7417_v39 = vpop.f32.mrf.mxu0  ;;  %v7586_v17 = vpop.f32.mrf.mxu1 }
 0x67b   : > { %v7416_v30 = vadd.f32 %v7415_v50, %v7247_v61 }
 0x67d   : > { %v16926_v12 = vadd.f32 %v7584_v15, %v7416_v30  ;;  %v14306_v15 = vld [vmem:[#allocation2 + $0x218] sm:$0xff] }
 0x67e   : > { %v7079_v48 = vpop.f32.mrf.mxu2  ;;  %v7248_v20 = vpop.f32.mrf.mxu3  ;;  %8446 = vmatpush.bf16.msrb.mxu3 %v14306_v15 }
 0x67f   : > { %18463 = vst [vmem:[#allocation33_spill] sm:$0xff] %v16926_v12  ;;  %v7080_v21 = vadd.f32 %v7079_v48, %v18464_v57  ;;  %v14314_v48 = vld [vmem:[#allocation2 + $0x1d8] sm:$0xff]  ;;  %v11184_v57 = vld [vmem:[%s15786_s29 + $0x450] sm:$0xf0] }
 0x680   : > { %8615 = vmatpush.bf16.msrb.mxu0 %v14314_v48  ;;  %v18469_v48 = vld [vmem:[#allocation37_spill] sm:$0xff] }
 0x681   : > { %v7249_v9 = vadd.f32 %v7248_v20, %v7080_v21  ;;  %v13766_v20 = vld [vmem:[%s15786_s29 + $0x40c] sm:$0xf]  ;;  %v13776_v21 = vld [vmem:[%s15786_s29 + $0x454] sm:$0xf0] }
 0x682   : > { %v7420_v50 = vpop.f32.mrf.mxu0  ;;  %v7589_v61 = vpop.f32.mrf.mxu1 }
 0x683   : > { %v7418_v44 = vadd.f32 %v7417_v39, %v7249_v9  ;;  %7637 = vmatmul.bf16.gmra.mxu2 %v11111_v2  ;;  %7806 = vmatmul.bf16.gmra.mxu3 %v11115_v29  ;;  %v18466_v2 = vld [vmem:[#allocation35_spill] sm:$0xff]  ;;  %v18467_v9 = vld [vmem:[#allocation36_spill] sm:$0xff] }
 0x685   : > { %7975 = vmatmul.bf16.gmra.mxu0 %v11119_v18  ;;  %8144 = vmatmul.bf16.gmra.mxu1 %v11123_v19  ;;  %v16929_v30 = vadd.f32 %v7586_v17, %v7418_v44  ;;  %v13767_v44 = vld [vmem:[%s15786_s29 + $0x414] sm:$0xf]  ;;  %v11192_v17 = vld [vmem:[%s15786_s29 + $0x458] sm:$0xf0] }
 0x686   : > { %v7082_v33 = vpop.f32.mrf.mxu2  ;;  %v7251_v43 = vpop.f32.mrf.mxu3 }
 0x687   : > { %18465 = vst [vmem:[#allocation34_spill] sm:$0xff] %v16929_v30  ;;  %v7083_v39 = vadd.f32 %v7082_v33, %v18466_v2  ;;  %v11183_v33 = vor.u32 %v13775_v47, %v11182_v35  ;;  %v11191_v2 = vor.u32 %v13776_v21, %v11190_v36 }
 0x689   : > { %v7252_v26 = vadd.f32 %v7251_v43, %v7083_v39  ;;  %v11187_v43 = vor.u32 %v13766_v20, %v11184_v57 }
 0x68a   : > { %v7422_v59 = vpop.f32.mrf.mxu0  ;;  %v7591_v54 = vpop.f32.mrf.mxu1 }
 0x68b   : > { %v7421_v62 = vadd.f32 %v7420_v50, %v7252_v26  ;;  %v11195_v50 = vor.u32 %v13767_v44, %v11192_v17  ;;  %v11254_v44 = vld [vmem:[%s15786_s29 + $0x498] sm:$0xf]  ;;  %v13793_v17 = vld [vmem:[%s15786_s29 + $0x4dc] sm:$0xf0] }
 0x68d   : > { %v16940_v29 = vadd.f32 %v7589_v61, %v7421_v62  ;;  %v14322_v61 = vld [vmem:[#allocation2 + $0x3b8] sm:$0xff] }
 0x68e   : > { %v7084_v18 = vpop.f32.mrf.mxu2  ;;  %v7253_v19 = vpop.f32.mrf.mxu3  ;;  %8784 = vmatpush.bf16.msrb.mxu1 %v14322_v61  ;;  %v11255_v61 = vor.u32 %v13793_v17, %v11254_v44 }
 0x68f   : > { %v7085_v15 = vadd.f32 %v7084_v18, %v18467_v9  ;;  %v13784_v18 = vld [vmem:[%s15786_s29 + $0x49c] sm:$0xf]  ;;  %v11262_v9 = vld [vmem:[%s15786_s29 + $0x4a0] sm:$0xf] }
 0x691   : > { %v7254_v39 = vadd.f32 %v7253_v19, %v7085_v15  ;;  %v11256_v19 = vld [vmem:[%s15786_s29 + $0x4e0] sm:$0xf0]  ;;  %v13794_v15 = vld [vmem:[%s15786_s29 + $0x4e4] sm:$0xf0] }
 0x692   : > { %v7425_v26 = vpop.f32.mrf.mxu0  ;;  %v7594_v30 = vpop.f32.mrf.mxu1 }
 0x693   : > { %v7423_v12 = vadd.f32 %v7422_v59, %v7254_v39  ;;  %7642 = vmatmul.bf16.gmra.mxu2 %v11183_v33  ;;  %7811 = vmatmul.bf16.gmra.mxu3 %v11187_v43  ;;  %v13785_v33 = vld [vmem:[%s15786_s29 + $0x4a4] sm:$0xf]  ;;  %v11264_v43 = vld [vmem:[%s15786_s29 + $0x4e8] sm:$0xf0] }
 0x695   : > { %7980 = vmatmul.bf16.gmra.mxu0 %v11191_v2  ;;  %8149 = vmatmul.bf16.gmra.mxu1 %v11195_v50  ;;  %v16943_v62 = vadd.f32 %v7591_v54, %v7423_v12  ;;  %v18470_v50 = vld [vmem:[#allocation38_spill] sm:$0xff] }
 0x696   : > { %v7087_v35 = vpop.f32.mrf.mxu2  ;;  %v7256_v47 = vpop.f32.mrf.mxu3 }
 0x697   : > { %18468 = vst [vmem:[#allocation35_spill] sm:$0xff] %v16943_v62  ;;  %v7088_v20 = vadd.f32 %v7087_v35, %v18469_v48  ;;  %v11259_v35 = vor.u32 %v13784_v18, %v11256_v19  ;;  %v11267_v48 = vor.u32 %v13785_v33, %v11264_v43  ;;  %v13811_v33 = vld [vmem:[%s15786_s29 + $0x56c] sm:$0xf0]  ;;  %v13802_v43 = vld [vmem:[%s15786_s29 + $0x52c] sm:$0xf] }
 0x699   : > { %v7257_v59 = vadd.f32 %v7256_v47, %v7088_v20  ;;  %v11263_v47 = vor.u32 %v13794_v15, %v11262_v9 }
 0x69a   : > { %v7427_v57 = vpop.f32.mrf.mxu0  ;;  %v7596_v36 = vpop.f32.mrf.mxu1 }
 0x69b   : > { %v7426_v21 = vadd.f32 %v7425_v26, %v7257_v59 }
 0x69d   : > { %v16954_v2 = vadd.f32 %v7594_v30, %v7426_v21 }
 0x69e   : > { %v7089_v12 = vpop.f32.mrf.mxu2  ;;  %v7258_v54 = vpop.f32.mrf.mxu3 }
 0x69f   : > { %v7090_v39 = vadd.f32 %v7089_v12, %v18470_v50  ;;  %v11328_v12 = vld [vmem:[%s15786_s29 + $0x570] sm:$0xf0]  ;;  %v13812_v50 = vld [vmem:[%s15786_s29 + $0x574] sm:$0xf0] }
 0x6a1   : > { %v7259_v20 = vadd.f32 %v7258_v54, %v7090_v39  ;;  %v11334_v54 = vld [vmem:[%s15786_s29 + $0x530] sm:$0xf]  ;;  %v13803_v39 = vld [vmem:[%s15786_s29 + $0x534] sm:$0xf] }
 0x6a2   : > { %v7946_v26 = vpop.f32.mrf.mxu0  ;;  %v8115_v59 = vpop.f32.mrf.mxu1 }
 0x6a3   : > { %v7428_v62 = vadd.f32 %v7427_v57, %v7259_v20  ;;  %7647 = vmatmul.bf16.gmra.mxu2 %v11255_v61  ;;  %7816 = vmatmul.bf16.gmra.mxu3 %v11259_v35  ;;  %v11326_v57 = vld [vmem:[%s15786_s29 + $0x528] sm:$0xf]  ;;  %v11336_v61 = vld [vmem:[%s15786_s29 + $0x578] sm:$0xf0] }
 0x6a4   : > { %v11327_v20 = vor.u32 %v13811_v33, %v11326_v57 }
 0x6a5   : > { %7985 = vmatmul.bf16.gmra.mxu0 %v11263_v47  ;;  %8154 = vmatmul.bf16.gmra.mxu1 %v11267_v48  ;;  %v16957_v30 = vadd.f32 %v7596_v36, %v7428_v62  ;;  %v18472_v47 = vld [vmem:[#allocation39_spill] sm:$0xff] }
 0x6a6   : > { %v7608_v21 = vpop.f32.mrf.mxu2  ;;  %v7777_v44 = vpop.f32.mrf.mxu3 }
 0x6a7   : > { %18471 = vst [vmem:[#allocation36_spill] sm:$0xff] %v16957_v30  ;;  %v7609_v17 = vadd.f32 %v7608_v21, %v16520_v31  ;;  %v11331_v31 = vor.u32 %v13802_v43, %v11328_v12  ;;  %v11335_v21 = vor.u32 %v13812_v50, %v11334_v54 }
 0x6a9   : > { %v7778_v18 = vadd.f32 %v7777_v44, %v7609_v17  ;;  %v11339_v44 = vor.u32 %v13803_v39, %v11336_v61  ;;  %v13829_v39 = vld [vmem:[%s15786_s29 + $0x5fc] sm:$0xf0]  ;;  %v13820_v61 = vld [vmem:[%s15786_s29 + $0x5bc] sm:$0xf] }
 0x6aa   : > { %v7948_v19 = vpop.f32.mrf.mxu0  ;;  %v8117_v9 = vpop.f32.mrf.mxu1 }
 0x6ab   : > { %v7947_v15 = vadd.f32 %v7946_v26, %v7778_v18 }
 0x6ad   : > { %v16968_v35 = vadd.f32 %v8115_v59, %v7947_v15 }
 0x6ae   : > { %v7610_v62 = vpop.f32.mrf.mxu2  ;;  %v7779_v36 = vpop.f32.mrf.mxu3 }
 0x6af   : > { %v7611_v48 = vadd.f32 %v7610_v62, %v18472_v47  ;;  %v11400_v62 = vld [vmem:[%s15786_s29 + $0x600] sm:$0xf0]  ;;  %v13830_v47 = vld [vmem:[%s15786_s29 + $0x604] sm:$0xf0] }
 0x6b1   : > { %v7780_v17 = vadd.f32 %v7779_v36, %v7611_v48  ;;  %v11406_v36 = vld [vmem:[%s15786_s29 + $0x5c0] sm:$0xf]  ;;  %v13821_v48 = vld [vmem:[%s15786_s29 + $0x5c4] sm:$0xf] }
 0x6b2   : > { %v7951_v26 = vpop.f32.mrf.mxu0  ;;  %v8120_v18 = vpop.f32.mrf.mxu1 }
 0x6b3   : > { %v7949_v30 = vadd.f32 %v7948_v19, %v7780_v17  ;;  %7652 = vmatmul.bf16.gmra.mxu2 %v11327_v20  ;;  %7821 = vmatmul.bf16.gmra.mxu3 %v11331_v31  ;;  %v11398_v19 = vld [vmem:[%s15786_s29 + $0x5b8] sm:$0xf]  ;;  %v11408_v20 = vld [vmem:[%s15786_s29 + $0x608] sm:$0xf0]  ;;  %v11407_v17 = vor.u32 %v13830_v47, %v11406_v36  ;;  %v11470_v47 = vld [vmem:[%s15786_s29 + $0x648] sm:$0xf] }
 0x6b5   : > { %7990 = vmatmul.bf16.gmra.mxu0 %v11335_v21  ;;  %8159 = vmatmul.bf16.gmra.mxu1 %v11339_v44  ;;  %v16971_v59 = vadd.f32 %v8117_v9, %v7949_v30  ;;  %v11399_v44 = vor.u32 %v13829_v39, %v11398_v19 }
 0x6b6   : > { %v7613_v15 = vpop.f32.mrf.mxu2  ;;  %v7782_v57 = vpop.f32.mrf.mxu3 }
 0x6b7   : > { %18473 = vst [vmem:[#allocation37_spill] sm:$0xff] %v16971_v59  ;;  %v7614_v33 = vadd.f32 %v7613_v15, %v16534_v32  ;;  %v11403_v32 = vor.u32 %v13820_v61, %v11400_v62  ;;  %v11411_v15 = vor.u32 %v13821_v48, %v11408_v20  ;;  %v14297_v59 = vld [vmem:[#allocation2 + $0x400] sm:$0xff]  ;;  %v13847_v48 = vld [vmem:[%s15786_s29 + $0x68c] sm:$0xf0]  ;;  %v14313_v20 = vld [vmem:[#allocation2 + $0xa8] sm:$0xff] }
 0x6b8   : > { %8278 = vmatpush.bf16.msrb.mxu2 %v14297_v59  ;;  %v11478_v59 = vld [vmem:[%s15786_s29 + $0x650] sm:$0xf]  ;;  %8616 = vmatpush.bf16.msrb.mxu0 %v14313_v20 }
 0x6b9   : > { %v7783_v43 = vadd.f32 %v7782_v57, %v7614_v33 }
 0x6ba   : > { %v7953_v12 = vpop.f32.mrf.mxu0  ;;  %v8122_v54 = vpop.f32.mrf.mxu1 }
 0x6bb   : > { %v7952_v50 = vadd.f32 %v7951_v26, %v7783_v43 }
 0x6bd   : > { %v16982_v31 = vadd.f32 %v8120_v18, %v7952_v50  ;;  %v14305_v18 = vld [vmem:[#allocation2 + $0x2f8] sm:$0xff] }
 0x6be   : > { %v7615_v30 = vpop.f32.mrf.mxu2  ;;  %v7784_v9 = vpop.f32.mrf.mxu3  ;;  %8447 = vmatpush.bf16.msrb.mxu3 %v14305_v18 }
 0x6bf   : > { %v7616_v21 = vadd.f32 %v7615_v30, %v16537_v56  ;;  %v13838_v30 = vld [vmem:[%s15786_s29 + $0x64c] sm:$0xf] }
 0x6c1   : > { %v7785_v57 = vadd.f32 %v7784_v9, %v7616_v21  ;;  %v11472_v9 = vld [vmem:[%s15786_s29 + $0x690] sm:$0xf0]  ;;  %v13848_v21 = vld [vmem:[%s15786_s29 + $0x694] sm:$0xf0] }
 0x6c2   : > { %v7956_v26 = vpop.f32.mrf.mxu0  ;;  %v8125_v33 = vpop.f32.mrf.mxu1  ;;  %v11479_v18 = vor.u32 %v13848_v21, %v11478_v59  ;;  %v11542_v59 = vld [vmem:[%s15786_s29 + $0x6d8] sm:$0xf]  ;;  %v13865_v21 = vld [vmem:[%s15786_s29 + $0x71c] sm:$0xf0] }
 0x6c3   : > { %v7954_v43 = vadd.f32 %v7953_v12, %v7785_v57  ;;  %7657 = vmatmul.bf16.gmra.mxu2 %v11399_v44  ;;  %7826 = vmatmul.bf16.gmra.mxu3 %v11403_v32  ;;  %v11480_v44 = vld [vmem:[%s15786_s29 + $0x698] sm:$0xf0]  ;;  %v11471_v57 = vor.u32 %v13847_v48, %v11470_v47 }
 0x6c5   : > { %7995 = vmatmul.bf16.gmra.mxu0 %v11407_v17  ;;  %8164 = vmatmul.bf16.gmra.mxu1 %v11411_v15  ;;  %v16985_v56 = vadd.f32 %v8122_v54, %v7954_v43  ;;  %v13839_v54 = vld [vmem:[%s15786_s29 + $0x654] sm:$0xf]  ;;  %v11475_v43 = vor.u32 %v13838_v30, %v11472_v9 }
 0x6c6   : > { %v7618_v50 = vpop.f32.mrf.mxu2  ;;  %v7787_v19 = vpop.f32.mrf.mxu3 }
 0x6c7   : > { %v7619_v12 = vadd.f32 %v7618_v50, %v16548_v53 }
 0x6c9   : > { %v7788_v39 = vadd.f32 %v7787_v19, %v7619_v12 }
 0x6ca   : > { %v7958_v61 = vpop.f32.mrf.mxu0  ;;  %v8127_v62 = vpop.f32.mrf.mxu1 }
 0x6cb   : > { %v7957_v36 = vadd.f32 %v7956_v26, %v7788_v39  ;;  %v11483_v26 = vor.u32 %v13839_v54, %v11480_v44  ;;  %v13856_v54 = vld [vmem:[%s15786_s29 + $0x6dc] sm:$0xf]  ;;  %v11544_v44 = vld [vmem:[%s15786_s29 + $0x720] sm:$0xf0] }
 0x6cd   : > { %v16996_v32 = vadd.f32 %v8125_v33, %v7957_v36  ;;  %v14321_v33 = vld [vmem:[#allocation2 + $0x260] sm:$0xff] }
 0x6ce   : > { %v7620_v17 = vpop.f32.mrf.mxu2  ;;  %v7789_v15 = vpop.f32.mrf.mxu3  ;;  %8785 = vmatpush.bf16.msrb.mxu1 %v14321_v33 }
 0x6cf   : > { %v7621_v53 = vadd.f32 %v7620_v17, %v16551_v24  ;;  %v11550_v17 = vld [vmem:[%s15786_s29 + $0x6e0] sm:$0xf] }
 0x6d1   : > { %v7790_v50 = vadd.f32 %v7789_v15, %v7621_v53  ;;  %v13866_v15 = vld [vmem:[%s15786_s29 + $0x724] sm:$0xf0]  ;;  %v13857_v53 = vld [vmem:[%s15786_s29 + $0x6e4] sm:$0xf] }
 0x6d2   : > { %v7961_v19 = vpop.f32.mrf.mxu0  ;;  %v8130_v12 = vpop.f32.mrf.mxu1 }
 0x6d3   : > { %v7959_v39 = vadd.f32 %v7958_v61, %v7790_v50  ;;  %7662 = vmatmul.bf16.gmra.mxu2 %v11471_v57  ;;  %7831 = vmatmul.bf16.gmra.mxu3 %v11475_v43  ;;  %v11552_v57 = vld [vmem:[%s15786_s29 + $0x728] sm:$0xf0]  ;;  %v11543_v50 = vor.u32 %v13865_v21, %v11542_v59 }
 0x6d4   : > { %v11555_v33 = vor.u32 %v13857_v53, %v11552_v57  ;;  %v11616_v53 = vld [vmem:[%s15786_s29 + $0x7b0] sm:$0xf0]  ;;  %v11622_v57 = vld [vmem:[%s15786_s29 + $0x770] sm:$0xf] }
 0x6d5   : > { %8000 = vmatmul.bf16.gmra.mxu0 %v11479_v18  ;;  %8169 = vmatmul.bf16.gmra.mxu1 %v11483_v26  ;;  %v16999_v24 = vadd.f32 %v8127_v62, %v7959_v39  ;;  %v11551_v39 = vor.u32 %v13866_v15, %v11550_v17  ;;  %v13883_v17 = vld [vmem:[%s15786_s29 + $0x7ac] sm:$0xf0]  ;;  %v13874_v15 = vld [vmem:[%s15786_s29 + $0x76c] sm:$0xf] }
 0x6d6   : > { %v7623_v36 = vpop.f32.mrf.mxu2  ;;  %v7792_v47 = vpop.f32.mrf.mxu3 }
 0x6d7   : > { %v7624_v48 = vadd.f32 %v7623_v36, %v16562_v49  ;;  %v11547_v49 = vor.u32 %v13856_v54, %v11544_v44 }
 0x6d9   : > { %v7793_v61 = vadd.f32 %v7792_v47, %v7624_v48 }
 0x6da   : > { %v7963_v20 = vpop.f32.mrf.mxu0  ;;  %v8132_v30 = vpop.f32.mrf.mxu1 }
 0x6db   : > { %v7962_v9 = vadd.f32 %v7961_v19, %v7793_v61 }
 0x6dd   : > { %v17010_v43 = vadd.f32 %v8130_v12, %v7962_v9 }
 0x6de   : > { %v7625_v62 = vpop.f32.mrf.mxu2  ;;  %v7794_v18 = vpop.f32.mrf.mxu3 }
 0x6df   : > { %v7626_v26 = vadd.f32 %v7625_v62, %v16565_v51  ;;  %v13884_v62 = vld [vmem:[%s15786_s29 + $0x7b4] sm:$0xf0] }
 0x6e1   : > { %v7795_v36 = vadd.f32 %v7794_v18, %v7626_v26  ;;  %v13875_v18 = vld [vmem:[%s15786_s29 + $0x774] sm:$0xf]  ;;  %v11624_v26 = vld [vmem:[%s15786_s29 + $0x7b8] sm:$0xf0] }
 0x6e2   : > { %v7966_v19 = vpop.f32.mrf.mxu0  ;;  %v8135_v47 = vpop.f32.mrf.mxu1 }
 0x6e3   : > { %v7964_v48 = vadd.f32 %v7963_v20, %v7795_v36  ;;  %7667 = vmatmul.bf16.gmra.mxu2 %v11543_v50  ;;  %7836 = vmatmul.bf16.gmra.mxu3 %v11547_v49  ;;  %v11614_v20 = vld [vmem:[%s15786_s29 + $0x768] sm:$0xf]  ;;  %v11623_v36 = vor.u32 %v13884_v62, %v11622_v57  ;;  %v13901_v57 = vld [vmem:[%s15786_s29 + $0x83c] sm:$0xf0]  ;;  %v13892_v62 = vld [vmem:[%s15786_s29 + $0x7fc] sm:$0xf] }
 0x6e5   : > { %8005 = vmatmul.bf16.gmra.mxu0 %v11551_v39  ;;  %8174 = vmatmul.bf16.gmra.mxu1 %v11555_v33  ;;  %v17013_v51 = vadd.f32 %v8132_v30, %v7964_v48  ;;  %v11615_v33 = vor.u32 %v13883_v17, %v11614_v20  ;;  %v11627_v48 = vor.u32 %v13875_v18, %v11624_v26  ;;  %v11688_v18 = vld [vmem:[%s15786_s29 + $0x840] sm:$0xf0]  ;;  %v11694_v26 = vld [vmem:[%s15786_s29 + $0x800] sm:$0xf] }
 0x6e6   : > { %v7628_v12 = vpop.f32.mrf.mxu2  ;;  %v7797_v61 = vpop.f32.mrf.mxu3 }
 0x6e7   : > { %v7629_v9 = vadd.f32 %v7628_v12, %v16576_v38  ;;  %v11619_v38 = vor.u32 %v13874_v15, %v11616_v53 }
 0x6e9   : > { %v7798_v59 = vadd.f32 %v7797_v61, %v7629_v9 }
 0x6ea   : > { %v7968_v21 = vpop.f32.mrf.mxu0  ;;  %v8137_v54 = vpop.f32.mrf.mxu1 }
 0x6eb   : > { %v7967_v44 = vadd.f32 %v7966_v19, %v7798_v59 }
 0x6ed   : > { %v17024_v50 = vadd.f32 %v8135_v47, %v7967_v44 }
 0x6ee   : > { %v7630_v30 = vpop.f32.mrf.mxu2  ;;  %v7799_v49 = vpop.f32.mrf.mxu3 }
 0x6ef   : > { %v7631_v39 = vadd.f32 %v7630_v30, %v16579_v22  ;;  %v13902_v30 = vld [vmem:[%s15786_s29 + $0x844] sm:$0xf0] }
 0x6f1   : > { %v7800_v12 = vadd.f32 %v7799_v49, %v7631_v39  ;;  %v13893_v49 = vld [vmem:[%s15786_s29 + $0x804] sm:$0xf]  ;;  %v11696_v39 = vld [vmem:[%s15786_s29 + $0x848] sm:$0xf0] }
 0x6f2   : > { %v7971_v19 = vpop.f32.mrf.mxu0  ;;  %v8140_v61 = vpop.f32.mrf.mxu1 }
 0x6f3   : > { %v7969_v9 = vadd.f32 %v7968_v21, %v7800_v12  ;;  %7672 = vmatmul.bf16.gmra.mxu2 %v11615_v33  ;;  %7841 = vmatmul.bf16.gmra.mxu3 %v11619_v38  ;;  %v11686_v21 = vld [vmem:[%s15786_s29 + $0x7f8] sm:$0xf]  ;;  %v11695_v12 = vor.u32 %v13902_v30, %v11694_v26  ;;  %v11758_v30 = vld [vmem:[%s15786_s29 + $0x888] sm:$0xf] }
 0x6f5   : > { %8010 = vmatmul.bf16.gmra.mxu0 %v11623_v36  ;;  %8179 = vmatmul.bf16.gmra.mxu1 %v11627_v48  ;;  %v17027_v22 = vadd.f32 %v8137_v54, %v7969_v9  ;;  %v11687_v48 = vor.u32 %v13901_v57, %v11686_v21  ;;  %v11699_v9 = vor.u32 %v13893_v49, %v11696_v39  ;;  %v13919_v49 = vld [vmem:[%s15786_s29 + $0x8cc] sm:$0xf0]  ;;  %v14312_v39 = vld [vmem:[#allocation2 + $0x3d8] sm:$0xff] }
 0x6f6   : > { %v7633_v47 = vpop.f32.mrf.mxu2  ;;  %v7802_v59 = vpop.f32.mrf.mxu3  ;;  %8617 = vmatpush.bf16.msrb.mxu0 %v14312_v39 }
 0x6f7   : > { %v7634_v44 = vadd.f32 %v7633_v47, %v16590_v27  ;;  %v11691_v27 = vor.u32 %v13892_v62, %v11688_v18 }
 0x6f9   : > { %v7803_v20 = vadd.f32 %v7802_v59, %v7634_v44 }
 0x6fa   : > { %v7973_v17 = vpop.f32.mrf.mxu0  ;;  %v8142_v15 = vpop.f32.mrf.mxu1 }
 0x6fb   : > { %v7972_v53 = vadd.f32 %v7971_v19, %v7803_v20  ;;  %v14296_v20 = vld [vmem:[#allocation2 + $0x8] sm:$0xff] }
 0x6fc   : > { %8279 = vmatpush.bf16.msrb.mxu2 %v14296_v20 }
 0x6fd   : > { %v17038_v33 = vadd.f32 %v8140_v61, %v7972_v53  ;;  %v14304_v61 = vld [vmem:[#allocation2 + $0x78] sm:$0xff] }
 0x6fe   : > { %v7635_v54 = vpop.f32.mrf.mxu2  ;;  %v7804_v38 = vpop.f32.mrf.mxu3  ;;  %8448 = vmatpush.bf16.msrb.mxu3 %v14304_v61 }
 0x6ff   : > { %v7636_v36 = vadd.f32 %v7635_v54, %v16593_v14  ;;  %v13910_v54 = vld [vmem:[%s15786_s29 + $0x88c] sm:$0xf] }
 0x701   : > { %v7805_v47 = vadd.f32 %v7804_v38, %v7636_v36  ;;  %v11760_v38 = vld [vmem:[%s15786_s29 + $0x8d0] sm:$0xf0]  ;;  %v11766_v36 = vld [vmem:[%s15786_s29 + $0x890] sm:$0xf] }
 0x702   : > { %v7976_v19 = vpop.f32.mrf.mxu0  ;;  %v8145_v59 = vpop.f32.mrf.mxu1  ;;  %v11763_v20 = vor.u32 %v13910_v54, %v11760_v38 }
 0x703   : > { %v7974_v44 = vadd.f32 %v7973_v17, %v7805_v47  ;;  %7677 = vmatmul.bf16.gmra.mxu2 %v11687_v48  ;;  %7846 = vmatmul.bf16.gmra.mxu3 %v11691_v27  ;;  %v13920_v48 = vld [vmem:[%s15786_s29 + $0x8d4] sm:$0xf0]  ;;  %v11768_v27 = vld [vmem:[%s15786_s29 + $0x8d8] sm:$0xf0] }
 0x704   : > { %v11767_v61 = vor.u32 %v13920_v48, %v11766_v36  ;;  %v11830_v36 = vld [vmem:[%s15786_s29 + $0x918] sm:$0xf]  ;;  %v13937_v48 = vld [vmem:[%s15786_s29 + $0x95c] sm:$0xf0] }
 0x705   : > { %8015 = vmatmul.bf16.gmra.mxu0 %v11695_v12  ;;  %8184 = vmatmul.bf16.gmra.mxu1 %v11699_v9  ;;  %v17041_v14 = vadd.f32 %v8142_v15, %v7974_v44  ;;  %v13911_v15 = vld [vmem:[%s15786_s29 + $0x894] sm:$0xf]  ;;  %v11759_v44 = vor.u32 %v13919_v49, %v11758_v30 }
 0x706   : > { %v7638_v53 = vpop.f32.mrf.mxu2  ;;  %v7807_v21 = vpop.f32.mrf.mxu3 }
 0x707   : > { %v7639_v17 = vadd.f32 %v7638_v53, %v16604_v4 }
 0x709   : > { %v7808_v57 = vadd.f32 %v7807_v21, %v7639_v17 }
 0x70a   : > { %v7978_v62 = vpop.f32.mrf.mxu0  ;;  %v8147_v18 = vpop.f32.mrf.mxu1 }
 0x70b   : > { %v7977_v26 = vadd.f32 %v7976_v19, %v7808_v57  ;;  %v11771_v19 = vor.u32 %v13911_v15, %v11768_v27  ;;  %v13928_v15 = vld [vmem:[%s15786_s29 + $0x91c] sm:$0xf]  ;;  %v11832_v27 = vld [vmem:[%s15786_s29 + $0x960] sm:$0xf0] }
 0x70d   : > { %v17052_v12 = vadd.f32 %v8145_v59, %v7977_v26  ;;  %v14320_v59 = vld [vmem:[#allocation2 + $0x2d8] sm:$0xff] }
 0x70e   : > { %v7640_v9 = vpop.f32.mrf.mxu2  ;;  %v7809_v47 = vpop.f32.mrf.mxu3  ;;  %8786 = vmatpush.bf16.msrb.mxu1 %v14320_v59 }
 0x70f   : > { %v7641_v4 = vadd.f32 %v7640_v9, %v16607_v34  ;;  %v11838_v9 = vld [vmem:[%s15786_s29 + $0x920] sm:$0xf] }
 0x711   : > { %v7810_v53 = vadd.f32 %v7809_v47, %v7641_v4  ;;  %v13938_v47 = vld [vmem:[%s15786_s29 + $0x964] sm:$0xf0]  ;;  %v13929_v4 = vld [vmem:[%s15786_s29 + $0x924] sm:$0xf] }
 0x712   : > { %v7981_v21 = vpop.f32.mrf.mxu0  ;;  %v8150_v17 = vpop.f32.mrf.mxu1 }
 0x713   : > { %v7979_v57 = vadd.f32 %v7978_v62, %v7810_v53  ;;  %7682 = vmatmul.bf16.gmra.mxu2 %v11759_v44  ;;  %7851 = vmatmul.bf16.gmra.mxu3 %v11763_v20  ;;  %v11840_v44 = vld [vmem:[%s15786_s29 + $0x968] sm:$0xf0]  ;;  %v11831_v53 = vor.u32 %v13937_v48, %v11830_v36 }
 0x714   : > { %v11843_v59 = vor.u32 %v13929_v4, %v11840_v44  ;;  %v11904_v4 = vld [vmem:[%s15786_s29 + $0x9f0] sm:$0xf0]  ;;  %v11910_v44 = vld [vmem:[%s15786_s29 + $0x9b0] sm:$0xf] }
 0x715   : > { %8020 = vmatmul.bf16.gmra.mxu0 %v11767_v61  ;;  %8189 = vmatmul.bf16.gmra.mxu1 %v11771_v19  ;;  %v17055_v34 = vadd.f32 %v8147_v18, %v7979_v57  ;;  %v11839_v57 = vor.u32 %v13938_v47, %v11838_v9  ;;  %v13955_v9 = vld [vmem:[%s15786_s29 + $0x9ec] sm:$0xf0]  ;;  %v13946_v47 = vld [vmem:[%s15786_s29 + $0x9ac] sm:$0xf] }
 0x716   : > { %v7643_v26 = vpop.f32.mrf.mxu2  ;;  %v7812_v30 = vpop.f32.mrf.mxu3 }
 0x717   : > { %v7644_v49 = vadd.f32 %v7643_v26, %v16618_v5  ;;  %v11835_v5 = vor.u32 %v13928_v15, %v11832_v27 }
 0x719   : > { %v7813_v62 = vadd.f32 %v7812_v30, %v7644_v49 }
 0x71a   : > { %v7983_v39 = vpop.f32.mrf.mxu0  ;;  %v8152_v54 = vpop.f32.mrf.mxu1 }
 0x71b   : > { %v7982_v38 = vadd.f32 %v7981_v21, %v7813_v62 }
 0x71d   : > { %v17066_v20 = vadd.f32 %v8150_v17, %v7982_v38 }
 0x71e   : > { %v7645_v18 = vpop.f32.mrf.mxu2  ;;  %v7814_v61 = vpop.f32.mrf.mxu3 }
 0x71f   : > { %v7646_v19 = vadd.f32 %v7645_v18, %v16621_v1  ;;  %v13956_v18 = vld [vmem:[%s15786_s29 + $0x9f4] sm:$0xf0] }
 0x721   : > { %v7815_v26 = vadd.f32 %v7814_v61, %v7646_v19  ;;  %v13947_v61 = vld [vmem:[%s15786_s29 + $0x9b4] sm:$0xf]  ;;  %v11912_v19 = vld [vmem:[%s15786_s29 + $0x9f8] sm:$0xf0] }
 0x722   : > { %v7986_v21 = vpop.f32.mrf.mxu0  ;;  %v8155_v30 = vpop.f32.mrf.mxu1 }
 0x723   : > { %v7984_v49 = vadd.f32 %v7983_v39, %v7815_v26  ;;  %7687 = vmatmul.bf16.gmra.mxu2 %v11831_v53  ;;  %7856 = vmatmul.bf16.gmra.mxu3 %v11835_v5  ;;  %v11902_v39 = vld [vmem:[%s15786_s29 + $0x9a8] sm:$0xf]  ;;  %v11911_v26 = vor.u32 %v13956_v18, %v11910_v44  ;;  %v13973_v44 = vld [vmem:[%s15786_s29 + $0xa7c] sm:$0xf0]  ;;  %v13964_v18 = vld [vmem:[%s15786_s29 + $0xa3c] sm:$0xf] }
 0x725   : > { %8025 = vmatmul.bf16.gmra.mxu0 %v11839_v57  ;;  %8194 = vmatmul.bf16.gmra.mxu1 %v11843_v59  ;;  %v17069_v1 = vadd.f32 %v8152_v54, %v7984_v49  ;;  %v11903_v59 = vor.u32 %v13955_v9, %v11902_v39  ;;  %v11915_v49 = vor.u32 %v13947_v61, %v11912_v19  ;;  %v11976_v61 = vld [vmem:[%s15786_s29 + $0xa80] sm:$0xf0]  ;;  %v11982_v19 = vld [vmem:[%s15786_s29 + $0xa40] sm:$0xf] }
 0x726   : > { %v7648_v17 = vpop.f32.mrf.mxu2  ;;  %v7817_v62 = vpop.f32.mrf.mxu3 }
 0x727   : > { %v7649_v38 = vadd.f32 %v7648_v17, %v16632_v10  ;;  %v11907_v10 = vor.u32 %v13946_v47, %v11904_v4 }
 0x729   : > { %v7818_v36 = vadd.f32 %v7817_v62, %v7649_v38 }
 0x72a   : > { %v7988_v48 = vpop.f32.mrf.mxu0  ;;  %v8157_v15 = vpop.f32.mrf.mxu1 }
 0x72b   : > { %v7987_v27 = vadd.f32 %v7986_v21, %v7818_v36 }
 0x72d   : > { %v17080_v53 = vadd.f32 %v8155_v30, %v7987_v27 }
 0x72e   : > { %v7650_v54 = vpop.f32.mrf.mxu2  ;;  %v7819_v5 = vpop.f32.mrf.mxu3 }
 0x72f   : > { %v7651_v57 = vadd.f32 %v7650_v54, %v16635_v52  ;;  %v13974_v54 = vld [vmem:[%s15786_s29 + $0xa84] sm:$0xf0] }
 0x731   : > { %v7820_v17 = vadd.f32 %v7819_v5, %v7651_v57  ;;  %v13965_v5 = vld [vmem:[%s15786_s29 + $0xa44] sm:$0xf]  ;;  %v11984_v57 = vld [vmem:[%s15786_s29 + $0xa88] sm:$0xf0] }
 0x732   : > { %v7991_v21 = vpop.f32.mrf.mxu0  ;;  %v8160_v62 = vpop.f32.mrf.mxu1 }
 0x733   : > { %v7989_v38 = vadd.f32 %v7988_v48, %v7820_v17  ;;  %7692 = vmatmul.bf16.gmra.mxu2 %v11903_v59  ;;  %7861 = vmatmul.bf16.gmra.mxu3 %v11907_v10  ;;  %v11974_v48 = vld [vmem:[%s15786_s29 + $0xa38] sm:$0xf]  ;;  %v11983_v17 = vor.u32 %v13974_v54, %v11982_v19  ;;  %v12046_v54 = vld [vmem:[%s15786_s29 + $0xac8] sm:$0xf] }
 0x735   : > { %8030 = vmatmul.bf16.gmra.mxu0 %v11911_v26  ;;  %8199 = vmatmul.bf16.gmra.mxu1 %v11915_v49  ;;  %v17083_v52 = vadd.f32 %v8157_v15, %v7989_v38  ;;  %v11975_v49 = vor.u32 %v13973_v44, %v11974_v48  ;;  %v11987_v38 = vor.u32 %v13965_v5, %v11984_v57  ;;  %v13991_v5 = vld [vmem:[%s15786_s29 + $0xb0c] sm:$0xf0]  ;;  %v14311_v57 = vld [vmem:[#allocation2 + $0x2a0] sm:$0xff] }
 0x736   : > { %v7653_v30 = vpop.f32.mrf.mxu2  ;;  %v7822_v36 = vpop.f32.mrf.mxu3  ;;  %8618 = vmatpush.bf16.msrb.mxu0 %v14311_v57 }
 0x737   : > { %v7654_v27 = vadd.f32 %v7653_v30, %v16646_v37  ;;  %v11979_v37 = vor.u32 %v13964_v18, %v11976_v61 }
 0x739   : > { %v7823_v39 = vadd.f32 %v7822_v36, %v7654_v27 }
 0x73a   : > { %v7993_v9 = vpop.f32.mrf.mxu0  ;;  %v8162_v47 = vpop.f32.mrf.mxu1 }
 0x73b   : > { %v7992_v4 = vadd.f32 %v7991_v21, %v7823_v39  ;;  %v14295_v39 = vld [vmem:[#allocation2 + $0x358] sm:$0xff] }
 0x73c   : > { %8280 = vmatpush.bf16.msrb.mxu2 %v14295_v39 }
 0x73d   : > { %v17094_v59 = vadd.f32 %v8160_v62, %v7992_v4  ;;  %v14303_v62 = vld [vmem:[#allocation2 + $0x2d0] sm:$0xff] }
 0x73e   : > { %v7655_v15 = vpop.f32.mrf.mxu2  ;;  %v7824_v10 = vpop.f32.mrf.mxu3  ;;  %8449 = vmatpush.bf16.msrb.mxu3 %v14303_v62 }
 0x73f   : > { %v7656_v26 = vadd.f32 %v7655_v15, %v16649_v41  ;;  %v13982_v15 = vld [vmem:[%s15786_s29 + $0xacc] sm:$0xf] }
 0x741   : > { %v7825_v30 = vadd.f32 %v7824_v10, %v7656_v26  ;;  %v12048_v10 = vld [vmem:[%s15786_s29 + $0xb10] sm:$0xf0]  ;;  %v12054_v26 = vld [vmem:[%s15786_s29 + $0xad0] sm:$0xf] }
 0x742   : > { %v7996_v21 = vpop.f32.mrf.mxu0  ;;  %v8165_v36 = vpop.f32.mrf.mxu1  ;;  %v12051_v39 = vor.u32 %v13982_v15, %v12048_v10 }
 0x743   : > { %v7994_v27 = vadd.f32 %v7993_v9, %v7825_v30  ;;  %7697 = vmatmul.bf16.gmra.mxu2 %v11975_v49  ;;  %7866 = vmatmul.bf16.gmra.mxu3 %v11979_v37  ;;  %v13992_v49 = vld [vmem:[%s15786_s29 + $0xb14] sm:$0xf0]  ;;  %v12056_v37 = vld [vmem:[%s15786_s29 + $0xb18] sm:$0xf0] }
 0x744   : > { %v12055_v62 = vor.u32 %v13992_v49, %v12054_v26  ;;  %v12118_v26 = vld [vmem:[%s15786_s29 + $0xb58] sm:$0xf]  ;;  %v14009_v49 = vld [vmem:[%s15786_s29 + $0xb9c] sm:$0xf0] }
 0x745   : > { %8035 = vmatmul.bf16.gmra.mxu0 %v11983_v17  ;;  %8204 = vmatmul.bf16.gmra.mxu1 %v11987_v38  ;;  %v17097_v41 = vadd.f32 %v8162_v47, %v7994_v27  ;;  %v13983_v47 = vld [vmem:[%s15786_s29 + $0xad4] sm:$0xf]  ;;  %v12047_v27 = vor.u32 %v13991_v5, %v12046_v54 }
 0x746   : > { %v7658_v4 = vpop.f32.mrf.mxu2  ;;  %v7827_v48 = vpop.f32.mrf.mxu3 }
 0x747   : > { %v7659_v9 = vadd.f32 %v7658_v4, %v16660_v55 }
 0x749   : > { %v7828_v44 = vadd.f32 %v7827_v48, %v7659_v9 }
 0x74a   : > { %v7998_v18 = vpop.f32.mrf.mxu0  ;;  %v8167_v61 = vpop.f32.mrf.mxu1 }
 0x74b   : > { %v7997_v19 = vadd.f32 %v7996_v21, %v7828_v44  ;;  %v12059_v21 = vor.u32 %v13983_v47, %v12056_v37  ;;  %v14000_v47 = vld [vmem:[%s15786_s29 + $0xb5c] sm:$0xf]  ;;  %v12120_v37 = vld [vmem:[%s15786_s29 + $0xba0] sm:$0xf0] }
 0x74d   : > { %v17108_v17 = vadd.f32 %v8165_v36, %v7997_v19  ;;  %v14319_v36 = vld [vmem:[#allocation2 + $0xd8] sm:$0xff] }
 0x74e   : > { %v7660_v38 = vpop.f32.mrf.mxu2  ;;  %v7829_v30 = vpop.f32.mrf.mxu3  ;;  %8787 = vmatpush.bf16.msrb.mxu1 %v14319_v36 }
 0x74f   : > { %v7661_v55 = vadd.f32 %v7660_v38, %v16663_v42  ;;  %v12126_v38 = vld [vmem:[%s15786_s29 + $0xb60] sm:$0xf] }
 0x751   : > { %v7830_v4 = vadd.f32 %v7829_v30, %v7661_v55  ;;  %v14010_v30 = vld [vmem:[%s15786_s29 + $0xba4] sm:$0xf0]  ;;  %v14001_v55 = vld [vmem:[%s15786_s29 + $0xb64] sm:$0xf] }
 0x752   : > { %v8001_v48 = vpop.f32.mrf.mxu0  ;;  %v8170_v9 = vpop.f32.mrf.mxu1 }
 0x753   : > { %v7999_v44 = vadd.f32 %v7998_v18, %v7830_v4  ;;  %7702 = vmatmul.bf16.gmra.mxu2 %v12047_v27  ;;  %7871 = vmatmul.bf16.gmra.mxu3 %v12051_v39  ;;  %v12128_v27 = vld [vmem:[%s15786_s29 + $0xba8] sm:$0xf0]  ;;  %v12119_v4 = vor.u32 %v14009_v49, %v12118_v26 }
 0x754   : > { %v12131_v36 = vor.u32 %v14001_v55, %v12128_v27  ;;  %v12192_v55 = vld [vmem:[%s15786_s29 + $0xc30] sm:$0xf0]  ;;  %v12198_v27 = vld [vmem:[%s15786_s29 + $0xbf0] sm:$0xf] }
 0x755   : > { %8040 = vmatmul.bf16.gmra.mxu0 %v12055_v62  ;;  %8209 = vmatmul.bf16.gmra.mxu1 %v12059_v21  ;;  %v17111_v42 = vadd.f32 %v8167_v61, %v7999_v44  ;;  %v12127_v44 = vor.u32 %v14010_v30, %v12126_v38  ;;  %v14027_v38 = vld [vmem:[%s15786_s29 + $0xc2c] sm:$0xf0]  ;;  %v14018_v30 = vld [vmem:[%s15786_s29 + $0xbec] sm:$0xf] }
 0x756   : > { %v7663_v19 = vpop.f32.mrf.mxu2  ;;  %v7832_v54 = vpop.f32.mrf.mxu3 }
 0x757   : > { %v7664_v5 = vadd.f32 %v7663_v19, %v16674_v8  ;;  %v12123_v8 = vor.u32 %v14000_v47, %v12120_v37 }
 0x759   : > { %v7833_v18 = vadd.f32 %v7832_v54, %v7664_v5 }
 0x75a   : > { %v8003_v57 = vpop.f32.mrf.mxu0  ;;  %v8172_v15 = vpop.f32.mrf.mxu1 }
 0x75b   : > { %v8002_v10 = vadd.f32 %v8001_v48, %v7833_v18 }
 0x75d   : > { %v17122_v39 = vadd.f32 %v8170_v9, %v8002_v10 }
 0x75e   : > { %v7665_v61 = vpop.f32.mrf.mxu2  ;;  %v7834_v62 = vpop.f32.mrf.mxu3 }
 0x75f   : > { %v7666_v21 = vadd.f32 %v7665_v61, %v16677_v28  ;;  %v14028_v61 = vld [vmem:[%s15786_s29 + $0xc34] sm:$0xf0] }
 0x761   : > { %v7835_v19 = vadd.f32 %v7834_v62, %v7666_v21  ;;  %v14019_v62 = vld [vmem:[%s15786_s29 + $0xbf4] sm:$0xf]  ;;  %v12200_v21 = vld [vmem:[%s15786_s29 + $0xc38] sm:$0xf0] }
 0x762   : > { %v8006_v48 = vpop.f32.mrf.mxu0  ;;  %v8175_v54 = vpop.f32.mrf.mxu1 }
 0x763   : > { %v8004_v5 = vadd.f32 %v8003_v57, %v7835_v19  ;;  %7707 = vmatmul.bf16.gmra.mxu2 %v12119_v4  ;;  %7876 = vmatmul.bf16.gmra.mxu3 %v12123_v8  ;;  %v12190_v57 = vld [vmem:[%s15786_s29 + $0xbe8] sm:$0xf]  ;;  %v12199_v19 = vor.u32 %v14028_v61, %v12198_v27  ;;  %v14045_v27 = vld [vmem:[%s15786_s29 + $0xcbc] sm:$0xf0]  ;;  %v14036_v61 = vld [vmem:[%s15786_s29 + $0xc7c] sm:$0xf] }
 0x765   : > { %8045 = vmatmul.bf16.gmra.mxu0 %v12127_v44  ;;  %8214 = vmatmul.bf16.gmra.mxu1 %v12131_v36  ;;  %v17125_v28 = vadd.f32 %v8172_v15, %v8004_v5  ;;  %v12191_v36 = vor.u32 %v14027_v38, %v12190_v57  ;;  %v12203_v5 = vor.u32 %v14019_v62, %v12200_v21  ;;  %v12264_v62 = vld [vmem:[%s15786_s29 + $0xcc0] sm:$0xf0]  ;;  %v12270_v21 = vld [vmem:[%s15786_s29 + $0xc80] sm:$0xf] }
 0x766   : > { %v7668_v9 = vpop.f32.mrf.mxu2  ;;  %v7837_v18 = vpop.f32.mrf.mxu3 }
 0x767   : > { %v7669_v10 = vadd.f32 %v7668_v9, %v16688_v13  ;;  %v12195_v13 = vor.u32 %v14018_v30, %v12192_v55 }
 0x769   : > { %v7838_v26 = vadd.f32 %v7837_v18, %v7669_v10 }
 0x76a   : > { %v8008_v49 = vpop.f32.mrf.mxu0  ;;  %v8177_v47 = vpop.f32.mrf.mxu1 }
 0x76b   : > { %v8007_v37 = vadd.f32 %v8006_v48, %v7838_v26 }
 0x76d   : > { %v17136_v4 = vadd.f32 %v8175_v54, %v8007_v37 }
 0x76e   : > { %v7670_v15 = vpop.f32.mrf.mxu2  ;;  %v7839_v8 = vpop.f32.mrf.mxu3 }
 0x76f   : > { %v7671_v44 = vadd.f32 %v7670_v15, %v16691_v63  ;;  %v14046_v15 = vld [vmem:[%s15786_s29 + $0xcc4] sm:$0xf0] }
 0x771   : > { %v7840_v9 = vadd.f32 %v7839_v8, %v7671_v44  ;;  %v14037_v8 = vld [vmem:[%s15786_s29 + $0xc84] sm:$0xf]  ;;  %v12272_v44 = vld [vmem:[%s15786_s29 + $0xcc8] sm:$0xf0] }
 0x772   : > { %v8011_v48 = vpop.f32.mrf.mxu0  ;;  %v8180_v18 = vpop.f32.mrf.mxu1 }
 0x773   : > { %v8009_v10 = vadd.f32 %v8008_v49, %v7840_v9  ;;  %7712 = vmatmul.bf16.gmra.mxu2 %v12191_v36  ;;  %7881 = vmatmul.bf16.gmra.mxu3 %v12195_v13  ;;  %v12262_v49 = vld [vmem:[%s15786_s29 + $0xc78] sm:$0xf]  ;;  %v12271_v9 = vor.u32 %v14046_v15, %v12270_v21  ;;  %v12334_v15 = vld [vmem:[%s15786_s29 + $0xd08] sm:$0xf] }
 0x775   : > { %8050 = vmatmul.bf16.gmra.mxu0 %v12199_v19  ;;  %8219 = vmatmul.bf16.gmra.mxu1 %v12203_v5  ;;  %v17139_v63 = vadd.f32 %v8177_v47, %v8009_v10  ;;  %v12263_v5 = vor.u32 %v14045_v27, %v12262_v49  ;;  %v12275_v10 = vor.u32 %v14037_v8, %v12272_v44  ;;  %v14063_v8 = vld [vmem:[%s15786_s29 + $0xd4c] sm:$0xf0]  ;;  %v14310_v44 = vld [vmem:[#allocation2 + $0x460] sm:$0xff] }
 0x776   : > { %v7673_v54 = vpop.f32.mrf.mxu2  ;;  %v7842_v26 = vpop.f32.mrf.mxu3  ;;  %8619 = vmatpush.bf16.msrb.mxu0 %v14310_v44 }
 0x777   : > { %v7674_v37 = vadd.f32 %v7673_v54, %v16702_v58  ;;  %v12267_v58 = vor.u32 %v14036_v61, %v12264_v62 }
 0x779   : > { %v7843_v57 = vadd.f32 %v7842_v26, %v7674_v37 }
 0x77a   : > { %v8013_v38 = vpop.f32.mrf.mxu0  ;;  %v8182_v30 = vpop.f32.mrf.mxu1 }
 0x77b   : > { %v8012_v55 = vadd.f32 %v8011_v48, %v7843_v57  ;;  %v14294_v57 = vld [vmem:[#allocation2 + $0x1c0] sm:$0xff] }
 0x77c   : > { %8281 = vmatpush.bf16.msrb.mxu2 %v14294_v57 }
 0x77d   : > { %v17150_v36 = vadd.f32 %v8180_v18, %v8012_v55  ;;  %v14302_v18 = vld [vmem:[#allocation2 + $0x468] sm:$0xff] }
 0x77e   : > { %v7675_v47 = vpop.f32.mrf.mxu2  ;;  %v7844_v13 = vpop.f32.mrf.mxu3  ;;  %8450 = vmatpush.bf16.msrb.mxu3 %v14302_v18 }
 0x77f   : > { %v7676_v19 = vadd.f32 %v7675_v47, %v16705_v25  ;;  %v14054_v47 = vld [vmem:[%s15786_s29 + $0xd0c] sm:$0xf] }
 0x781   : > { %v7845_v54 = vadd.f32 %v7844_v13, %v7676_v19  ;;  %v12336_v13 = vld [vmem:[%s15786_s29 + $0xd50] sm:$0xf0]  ;;  %v12342_v19 = vld [vmem:[%s15786_s29 + $0xd10] sm:$0xf] }
 0x782   : > { %v8016_v48 = vpop.f32.mrf.mxu0  ;;  %v8185_v26 = vpop.f32.mrf.mxu1  ;;  %v12339_v57 = vor.u32 %v14054_v47, %v12336_v13 }
 0x783   : > { %v8014_v37 = vadd.f32 %v8013_v38, %v7845_v54  ;;  %7717 = vmatmul.bf16.gmra.mxu2 %v12263_v5  ;;  %7886 = vmatmul.bf16.gmra.mxu3 %v12267_v58  ;;  %v14064_v5 = vld [vmem:[%s15786_s29 + $0xd54] sm:$0xf0]  ;;  %v12344_v58 = vld [vmem:[%s15786_s29 + $0xd58] sm:$0xf0] }
 0x784   : > { %v12343_v18 = vor.u32 %v14064_v5, %v12342_v19  ;;  %v12406_v19 = vld [vmem:[%s15786_s29 + $0xd98] sm:$0xf]  ;;  %v14081_v5 = vld [vmem:[%s15786_s29 + $0xddc] sm:$0xf0] }
 0x785   : > { %8055 = vmatmul.bf16.gmra.mxu0 %v12271_v9  ;;  %8224 = vmatmul.bf16.gmra.mxu1 %v12275_v10  ;;  %v17153_v25 = vadd.f32 %v8182_v30, %v8014_v37  ;;  %v14055_v30 = vld [vmem:[%s15786_s29 + $0xd14] sm:$0xf]  ;;  %v12335_v37 = vor.u32 %v14063_v8, %v12334_v15 }
 0x786   : > { %v7678_v55 = vpop.f32.mrf.mxu2  ;;  %v7847_v49 = vpop.f32.mrf.mxu3 }
 0x787   : > { %v7679_v38 = vadd.f32 %v7678_v55, %v16716_v6 }
 0x789   : > { %v7848_v27 = vadd.f32 %v7847_v49, %v7679_v38 }
 0x78a   : > { %v8018_v61 = vpop.f32.mrf.mxu0  ;;  %v8187_v62 = vpop.f32.mrf.mxu1 }
 0x78b   : > { %v8017_v21 = vadd.f32 %v8016_v48, %v7848_v27  ;;  %v12347_v48 = vor.u32 %v14055_v30, %v12344_v58  ;;  %v14072_v30 = vld [vmem:[%s15786_s29 + $0xd9c] sm:$0xf]  ;;  %v12408_v58 = vld [vmem:[%s15786_s29 + $0xde0] sm:$0xf0] }
 0x78d   : > { %v17164_v9 = vadd.f32 %v8185_v26, %v8017_v21  ;;  %v14318_v26 = vld [vmem:[#allocation2 + $0x138] sm:$0xff] }
 0x78e   : > { %v7680_v10 = vpop.f32.mrf.mxu2  ;;  %v7849_v54 = vpop.f32.mrf.mxu3  ;;  %8788 = vmatpush.bf16.msrb.mxu1 %v14318_v26 }
 0x78f   : > { %v7681_v6 = vadd.f32 %v7680_v10, %v16719_v23  ;;  %v12414_v10 = vld [vmem:[%s15786_s29 + $0xda0] sm:$0xf] }
 0x791   : > { %v7850_v55 = vadd.f32 %v7849_v54, %v7681_v6  ;;  %v14082_v54 = vld [vmem:[%s15786_s29 + $0xde4] sm:$0xf0]  ;;  %v14073_v6 = vld [vmem:[%s15786_s29 + $0xda4] sm:$0xf] }
 0x792   : > { %v8021_v49 = vpop.f32.mrf.mxu0  ;;  %v8190_v38 = vpop.f32.mrf.mxu1 }
 0x793   : > { %v8019_v27 = vadd.f32 %v8018_v61, %v7850_v55  ;;  %7722 = vmatmul.bf16.gmra.mxu2 %v12335_v37  ;;  %7891 = vmatmul.bf16.gmra.mxu3 %v12339_v57  ;;  %v12416_v37 = vld [vmem:[%s15786_s29 + $0xde8] sm:$0xf0]  ;;  %v12407_v55 = vor.u32 %v14081_v5, %v12406_v19 }
 0x794   : > { %v12419_v26 = vor.u32 %v14073_v6, %v12416_v37  ;;  %v12480_v6 = vld [vmem:[%s15786_s29 + $0xe70] sm:$0xf0]  ;;  %v12486_v37 = vld [vmem:[%s15786_s29 + $0xe30] sm:$0xf] }
 0x795   : > { %8060 = vmatmul.bf16.gmra.mxu0 %v12343_v18  ;;  %8229 = vmatmul.bf16.gmra.mxu1 %v12347_v48  ;;  %v17167_v23 = vadd.f32 %v8187_v62, %v8019_v27  ;;  %v12415_v27 = vor.u32 %v14082_v54, %v12414_v10  ;;  %v14099_v10 = vld [vmem:[%s15786_s29 + $0xe6c] sm:$0xf0]  ;;  %v14090_v54 = vld [vmem:[%s15786_s29 + $0xe2c] sm:$0xf] }
 0x796   : > { %v7683_v21 = vpop.f32.mrf.mxu2  ;;  %v7852_v15 = vpop.f32.mrf.mxu3 }
 0x797   : > { %v7684_v8 = vadd.f32 %v7683_v21, %v16730_v7  ;;  %v12411_v7 = vor.u32 %v14072_v30, %v12408_v58 }
 0x799   : > { %v7853_v61 = vadd.f32 %v7852_v15, %v7684_v8 }
 0x79a   : > { %v8023_v44 = vpop.f32.mrf.mxu0  ;;  %v8192_v47 = vpop.f32.mrf.mxu1 }
 0x79b   : > { %v8022_v13 = vadd.f32 %v8021_v49, %v7853_v61 }
 0x79d   : > { %v17178_v57 = vadd.f32 %v8190_v38, %v8022_v13 }
 0x79e   : > { %v7685_v62 = vpop.f32.mrf.mxu2  ;;  %v7854_v18 = vpop.f32.mrf.mxu3 }
 0x79f   : > { %v7686_v48 = vadd.f32 %v7685_v62, %v16733_v16  ;;  %v14100_v62 = vld [vmem:[%s15786_s29 + $0xe74] sm:$0xf0] }
 0x7a1   : > { %v7855_v21 = vadd.f32 %v7854_v18, %v7686_v48  ;;  %v14091_v18 = vld [vmem:[%s15786_s29 + $0xe34] sm:$0xf]  ;;  %v12488_v48 = vld [vmem:[%s15786_s29 + $0xe78] sm:$0xf0] }
 0x7a2   : > { %v8026_v49 = vpop.f32.mrf.mxu0  ;;  %v8195_v15 = vpop.f32.mrf.mxu1 }
 0x7a3   : > { %v8024_v8 = vadd.f32 %v8023_v44, %v7855_v21  ;;  %7727 = vmatmul.bf16.gmra.mxu2 %v12407_v55  ;;  %7896 = vmatmul.bf16.gmra.mxu3 %v12411_v7  ;;  %v12478_v44 = vld [vmem:[%s15786_s29 + $0xe28] sm:$0xf]  ;;  %v12487_v21 = vor.u32 %v14100_v62, %v12486_v37  ;;  %v14117_v37 = vld [vmem:[%s15786_s29 + $0xefc] sm:$0xf0]  ;;  %v14108_v62 = vld [vmem:[%s15786_s29 + $0xebc] sm:$0xf] }
 0x7a5   : > { %8065 = vmatmul.bf16.gmra.mxu0 %v12415_v27  ;;  %8234 = vmatmul.bf16.gmra.mxu1 %v12419_v26  ;;  %v17181_v16 = vadd.f32 %v8192_v47, %v8024_v8  ;;  %v12479_v26 = vor.u32 %v14099_v10, %v12478_v44  ;;  %v12491_v8 = vor.u32 %v14091_v18, %v12488_v48  ;;  %v12552_v18 = vld [vmem:[%s15786_s29 + $0xf00] sm:$0xf0]  ;;  %v12558_v48 = vld [vmem:[%s15786_s29 + $0xec0] sm:$0xf] }
 0x7a6   : > { %v7688_v38 = vpop.f32.mrf.mxu2  ;;  %v7857_v61 = vpop.f32.mrf.mxu3 }
 0x7a7   : > { %v7689_v13 = vadd.f32 %v7688_v38, %v16744_v11  ;;  %v12483_v11 = vor.u32 %v14090_v54, %v12480_v6 }
 0x7a9   : > { %v7858_v19 = vadd.f32 %v7857_v61, %v7689_v13 }
 0x7aa   : > { %v8028_v5 = vpop.f32.mrf.mxu0  ;;  %v8197_v30 = vpop.f32.mrf.mxu1 }
 0x7ab   : > { %v8027_v58 = vadd.f32 %v8026_v49, %v7858_v19 }
 0x7ad   : > { %v17192_v55 = vadd.f32 %v8195_v15, %v8027_v58 }
 0x7ae   : > { %v7690_v47 = vpop.f32.mrf.mxu2  ;;  %v7859_v7 = vpop.f32.mrf.mxu3 }
 0x7af   : > { %v7691_v27 = vadd.f32 %v7690_v47, %v16747_v46  ;;  %v14118_v47 = vld [vmem:[%s15786_s29 + $0xf04] sm:$0xf0] }
 0x7b1   : > { %v7860_v38 = vadd.f32 %v7859_v7, %v7691_v27  ;;  %v14109_v7 = vld [vmem:[%s15786_s29 + $0xec4] sm:$0xf]  ;;  %v12560_v27 = vld [vmem:[%s15786_s29 + $0xf08] sm:$0xf0] }
 0x7b2   : > { %v8031_v49 = vpop.f32.mrf.mxu0  ;;  %v8200_v61 = vpop.f32.mrf.mxu1 }
 0x7b3   : > { %v8029_v13 = vadd.f32 %v8028_v5, %v7860_v38  ;;  %7732 = vmatmul.bf16.gmra.mxu2 %v12479_v26  ;;  %7901 = vmatmul.bf16.gmra.mxu3 %v12483_v11  ;;  %v12550_v5 = vld [vmem:[%s15786_s29 + $0xeb8] sm:$0xf]  ;;  %v12559_v38 = vor.u32 %v14118_v47, %v12558_v48  ;;  %v12622_v47 = vld [vmem:[%s15786_s29 + $0xf48] sm:$0xf] }
 0x7b5   : > { %8070 = vmatmul.bf16.gmra.mxu0 %v12487_v21  ;;  %8239 = vmatmul.bf16.gmra.mxu1 %v12491_v8  ;;  %v17195_v46 = vadd.f32 %v8197_v30, %v8029_v13  ;;  %v12551_v8 = vor.u32 %v14117_v37, %v12550_v5  ;;  %v12563_v13 = vor.u32 %v14109_v7, %v12560_v27  ;;  %v14135_v7 = vld [vmem:[%s15786_s29 + $0xf8c] sm:$0xf0] }
 0x7b6   : > { %v7693_v15 = vpop.f32.mrf.mxu2  ;;  %v7862_v19 = vpop.f32.mrf.mxu3  ;;  %v14309_v27 = vld [vmem:[#allocation2 + $0x110] sm:$0xff] }
 0x7b7   : > { %v7694_v58 = vadd.f32 %v7693_v15, %v16758_v60  ;;  %v12555_v60 = vor.u32 %v14108_v62, %v12552_v18  ;;  %8620 = vmatpush.bf16.msrb.mxu0 %v14309_v27 }
 0x7b9   : > { %v7863_v44 = vadd.f32 %v7862_v19, %v7694_v58 }
 0x7ba   : > { %v8033_v10 = vpop.f32.mrf.mxu0  ;;  %v8202_v54 = vpop.f32.mrf.mxu1 }
 0x7bb   : > { %v8032_v6 = vadd.f32 %v8031_v49, %v7863_v44  ;;  %v14293_v44 = vld [vmem:[#allocation2 + $0x210] sm:$0xff] }
 0x7bc   : > { %8282 = vmatpush.bf16.msrb.mxu2 %v14293_v44 }
 0x7bd   : > { %v17206_v26 = vadd.f32 %v8200_v61, %v8032_v6  ;;  %v14301_v61 = vld [vmem:[#allocation2 + $0xb8] sm:$0xff] }
 0x7be   : > { %v7695_v30 = vpop.f32.mrf.mxu2  ;;  %v7864_v11 = vpop.f32.mrf.mxu3  ;;  %8451 = vmatpush.bf16.msrb.mxu3 %v14301_v61 }
 0x7bf   : > { %v7696_v21 = vadd.f32 %v7695_v30, %v16761_v0  ;;  %v14126_v30 = vld [vmem:[%s15786_s29 + $0xf4c] sm:$0xf] }
 0x7c1   : > { %v7865_v15 = vadd.f32 %v7864_v11, %v7696_v21  ;;  %v12624_v11 = vld [vmem:[%s15786_s29 + $0xf90] sm:$0xf0]  ;;  %v12630_v21 = vld [vmem:[%s15786_s29 + $0xf50] sm:$0xf] }
 0x7c2   : > { %v8036_v49 = vpop.f32.mrf.mxu0  ;;  %v8205_v19 = vpop.f32.mrf.mxu1  ;;  %v12627_v44 = vor.u32 %v14126_v30, %v12624_v11 }
 0x7c3   : > { %v8034_v58 = vadd.f32 %v8033_v10, %v7865_v15  ;;  %7737 = vmatmul.bf16.gmra.mxu2 %v12551_v8  ;;  %7906 = vmatmul.bf16.gmra.mxu3 %v12555_v60  ;;  %v14136_v8 = vld [vmem:[%s15786_s29 + $0xf94] sm:$0xf0]  ;;  %v12632_v60 = vld [vmem:[%s15786_s29 + $0xf98] sm:$0xf0] }
 0x7c4   : > { %v12631_v61 = vor.u32 %v14136_v8, %v12630_v21  ;;  %v12694_v21 = vld [vmem:[%s15786_s29 + $0xfd8] sm:$0xf]  ;;  %v14153_v8 = vld [vmem:[%s15786_s29 + $0x101c] sm:$0xf0] }
 0x7c5   : > { %8075 = vmatmul.bf16.gmra.mxu0 %v12559_v38  ;;  %8244 = vmatmul.bf16.gmra.mxu1 %v12563_v13  ;;  %v17209_v0 = vadd.f32 %v8202_v54, %v8034_v58  ;;  %v14127_v54 = vld [vmem:[%s15786_s29 + $0xf54] sm:$0xf]  ;;  %v12623_v58 = vor.u32 %v14135_v7, %v12622_v47 }
 0x7c6   : > { %v7698_v6 = vpop.f32.mrf.mxu2  ;;  %v7867_v5 = vpop.f32.mrf.mxu3 }
 0x7c7   : > { %v7699_v10 = vadd.f32 %v7698_v6, %v16772_v3 }
 0x7c9   : > { %v7868_v37 = vadd.f32 %v7867_v5, %v7699_v10 }
 0x7ca   : > { %v8038_v62 = vpop.f32.mrf.mxu0  ;;  %v8207_v18 = vpop.f32.mrf.mxu1 }
 0x7cb   : > { %v8037_v48 = vadd.f32 %v8036_v49, %v7868_v37  ;;  %v12635_v49 = vor.u32 %v14127_v54, %v12632_v60  ;;  %v14144_v54 = vld [vmem:[%s15786_s29 + $0xfdc] sm:$0xf]  ;;  %v12696_v60 = vld [vmem:[%s15786_s29 + $0x1020] sm:$0xf0] }
 0x7cd   : > { %v17220_v38 = vadd.f32 %v8205_v19, %v8037_v48  ;;  %v14317_v19 = vld [vmem:[#allocation2 + $0x478] sm:$0xff] }
 0x7ce   : > { %v7700_v13 = vpop.f32.mrf.mxu2  ;;  %v7869_v15 = vpop.f32.mrf.mxu3  ;;  %8789 = vmatpush.bf16.msrb.mxu1 %v14317_v19 }
 0x7cf   : > { %v7701_v3 = vadd.f32 %v7700_v13, %v16775_v40  ;;  %v12702_v13 = vld [vmem:[%s15786_s29 + $0xfe0] sm:$0xf] }
 0x7d1   : > { %v7870_v6 = vadd.f32 %v7869_v15, %v7701_v3  ;;  %v14154_v15 = vld [vmem:[%s15786_s29 + $0x1024] sm:$0xf0]  ;;  %v14145_v3 = vld [vmem:[%s15786_s29 + $0xfe4] sm:$0xf] }
 0x7d2   : > { %v8041_v5 = vpop.f32.mrf.mxu0  ;;  %v8210_v10 = vpop.f32.mrf.mxu1  ;;  %v12703_v19 = vor.u32 %v14154_v15, %v12702_v13 }
 0x7d3   : > { %v8039_v37 = vadd.f32 %v8038_v62, %v7870_v6  ;;  %7742 = vmatmul.bf16.gmra.mxu2 %v12623_v58  ;;  %7911 = vmatmul.bf16.gmra.mxu3 %v12627_v44  ;;  %v12704_v58 = vld [vmem:[%s15786_s29 + $0x1028] sm:$0xf0] }
 0x7d5   : > { %8080 = vmatmul.bf16.gmra.mxu0 %v12631_v61  ;;  %8249 = vmatmul.bf16.gmra.mxu1 %v12635_v49  ;;  %v17223_v40 = vadd.f32 %v8207_v18, %v8039_v37  ;;  %v18476_v49 = vld [vmem:[#allocation40_spill] sm:$0xff]  ;;  %v12695_v37 = vor.u32 %v14153_v8, %v12694_v21  ;;  %v18478_v8 = vld [vmem:[#allocation41_spill] sm:$0xff] }
 0x7d6   : > { %v7703_v48 = vpop.f32.mrf.mxu2  ;;  %v7872_v47 = vpop.f32.mrf.mxu3 }
 0x7d7   : > { %18474 = vst [vmem:[#allocation38_spill] sm:$0xff] %v17223_v40  ;;  %v7704_v7 = vadd.f32 %v7703_v48, %v16786_v45  ;;  %v12699_v45 = vor.u32 %v14144_v54, %v12696_v60  ;;  %v12707_v48 = vor.u32 %v14145_v3, %v12704_v58  ;;  %v14171_v58 = vld [vmem:[%s15786_s29 + $0x10ac] sm:$0xf0]  ;;  %v14332_v40 = vld [vmem:[#allocation2 + $0x340] sm:$0xff] }
 0x7d8   : > { %8951 = vmatpush.bf16.msra.mxu2 %v14332_v40  ;;  %v12918_v40 = vld [vmem:[%s15786_s29 + $0x1190] sm:$0xf] }
 0x7d9   : > { %v7873_v62 = vadd.f32 %v7872_v47, %v7704_v7 }
 0x7da   : > { %v8043_v27 = vpop.f32.mrf.mxu0  ;;  %v8212_v30 = vpop.f32.mrf.mxu1 }
 0x7db   : > { %v8042_v11 = vadd.f32 %v8041_v5, %v7873_v62 }
 0x7dd   : > { %v17234_v44 = vadd.f32 %v8210_v10, %v8042_v11 }
 0x7de   : > { %v7705_v18 = vpop.f32.mrf.mxu2  ;;  %v7874_v61 = vpop.f32.mrf.mxu3 }
 0x7df   : > { %18475 = vst [vmem:[#allocation39_spill] sm:$0xff] %v17234_v44  ;;  %v7706_v6 = vadd.f32 %v7705_v18, %v18476_v49  ;;  %v14162_v18 = vld [vmem:[%s15786_s29 + $0x106c] sm:$0xf]  ;;  %v12774_v49 = vld [vmem:[%s15786_s29 + $0x1070] sm:$0xf] }
 0x7e1   : > { %v7875_v47 = vadd.f32 %v7874_v61, %v7706_v6  ;;  %v12768_v61 = vld [vmem:[%s15786_s29 + $0x10b0] sm:$0xf0]  ;;  %v14172_v6 = vld [vmem:[%s15786_s29 + $0x10b4] sm:$0xf0] }
 0x7e2   : > { %v8046_v5 = vpop.f32.mrf.mxu0  ;;  %v8215_v7 = vpop.f32.mrf.mxu1 }
 0x7e3   : > { %v8044_v62 = vadd.f32 %v8043_v27, %v7875_v47  ;;  %7747 = vmatmul.bf16.gmra.mxu2 %v12695_v37  ;;  %7916 = vmatmul.bf16.gmra.mxu3 %v12699_v45  ;;  %v12766_v27 = vld [vmem:[%s15786_s29 + $0x1068] sm:$0xf]  ;;  %v14163_v37 = vld [vmem:[%s15786_s29 + $0x1074] sm:$0xf]  ;;  %v12776_v45 = vld [vmem:[%s15786_s29 + $0x10b8] sm:$0xf0] }
 0x7e4   : > { %v18480_v47 = vld [vmem:[#allocation16_spill] sm:$0xff] }
 0x7e5   : > { %8085 = vmatmul.bf16.gmra.mxu0 %v12703_v19  ;;  %8254 = vmatmul.bf16.gmra.mxu1 %v12707_v48  ;;  %v17237_v10 = vadd.f32 %v8212_v30, %v8044_v62 }
 0x7e6   : > { %v7708_v11 = vpop.f32.mrf.mxu2  ;;  %v7877_v21 = vpop.f32.mrf.mxu3 }
 0x7e7   : > { %18477 = vst [vmem:[#allocation40_spill] sm:$0xff] %v17237_v10  ;;  %v7709_v54 = vadd.f32 %v7708_v11, %v18478_v8  ;;  %v12767_v10 = vor.u32 %v14171_v58, %v12766_v27  ;;  %v12771_v11 = vor.u32 %v14162_v18, %v12768_v61  ;;  %v12779_v8 = vor.u32 %v14163_v37, %v12776_v45  ;;  %v18482_v58 = vld [vmem:[#allocation17_spill] sm:$0xff]  ;;  %v14189_v45 = vld [vmem:[%s15786_s29 + $0x113c] sm:$0xf0] }
 0x7e9   : > { %v7878_v60 = vadd.f32 %v7877_v21, %v7709_v54  ;;  %v12775_v21 = vor.u32 %v14172_v6, %v12774_v49 }
 0x7ea   : > { %v8048_v13 = vpop.f32.mrf.mxu0  ;;  %v8217_v15 = vpop.f32.mrf.mxu1 }
 0x7eb   : > { %v8047_v3 = vadd.f32 %v8046_v5, %v7878_v60 }
 0x7ed   : > { %v17248_v19 = vadd.f32 %v8215_v7, %v8047_v3 }
 0x7ee   : > { %v7710_v30 = vpop.f32.mrf.mxu2  ;;  %v7879_v48 = vpop.f32.mrf.mxu3 }
 0x7ef   : > { %18479 = vst [vmem:[#allocation41_spill] sm:$0xff] %v17248_v19  ;;  %v7711_v62 = vadd.f32 %v7710_v30, %v18480_v47  ;;  %v12840_v30 = vld [vmem:[%s15786_s29 + $0x1140] sm:$0xf0]  ;;  %v14190_v47 = vld [vmem:[%s15786_s29 + $0x1144] sm:$0xf0] }
 0x7f1   : > { %v7880_v54 = vadd.f32 %v7879_v48, %v7711_v62  ;;  %v12846_v48 = vld [vmem:[%s15786_s29 + $0x1100] sm:$0xf]  ;;  %v14181_v62 = vld [vmem:[%s15786_s29 + $0x1104] sm:$0xf] }
 0x7f2   : > { %v8051_v5 = vpop.f32.mrf.mxu0  ;;  %v8220_v60 = vpop.f32.mrf.mxu1 }
 0x7f3   : > { %v8049_v44 = vadd.f32 %v8048_v13, %v7880_v54  ;;  %7752 = vmatmul.bf16.gmra.mxu2 %v12767_v10  ;;  %7921 = vmatmul.bf16.gmra.mxu3 %v12771_v11  ;;  %v12838_v13 = vld [vmem:[%s15786_s29 + $0x10f8] sm:$0xf]  ;;  %v14180_v10 = vld [vmem:[%s15786_s29 + $0x10fc] sm:$0xf]  ;;  %v12848_v11 = vld [vmem:[%s15786_s29 + $0x1148] sm:$0xf0] }
 0x7f5   : > { %8090 = vmatmul.bf16.gmra.mxu0 %v12775_v21  ;;  %8259 = vmatmul.bf16.gmra.mxu1 %v12779_v8  ;;  %v17251_v7 = vadd.f32 %v8217_v15, %v8049_v44  ;;  %v18484_v8 = vld [vmem:[#allocation18_spill] sm:$0xff] }
 0x7f6   : > { %v7713_v3 = vpop.f32.mrf.mxu2  ;;  %v7882_v27 = vpop.f32.mrf.mxu3 }
 0x7f7   : > { %18481 = vst [vmem:[#allocation16_spill] sm:$0xff] %v17251_v7  ;;  %v7714_v18 = vadd.f32 %v7713_v3, %v18482_v58  ;;  %v12839_v7 = vor.u32 %v14189_v45, %v12838_v13  ;;  %v12843_v3 = vor.u32 %v14180_v10, %v12840_v30  ;;  %v12851_v58 = vor.u32 %v14181_v62, %v12848_v11  ;;  %v12910_v62 = vld [vmem:[%s15786_s29 + $0x1188] sm:$0xf]  ;;  %v14207_v11 = vld [vmem:[%s15786_s29 + $0x11cc] sm:$0xf0] }
 0x7f9   : > { %v7883_v61 = vadd.f32 %v7882_v27, %v7714_v18  ;;  %v12847_v27 = vor.u32 %v14190_v47, %v12846_v48 }
 0x7fa   : > { %v8053_v49 = vpop.f32.mrf.mxu0  ;;  %v8222_v6 = vpop.f32.mrf.mxu1 }
 0x7fb   : > { %v8052_v37 = vadd.f32 %v8051_v5, %v7883_v61 }
 0x7fd   : > { %v17262_v21 = vadd.f32 %v8220_v60, %v8052_v37  ;;  %v14340_v60 = vld [vmem:[#allocation2 + $0xf0] sm:$0xff] }
 0x7fe   : > { %v7715_v44 = vpop.f32.mrf.mxu2  ;;  %v7884_v15 = vpop.f32.mrf.mxu3  ;;  %9120 = vmatpush.bf16.msra.mxu3 %v14340_v60 }
 0x7ff   : > { %18483 = vst [vmem:[#allocation17_spill] sm:$0xff] %v17262_v21  ;;  %v7716_v54 = vadd.f32 %v7715_v44, %v18484_v8  ;;  %v14348_v44 = vld [vmem:[#allocation2 + $0x428] sm:$0xff]  ;;  %v12912_v8 = vld [vmem:[%s15786_s29 + $0x11d0] sm:$0xf0] }
 0x800   : > { %9289 = vmatpush.bf16.msra.mxu0 %v14348_v44  ;;  %v18490_v44 = vld [vmem:[#allocation21_spill] sm:$0xff] }
 0x801   : > { %v7885_v18 = vadd.f32 %v7884_v15, %v7716_v54  ;;  %v14198_v15 = vld [vmem:[%s15786_s29 + $0x118c] sm:$0xf]  ;;  %v14208_v54 = vld [vmem:[%s15786_s29 + $0x11d4] sm:$0xf0] }
 0x802   : > { %v8056_v5 = vpop.f32.mrf.mxu0  ;;  %v8225_v61 = vpop.f32.mrf.mxu1 }
 0x803   : > { %v8054_v19 = vadd.f32 %v8053_v49, %v7885_v18  ;;  %7757 = vmatmul.bf16.gmra.mxu2 %v12839_v7  ;;  %7926 = vmatmul.bf16.gmra.mxu3 %v12843_v3  ;;  %v18486_v7 = vld [vmem:[#allocation19_spill] sm:$0xff]  ;;  %v18488_v18 = vld [vmem:[#allocation20_spill] sm:$0xff] }
 0x805   : > { %8095 = vmatmul.bf16.gmra.mxu0 %v12847_v27  ;;  %8264 = vmatmul.bf16.gmra.mxu1 %v12851_v58  ;;  %v17265_v37 = vadd.f32 %v8222_v6, %v8054_v19  ;;  %v14199_v19 = vld [vmem:[%s15786_s29 + $0x1194] sm:$0xf]  ;;  %v12920_v6 = vld [vmem:[%s15786_s29 + $0x11d8] sm:$0xf0] }
 0x806   : > { %v7718_v13 = vpop.f32.mrf.mxu2  ;;  %v7887_v45 = vpop.f32.mrf.mxu3 }
 0x807   : > { %18485 = vst [vmem:[#allocation18_spill] sm:$0xff] %v17265_v37  ;;  %v7719_v49 = vadd.f32 %v7718_v13, %v18486_v7  ;;  %v12911_v13 = vor.u32 %v14207_v11, %v12910_v62  ;;  %v12919_v7 = vor.u32 %v14208_v54, %v12918_v40 }
 0x809   : > { %v7888_v10 = vadd.f32 %v7887_v45, %v7719_v49  ;;  %v12915_v45 = vor.u32 %v14198_v15, %v12912_v8 }
 0x80a   : > { %v8058_v30 = vpop.f32.mrf.mxu0  ;;  %v8227_v48 = vpop.f32.mrf.mxu1 }
 0x80b   : > { %v8057_v47 = vadd.f32 %v8056_v5, %v7888_v10  ;;  %v12923_v5 = vor.u32 %v14199_v19, %v12920_v6  ;;  %v10694_v19 = vld [vmem:[%s15786_s29 + $0x28] sm:$0xf]  ;;  %v13651_v6 = vld [vmem:[%s15786_s29 + $0x6c] sm:$0xf0] }
 0x80d   : > { %v17276_v3 = vadd.f32 %v8225_v61, %v8057_v47  ;;  %v14356_v61 = vld [vmem:[#allocation2 + $0x188] sm:$0xff] }
 0x80e   : > { %v7720_v27 = vpop.f32.mrf.mxu2  ;;  %v7889_v58 = vpop.f32.mrf.mxu3  ;;  %9458 = vmatpush.bf16.msra.mxu1 %v14356_v61  ;;  %v10695_v61 = vor.u32 %v13651_v6, %v10694_v19  ;;  %v18494_v6 = vld [vmem:[#allocation23_spill] sm:$0xff] }
 0x80f   : > { %18487 = vst [vmem:[#allocation19_spill] sm:$0xff] %v17276_v3  ;;  %v7721_v60 = vadd.f32 %v7720_v27, %v18488_v18  ;;  %v13642_v27 = vld [vmem:[%s15786_s29 + $0x2c] sm:$0xf]  ;;  %v10702_v18 = vld [vmem:[%s15786_s29 + $0x30] sm:$0xf] }
 0x810   : > { %v14331_v3 = vld [vmem:[#allocation2 + $0x308] sm:$0xff] }
 0x811   : > { %v7890_v49 = vadd.f32 %v7889_v58, %v7721_v60  ;;  %v10696_v58 = vld [vmem:[%s15786_s29 + $0x70] sm:$0xf0]  ;;  %v13652_v60 = vld [vmem:[%s15786_s29 + $0x74] sm:$0xf0]  ;;  %8952 = vmatpush.bf16.msra.mxu2 %v14331_v3  ;;  %v10918_v3 = vld [vmem:[%s15786_s29 + $0x1e0] sm:$0xf] }
 0x812   : > { %v8061_v10 = vpop.f32.mrf.mxu0  ;;  %v8230_v37 = vpop.f32.mrf.mxu1 }
 0x813   : > { %v8059_v21 = vadd.f32 %v8058_v30, %v7890_v49  ;;  %7762 = vmatmul.bf16.gmra.mxu2 %v12911_v13  ;;  %7931 = vmatmul.bf16.gmra.mxu3 %v12915_v45  ;;  %v13643_v13 = vld [vmem:[%s15786_s29 + $0x34] sm:$0xf]  ;;  %v10704_v45 = vld [vmem:[%s15786_s29 + $0x78] sm:$0xf0] }
 0x815   : > { %8100 = vmatmul.bf16.gmra.mxu0 %v12919_v7  ;;  %8269 = vmatmul.bf16.gmra.mxu1 %v12923_v5  ;;  %v17279_v47 = vadd.f32 %v8227_v48, %v8059_v21  ;;  %v18492_v5 = vld [vmem:[#allocation22_spill] sm:$0xff] }
 0x816   : > { %v7723_v62 = vpop.f32.mrf.mxu2  ;;  %v7892_v11 = vpop.f32.mrf.mxu3 }
 0x817   : > { %18489 = vst [vmem:[#allocation20_spill] sm:$0xff] %v17279_v47  ;;  %v7724_v15 = vadd.f32 %v7723_v62, %v18490_v44  ;;  %v10699_v62 = vor.u32 %v13642_v27, %v10696_v58  ;;  %v10707_v44 = vor.u32 %v13643_v13, %v10704_v45  ;;  %v13669_v45 = vld [vmem:[%s15786_s29 + $0xfc] sm:$0xf0] }
 0x819   : > { %v7893_v30 = vadd.f32 %v7892_v11, %v7724_v15  ;;  %v10703_v11 = vor.u32 %v13652_v60, %v10702_v18 }
 0x81a   : > { %v8063_v8 = vpop.f32.mrf.mxu0  ;;  %v8232_v40 = vpop.f32.mrf.mxu1 }
 0x81b   : > { %v8062_v54 = vadd.f32 %v8061_v10, %v7893_v30 }
 0x81d   : > { %v17290_v7 = vadd.f32 %v8230_v37, %v8062_v54 }
 0x81e   : > { %v7725_v21 = vpop.f32.mrf.mxu2  ;;  %v7894_v48 = vpop.f32.mrf.mxu3 }
 0x81f   : > { %18491 = vst [vmem:[#allocation21_spill] sm:$0xff] %v17290_v7  ;;  %v7726_v49 = vadd.f32 %v7725_v21, %v18492_v5  ;;  %v13660_v21 = vld [vmem:[%s15786_s29 + $0xbc] sm:$0xf]  ;;  %v10774_v5 = vld [vmem:[%s15786_s29 + $0xc0] sm:$0xf] }
 0x821   : > { %v7895_v15 = vadd.f32 %v7894_v48, %v7726_v49  ;;  %v10768_v48 = vld [vmem:[%s15786_s29 + $0x100] sm:$0xf0]  ;;  %v13670_v49 = vld [vmem:[%s15786_s29 + $0x104] sm:$0xf0] }
 0x822   : > { %v8066_v10 = vpop.f32.mrf.mxu0  ;;  %v8235_v30 = vpop.f32.mrf.mxu1 }
 0x823   : > { %v8064_v47 = vadd.f32 %v8063_v8, %v7895_v15  ;;  %8283 = vmatmul.bf16.vlgmr.msrb.gmra.mxu2 %v10695_v61  ;;  %8452 = vmatmul.bf16.vlgmr.msrb.gmra.mxu3 %v10699_v62  ;;  %v10766_v8 = vld [vmem:[%s15786_s29 + $0xb8] sm:$0xf]  ;;  %v13661_v61 = vld [vmem:[%s15786_s29 + $0xc4] sm:$0xf]  ;;  %v10776_v62 = vld [vmem:[%s15786_s29 + $0x108] sm:$0xf0] }
 0x825   : > { %8621 = vmatmul.bf16.vlgmr.msrb.gmra.mxu0 %v10703_v11  ;;  %8790 = vmatmul.bf16.vlgmr.msrb.gmra.mxu1 %v10707_v44  ;;  %v17293_v37 = vadd.f32 %v8232_v40, %v8064_v47  ;;  %v18496_v44 = vld [vmem:[#allocation24_spill] sm:$0xff] }
 0x826   : > { %v7728_v54 = vpop.f32.mrf.mxu2  ;;  %v7897_v19 = vpop.f32.mrf.mxu3 }
 0x827   : > { %18493 = vst [vmem:[#allocation22_spill] sm:$0xff] %v17293_v37  ;;  %v7729_v27 = vadd.f32 %v7728_v54, %v18494_v6  ;;  %v10767_v37 = vor.u32 %v13669_v45, %v10766_v8  ;;  %v10771_v54 = vor.u32 %v13660_v21, %v10768_v48  ;;  %v10779_v6 = vor.u32 %v13661_v61, %v10776_v62  ;;  %v18498_v45 = vld [vmem:[#allocation25_spill] sm:$0xff]  ;;  %v13687_v62 = vld [vmem:[%s15786_s29 + $0x18c] sm:$0xf0] }
 0x829   : > { %v7898_v58 = vadd.f32 %v7897_v19, %v7729_v27  ;;  %v10775_v19 = vor.u32 %v13670_v49, %v10774_v5 }
 0x82a   : > { %v8068_v18 = vpop.f32.mrf.mxu0  ;;  %v8237_v60 = vpop.f32.mrf.mxu1 }
 0x82b   : > { %v8067_v13 = vadd.f32 %v8066_v10, %v7898_v58 }
 0x82d   : > { %v17304_v11 = vadd.f32 %v8235_v30, %v8067_v13 }
 0x82e   : > { %v7730_v47 = vpop.f32.mrf.mxu2  ;;  %v7899_v40 = vpop.f32.mrf.mxu3 }
 0x82f   : > { %18495 = vst [vmem:[#allocation23_spill] sm:$0xff] %v17304_v11  ;;  %v7731_v15 = vadd.f32 %v7730_v47, %v18496_v44  ;;  %v10840_v47 = vld [vmem:[%s15786_s29 + $0x190] sm:$0xf0]  ;;  %v13688_v44 = vld [vmem:[%s15786_s29 + $0x194] sm:$0xf0] }
 0x831   : > { %v7900_v27 = vadd.f32 %v7899_v40, %v7731_v15  ;;  %v10846_v40 = vld [vmem:[%s15786_s29 + $0x150] sm:$0xf]  ;;  %v13679_v15 = vld [vmem:[%s15786_s29 + $0x154] sm:$0xf] }
 0x832   : > { %v8071_v10 = vpop.f32.mrf.mxu0  ;;  %v8240_v58 = vpop.f32.mrf.mxu1 }
 0x833   : > { %v8069_v7 = vadd.f32 %v8068_v18, %v7900_v27  ;;  %8288 = vmatmul.bf16.gmra.mxu2 %v10767_v37  ;;  %8457 = vmatmul.bf16.gmra.mxu3 %v10771_v54  ;;  %v10838_v18 = vld [vmem:[%s15786_s29 + $0x148] sm:$0xf]  ;;  %v13678_v37 = vld [vmem:[%s15786_s29 + $0x14c] sm:$0xf]  ;;  %v10848_v54 = vld [vmem:[%s15786_s29 + $0x198] sm:$0xf0] }
 0x835   : > { %8626 = vmatmul.bf16.gmra.mxu0 %v10775_v19  ;;  %8795 = vmatmul.bf16.gmra.mxu1 %v10779_v6  ;;  %v17307_v30 = vadd.f32 %v8237_v60, %v8069_v7  ;;  %v18500_v6 = vld [vmem:[#allocation26_spill] sm:$0xff] }
 0x836   : > { %v7733_v13 = vpop.f32.mrf.mxu2  ;;  %v7902_v8 = vpop.f32.mrf.mxu3 }
 0x837   : > { %18497 = vst [vmem:[#allocation24_spill] sm:$0xff] %v17307_v30  ;;  %v7734_v21 = vadd.f32 %v7733_v13, %v18498_v45  ;;  %v10839_v30 = vor.u32 %v13687_v62, %v10838_v18  ;;  %v10843_v13 = vor.u32 %v13678_v37, %v10840_v47  ;;  %v10851_v45 = vor.u32 %v13679_v15, %v10848_v54  ;;  %v10910_v15 = vld [vmem:[%s15786_s29 + $0x1d8] sm:$0xf]  ;;  %v13705_v54 = vld [vmem:[%s15786_s29 + $0x21c] sm:$0xf0] }
 0x839   : > { %v7903_v48 = vadd.f32 %v7902_v8, %v7734_v21  ;;  %v10847_v8 = vor.u32 %v13688_v44, %v10846_v40 }
 0x83a   : > { %v8073_v5 = vpop.f32.mrf.mxu0  ;;  %v8242_v49 = vpop.f32.mrf.mxu1 }
 0x83b   : > { %v8072_v61 = vadd.f32 %v8071_v10, %v7903_v48 }
 0x83d   : > { %v17318_v19 = vadd.f32 %v8240_v58, %v8072_v61  ;;  %v14339_v58 = vld [vmem:[#allocation2 + $0xe8] sm:$0xff] }
 0x83e   : > { %v7735_v7 = vpop.f32.mrf.mxu2  ;;  %v7904_v60 = vpop.f32.mrf.mxu3  ;;  %9121 = vmatpush.bf16.msra.mxu3 %v14339_v58 }
 0x83f   : > { %18499 = vst [vmem:[#allocation25_spill] sm:$0xff] %v17318_v19  ;;  %v7736_v27 = vadd.f32 %v7735_v7, %v18500_v6  ;;  %v14347_v7 = vld [vmem:[#allocation2 + $0x80] sm:$0xff] }
 0x840   : > { %v10912_v6 = vld [vmem:[%s15786_s29 + $0x220] sm:$0xf0]  ;;  %9290 = vmatpush.bf16.msra.mxu0 %v14347_v7  ;;  %v18506_v7 = vld [vmem:[#allocation29_spill] sm:$0xff] }
 0x841   : > { %v7905_v21 = vadd.f32 %v7904_v60, %v7736_v27  ;;  %v13696_v60 = vld [vmem:[%s15786_s29 + $0x1dc] sm:$0xf]  ;;  %v13706_v27 = vld [vmem:[%s15786_s29 + $0x224] sm:$0xf0] }
 0x842   : > { %v8076_v10 = vpop.f32.mrf.mxu0  ;;  %v8245_v48 = vpop.f32.mrf.mxu1 }
 0x843   : > { %v8074_v11 = vadd.f32 %v8073_v5, %v7905_v21  ;;  %8293 = vmatmul.bf16.gmra.mxu2 %v10839_v30  ;;  %8462 = vmatmul.bf16.gmra.mxu3 %v10843_v13  ;;  %v18502_v30 = vld [vmem:[#allocation27_spill] sm:$0xff]  ;;  %v18504_v21 = vld [vmem:[#allocation28_spill] sm:$0xff] }
 0x845   : > { %8631 = vmatmul.bf16.gmra.mxu0 %v10847_v8  ;;  %8800 = vmatmul.bf16.gmra.mxu1 %v10851_v45  ;;  %v17321_v61 = vadd.f32 %v8242_v49, %v8074_v11  ;;  %v13697_v11 = vld [vmem:[%s15786_s29 + $0x1e4] sm:$0xf]  ;;  %v10920_v49 = vld [vmem:[%s15786_s29 + $0x228] sm:$0xf0] }
 0x846   : > { %v7738_v18 = vpop.f32.mrf.mxu2  ;;  %v7907_v62 = vpop.f32.mrf.mxu3 }
 0x847   : > { %18501 = vst [vmem:[#allocation26_spill] sm:$0xff] %v17321_v61  ;;  %v7739_v5 = vadd.f32 %v7738_v18, %v18502_v30  ;;  %v10911_v18 = vor.u32 %v13705_v54, %v10910_v15  ;;  %v10919_v30 = vor.u32 %v13706_v27, %v10918_v3 }
 0x849   : > { %v7908_v37 = vadd.f32 %v7907_v62, %v7739_v5  ;;  %v10915_v62 = vor.u32 %v13696_v60, %v10912_v6 }
 0x84a   : > { %v8078_v47 = vpop.f32.mrf.mxu0  ;;  %v8247_v40 = vpop.f32.mrf.mxu1 }
 0x84b   : > { %v8077_v44 = vadd.f32 %v8076_v10, %v7908_v37  ;;  %v10923_v10 = vor.u32 %v13697_v11, %v10920_v49  ;;  %v10982_v11 = vld [vmem:[%s15786_s29 + $0x268] sm:$0xf]  ;;  %v13723_v49 = vld [vmem:[%s15786_s29 + $0x2ac] sm:$0xf0] }
 0x84d   : > { %v17332_v13 = vadd.f32 %v8245_v48, %v8077_v44  ;;  %v14355_v48 = vld [vmem:[#allocation2 + $0x58] sm:$0xff] }
 0x84e   : > { %v7740_v8 = vpop.f32.mrf.mxu2  ;;  %v7909_v45 = vpop.f32.mrf.mxu3  ;;  %9459 = vmatpush.bf16.msra.mxu1 %v14355_v48  ;;  %v10983_v48 = vor.u32 %v13723_v49, %v10982_v11  ;;  %v18510_v49 = vld [vmem:[#allocation31_spill] sm:$0xff] }
 0x84f   : > { %18503 = vst [vmem:[#allocation27_spill] sm:$0xff] %v17332_v13  ;;  %v7741_v58 = vadd.f32 %v7740_v8, %v18504_v21  ;;  %v13714_v8 = vld [vmem:[%s15786_s29 + $0x26c] sm:$0xf]  ;;  %v10990_v21 = vld [vmem:[%s15786_s29 + $0x270] sm:$0xf] }
 0x850   : > { %v14330_v13 = vld [vmem:[#allocation2 + $0x50] sm:$0xff] }
 0x851   : > { %v7910_v5 = vadd.f32 %v7909_v45, %v7741_v58  ;;  %v10984_v45 = vld [vmem:[%s15786_s29 + $0x2b0] sm:$0xf0]  ;;  %v13724_v58 = vld [vmem:[%s15786_s29 + $0x2b4] sm:$0xf0]  ;;  %8953 = vmatpush.bf16.msra.mxu2 %v14330_v13  ;;  %v11206_v13 = vld [vmem:[%s15786_s29 + $0x420] sm:$0xf] }
 0x852   : > { %v8081_v37 = vpop.f32.mrf.mxu0  ;;  %v8250_v61 = vpop.f32.mrf.mxu1 }
 0x853   : > { %v8079_v19 = vadd.f32 %v8078_v47, %v7910_v5  ;;  %8298 = vmatmul.bf16.gmra.mxu2 %v10911_v18  ;;  %8467 = vmatmul.bf16.gmra.mxu3 %v10915_v62  ;;  %v13715_v18 = vld [vmem:[%s15786_s29 + $0x274] sm:$0xf]  ;;  %v10992_v62 = vld [vmem:[%s15786_s29 + $0x2b8] sm:$0xf0] }
 0x855   : > { %8636 = vmatmul.bf16.gmra.mxu0 %v10919_v30  ;;  %8805 = vmatmul.bf16.gmra.mxu1 %v10923_v10  ;;  %v17335_v44 = vadd.f32 %v8247_v40, %v8079_v19  ;;  %v18508_v10 = vld [vmem:[#allocation30_spill] sm:$0xff] }
 0x856   : > { %v7743_v15 = vpop.f32.mrf.mxu2  ;;  %v7912_v54 = vpop.f32.mrf.mxu3 }
 0x857   : > { %18505 = vst [vmem:[#allocation28_spill] sm:$0xff] %v17335_v44  ;;  %v7744_v60 = vadd.f32 %v7743_v15, %v18506_v7  ;;  %v10987_v15 = vor.u32 %v13714_v8, %v10984_v45  ;;  %v10995_v7 = vor.u32 %v13715_v18, %v10992_v62  ;;  %v13741_v62 = vld [vmem:[%s15786_s29 + $0x33c] sm:$0xf0] }
 0x859   : > { %v7913_v47 = vadd.f32 %v7912_v54, %v7744_v60  ;;  %v10991_v54 = vor.u32 %v13724_v58, %v10990_v21 }
 0x85a   : > { %v8083_v6 = vpop.f32.mrf.mxu0  ;;  %v8252_v3 = vpop.f32.mrf.mxu1 }
 0x85b   : > { %v8082_v27 = vadd.f32 %v8081_v37, %v7913_v47 }
 0x85d   : > { %v17346_v30 = vadd.f32 %v8250_v61, %v8082_v27 }
 0x85e   : > { %v7745_v19 = vpop.f32.mrf.mxu2  ;;  %v7914_v40 = vpop.f32.mrf.mxu3 }
 0x85f   : > { %18507 = vst [vmem:[#allocation29_spill] sm:$0xff] %v17346_v30  ;;  %v7746_v5 = vadd.f32 %v7745_v19, %v18508_v10  ;;  %v13732_v19 = vld [vmem:[%s15786_s29 + $0x2fc] sm:$0xf]  ;;  %v11062_v10 = vld [vmem:[%s15786_s29 + $0x300] sm:$0xf] }
 0x861   : > { %v7915_v60 = vadd.f32 %v7914_v40, %v7746_v5  ;;  %v11056_v40 = vld [vmem:[%s15786_s29 + $0x340] sm:$0xf0]  ;;  %v13742_v5 = vld [vmem:[%s15786_s29 + $0x344] sm:$0xf0] }
 0x862   : > { %v8086_v37 = vpop.f32.mrf.mxu0  ;;  %v8255_v47 = vpop.f32.mrf.mxu1 }
 0x863   : > { %v8084_v44 = vadd.f32 %v8083_v6, %v7915_v60  ;;  %8303 = vmatmul.bf16.gmra.mxu2 %v10983_v48  ;;  %8472 = vmatmul.bf16.gmra.mxu3 %v10987_v15  ;;  %v11054_v6 = vld [vmem:[%s15786_s29 + $0x2f8] sm:$0xf]  ;;  %v13733_v48 = vld [vmem:[%s15786_s29 + $0x304] sm:$0xf]  ;;  %v11064_v15 = vld [vmem:[%s15786_s29 + $0x348] sm:$0xf0] }
 0x865   : > { %8641 = vmatmul.bf16.gmra.mxu0 %v10991_v54  ;;  %8810 = vmatmul.bf16.gmra.mxu1 %v10995_v7  ;;  %v17349_v61 = vadd.f32 %v8252_v3, %v8084_v44  ;;  %v18512_v7 = vld [vmem:[#allocation32_spill] sm:$0xff] }
 0x866   : > { %v7748_v27 = vpop.f32.mrf.mxu2  ;;  %v7917_v11 = vpop.f32.mrf.mxu3 }
 0x867   : > { %18509 = vst [vmem:[#allocation30_spill] sm:$0xff] %v17349_v61  ;;  %v7749_v8 = vadd.f32 %v7748_v27, %v18510_v49  ;;  %v11055_v61 = vor.u32 %v13741_v62, %v11054_v6  ;;  %v11059_v27 = vor.u32 %v13732_v19, %v11056_v40  ;;  %v11067_v49 = vor.u32 %v13733_v48, %v11064_v15  ;;  %v18514_v62 = vld [vmem:[#allocation33_spill] sm:$0xff]  ;;  %v13759_v15 = vld [vmem:[%s15786_s29 + $0x3cc] sm:$0xf0] }
 0x869   : > { %v7918_v45 = vadd.f32 %v7917_v11, %v7749_v8  ;;  %v11063_v11 = vor.u32 %v13742_v5, %v11062_v10 }
 0x86a   : > { %v8088_v21 = vpop.f32.mrf.mxu0  ;;  %v8257_v58 = vpop.f32.mrf.mxu1 }
 0x86b   : > { %v8087_v18 = vadd.f32 %v8086_v37, %v7918_v45 }
 0x86d   : > { %v17360_v54 = vadd.f32 %v8255_v47, %v8087_v18 }
 0x86e   : > { %v7750_v44 = vpop.f32.mrf.mxu2  ;;  %v7919_v3 = vpop.f32.mrf.mxu3 }
 0x86f   : > { %18511 = vst [vmem:[#allocation31_spill] sm:$0xff] %v17360_v54  ;;  %v7751_v60 = vadd.f32 %v7750_v44, %v18512_v7  ;;  %v11128_v44 = vld [vmem:[%s15786_s29 + $0x3d0] sm:$0xf0]  ;;  %v13760_v7 = vld [vmem:[%s15786_s29 + $0x3d4] sm:$0xf0] }
 0x871   : > { %v7920_v8 = vadd.f32 %v7919_v3, %v7751_v60  ;;  %v11134_v3 = vld [vmem:[%s15786_s29 + $0x390] sm:$0xf]  ;;  %v13751_v60 = vld [vmem:[%s15786_s29 + $0x394] sm:$0xf] }
 0x872   : > { %v8091_v37 = vpop.f32.mrf.mxu0  ;;  %v8260_v45 = vpop.f32.mrf.mxu1 }
 0x873   : > { %v8089_v30 = vadd.f32 %v8088_v21, %v7920_v8  ;;  %8308 = vmatmul.bf16.gmra.mxu2 %v11055_v61  ;;  %8477 = vmatmul.bf16.gmra.mxu3 %v11059_v27  ;;  %v11126_v21 = vld [vmem:[%s15786_s29 + $0x388] sm:$0xf]  ;;  %v13750_v61 = vld [vmem:[%s15786_s29 + $0x38c] sm:$0xf]  ;;  %v11136_v27 = vld [vmem:[%s15786_s29 + $0x3d8] sm:$0xf0] }
 0x875   : > { %8646 = vmatmul.bf16.gmra.mxu0 %v11063_v11  ;;  %8815 = vmatmul.bf16.gmra.mxu1 %v11067_v49  ;;  %v17363_v47 = vadd.f32 %v8257_v58, %v8089_v30  ;;  %v18515_v49 = vld [vmem:[#allocation34_spill] sm:$0xff] }
 0x876   : > { %v7753_v18 = vpop.f32.mrf.mxu2  ;;  %v7922_v6 = vpop.f32.mrf.mxu3 }
 0x877   : > { %18513 = vst [vmem:[#allocation32_spill] sm:$0xff] %v17363_v47  ;;  %v7754_v19 = vadd.f32 %v7753_v18, %v18514_v62  ;;  %v11127_v47 = vor.u32 %v13759_v15, %v11126_v21  ;;  %v11131_v18 = vor.u32 %v13750_v61, %v11128_v44  ;;  %v11139_v62 = vor.u32 %v13751_v60, %v11136_v27  ;;  %v13777_v60 = vld [vmem:[%s15786_s29 + $0x45c] sm:$0xf0]  ;;  %v14346_v27 = vld [vmem:[#allocation2 + $0x430] sm:$0xff] }
 0x878   : > { %9291 = vmatpush.bf16.msra.mxu0 %v14346_v27 }
 0x879   : > { %v7923_v40 = vadd.f32 %v7922_v6, %v7754_v19  ;;  %v11135_v6 = vor.u32 %v13760_v7, %v11134_v3  ;;  %v11198_v7 = vld [vmem:[%s15786_s29 + $0x418] sm:$0xf] }
 0x87a   : > { %v8093_v10 = vpop.f32.mrf.mxu0  ;;  %v8262_v5 = vpop.f32.mrf.mxu1 }
 0x87b   : > { %v8092_v48 = vadd.f32 %v8091_v37, %v7923_v40 }
 0x87d   : > { %v17374_v11 = vadd.f32 %v8260_v45, %v8092_v48  ;;  %v14338_v45 = vld [vmem:[#allocation2 + $0x3d0] sm:$0xff] }
 0x87e   : > { %v7755_v30 = vpop.f32.mrf.mxu2  ;;  %v7924_v58 = vpop.f32.mrf.mxu3  ;;  %9122 = vmatpush.bf16.msra.mxu3 %v14338_v45 }
 0x87f   : > { %v7756_v8 = vadd.f32 %v7755_v30, %v18515_v49  ;;  %v13768_v30 = vld [vmem:[%s15786_s29 + $0x41c] sm:$0xf]  ;;  %v13778_v49 = vld [vmem:[%s15786_s29 + $0x464] sm:$0xf0] }
 0x881   : > { %v7925_v19 = vadd.f32 %v7924_v58, %v7756_v8  ;;  %v11200_v58 = vld [vmem:[%s15786_s29 + $0x460] sm:$0xf0] }
 0x882   : > { %v8096_v37 = vpop.f32.mrf.mxu0  ;;  %v8265_v40 = vpop.f32.mrf.mxu1  ;;  %v11203_v45 = vor.u32 %v13768_v30, %v11200_v58 }
 0x883   : > { %v8094_v54 = vadd.f32 %v8093_v10, %v7925_v19  ;;  %8313 = vmatmul.bf16.gmra.mxu2 %v11127_v47  ;;  %8482 = vmatmul.bf16.gmra.mxu3 %v11131_v18  ;;  %v11199_v19 = vor.u32 %v13777_v60, %v11198_v7 }
 0x885   : > { %8651 = vmatmul.bf16.gmra.mxu0 %v11135_v6  ;;  %8820 = vmatmul.bf16.gmra.mxu1 %v11139_v62  ;;  %v17377_v48 = vadd.f32 %v8262_v5, %v8094_v54  ;;  %v13769_v54 = vld [vmem:[%s15786_s29 + $0x424] sm:$0xf]  ;;  %v11208_v5 = vld [vmem:[%s15786_s29 + $0x468] sm:$0xf0]  ;;  %v18517_v62 = vld [vmem:[#allocation35_spill] sm:$0xff] }
 0x886   : > { %v7758_v21 = vpop.f32.mrf.mxu2  ;;  %v7927_v15 = vpop.f32.mrf.mxu3 }
 0x887   : > { %18516 = vst [vmem:[#allocation33_spill] sm:$0xff] %v17377_v48  ;;  %v7759_v47 = vadd.f32 %v7758_v21, %v16940_v29  ;;  %v11207_v21 = vor.u32 %v13778_v49, %v11206_v13  ;;  %v11270_v49 = vld [vmem:[%s15786_s29 + $0x4a8] sm:$0xf] }
 0x889   : > { %v7928_v10 = vadd.f32 %v7927_v15, %v7759_v47 }
 0x88a   : > { %v8098_v61 = vpop.f32.mrf.mxu0  ;;  %v8267_v44 = vpop.f32.mrf.mxu1 }
 0x88b   : > { %v8097_v3 = vadd.f32 %v8096_v37, %v7928_v10  ;;  %v11211_v37 = vor.u32 %v13769_v54, %v11208_v5  ;;  %v13795_v54 = vld [vmem:[%s15786_s29 + $0x4ec] sm:$0xf0]  ;;  %v13786_v5 = vld [vmem:[%s15786_s29 + $0x4ac] sm:$0xf] }
 0x88d   : > { %v17388_v8 = vadd.f32 %v8265_v40, %v8097_v3  ;;  %v14354_v40 = vld [vmem:[#allocation2 + $0x98] sm:$0xff] }
 0x88e   : > { %v7760_v18 = vpop.f32.mrf.mxu2  ;;  %v7929_v6 = vpop.f32.mrf.mxu3  ;;  %9460 = vmatpush.bf16.msra.mxu1 %v14354_v40 }
 0x88f   : > { %v7761_v29 = vadd.f32 %v7760_v18, %v18517_v62  ;;  %v11272_v18 = vld [vmem:[%s15786_s29 + $0x4f0] sm:$0xf0]  ;;  %v13796_v62 = vld [vmem:[%s15786_s29 + $0x4f4] sm:$0xf0] }
 0x891   : > { %v7930_v15 = vadd.f32 %v7929_v6, %v7761_v29  ;;  %v11278_v6 = vld [vmem:[%s15786_s29 + $0x4b0] sm:$0xf]  ;;  %v13787_v29 = vld [vmem:[%s15786_s29 + $0x4b4] sm:$0xf] }
 0x892   : > { %v8101_v47 = vpop.f32.mrf.mxu0  ;;  %v8270_v10 = vpop.f32.mrf.mxu1  ;;  %v11279_v40 = vor.u32 %v13796_v62, %v11278_v6 }
 0x893   : > { %v8099_v48 = vadd.f32 %v8098_v61, %v7930_v15  ;;  %8318 = vmatmul.bf16.gmra.mxu2 %v11199_v19  ;;  %8487 = vmatmul.bf16.gmra.mxu3 %v11203_v45  ;;  %v11280_v19 = vld [vmem:[%s15786_s29 + $0x4f8] sm:$0xf0]  ;;  %v11271_v15 = vor.u32 %v13795_v54, %v11270_v49 }
 0x895   : > { %8656 = vmatmul.bf16.gmra.mxu0 %v11207_v21  ;;  %8825 = vmatmul.bf16.gmra.mxu1 %v11211_v37  ;;  %v17391_v3 = vadd.f32 %v8267_v44, %v8099_v48  ;;  %v18518_v21 = vld [vmem:[#allocation36_spill] sm:$0xff] }
 0x896   : > { %v7763_v7 = vpop.f32.mrf.mxu2  ;;  %v7932_v60 = vpop.f32.mrf.mxu3 }
 0x897   : > { %v7764_v27 = vadd.f32 %v7763_v7, %v16954_v2  ;;  %v11275_v2 = vor.u32 %v13786_v5, %v11272_v18  ;;  %v11283_v7 = vor.u32 %v13787_v29, %v11280_v19  ;;  %v13813_v29 = vld [vmem:[%s15786_s29 + $0x57c] sm:$0xf0]  ;;  %v13804_v19 = vld [vmem:[%s15786_s29 + $0x53c] sm:$0xf] }
 0x899   : > { %v7933_v61 = vadd.f32 %v7932_v60, %v7764_v27 }
 0x89a   : > { %v8103_v30 = vpop.f32.mrf.mxu0  ;;  %v8272_v58 = vpop.f32.mrf.mxu1 }
 0x89b   : > { %v8102_v13 = vadd.f32 %v8101_v47, %v7933_v61 }
 0x89d   : > { %v17402_v45 = vadd.f32 %v8270_v10, %v8102_v13 }
 0x89e   : > { %v7765_v48 = vpop.f32.mrf.mxu2  ;;  %v7934_v44 = vpop.f32.mrf.mxu3 }
 0x89f   : > { %v7766_v37 = vadd.f32 %v7765_v48, %v18518_v21  ;;  %v11344_v48 = vld [vmem:[%s15786_s29 + $0x580] sm:$0xf0]  ;;  %v13814_v21 = vld [vmem:[%s15786_s29 + $0x584] sm:$0xf0] }
 0x8a1   : > { %v7935_v60 = vadd.f32 %v7934_v44, %v7766_v37  ;;  %v11350_v44 = vld [vmem:[%s15786_s29 + $0x540] sm:$0xf]  ;;  %v13805_v37 = vld [vmem:[%s15786_s29 + $0x544] sm:$0xf] }
 0x8a2   : > { %v8622_v47 = vpop.f32.mrf.mxu0  ;;  %v8791_v27 = vpop.f32.mrf.mxu1 }
 0x8a3   : > { %v8104_v61 = vadd.f32 %v8103_v30, %v7935_v60  ;;  %8323 = vmatmul.bf16.gmra.mxu2 %v11271_v15  ;;  %8492 = vmatmul.bf16.gmra.mxu3 %v11275_v2  ;;  %v11342_v30 = vld [vmem:[%s15786_s29 + $0x538] sm:$0xf]  ;;  %v11352_v15 = vld [vmem:[%s15786_s29 + $0x588] sm:$0xf0] }
 0x8a5   : > { %8661 = vmatmul.bf16.gmra.mxu0 %v11279_v40  ;;  %8830 = vmatmul.bf16.gmra.mxu1 %v11283_v7  ;;  %v17405_v10 = vadd.f32 %v8272_v58, %v8104_v61  ;;  %v18520_v7 = vld [vmem:[#allocation37_spill] sm:$0xff]  ;;  %v11343_v61 = vor.u32 %v13813_v29, %v11342_v30 }
 0x8a6   : > { %v8284_v13 = vpop.f32.mrf.mxu2  ;;  %v8453_v49 = vpop.f32.mrf.mxu3 }
 0x8a7   : > { %18519 = vst [vmem:[#allocation34_spill] sm:$0xff] %v17405_v10  ;;  %v8285_v54 = vadd.f32 %v8284_v13, %v16968_v35  ;;  %v11347_v35 = vor.u32 %v13804_v19, %v11344_v48  ;;  %v11351_v13 = vor.u32 %v13814_v21, %v11350_v44 }
 0x8a9   : > { %v8454_v5 = vadd.f32 %v8453_v49, %v8285_v54  ;;  %v11355_v49 = vor.u32 %v13805_v37, %v11352_v15  ;;  %v13831_v37 = vld [vmem:[%s15786_s29 + $0x60c] sm:$0xf0]  ;;  %v13822_v15 = vld [vmem:[%s15786_s29 + $0x5cc] sm:$0xf] }
 0x8aa   : > { %v8624_v18 = vpop.f32.mrf.mxu0  ;;  %v8793_v6 = vpop.f32.mrf.mxu1 }
 0x8ab   : > { %v8623_v62 = vadd.f32 %v8622_v47, %v8454_v5 }
 0x8ad   : > { %v17416_v2 = vadd.f32 %v8791_v27, %v8623_v62 }
 0x8ae   : > { %v8286_v58 = vpop.f32.mrf.mxu2  ;;  %v8455_v40 = vpop.f32.mrf.mxu3 }
 0x8af   : > { %v8287_v60 = vadd.f32 %v8286_v58, %v18520_v7  ;;  %v11416_v58 = vld [vmem:[%s15786_s29 + $0x610] sm:$0xf0]  ;;  %v13832_v7 = vld [vmem:[%s15786_s29 + $0x614] sm:$0xf0] }
 0x8b1   : > { %v8456_v54 = vadd.f32 %v8455_v40, %v8287_v60  ;;  %v11422_v40 = vld [vmem:[%s15786_s29 + $0x5d0] sm:$0xf]  ;;  %v13823_v60 = vld [vmem:[%s15786_s29 + $0x5d4] sm:$0xf] }
 0x8b2   : > { %v8627_v47 = vpop.f32.mrf.mxu0  ;;  %v8796_v5 = vpop.f32.mrf.mxu1 }
 0x8b3   : > { %v8625_v10 = vadd.f32 %v8624_v18, %v8456_v54  ;;  %8328 = vmatmul.bf16.gmra.mxu2 %v11343_v61  ;;  %8497 = vmatmul.bf16.gmra.mxu3 %v11347_v35  ;;  %v11414_v18 = vld [vmem:[%s15786_s29 + $0x5c8] sm:$0xf]  ;;  %v11424_v61 = vld [vmem:[%s15786_s29 + $0x618] sm:$0xf0]  ;;  %v11423_v54 = vor.u32 %v13832_v7, %v11422_v40  ;;  %v11486_v7 = vld [vmem:[%s15786_s29 + $0x658] sm:$0xf] }
 0x8b5   : > { %8666 = vmatmul.bf16.gmra.mxu0 %v11351_v13  ;;  %8835 = vmatmul.bf16.gmra.mxu1 %v11355_v49  ;;  %v17419_v27 = vadd.f32 %v8793_v6, %v8625_v10  ;;  %v11415_v49 = vor.u32 %v13831_v37, %v11414_v18 }
 0x8b6   : > { %v8289_v62 = vpop.f32.mrf.mxu2  ;;  %v8458_v30 = vpop.f32.mrf.mxu3 }
 0x8b7   : > { %18521 = vst [vmem:[#allocation35_spill] sm:$0xff] %v17419_v27  ;;  %v8290_v29 = vadd.f32 %v8289_v62, %v16982_v31  ;;  %v11419_v31 = vor.u32 %v13822_v15, %v11416_v58  ;;  %v11427_v62 = vor.u32 %v13823_v60, %v11424_v61  ;;  %v14329_v27 = vld [vmem:[#allocation2 + $0x360] sm:$0xff]  ;;  %v14345_v61 = vld [vmem:[#allocation2 + $0x388] sm:$0xff] }
 0x8b8   : > { %8954 = vmatpush.bf16.msra.mxu2 %v14329_v27  ;;  %v13849_v60 = vld [vmem:[%s15786_s29 + $0x69c] sm:$0xf0]  ;;  %9292 = vmatpush.bf16.msra.mxu0 %v14345_v61 }
 0x8b9   : > { %v8459_v19 = vadd.f32 %v8458_v30, %v8290_v29  ;;  %v11494_v27 = vld [vmem:[%s15786_s29 + $0x660] sm:$0xf] }
 0x8ba   : > { %v8629_v48 = vpop.f32.mrf.mxu0  ;;  %v8798_v44 = vpop.f32.mrf.mxu1 }
 0x8bb   : > { %v8628_v21 = vadd.f32 %v8627_v47, %v8459_v19 }
 0x8bd   : > { %v17430_v35 = vadd.f32 %v8796_v5, %v8628_v21  ;;  %v14337_v5 = vld [vmem:[#allocation2 + $0x190] sm:$0xff] }
 0x8be   : > { %v8291_v10 = vpop.f32.mrf.mxu2  ;;  %v8460_v6 = vpop.f32.mrf.mxu3  ;;  %9123 = vmatpush.bf16.msra.mxu3 %v14337_v5 }
 0x8bf   : > { %v8292_v13 = vadd.f32 %v8291_v10, %v16985_v56  ;;  %v13840_v10 = vld [vmem:[%s15786_s29 + $0x65c] sm:$0xf] }
 0x8c1   : > { %v8461_v30 = vadd.f32 %v8460_v6, %v8292_v13  ;;  %v11488_v6 = vld [vmem:[%s15786_s29 + $0x6a0] sm:$0xf0]  ;;  %v13850_v13 = vld [vmem:[%s15786_s29 + $0x6a4] sm:$0xf0] }
 0x8c2   : > { %v8632_v47 = vpop.f32.mrf.mxu0  ;;  %v8801_v29 = vpop.f32.mrf.mxu1  ;;  %v11495_v5 = vor.u32 %v13850_v13, %v11494_v27  ;;  %v11558_v27 = vld [vmem:[%s15786_s29 + $0x6e8] sm:$0xf]  ;;  %v13867_v13 = vld [vmem:[%s15786_s29 + $0x72c] sm:$0xf0] }
 0x8c3   : > { %v8630_v19 = vadd.f32 %v8629_v48, %v8461_v30  ;;  %8333 = vmatmul.bf16.gmra.mxu2 %v11415_v49  ;;  %8502 = vmatmul.bf16.gmra.mxu3 %v11419_v31  ;;  %v11496_v49 = vld [vmem:[%s15786_s29 + $0x6a8] sm:$0xf0]  ;;  %v11487_v30 = vor.u32 %v13849_v60, %v11486_v7 }
 0x8c5   : > { %8671 = vmatmul.bf16.gmra.mxu0 %v11423_v54  ;;  %8840 = vmatmul.bf16.gmra.mxu1 %v11427_v62  ;;  %v17433_v56 = vadd.f32 %v8798_v44, %v8630_v19  ;;  %v13841_v44 = vld [vmem:[%s15786_s29 + $0x664] sm:$0xf]  ;;  %v11491_v19 = vor.u32 %v13840_v10, %v11488_v6 }
 0x8c6   : > { %v8294_v21 = vpop.f32.mrf.mxu2  ;;  %v8463_v18 = vpop.f32.mrf.mxu3 }
 0x8c7   : > { %v8295_v48 = vadd.f32 %v8294_v21, %v16996_v32 }
 0x8c9   : > { %v8464_v37 = vadd.f32 %v8463_v18, %v8295_v48 }
 0x8ca   : > { %v8634_v15 = vpop.f32.mrf.mxu0  ;;  %v8803_v58 = vpop.f32.mrf.mxu1 }
 0x8cb   : > { %v8633_v40 = vadd.f32 %v8632_v47, %v8464_v37  ;;  %v11499_v47 = vor.u32 %v13841_v44, %v11496_v49  ;;  %v13858_v44 = vld [vmem:[%s15786_s29 + $0x6ec] sm:$0xf]  ;;  %v11560_v49 = vld [vmem:[%s15786_s29 + $0x730] sm:$0xf0] }
 0x8cd   : > { %v17444_v31 = vadd.f32 %v8801_v29, %v8633_v40  ;;  %v14353_v29 = vld [vmem:[#allocation2 + $0x3a8] sm:$0xff] }
 0x8ce   : > { %v8296_v54 = vpop.f32.mrf.mxu2  ;;  %v8465_v62 = vpop.f32.mrf.mxu3  ;;  %9461 = vmatpush.bf16.msra.mxu1 %v14353_v29 }
 0x8cf   : > { %v8297_v32 = vadd.f32 %v8296_v54, %v16999_v24  ;;  %v11566_v54 = vld [vmem:[%s15786_s29 + $0x6f0] sm:$0xf] }
 0x8d1   : > { %v8466_v21 = vadd.f32 %v8465_v62, %v8297_v32  ;;  %v13868_v62 = vld [vmem:[%s15786_s29 + $0x734] sm:$0xf0]  ;;  %v13859_v32 = vld [vmem:[%s15786_s29 + $0x6f4] sm:$0xf] }
 0x8d2   : > { %v8637_v18 = vpop.f32.mrf.mxu0  ;;  %v8806_v48 = vpop.f32.mrf.mxu1 }
 0x8d3   : > { %v8635_v37 = vadd.f32 %v8634_v15, %v8466_v21  ;;  %8338 = vmatmul.bf16.gmra.mxu2 %v11487_v30  ;;  %8507 = vmatmul.bf16.gmra.mxu3 %v11491_v19  ;;  %v11568_v30 = vld [vmem:[%s15786_s29 + $0x738] sm:$0xf0]  ;;  %v11559_v21 = vor.u32 %v13867_v13, %v11558_v27 }
 0x8d4   : > { %v11571_v29 = vor.u32 %v13859_v32, %v11568_v30  ;;  %v11632_v32 = vld [vmem:[%s15786_s29 + $0x7c0] sm:$0xf0]  ;;  %v11638_v30 = vld [vmem:[%s15786_s29 + $0x780] sm:$0xf] }
 0x8d5   : > { %8676 = vmatmul.bf16.gmra.mxu0 %v11495_v5  ;;  %8845 = vmatmul.bf16.gmra.mxu1 %v11499_v47  ;;  %v17447_v24 = vadd.f32 %v8803_v58, %v8635_v37  ;;  %v11567_v37 = vor.u32 %v13868_v62, %v11566_v54  ;;  %v13885_v54 = vld [vmem:[%s15786_s29 + $0x7bc] sm:$0xf0]  ;;  %v13876_v62 = vld [vmem:[%s15786_s29 + $0x77c] sm:$0xf] }
 0x8d6   : > { %v8299_v40 = vpop.f32.mrf.mxu2  ;;  %v8468_v7 = vpop.f32.mrf.mxu3 }
 0x8d7   : > { %v8300_v60 = vadd.f32 %v8299_v40, %v17010_v43  ;;  %v11563_v43 = vor.u32 %v13858_v44, %v11560_v49 }
 0x8d9   : > { %v8469_v15 = vadd.f32 %v8468_v7, %v8300_v60 }
 0x8da   : > { %v8639_v61 = vpop.f32.mrf.mxu0  ;;  %v8808_v10 = vpop.f32.mrf.mxu1 }
 0x8db   : > { %v8638_v6 = vadd.f32 %v8637_v18, %v8469_v15 }
 0x8dd   : > { %v17458_v19 = vadd.f32 %v8806_v48, %v8638_v6 }
 0x8de   : > { %v8301_v58 = vpop.f32.mrf.mxu2  ;;  %v8470_v5 = vpop.f32.mrf.mxu3 }
 0x8df   : > { %v8302_v47 = vadd.f32 %v8301_v58, %v17013_v51  ;;  %v13886_v58 = vld [vmem:[%s15786_s29 + $0x7c4] sm:$0xf0] }
 0x8e1   : > { %v8471_v40 = vadd.f32 %v8470_v5, %v8302_v47  ;;  %v13877_v5 = vld [vmem:[%s15786_s29 + $0x784] sm:$0xf]  ;;  %v11640_v47 = vld [vmem:[%s15786_s29 + $0x7c8] sm:$0xf0] }
 0x8e2   : > { %v8642_v18 = vpop.f32.mrf.mxu0  ;;  %v8811_v7 = vpop.f32.mrf.mxu1 }
 0x8e3   : > { %v8640_v60 = vadd.f32 %v8639_v61, %v8471_v40  ;;  %8343 = vmatmul.bf16.gmra.mxu2 %v11559_v21  ;;  %8512 = vmatmul.bf16.gmra.mxu3 %v11563_v43  ;;  %v11630_v61 = vld [vmem:[%s15786_s29 + $0x778] sm:$0xf]  ;;  %v11639_v40 = vor.u32 %v13886_v58, %v11638_v30  ;;  %v13903_v30 = vld [vmem:[%s15786_s29 + $0x84c] sm:$0xf0]  ;;  %v13894_v58 = vld [vmem:[%s15786_s29 + $0x80c] sm:$0xf] }
 0x8e5   : > { %8681 = vmatmul.bf16.gmra.mxu0 %v11567_v37  ;;  %8850 = vmatmul.bf16.gmra.mxu1 %v11571_v29  ;;  %v17461_v51 = vadd.f32 %v8808_v10, %v8640_v60  ;;  %v11631_v29 = vor.u32 %v13885_v54, %v11630_v61  ;;  %v11643_v60 = vor.u32 %v13877_v5, %v11640_v47  ;;  %v11704_v5 = vld [vmem:[%s15786_s29 + $0x850] sm:$0xf0]  ;;  %v11710_v47 = vld [vmem:[%s15786_s29 + $0x810] sm:$0xf] }
 0x8e6   : > { %v8304_v48 = vpop.f32.mrf.mxu2  ;;  %v8473_v15 = vpop.f32.mrf.mxu3 }
 0x8e7   : > { %v8305_v6 = vadd.f32 %v8304_v48, %v17024_v50  ;;  %v11635_v50 = vor.u32 %v13876_v62, %v11632_v32 }
 0x8e9   : > { %v8474_v27 = vadd.f32 %v8473_v15, %v8305_v6 }
 0x8ea   : > { %v8644_v13 = vpop.f32.mrf.mxu0  ;;  %v8813_v44 = vpop.f32.mrf.mxu1 }
 0x8eb   : > { %v8643_v49 = vadd.f32 %v8642_v18, %v8474_v27 }
 0x8ed   : > { %v17472_v21 = vadd.f32 %v8811_v7, %v8643_v49 }
 0x8ee   : > { %v8306_v10 = vpop.f32.mrf.mxu2  ;;  %v8475_v43 = vpop.f32.mrf.mxu3 }
 0x8ef   : > { %v8307_v37 = vadd.f32 %v8306_v10, %v17027_v22  ;;  %v13904_v10 = vld [vmem:[%s15786_s29 + $0x854] sm:$0xf0] }
 0x8f1   : > { %v8476_v48 = vadd.f32 %v8475_v43, %v8307_v37  ;;  %v13895_v43 = vld [vmem:[%s15786_s29 + $0x814] sm:$0xf]  ;;  %v11712_v37 = vld [vmem:[%s15786_s29 + $0x858] sm:$0xf0] }
 0x8f2   : > { %v8647_v18 = vpop.f32.mrf.mxu0  ;;  %v8816_v15 = vpop.f32.mrf.mxu1 }
 0x8f3   : > { %v8645_v6 = vadd.f32 %v8644_v13, %v8476_v48  ;;  %8348 = vmatmul.bf16.gmra.mxu2 %v11631_v29  ;;  %8517 = vmatmul.bf16.gmra.mxu3 %v11635_v50  ;;  %v11702_v13 = vld [vmem:[%s15786_s29 + $0x808] sm:$0xf]  ;;  %v11711_v48 = vor.u32 %v13904_v10, %v11710_v47  ;;  %v11774_v10 = vld [vmem:[%s15786_s29 + $0x898] sm:$0xf] }
 0x8f5   : > { %8686 = vmatmul.bf16.gmra.mxu0 %v11639_v40  ;;  %8855 = vmatmul.bf16.gmra.mxu1 %v11643_v60  ;;  %v17475_v22 = vadd.f32 %v8813_v44, %v8645_v6  ;;  %v11703_v60 = vor.u32 %v13903_v30, %v11702_v13  ;;  %v11715_v6 = vor.u32 %v13895_v43, %v11712_v37  ;;  %v13921_v43 = vld [vmem:[%s15786_s29 + $0x8dc] sm:$0xf0]  ;;  %v14344_v37 = vld [vmem:[#allocation2 + $0x38] sm:$0xff] }
 0x8f6   : > { %v8309_v7 = vpop.f32.mrf.mxu2  ;;  %v8478_v27 = vpop.f32.mrf.mxu3  ;;  %9293 = vmatpush.bf16.msra.mxu0 %v14344_v37 }
 0x8f7   : > { %v8310_v49 = vadd.f32 %v8309_v7, %v17038_v33  ;;  %v11707_v33 = vor.u32 %v13894_v58, %v11704_v5 }
 0x8f9   : > { %v8479_v61 = vadd.f32 %v8478_v27, %v8310_v49 }
 0x8fa   : > { %v8649_v54 = vpop.f32.mrf.mxu0  ;;  %v8818_v62 = vpop.f32.mrf.mxu1 }
 0x8fb   : > { %v8648_v32 = vadd.f32 %v8647_v18, %v8479_v61  ;;  %v14328_v61 = vld [vmem:[#allocation2 + $0x158] sm:$0xff] }
 0x8fc   : > { %8955 = vmatpush.bf16.msra.mxu2 %v14328_v61 }
 0x8fd   : > { %v17486_v29 = vadd.f32 %v8816_v15, %v8648_v32  ;;  %v14336_v15 = vld [vmem:[#allocation2 + $0x1c8] sm:$0xff] }
 0x8fe   : > { %v8311_v44 = vpop.f32.mrf.mxu2  ;;  %v8480_v50 = vpop.f32.mrf.mxu3  ;;  %9124 = vmatpush.bf16.msra.mxu3 %v14336_v15 }
 0x8ff   : > { %v8312_v40 = vadd.f32 %v8311_v44, %v17041_v14  ;;  %v13912_v44 = vld [vmem:[%s15786_s29 + $0x89c] sm:$0xf] }
 0x901   : > { %v8481_v7 = vadd.f32 %v8480_v50, %v8312_v40  ;;  %v11776_v50 = vld [vmem:[%s15786_s29 + $0x8e0] sm:$0xf0]  ;;  %v11782_v40 = vld [vmem:[%s15786_s29 + $0x8a0] sm:$0xf] }
 0x902   : > { %v8652_v18 = vpop.f32.mrf.mxu0  ;;  %v8821_v27 = vpop.f32.mrf.mxu1  ;;  %v11779_v61 = vor.u32 %v13912_v44, %v11776_v50 }
 0x903   : > { %v8650_v49 = vadd.f32 %v8649_v54, %v8481_v7  ;;  %8353 = vmatmul.bf16.gmra.mxu2 %v11703_v60  ;;  %8522 = vmatmul.bf16.gmra.mxu3 %v11707_v33  ;;  %v13922_v60 = vld [vmem:[%s15786_s29 + $0x8e4] sm:$0xf0]  ;;  %v11784_v33 = vld [vmem:[%s15786_s29 + $0x8e8] sm:$0xf0] }
 0x904   : > { %v11783_v15 = vor.u32 %v13922_v60, %v11782_v40  ;;  %v11846_v40 = vld [vmem:[%s15786_s29 + $0x928] sm:$0xf]  ;;  %v13939_v60 = vld [vmem:[%s15786_s29 + $0x96c] sm:$0xf0] }
 0x905   : > { %8691 = vmatmul.bf16.gmra.mxu0 %v11711_v48  ;;  %8860 = vmatmul.bf16.gmra.mxu1 %v11715_v6  ;;  %v17489_v14 = vadd.f32 %v8818_v62, %v8650_v49  ;;  %v13913_v62 = vld [vmem:[%s15786_s29 + $0x8a4] sm:$0xf]  ;;  %v11775_v49 = vor.u32 %v13921_v43, %v11774_v10 }
 0x906   : > { %v8314_v32 = vpop.f32.mrf.mxu2  ;;  %v8483_v13 = vpop.f32.mrf.mxu3 }
 0x907   : > { %v8315_v54 = vadd.f32 %v8314_v32, %v17052_v12 }
 0x909   : > { %v8484_v30 = vadd.f32 %v8483_v13, %v8315_v54 }
 0x90a   : > { %v8654_v58 = vpop.f32.mrf.mxu0  ;;  %v8823_v5 = vpop.f32.mrf.mxu1 }
 0x90b   : > { %v8653_v47 = vadd.f32 %v8652_v18, %v8484_v30  ;;  %v11787_v18 = vor.u32 %v13913_v62, %v11784_v33  ;;  %v13930_v62 = vld [vmem:[%s15786_s29 + $0x92c] sm:$0xf]  ;;  %v11848_v33 = vld [vmem:[%s15786_s29 + $0x970] sm:$0xf0] }
 0x90d   : > { %v17500_v48 = vadd.f32 %v8821_v27, %v8653_v47  ;;  %v14352_v27 = vld [vmem:[#allocation2 + $0x150] sm:$0xff] }
 0x90e   : > { %v8316_v6 = vpop.f32.mrf.mxu2  ;;  %v8485_v7 = vpop.f32.mrf.mxu3  ;;  %9462 = vmatpush.bf16.msra.mxu1 %v14352_v27 }
 0x90f   : > { %v8317_v12 = vadd.f32 %v8316_v6, %v17055_v34  ;;  %v11854_v6 = vld [vmem:[%s15786_s29 + $0x930] sm:$0xf] }
 0x911   : > { %v8486_v32 = vadd.f32 %v8485_v7, %v8317_v12  ;;  %v13940_v7 = vld [vmem:[%s15786_s29 + $0x974] sm:$0xf0]  ;;  %v13931_v12 = vld [vmem:[%s15786_s29 + $0x934] sm:$0xf] }
 0x912   : > { %v8657_v13 = vpop.f32.mrf.mxu0  ;;  %v8826_v54 = vpop.f32.mrf.mxu1 }
 0x913   : > { %v8655_v30 = vadd.f32 %v8654_v58, %v8486_v32  ;;  %8358 = vmatmul.bf16.gmra.mxu2 %v11775_v49  ;;  %8527 = vmatmul.bf16.gmra.mxu3 %v11779_v61  ;;  %v11856_v49 = vld [vmem:[%s15786_s29 + $0x978] sm:$0xf0]  ;;  %v11847_v32 = vor.u32 %v13939_v60, %v11846_v40 }
 0x914   : > { %v11859_v27 = vor.u32 %v13931_v12, %v11856_v49  ;;  %v11920_v12 = vld [vmem:[%s15786_s29 + $0xa00] sm:$0xf0]  ;;  %v11926_v49 = vld [vmem:[%s15786_s29 + $0x9c0] sm:$0xf] }
 0x915   : > { %8696 = vmatmul.bf16.gmra.mxu0 %v11783_v15  ;;  %8865 = vmatmul.bf16.gmra.mxu1 %v11787_v18  ;;  %v17503_v34 = vadd.f32 %v8823_v5, %v8655_v30  ;;  %v11855_v30 = vor.u32 %v13940_v7, %v11854_v6  ;;  %v13957_v6 = vld [vmem:[%s15786_s29 + $0x9fc] sm:$0xf0]  ;;  %v13948_v7 = vld [vmem:[%s15786_s29 + $0x9bc] sm:$0xf] }
 0x916   : > { %v8319_v47 = vpop.f32.mrf.mxu2  ;;  %v8488_v10 = vpop.f32.mrf.mxu3 }
 0x917   : > { %v8320_v43 = vadd.f32 %v8319_v47, %v17066_v20  ;;  %v11851_v20 = vor.u32 %v13930_v62, %v11848_v33 }
 0x919   : > { %v8489_v58 = vadd.f32 %v8488_v10, %v8320_v43 }
 0x91a   : > { %v8659_v37 = vpop.f32.mrf.mxu0  ;;  %v8828_v44 = vpop.f32.mrf.mxu1 }
 0x91b   : > { %v8658_v50 = vadd.f32 %v8657_v13, %v8489_v58 }
 0x91d   : > { %v17514_v61 = vadd.f32 %v8826_v54, %v8658_v50 }
 0x91e   : > { %v8321_v5 = vpop.f32.mrf.mxu2  ;;  %v8490_v15 = vpop.f32.mrf.mxu3 }
 0x91f   : > { %v8322_v18 = vadd.f32 %v8321_v5, %v17069_v1  ;;  %v13958_v5 = vld [vmem:[%s15786_s29 + $0xa04] sm:$0xf0] }
 0x921   : > { %v8491_v47 = vadd.f32 %v8490_v15, %v8322_v18  ;;  %v13949_v15 = vld [vmem:[%s15786_s29 + $0x9c4] sm:$0xf]  ;;  %v11928_v18 = vld [vmem:[%s15786_s29 + $0xa08] sm:$0xf0] }
 0x922   : > { %v8662_v13 = vpop.f32.mrf.mxu0  ;;  %v8831_v10 = vpop.f32.mrf.mxu1 }
 0x923   : > { %v8660_v43 = vadd.f32 %v8659_v37, %v8491_v47  ;;  %8363 = vmatmul.bf16.gmra.mxu2 %v11847_v32  ;;  %8532 = vmatmul.bf16.gmra.mxu3 %v11851_v20  ;;  %v11918_v37 = vld [vmem:[%s15786_s29 + $0x9b8] sm:$0xf]  ;;  %v11927_v47 = vor.u32 %v13958_v5, %v11926_v49  ;;  %v13975_v49 = vld [vmem:[%s15786_s29 + $0xa8c] sm:$0xf0]  ;;  %v13966_v5 = vld [vmem:[%s15786_s29 + $0xa4c] sm:$0xf] }
 0x925   : > { %8701 = vmatmul.bf16.gmra.mxu0 %v11855_v30  ;;  %8870 = vmatmul.bf16.gmra.mxu1 %v11859_v27  ;;  %v17517_v1 = vadd.f32 %v8828_v44, %v8660_v43  ;;  %v11919_v27 = vor.u32 %v13957_v6, %v11918_v37  ;;  %v11931_v43 = vor.u32 %v13949_v15, %v11928_v18  ;;  %v11992_v15 = vld [vmem:[%s15786_s29 + $0xa90] sm:$0xf0]  ;;  %v11998_v18 = vld [vmem:[%s15786_s29 + $0xa50] sm:$0xf] }
 0x926   : > { %v8324_v54 = vpop.f32.mrf.mxu2  ;;  %v8493_v58 = vpop.f32.mrf.mxu3 }
 0x927   : > { %v8325_v50 = vadd.f32 %v8324_v54, %v17080_v53  ;;  %v11923_v53 = vor.u32 %v13948_v7, %v11920_v12 }
 0x929   : > { %v8494_v40 = vadd.f32 %v8493_v58, %v8325_v50 }
 0x92a   : > { %v8664_v60 = vpop.f32.mrf.mxu0  ;;  %v8833_v62 = vpop.f32.mrf.mxu1 }
 0x92b   : > { %v8663_v33 = vadd.f32 %v8662_v13, %v8494_v40 }
 0x92d   : > { %v17528_v32 = vadd.f32 %v8831_v10, %v8663_v33 }
 0x92e   : > { %v8326_v44 = vpop.f32.mrf.mxu2  ;;  %v8495_v20 = vpop.f32.mrf.mxu3 }
 0x92f   : > { %v8327_v30 = vadd.f32 %v8326_v44, %v17083_v52  ;;  %v13976_v44 = vld [vmem:[%s15786_s29 + $0xa94] sm:$0xf0] }
 0x931   : > { %v8496_v54 = vadd.f32 %v8495_v20, %v8327_v30  ;;  %v13967_v20 = vld [vmem:[%s15786_s29 + $0xa54] sm:$0xf]  ;;  %v12000_v30 = vld [vmem:[%s15786_s29 + $0xa98] sm:$0xf0] }
 0x932   : > { %v8667_v13 = vpop.f32.mrf.mxu0  ;;  %v8836_v58 = vpop.f32.mrf.mxu1 }
 0x933   : > { %v8665_v50 = vadd.f32 %v8664_v60, %v8496_v54  ;;  %8368 = vmatmul.bf16.gmra.mxu2 %v11919_v27  ;;  %8537 = vmatmul.bf16.gmra.mxu3 %v11923_v53  ;;  %v11990_v60 = vld [vmem:[%s15786_s29 + $0xa48] sm:$0xf]  ;;  %v11999_v54 = vor.u32 %v13976_v44, %v11998_v18  ;;  %v12062_v44 = vld [vmem:[%s15786_s29 + $0xad8] sm:$0xf] }
 0x935   : > { %8706 = vmatmul.bf16.gmra.mxu0 %v11927_v47  ;;  %8875 = vmatmul.bf16.gmra.mxu1 %v11931_v43  ;;  %v17531_v52 = vadd.f32 %v8833_v62, %v8665_v50  ;;  %v11991_v43 = vor.u32 %v13975_v49, %v11990_v60  ;;  %v12003_v50 = vor.u32 %v13967_v20, %v12000_v30  ;;  %v13993_v20 = vld [vmem:[%s15786_s29 + $0xb1c] sm:$0xf0] }
 0x936   : > { %v8329_v10 = vpop.f32.mrf.mxu2  ;;  %v8498_v40 = vpop.f32.mrf.mxu3  ;;  %v14343_v30 = vld [vmem:[#allocation2 + $0x1e0] sm:$0xff] }
 0x937   : > { %v8330_v33 = vadd.f32 %v8329_v10, %v17094_v59  ;;  %v11995_v59 = vor.u32 %v13966_v5, %v11992_v15  ;;  %9294 = vmatpush.bf16.msra.mxu0 %v14343_v30 }
 0x939   : > { %v8499_v37 = vadd.f32 %v8498_v40, %v8330_v33 }
 0x93a   : > { %v8669_v6 = vpop.f32.mrf.mxu0  ;;  %v8838_v7 = vpop.f32.mrf.mxu1 }
 0x93b   : > { %v8668_v12 = vadd.f32 %v8667_v13, %v8499_v37  ;;  %v14327_v37 = vld [vmem:[#allocation2 + $0x440] sm:$0xff] }
 0x93c   : > { %8956 = vmatpush.bf16.msra.mxu2 %v14327_v37 }
 0x93d   : > { %v17542_v27 = vadd.f32 %v8836_v58, %v8668_v12  ;;  %v14335_v58 = vld [vmem:[#allocation2 + $0x250] sm:$0xff] }
 0x93e   : > { %v8331_v62 = vpop.f32.mrf.mxu2  ;;  %v8500_v53 = vpop.f32.mrf.mxu3  ;;  %9125 = vmatpush.bf16.msra.mxu3 %v14335_v58 }
 0x93f   : > { %v8332_v47 = vadd.f32 %v8331_v62, %v17097_v41  ;;  %v13984_v62 = vld [vmem:[%s15786_s29 + $0xadc] sm:$0xf] }
 0x941   : > { %v8501_v10 = vadd.f32 %v8500_v53, %v8332_v47  ;;  %v12064_v53 = vld [vmem:[%s15786_s29 + $0xb20] sm:$0xf0]  ;;  %v12070_v47 = vld [vmem:[%s15786_s29 + $0xae0] sm:$0xf] }
 0x942   : > { %v8672_v13 = vpop.f32.mrf.mxu0  ;;  %v8841_v40 = vpop.f32.mrf.mxu1  ;;  %v12067_v37 = vor.u32 %v13984_v62, %v12064_v53 }
 0x943   : > { %v8670_v33 = vadd.f32 %v8669_v6, %v8501_v10  ;;  %8373 = vmatmul.bf16.gmra.mxu2 %v11991_v43  ;;  %8542 = vmatmul.bf16.gmra.mxu3 %v11995_v59  ;;  %v13994_v43 = vld [vmem:[%s15786_s29 + $0xb24] sm:$0xf0]  ;;  %v12072_v59 = vld [vmem:[%s15786_s29 + $0xb28] sm:$0xf0] }
 0x944   : > { %v12071_v58 = vor.u32 %v13994_v43, %v12070_v47  ;;  %v12134_v47 = vld [vmem:[%s15786_s29 + $0xb68] sm:$0xf]  ;;  %v14011_v43 = vld [vmem:[%s15786_s29 + $0xbac] sm:$0xf0] }
 0x945   : > { %8711 = vmatmul.bf16.gmra.mxu0 %v11999_v54  ;;  %8880 = vmatmul.bf16.gmra.mxu1 %v12003_v50  ;;  %v17545_v41 = vadd.f32 %v8838_v7, %v8670_v33  ;;  %v13985_v7 = vld [vmem:[%s15786_s29 + $0xae4] sm:$0xf]  ;;  %v12063_v33 = vor.u32 %v13993_v20, %v12062_v44 }
 0x946   : > { %v8334_v12 = vpop.f32.mrf.mxu2  ;;  %v8503_v60 = vpop.f32.mrf.mxu3 }
 0x947   : > { %v8335_v6 = vadd.f32 %v8334_v12, %v17108_v17 }
 0x949   : > { %v8504_v49 = vadd.f32 %v8503_v60, %v8335_v6 }
 0x94a   : > { %v8674_v5 = vpop.f32.mrf.mxu0  ;;  %v8843_v15 = vpop.f32.mrf.mxu1 }
 0x94b   : > { %v8673_v18 = vadd.f32 %v8672_v13, %v8504_v49  ;;  %v12075_v13 = vor.u32 %v13985_v7, %v12072_v59  ;;  %v14002_v7 = vld [vmem:[%s15786_s29 + $0xb6c] sm:$0xf]  ;;  %v12136_v59 = vld [vmem:[%s15786_s29 + $0xbb0] sm:$0xf0] }
 0x94d   : > { %v17556_v54 = vadd.f32 %v8841_v40, %v8673_v18  ;;  %v14351_v40 = vld [vmem:[#allocation2 + $0x40] sm:$0xff] }
 0x94e   : > { %v8336_v50 = vpop.f32.mrf.mxu2  ;;  %v8505_v10 = vpop.f32.mrf.mxu3  ;;  %9463 = vmatpush.bf16.msra.mxu1 %v14351_v40 }
 0x94f   : > { %v8337_v17 = vadd.f32 %v8336_v50, %v17111_v42  ;;  %v12142_v50 = vld [vmem:[%s15786_s29 + $0xb70] sm:$0xf] }
 0x951   : > { %v8506_v12 = vadd.f32 %v8505_v10, %v8337_v17  ;;  %v14012_v10 = vld [vmem:[%s15786_s29 + $0xbb4] sm:$0xf0]  ;;  %v14003_v17 = vld [vmem:[%s15786_s29 + $0xb74] sm:$0xf] }
 0x952   : > { %v8677_v60 = vpop.f32.mrf.mxu0  ;;  %v8846_v6 = vpop.f32.mrf.mxu1 }
 0x953   : > { %v8675_v49 = vadd.f32 %v8674_v5, %v8506_v12  ;;  %8378 = vmatmul.bf16.gmra.mxu2 %v12063_v33  ;;  %8547 = vmatmul.bf16.gmra.mxu3 %v12067_v37  ;;  %v12144_v33 = vld [vmem:[%s15786_s29 + $0xbb8] sm:$0xf0]  ;;  %v12135_v12 = vor.u32 %v14011_v43, %v12134_v47 }
 0x954   : > { %v12147_v40 = vor.u32 %v14003_v17, %v12144_v33  ;;  %v12208_v17 = vld [vmem:[%s15786_s29 + $0xc40] sm:$0xf0]  ;;  %v12214_v33 = vld [vmem:[%s15786_s29 + $0xc00] sm:$0xf] }
 0x955   : > { %8716 = vmatmul.bf16.gmra.mxu0 %v12071_v58  ;;  %8885 = vmatmul.bf16.gmra.mxu1 %v12075_v13  ;;  %v17559_v42 = vadd.f32 %v8843_v15, %v8675_v49  ;;  %v12143_v49 = vor.u32 %v14012_v10, %v12142_v50  ;;  %v14029_v50 = vld [vmem:[%s15786_s29 + $0xc3c] sm:$0xf0]  ;;  %v14020_v10 = vld [vmem:[%s15786_s29 + $0xbfc] sm:$0xf] }
 0x956   : > { %v8339_v18 = vpop.f32.mrf.mxu2  ;;  %v8508_v44 = vpop.f32.mrf.mxu3 }
 0x957   : > { %v8340_v20 = vadd.f32 %v8339_v18, %v17122_v39  ;;  %v12139_v39 = vor.u32 %v14002_v7, %v12136_v59 }
 0x959   : > { %v8509_v5 = vadd.f32 %v8508_v44, %v8340_v20 }
 0x95a   : > { %v8679_v30 = vpop.f32.mrf.mxu0  ;;  %v8848_v62 = vpop.f32.mrf.mxu1 }
 0x95b   : > { %v8678_v53 = vadd.f32 %v8677_v60, %v8509_v5 }
 0x95d   : > { %v17570_v37 = vadd.f32 %v8846_v6, %v8678_v53 }
 0x95e   : > { %v8341_v15 = vpop.f32.mrf.mxu2  ;;  %v8510_v58 = vpop.f32.mrf.mxu3 }
 0x95f   : > { %v8342_v13 = vadd.f32 %v8341_v15, %v17125_v28  ;;  %v14030_v15 = vld [vmem:[%s15786_s29 + $0xc44] sm:$0xf0] }
 0x961   : > { %v8511_v18 = vadd.f32 %v8510_v58, %v8342_v13  ;;  %v14021_v58 = vld [vmem:[%s15786_s29 + $0xc04] sm:$0xf]  ;;  %v12216_v13 = vld [vmem:[%s15786_s29 + $0xc48] sm:$0xf0] }
 0x962   : > { %v8682_v60 = vpop.f32.mrf.mxu0  ;;  %v8851_v44 = vpop.f32.mrf.mxu1 }
 0x963   : > { %v8680_v20 = vadd.f32 %v8679_v30, %v8511_v18  ;;  %8383 = vmatmul.bf16.gmra.mxu2 %v12135_v12  ;;  %8552 = vmatmul.bf16.gmra.mxu3 %v12139_v39  ;;  %v12206_v30 = vld [vmem:[%s15786_s29 + $0xbf8] sm:$0xf]  ;;  %v12215_v18 = vor.u32 %v14030_v15, %v12214_v33  ;;  %v14047_v33 = vld [vmem:[%s15786_s29 + $0xccc] sm:$0xf0]  ;;  %v14038_v15 = vld [vmem:[%s15786_s29 + $0xc8c] sm:$0xf] }
 0x965   : > { %8721 = vmatmul.bf16.gmra.mxu0 %v12143_v49  ;;  %8890 = vmatmul.bf16.gmra.mxu1 %v12147_v40  ;;  %v17573_v28 = vadd.f32 %v8848_v62, %v8680_v20  ;;  %v12207_v40 = vor.u32 %v14029_v50, %v12206_v30  ;;  %v12219_v20 = vor.u32 %v14021_v58, %v12216_v13  ;;  %v12280_v58 = vld [vmem:[%s15786_s29 + $0xcd0] sm:$0xf0]  ;;  %v12286_v13 = vld [vmem:[%s15786_s29 + $0xc90] sm:$0xf] }
 0x966   : > { %v8344_v6 = vpop.f32.mrf.mxu2  ;;  %v8513_v5 = vpop.f32.mrf.mxu3 }
 0x967   : > { %v8345_v53 = vadd.f32 %v8344_v6, %v17136_v4  ;;  %v12211_v4 = vor.u32 %v14020_v10, %v12208_v17 }
 0x969   : > { %v8514_v47 = vadd.f32 %v8513_v5, %v8345_v53 }
 0x96a   : > { %v8684_v43 = vpop.f32.mrf.mxu0  ;;  %v8853_v7 = vpop.f32.mrf.mxu1 }
 0x96b   : > { %v8683_v59 = vadd.f32 %v8682_v60, %v8514_v47 }
 0x96d   : > { %v17584_v12 = vadd.f32 %v8851_v44, %v8683_v59 }
 0x96e   : > { %v8346_v62 = vpop.f32.mrf.mxu2  ;;  %v8515_v39 = vpop.f32.mrf.mxu3 }
 0x96f   : > { %v8347_v49 = vadd.f32 %v8346_v62, %v17139_v63  ;;  %v14048_v62 = vld [vmem:[%s15786_s29 + $0xcd4] sm:$0xf0] }
 0x971   : > { %v8516_v6 = vadd.f32 %v8515_v39, %v8347_v49  ;;  %v14039_v39 = vld [vmem:[%s15786_s29 + $0xc94] sm:$0xf]  ;;  %v12288_v49 = vld [vmem:[%s15786_s29 + $0xcd8] sm:$0xf0] }
 0x972   : > { %v8687_v60 = vpop.f32.mrf.mxu0  ;;  %v8856_v5 = vpop.f32.mrf.mxu1 }
 0x973   : > { %v8685_v53 = vadd.f32 %v8684_v43, %v8516_v6  ;;  %8388 = vmatmul.bf16.gmra.mxu2 %v12207_v40  ;;  %8557 = vmatmul.bf16.gmra.mxu3 %v12211_v4  ;;  %v12278_v43 = vld [vmem:[%s15786_s29 + $0xc88] sm:$0xf]  ;;  %v12287_v6 = vor.u32 %v14048_v62, %v12286_v13  ;;  %v12350_v62 = vld [vmem:[%s15786_s29 + $0xd18] sm:$0xf] }
 0x975   : > { %8726 = vmatmul.bf16.gmra.mxu0 %v12215_v18  ;;  %8895 = vmatmul.bf16.gmra.mxu1 %v12219_v20  ;;  %v17587_v63 = vadd.f32 %v8853_v7, %v8685_v53  ;;  %v12279_v20 = vor.u32 %v14047_v33, %v12278_v43  ;;  %v12291_v53 = vor.u32 %v14039_v39, %v12288_v49  ;;  %v14065_v39 = vld [vmem:[%s15786_s29 + $0xd5c] sm:$0xf0]  ;;  %v14342_v49 = vld [vmem:[#allocation2 + $0x90] sm:$0xff] }
 0x976   : > { %v8349_v44 = vpop.f32.mrf.mxu2  ;;  %v8518_v47 = vpop.f32.mrf.mxu3  ;;  %9295 = vmatpush.bf16.msra.mxu0 %v14342_v49 }
 0x977   : > { %v8350_v59 = vadd.f32 %v8349_v44, %v17150_v36  ;;  %v12283_v36 = vor.u32 %v14038_v15, %v12280_v58 }
 0x979   : > { %v8519_v30 = vadd.f32 %v8518_v47, %v8350_v59 }
 0x97a   : > { %v8689_v50 = vpop.f32.mrf.mxu0  ;;  %v8858_v10 = vpop.f32.mrf.mxu1 }
 0x97b   : > { %v8688_v17 = vadd.f32 %v8687_v60, %v8519_v30  ;;  %v14326_v30 = vld [vmem:[#allocation2 + $0x378] sm:$0xff] }
 0x97c   : > { %8957 = vmatpush.bf16.msra.mxu2 %v14326_v30 }
 0x97d   : > { %v17598_v40 = vadd.f32 %v8856_v5, %v8688_v17  ;;  %v14334_v5 = vld [vmem:[#allocation2 + $0x3e8] sm:$0xff] }
 0x97e   : > { %v8351_v7 = vpop.f32.mrf.mxu2  ;;  %v8520_v4 = vpop.f32.mrf.mxu3  ;;  %9126 = vmatpush.bf16.msra.mxu3 %v14334_v5 }
 0x97f   : > { %v8352_v18 = vadd.f32 %v8351_v7, %v17153_v25  ;;  %v14056_v7 = vld [vmem:[%s15786_s29 + $0xd1c] sm:$0xf] }
 0x981   : > { %v8521_v44 = vadd.f32 %v8520_v4, %v8352_v18  ;;  %v12352_v4 = vld [vmem:[%s15786_s29 + $0xd60] sm:$0xf0]  ;;  %v12358_v18 = vld [vmem:[%s15786_s29 + $0xd20] sm:$0xf] }
 0x982   : > { %v8692_v60 = vpop.f32.mrf.mxu0  ;;  %v8861_v47 = vpop.f32.mrf.mxu1  ;;  %v12355_v30 = vor.u32 %v14056_v7, %v12352_v4 }
 0x983   : > { %v8690_v59 = vadd.f32 %v8689_v50, %v8521_v44  ;;  %8393 = vmatmul.bf16.gmra.mxu2 %v12279_v20  ;;  %8562 = vmatmul.bf16.gmra.mxu3 %v12283_v36  ;;  %v14066_v20 = vld [vmem:[%s15786_s29 + $0xd64] sm:$0xf0]  ;;  %v12360_v36 = vld [vmem:[%s15786_s29 + $0xd68] sm:$0xf0] }
 0x984   : > { %v12359_v5 = vor.u32 %v14066_v20, %v12358_v18  ;;  %v12422_v18 = vld [vmem:[%s15786_s29 + $0xda8] sm:$0xf]  ;;  %v14083_v20 = vld [vmem:[%s15786_s29 + $0xdec] sm:$0xf0] }
 0x985   : > { %8731 = vmatmul.bf16.gmra.mxu0 %v12287_v6  ;;  %8900 = vmatmul.bf16.gmra.mxu1 %v12291_v53  ;;  %v17601_v25 = vadd.f32 %v8858_v10, %v8690_v59  ;;  %v14057_v10 = vld [vmem:[%s15786_s29 + $0xd24] sm:$0xf]  ;;  %v12351_v59 = vor.u32 %v14065_v39, %v12350_v62 }
 0x986   : > { %v8354_v17 = vpop.f32.mrf.mxu2  ;;  %v8523_v43 = vpop.f32.mrf.mxu3 }
 0x987   : > { %v8355_v50 = vadd.f32 %v8354_v17, %v17164_v9 }
 0x989   : > { %v8524_v33 = vadd.f32 %v8523_v43, %v8355_v50 }
 0x98a   : > { %v8694_v15 = vpop.f32.mrf.mxu0  ;;  %v8863_v58 = vpop.f32.mrf.mxu1 }
 0x98b   : > { %v8693_v13 = vadd.f32 %v8692_v60, %v8524_v33  ;;  %v12363_v60 = vor.u32 %v14057_v10, %v12360_v36  ;;  %v14074_v10 = vld [vmem:[%s15786_s29 + $0xdac] sm:$0xf]  ;;  %v12424_v36 = vld [vmem:[%s15786_s29 + $0xdf0] sm:$0xf0] }
 0x98d   : > { %v17612_v6 = vadd.f32 %v8861_v47, %v8693_v13  ;;  %v14350_v47 = vld [vmem:[#allocation2 + $0x2b8] sm:$0xff] }
 0x98e   : > { %v8356_v53 = vpop.f32.mrf.mxu2  ;;  %v8525_v44 = vpop.f32.mrf.mxu3  ;;  %9464 = vmatpush.bf16.msra.mxu1 %v14350_v47 }
 0x98f   : > { %v8357_v9 = vadd.f32 %v8356_v53, %v17167_v23  ;;  %v12430_v53 = vld [vmem:[%s15786_s29 + $0xdb0] sm:$0xf] }
 0x991   : > { %v8526_v17 = vadd.f32 %v8525_v44, %v8357_v9  ;;  %v14084_v44 = vld [vmem:[%s15786_s29 + $0xdf4] sm:$0xf0]  ;;  %v14075_v9 = vld [vmem:[%s15786_s29 + $0xdb4] sm:$0xf] }
 0x992   : > { %v8697_v43 = vpop.f32.mrf.mxu0  ;;  %v8866_v50 = vpop.f32.mrf.mxu1 }
 0x993   : > { %v8695_v33 = vadd.f32 %v8694_v15, %v8526_v17  ;;  %8398 = vmatmul.bf16.gmra.mxu2 %v12351_v59  ;;  %8567 = vmatmul.bf16.gmra.mxu3 %v12355_v30  ;;  %v12432_v59 = vld [vmem:[%s15786_s29 + $0xdf8] sm:$0xf0]  ;;  %v12423_v17 = vor.u32 %v14083_v20, %v12422_v18 }
 0x994   : > { %v12435_v47 = vor.u32 %v14075_v9, %v12432_v59  ;;  %v12496_v9 = vld [vmem:[%s15786_s29 + $0xe80] sm:$0xf0]  ;;  %v12502_v59 = vld [vmem:[%s15786_s29 + $0xe40] sm:$0xf] }
 0x995   : > { %8736 = vmatmul.bf16.gmra.mxu0 %v12359_v5  ;;  %8905 = vmatmul.bf16.gmra.mxu1 %v12363_v60  ;;  %v17615_v23 = vadd.f32 %v8863_v58, %v8695_v33  ;;  %v12431_v33 = vor.u32 %v14084_v44, %v12430_v53  ;;  %v14101_v53 = vld [vmem:[%s15786_s29 + $0xe7c] sm:$0xf0]  ;;  %v14092_v44 = vld [vmem:[%s15786_s29 + $0xe3c] sm:$0xf] }
 0x996   : > { %v8359_v13 = vpop.f32.mrf.mxu2  ;;  %v8528_v62 = vpop.f32.mrf.mxu3 }
 0x997   : > { %v8360_v39 = vadd.f32 %v8359_v13, %v17178_v57  ;;  %v12427_v57 = vor.u32 %v14074_v10, %v12424_v36 }
 0x999   : > { %v8529_v15 = vadd.f32 %v8528_v62, %v8360_v39 }
 0x99a   : > { %v8699_v49 = vpop.f32.mrf.mxu0  ;;  %v8868_v7 = vpop.f32.mrf.mxu1 }
 0x99b   : > { %v8698_v4 = vadd.f32 %v8697_v43, %v8529_v15 }
 0x99d   : > { %v17626_v30 = vadd.f32 %v8866_v50, %v8698_v4 }
 0x99e   : > { %v8361_v58 = vpop.f32.mrf.mxu2  ;;  %v8530_v5 = vpop.f32.mrf.mxu3 }
 0x99f   : > { %v8362_v60 = vadd.f32 %v8361_v58, %v17181_v16  ;;  %v14102_v58 = vld [vmem:[%s15786_s29 + $0xe84] sm:$0xf0] }
 0x9a1   : > { %v8531_v13 = vadd.f32 %v8530_v5, %v8362_v60  ;;  %v14093_v5 = vld [vmem:[%s15786_s29 + $0xe44] sm:$0xf]  ;;  %v12504_v60 = vld [vmem:[%s15786_s29 + $0xe88] sm:$0xf0] }
 0x9a2   : > { %v8702_v43 = vpop.f32.mrf.mxu0  ;;  %v8871_v62 = vpop.f32.mrf.mxu1 }
 0x9a3   : > { %v8700_v39 = vadd.f32 %v8699_v49, %v8531_v13  ;;  %8403 = vmatmul.bf16.gmra.mxu2 %v12423_v17  ;;  %8572 = vmatmul.bf16.gmra.mxu3 %v12427_v57  ;;  %v12494_v49 = vld [vmem:[%s15786_s29 + $0xe38] sm:$0xf]  ;;  %v12503_v13 = vor.u32 %v14102_v58, %v12502_v59  ;;  %v14119_v59 = vld [vmem:[%s15786_s29 + $0xf0c] sm:$0xf0]  ;;  %v14110_v58 = vld [vmem:[%s15786_s29 + $0xecc] sm:$0xf] }
 0x9a5   : > { %8741 = vmatmul.bf16.gmra.mxu0 %v12431_v33  ;;  %8910 = vmatmul.bf16.gmra.mxu1 %v12435_v47  ;;  %v17629_v16 = vadd.f32 %v8868_v7, %v8700_v39  ;;  %v12495_v47 = vor.u32 %v14101_v53, %v12494_v49  ;;  %v12507_v39 = vor.u32 %v14093_v5, %v12504_v60  ;;  %v12568_v5 = vld [vmem:[%s15786_s29 + $0xf10] sm:$0xf0]  ;;  %v12574_v60 = vld [vmem:[%s15786_s29 + $0xed0] sm:$0xf] }
 0x9a6   : > { %v8364_v50 = vpop.f32.mrf.mxu2  ;;  %v8533_v15 = vpop.f32.mrf.mxu3 }
 0x9a7   : > { %v8365_v4 = vadd.f32 %v8364_v50, %v17192_v55  ;;  %v12499_v55 = vor.u32 %v14092_v44, %v12496_v9 }
 0x9a9   : > { %v8534_v18 = vadd.f32 %v8533_v15, %v8365_v4 }
 0x9aa   : > { %v8704_v20 = vpop.f32.mrf.mxu0  ;;  %v8873_v10 = vpop.f32.mrf.mxu1 }
 0x9ab   : > { %v8703_v36 = vadd.f32 %v8702_v43, %v8534_v18 }
 0x9ad   : > { %v17640_v17 = vadd.f32 %v8871_v62, %v8703_v36 }
 0x9ae   : > { %v8366_v7 = vpop.f32.mrf.mxu2  ;;  %v8535_v57 = vpop.f32.mrf.mxu3 }
 0x9af   : > { %v8367_v33 = vadd.f32 %v8366_v7, %v17195_v46  ;;  %v14120_v7 = vld [vmem:[%s15786_s29 + $0xf14] sm:$0xf0] }
 0x9b1   : > { %v8536_v50 = vadd.f32 %v8535_v57, %v8367_v33  ;;  %v14111_v57 = vld [vmem:[%s15786_s29 + $0xed4] sm:$0xf]  ;;  %v12576_v33 = vld [vmem:[%s15786_s29 + $0xf18] sm:$0xf0] }
 0x9b2   : > { %v8707_v43 = vpop.f32.mrf.mxu0  ;;  %v8876_v15 = vpop.f32.mrf.mxu1 }
 0x9b3   : > { %v8705_v4 = vadd.f32 %v8704_v20, %v8536_v50  ;;  %8408 = vmatmul.bf16.gmra.mxu2 %v12495_v47  ;;  %8577 = vmatmul.bf16.gmra.mxu3 %v12499_v55  ;;  %v12566_v20 = vld [vmem:[%s15786_s29 + $0xec8] sm:$0xf]  ;;  %v12575_v50 = vor.u32 %v14120_v7, %v12574_v60  ;;  %v12638_v7 = vld [vmem:[%s15786_s29 + $0xf58] sm:$0xf] }
 0x9b5   : > { %8746 = vmatmul.bf16.gmra.mxu0 %v12503_v13  ;;  %8915 = vmatmul.bf16.gmra.mxu1 %v12507_v39  ;;  %v17643_v46 = vadd.f32 %v8873_v10, %v8705_v4  ;;  %v12567_v39 = vor.u32 %v14119_v59, %v12566_v20  ;;  %v12579_v4 = vor.u32 %v14111_v57, %v12576_v33  ;;  %v14137_v57 = vld [vmem:[%s15786_s29 + $0xf9c] sm:$0xf0]  ;;  %v14341_v33 = vld [vmem:[#allocation2 + $0x168] sm:$0xff] }
 0x9b6   : > { %v8369_v62 = vpop.f32.mrf.mxu2  ;;  %v8538_v18 = vpop.f32.mrf.mxu3  ;;  %9296 = vmatpush.bf16.msra.mxu0 %v14341_v33  ;;  %v18526_v33 = vld [vmem:[#allocation39_spill] sm:$0xff] }
 0x9b7   : > { %v8370_v36 = vadd.f32 %v8369_v62, %v17206_v26  ;;  %v12571_v26 = vor.u32 %v14110_v58, %v12568_v5 }
 0x9b9   : > { %v8539_v49 = vadd.f32 %v8538_v18, %v8370_v36 }
 0x9ba   : > { %v8709_v53 = vpop.f32.mrf.mxu0  ;;  %v8878_v44 = vpop.f32.mrf.mxu1 }
 0x9bb   : > { %v8708_v9 = vadd.f32 %v8707_v43, %v8539_v49  ;;  %v14325_v49 = vld [vmem:[#allocation2 + $0x108] sm:$0xff] }
 0x9bc   : > { %8958 = vmatpush.bf16.msra.mxu2 %v14325_v49  ;;  %v12639_v49 = vor.u32 %v14137_v57, %v12638_v7 }
 0x9bd   : > { %v17654_v47 = vadd.f32 %v8876_v15, %v8708_v9  ;;  %v14333_v15 = vld [vmem:[#allocation2 + $0x2e0] sm:$0xff] }
 0x9be   : > { %v8371_v10 = vpop.f32.mrf.mxu2  ;;  %v8540_v55 = vpop.f32.mrf.mxu3  ;;  %9127 = vmatpush.bf16.msra.mxu3 %v14333_v15 }
 0x9bf   : > { %v8372_v13 = vadd.f32 %v8371_v10, %v17209_v0  ;;  %v14128_v10 = vld [vmem:[%s15786_s29 + $0xf5c] sm:$0xf] }
 0x9c1   : > { %v8541_v62 = vadd.f32 %v8540_v55, %v8372_v13  ;;  %v12640_v55 = vld [vmem:[%s15786_s29 + $0xfa0] sm:$0xf0]  ;;  %v12646_v13 = vld [vmem:[%s15786_s29 + $0xf60] sm:$0xf] }
 0x9c2   : > { %v8712_v43 = vpop.f32.mrf.mxu0  ;;  %v8881_v18 = vpop.f32.mrf.mxu1  ;;  %v12643_v15 = vor.u32 %v14128_v10, %v12640_v55 }
 0x9c3   : > { %v8710_v36 = vadd.f32 %v8709_v53, %v8541_v62  ;;  %8413 = vmatmul.bf16.gmra.mxu2 %v12567_v39  ;;  %8582 = vmatmul.bf16.gmra.mxu3 %v12571_v26  ;;  %v14138_v39 = vld [vmem:[%s15786_s29 + $0xfa4] sm:$0xf0]  ;;  %v12648_v26 = vld [vmem:[%s15786_s29 + $0xfa8] sm:$0xf0] }
 0x9c5   : > { %8751 = vmatmul.bf16.gmra.mxu0 %v12575_v50  ;;  %8920 = vmatmul.bf16.gmra.mxu1 %v12579_v4  ;;  %v17657_v0 = vadd.f32 %v8878_v44, %v8710_v36  ;;  %v14129_v44 = vld [vmem:[%s15786_s29 + $0xf64] sm:$0xf]  ;;  %v18524_v36 = vld [vmem:[#allocation38_spill] sm:$0xff] }
 0x9c6   : > { %v8374_v9 = vpop.f32.mrf.mxu2  ;;  %v8543_v20 = vpop.f32.mrf.mxu3 }
 0x9c7   : > { %18522 = vst [vmem:[#allocation36_spill] sm:$0xff] %v17657_v0  ;;  %v8375_v53 = vadd.f32 %v8374_v9, %v17220_v38  ;;  %v12647_v9 = vor.u32 %v14138_v39, %v12646_v13 }
 0x9c9   : > { %v8544_v59 = vadd.f32 %v8543_v20, %v8375_v53 }
 0x9ca   : > { %v8714_v58 = vpop.f32.mrf.mxu0  ;;  %v8883_v5 = vpop.f32.mrf.mxu1 }
 0x9cb   : > { %v8713_v60 = vadd.f32 %v8712_v43, %v8544_v59  ;;  %v12651_v43 = vor.u32 %v14129_v44, %v12648_v26  ;;  %v12710_v44 = vld [vmem:[%s15786_s29 + $0xfe8] sm:$0xf]  ;;  %v14155_v26 = vld [vmem:[%s15786_s29 + $0x102c] sm:$0xf0] }
 0x9cd   : > { %v17668_v50 = vadd.f32 %v8881_v18, %v8713_v60  ;;  %v14349_v18 = vld [vmem:[#allocation2 + $0x238] sm:$0xff] }
 0x9ce   : > { %v8376_v4 = vpop.f32.mrf.mxu2  ;;  %v8545_v62 = vpop.f32.mrf.mxu3  ;;  %9465 = vmatpush.bf16.msra.mxu1 %v14349_v18  ;;  %v12711_v18 = vor.u32 %v14155_v26, %v12710_v44  ;;  %v18530_v26 = vld [vmem:[#allocation41_spill] sm:$0xff] }
 0x9cf   : > { %18523 = vst [vmem:[#allocation37_spill] sm:$0xff] %v17668_v50  ;;  %v8377_v38 = vadd.f32 %v8376_v4, %v18524_v36  ;;  %v14146_v4 = vld [vmem:[%s15786_s29 + $0xfec] sm:$0xf]  ;;  %v12718_v36 = vld [vmem:[%s15786_s29 + $0xff0] sm:$0xf] }
 0x9d1   : > { %v8546_v20 = vadd.f32 %v8545_v62, %v8377_v38  ;;  %v12712_v62 = vld [vmem:[%s15786_s29 + $0x1030] sm:$0xf0]  ;;  %v14156_v38 = vld [vmem:[%s15786_s29 + $0x1034] sm:$0xf0] }
 0x9d2   : > { %v8717_v53 = vpop.f32.mrf.mxu0  ;;  %v8886_v59 = vpop.f32.mrf.mxu1 }
 0x9d3   : > { %v8715_v0 = vadd.f32 %v8714_v58, %v8546_v20  ;;  %8418 = vmatmul.bf16.gmra.mxu2 %v12639_v49  ;;  %8587 = vmatmul.bf16.gmra.mxu3 %v12643_v15  ;;  %v14147_v49 = vld [vmem:[%s15786_s29 + $0xff4] sm:$0xf]  ;;  %v12720_v15 = vld [vmem:[%s15786_s29 + $0x1038] sm:$0xf0] }
 0x9d5   : > { %8756 = vmatmul.bf16.gmra.mxu0 %v12647_v9  ;;  %8925 = vmatmul.bf16.gmra.mxu1 %v12651_v43  ;;  %v17671_v60 = vadd.f32 %v8883_v5, %v8715_v0  ;;  %v18528_v43 = vld [vmem:[#allocation40_spill] sm:$0xff] }
 0x9d6   : > { %v8379_v7 = vpop.f32.mrf.mxu2  ;;  %v8548_v57 = vpop.f32.mrf.mxu3 }
 0x9d7   : > { %18525 = vst [vmem:[#allocation38_spill] sm:$0xff] %v17671_v60  ;;  %v8380_v10 = vadd.f32 %v8379_v7, %v18526_v33  ;;  %v12715_v7 = vor.u32 %v14146_v4, %v12712_v62  ;;  %v12723_v33 = vor.u32 %v14147_v49, %v12720_v15  ;;  %v14173_v15 = vld [vmem:[%s15786_s29 + $0x10bc] sm:$0xf0] }
 0x9d9   : > { %v8549_v58 = vadd.f32 %v8548_v57, %v8380_v10  ;;  %v12719_v57 = vor.u32 %v14156_v38, %v12718_v36 }
 0x9da   : > { %v8719_v55 = vpop.f32.mrf.mxu0  ;;  %v8888_v13 = vpop.f32.mrf.mxu1 }
 0x9db   : > { %v8718_v39 = vadd.f32 %v8717_v53, %v8549_v58 }
 0x9dd   : > { %v17682_v9 = vadd.f32 %v8886_v59, %v8718_v39 }
 0x9de   : > { %v8381_v0 = vpop.f32.mrf.mxu2  ;;  %v8550_v5 = vpop.f32.mrf.mxu3 }
 0x9df   : > { %18527 = vst [vmem:[#allocation39_spill] sm:$0xff] %v17682_v9  ;;  %v8382_v20 = vadd.f32 %v8381_v0, %v18528_v43  ;;  %v14164_v0 = vld [vmem:[%s15786_s29 + $0x107c] sm:$0xf]  ;;  %v12790_v43 = vld [vmem:[%s15786_s29 + $0x1080] sm:$0xf] }
 0x9e1   : > { %v8551_v10 = vadd.f32 %v8550_v5, %v8382_v20  ;;  %v12784_v5 = vld [vmem:[%s15786_s29 + $0x10c0] sm:$0xf0]  ;;  %v14174_v20 = vld [vmem:[%s15786_s29 + $0x10c4] sm:$0xf0] }
 0x9e2   : > { %v8722_v53 = vpop.f32.mrf.mxu0  ;;  %v8891_v58 = vpop.f32.mrf.mxu1 }
 0x9e3   : > { %v8720_v60 = vadd.f32 %v8719_v55, %v8551_v10  ;;  %8423 = vmatmul.bf16.gmra.mxu2 %v12711_v18  ;;  %8592 = vmatmul.bf16.gmra.mxu3 %v12715_v7  ;;  %v12782_v55 = vld [vmem:[%s15786_s29 + $0x1078] sm:$0xf]  ;;  %v14165_v18 = vld [vmem:[%s15786_s29 + $0x1084] sm:$0xf]  ;;  %v12792_v7 = vld [vmem:[%s15786_s29 + $0x10c8] sm:$0xf0] }
 0x9e5   : > { %8761 = vmatmul.bf16.gmra.mxu0 %v12719_v57  ;;  %8930 = vmatmul.bf16.gmra.mxu1 %v12723_v33  ;;  %v17685_v59 = vadd.f32 %v8888_v13, %v8720_v60  ;;  %v18532_v33 = vld [vmem:[#allocation16_spill] sm:$0xff] }
 0x9e6   : > { %v8384_v39 = vpop.f32.mrf.mxu2  ;;  %v8553_v44 = vpop.f32.mrf.mxu3 }
 0x9e7   : > { %18529 = vst [vmem:[#allocation40_spill] sm:$0xff] %v17685_v59  ;;  %v8385_v4 = vadd.f32 %v8384_v39, %v18530_v26  ;;  %v12783_v59 = vor.u32 %v14173_v15, %v12782_v55  ;;  %v12787_v39 = vor.u32 %v14164_v0, %v12784_v5  ;;  %v12795_v26 = vor.u32 %v14165_v18, %v12792_v7  ;;  %v18534_v15 = vld [vmem:[#allocation17_spill] sm:$0xff]  ;;  %v14191_v7 = vld [vmem:[%s15786_s29 + $0x114c] sm:$0xf0] }
 0x9e9   : > { %v8554_v62 = vadd.f32 %v8553_v44, %v8385_v4  ;;  %v12791_v44 = vor.u32 %v14174_v20, %v12790_v43 }
 0x9ea   : > { %v8724_v36 = vpop.f32.mrf.mxu0  ;;  %v8893_v38 = vpop.f32.mrf.mxu1 }
 0x9eb   : > { %v8723_v49 = vadd.f32 %v8722_v53, %v8554_v62 }
 0x9ed   : > { %v17696_v57 = vadd.f32 %v8891_v58, %v8723_v49 }
 0x9ee   : > { %v8386_v60 = vpop.f32.mrf.mxu2  ;;  %v8555_v13 = vpop.f32.mrf.mxu3 }
 0x9ef   : > { %18531 = vst [vmem:[#allocation41_spill] sm:$0xff] %v17696_v57  ;;  %v8387_v10 = vadd.f32 %v8386_v60, %v18532_v33  ;;  %v12856_v60 = vld [vmem:[%s15786_s29 + $0x1150] sm:$0xf0]  ;;  %v14192_v33 = vld [vmem:[%s15786_s29 + $0x1154] sm:$0xf0] }
 0x9f1   : > { %v8556_v4 = vadd.f32 %v8555_v13, %v8387_v10  ;;  %v12862_v13 = vld [vmem:[%s15786_s29 + $0x1110] sm:$0xf]  ;;  %v14183_v10 = vld [vmem:[%s15786_s29 + $0x1114] sm:$0xf] }
 0x9f2   : > { %v8727_v53 = vpop.f32.mrf.mxu0  ;;  %v8896_v62 = vpop.f32.mrf.mxu1 }
 0x9f3   : > { %v8725_v9 = vadd.f32 %v8724_v36, %v8556_v4  ;;  %8428 = vmatmul.bf16.gmra.mxu2 %v12783_v59  ;;  %8597 = vmatmul.bf16.gmra.mxu3 %v12787_v39  ;;  %v12854_v36 = vld [vmem:[%s15786_s29 + $0x1108] sm:$0xf]  ;;  %v14182_v59 = vld [vmem:[%s15786_s29 + $0x110c] sm:$0xf]  ;;  %v12864_v39 = vld [vmem:[%s15786_s29 + $0x1158] sm:$0xf0] }
 0x9f5   : > { %8766 = vmatmul.bf16.gmra.mxu0 %v12791_v44  ;;  %8935 = vmatmul.bf16.gmra.mxu1 %v12795_v26  ;;  %v17699_v58 = vadd.f32 %v8893_v38, %v8725_v9  ;;  %v18536_v26 = vld [vmem:[#allocation18_spill] sm:$0xff] }
 0x9f6   : > { %v8389_v49 = vpop.f32.mrf.mxu2  ;;  %v8558_v55 = vpop.f32.mrf.mxu3 }
 0x9f7   : > { %18533 = vst [vmem:[#allocation16_spill] sm:$0xff] %v17699_v58  ;;  %v8390_v0 = vadd.f32 %v8389_v49, %v18534_v15  ;;  %v12855_v58 = vor.u32 %v14191_v7, %v12854_v36  ;;  %v12859_v49 = vor.u32 %v14182_v59, %v12856_v60  ;;  %v12867_v15 = vor.u32 %v14183_v10, %v12864_v39  ;;  %v18538_v7 = vld [vmem:[#allocation19_spill] sm:$0xff]  ;;  %v14209_v39 = vld [vmem:[%s15786_s29 + $0x11dc] sm:$0xf0] }
 0x9f9   : > { %v8559_v5 = vadd.f32 %v8558_v55, %v8390_v0  ;;  %v12863_v55 = vor.u32 %v14192_v33, %v12862_v13 }
 0x9fa   : > { %v8729_v43 = vpop.f32.mrf.mxu0  ;;  %v8898_v20 = vpop.f32.mrf.mxu1 }
 0x9fb   : > { %v8728_v18 = vadd.f32 %v8727_v53, %v8559_v5 }
 0x9fd   : > { %v17710_v44 = vadd.f32 %v8896_v62, %v8728_v18 }
 0x9fe   : > { %v8391_v9 = vpop.f32.mrf.mxu2  ;;  %v8560_v38 = vpop.f32.mrf.mxu3 }
 0x9ff   : > { %18535 = vst [vmem:[#allocation17_spill] sm:$0xff] %v17710_v44  ;;  %v8392_v4 = vadd.f32 %v8391_v9, %v18536_v26  ;;  %v12928_v9 = vld [vmem:[%s15786_s29 + $0x11e0] sm:$0xf0]  ;;  %v14210_v26 = vld [vmem:[%s15786_s29 + $0x11e4] sm:$0xf0] }
 0xa01   : > { %v8561_v0 = vadd.f32 %v8560_v38, %v8392_v4  ;;  %v12934_v38 = vld [vmem:[%s15786_s29 + $0x11a0] sm:$0xf]  ;;  %v14201_v4 = vld [vmem:[%s15786_s29 + $0x11a4] sm:$0xf] }
 0xa02   : > { %v8732_v53 = vpop.f32.mrf.mxu0  ;;  %v8901_v5 = vpop.f32.mrf.mxu1 }
 0xa03   : > { %v8730_v57 = vadd.f32 %v8729_v43, %v8561_v0  ;;  %8433 = vmatmul.bf16.gmra.mxu2 %v12855_v58  ;;  %8602 = vmatmul.bf16.gmra.mxu3 %v12859_v49  ;;  %v12926_v43 = vld [vmem:[%s15786_s29 + $0x1198] sm:$0xf]  ;;  %v14200_v58 = vld [vmem:[%s15786_s29 + $0x119c] sm:$0xf]  ;;  %v12936_v49 = vld [vmem:[%s15786_s29 + $0x11e8] sm:$0xf0] }
 0xa05   : > { %8771 = vmatmul.bf16.gmra.mxu0 %v12863_v55  ;;  %8940 = vmatmul.bf16.gmra.mxu1 %v12867_v15  ;;  %v17713_v62 = vadd.f32 %v8898_v20, %v8730_v57  ;;  %v18540_v15 = vld [vmem:[#allocation20_spill] sm:$0xff] }
 0xa06   : > { %v8394_v18 = vpop.f32.mrf.mxu2  ;;  %v8563_v36 = vpop.f32.mrf.mxu3 }
 0xa07   : > { %18537 = vst [vmem:[#allocation18_spill] sm:$0xff] %v17713_v62  ;;  %v8395_v59 = vadd.f32 %v8394_v18, %v18538_v7  ;;  %v12927_v62 = vor.u32 %v14209_v39, %v12926_v43  ;;  %v12931_v18 = vor.u32 %v14200_v58, %v12928_v9  ;;  %v12939_v7 = vor.u32 %v14201_v4, %v12936_v49  ;;  %v18542_v39 = vld [vmem:[#allocation21_spill] sm:$0xff]  ;;  %v13653_v49 = vld [vmem:[%s15786_s29 + $0x7c] sm:$0xf0] }
 0xa09   : > { %v8564_v60 = vadd.f32 %v8563_v36, %v8395_v59  ;;  %v12935_v36 = vor.u32 %v14210_v26, %v12934_v38 }
 0xa0a   : > { %v8734_v13 = vpop.f32.mrf.mxu0  ;;  %v8903_v33 = vpop.f32.mrf.mxu1 }
 0xa0b   : > { %v8733_v10 = vadd.f32 %v8732_v53, %v8564_v60 }
 0xa0d   : > { %v17724_v55 = vadd.f32 %v8901_v5, %v8733_v10 }
 0xa0e   : > { %v8396_v57 = vpop.f32.mrf.mxu2  ;;  %v8565_v20 = vpop.f32.mrf.mxu3 }
 0xa0f   : > { %18539 = vst [vmem:[#allocation19_spill] sm:$0xff] %v17724_v55  ;;  %v8397_v0 = vadd.f32 %v8396_v57, %v18540_v15  ;;  %v10712_v57 = vld [vmem:[%s15786_s29 + $0x80] sm:$0xf0]  ;;  %v13654_v15 = vld [vmem:[%s15786_s29 + $0x84] sm:$0xf0] }
 0xa11   : > { %v8566_v59 = vadd.f32 %v8565_v20, %v8397_v0  ;;  %v10718_v20 = vld [vmem:[%s15786_s29 + $0x40] sm:$0xf]  ;;  %v13645_v0 = vld [vmem:[%s15786_s29 + $0x44] sm:$0xf] }
 0xa12   : > { %v8737_v53 = vpop.f32.mrf.mxu0  ;;  %v8906_v60 = vpop.f32.mrf.mxu1 }
 0xa13   : > { %v8735_v44 = vadd.f32 %v8734_v13, %v8566_v59  ;;  %8438 = vmatmul.bf16.gmra.mxu2 %v12927_v62  ;;  %8607 = vmatmul.bf16.gmra.mxu3 %v12931_v18  ;;  %v10710_v13 = vld [vmem:[%s15786_s29 + $0x38] sm:$0xf]  ;;  %v13644_v62 = vld [vmem:[%s15786_s29 + $0x3c] sm:$0xf]  ;;  %v10720_v18 = vld [vmem:[%s15786_s29 + $0x88] sm:$0xf0] }
 0xa15   : > { %8776 = vmatmul.bf16.gmra.mxu0 %v12935_v36  ;;  %8945 = vmatmul.bf16.gmra.mxu1 %v12939_v7  ;;  %v17727_v5 = vadd.f32 %v8903_v33, %v8735_v44  ;;  %v18544_v7 = vld [vmem:[#allocation22_spill] sm:$0xff] }
 0xa16   : > { %v8399_v10 = vpop.f32.mrf.mxu2  ;;  %v8568_v43 = vpop.f32.mrf.mxu3 }
 0xa17   : > { %18541 = vst [vmem:[#allocation20_spill] sm:$0xff] %v17727_v5  ;;  %v8400_v58 = vadd.f32 %v8399_v10, %v18542_v39  ;;  %v10711_v5 = vor.u32 %v13653_v49, %v10710_v13  ;;  %v10715_v10 = vor.u32 %v13644_v62, %v10712_v57  ;;  %v10723_v39 = vor.u32 %v13645_v0, %v10720_v18  ;;  %v18546_v49 = vld [vmem:[#allocation23_spill] sm:$0xff]  ;;  %v13671_v18 = vld [vmem:[%s15786_s29 + $0x10c] sm:$0xf0] }
 0xa19   : > { %v8569_v9 = vadd.f32 %v8568_v43, %v8400_v58  ;;  %v10719_v43 = vor.u32 %v13654_v15, %v10718_v20 }
 0xa1a   : > { %v8739_v38 = vpop.f32.mrf.mxu0  ;;  %v8908_v26 = vpop.f32.mrf.mxu1 }
 0xa1b   : > { %v8738_v4 = vadd.f32 %v8737_v53, %v8569_v9 }
 0xa1d   : > { %v17738_v36 = vadd.f32 %v8906_v60, %v8738_v4 }
 0xa1e   : > { %v8401_v44 = vpop.f32.mrf.mxu2  ;;  %v8570_v33 = vpop.f32.mrf.mxu3 }
 0xa1f   : > { %18543 = vst [vmem:[#allocation21_spill] sm:$0xff] %v17738_v36  ;;  %v8402_v59 = vadd.f32 %v8401_v44, %v18544_v7  ;;  %v10784_v44 = vld [vmem:[%s15786_s29 + $0x110] sm:$0xf0]  ;;  %v13672_v7 = vld [vmem:[%s15786_s29 + $0x114] sm:$0xf0] }
 0xa21   : > { %v8571_v58 = vadd.f32 %v8570_v33, %v8402_v59  ;;  %v10790_v33 = vld [vmem:[%s15786_s29 + $0xd0] sm:$0xf]  ;;  %v13663_v59 = vld [vmem:[%s15786_s29 + $0xd4] sm:$0xf] }
 0xa22   : > { %v8742_v53 = vpop.f32.mrf.mxu0  ;;  %v8911_v9 = vpop.f32.mrf.mxu1 }
 0xa23   : > { %v8740_v55 = vadd.f32 %v8739_v38, %v8571_v58  ;;  %8959 = vmatmul.bf16.vlgmr.msra.gmra.mxu2 %v10711_v5  ;;  %9128 = vmatmul.bf16.vlgmr.msra.gmra.mxu3 %v10715_v10  ;;  %v10782_v38 = vld [vmem:[%s15786_s29 + $0xc8] sm:$0xf]  ;;  %v13662_v5 = vld [vmem:[%s15786_s29 + $0xcc] sm:$0xf]  ;;  %v10792_v10 = vld [vmem:[%s15786_s29 + $0x118] sm:$0xf0] }
 0xa25   : > { %9297 = vmatmul.bf16.vlgmr.msra.gmra.mxu0 %v10719_v43  ;;  %9466 = vmatmul.bf16.vlgmr.msra.gmra.mxu1 %v10723_v39  ;;  %v17741_v60 = vadd.f32 %v8908_v26, %v8740_v55  ;;  %v18548_v39 = vld [vmem:[#allocation24_spill] sm:$0xff] }
 0xa26   : > { %v8404_v4 = vpop.f32.mrf.mxu2  ;;  %v8573_v13 = vpop.f32.mrf.mxu3 }
 0xa27   : > { %18545 = vst [vmem:[#allocation22_spill] sm:$0xff] %v17741_v60  ;;  %v8405_v62 = vadd.f32 %v8404_v4, %v18546_v49  ;;  %v10783_v60 = vor.u32 %v13671_v18, %v10782_v38  ;;  %v10787_v4 = vor.u32 %v13662_v5, %v10784_v44  ;;  %v10795_v49 = vor.u32 %v13663_v59, %v10792_v10  ;;  %v18550_v18 = vld [vmem:[#allocation25_spill] sm:$0xff]  ;;  %v13689_v10 = vld [vmem:[%s15786_s29 + $0x19c] sm:$0xf0] }
 0xa29   : > { %v8574_v57 = vadd.f32 %v8573_v13, %v8405_v62  ;;  %v10791_v13 = vor.u32 %v13672_v7, %v10790_v33 }
 0xa2a   : > { %v8744_v20 = vpop.f32.mrf.mxu0  ;;  %v8913_v15 = vpop.f32.mrf.mxu1 }
 0xa2b   : > { %v8743_v0 = vadd.f32 %v8742_v53, %v8574_v57 }
 0xa2d   : > { %v17752_v43 = vadd.f32 %v8911_v9, %v8743_v0 }
 0xa2e   : > { %v8406_v55 = vpop.f32.mrf.mxu2  ;;  %v8575_v26 = vpop.f32.mrf.mxu3 }
 0xa2f   : > { %18547 = vst [vmem:[#allocation23_spill] sm:$0xff] %v17752_v43  ;;  %v8407_v58 = vadd.f32 %v8406_v55, %v18548_v39  ;;  %v10856_v55 = vld [vmem:[%s15786_s29 + $0x1a0] sm:$0xf0]  ;;  %v13690_v39 = vld [vmem:[%s15786_s29 + $0x1a4] sm:$0xf0] }
 0xa31   : > { %v8576_v62 = vadd.f32 %v8575_v26, %v8407_v58  ;;  %v10862_v26 = vld [vmem:[%s15786_s29 + $0x160] sm:$0xf]  ;;  %v13681_v58 = vld [vmem:[%s15786_s29 + $0x164] sm:$0xf] }
 0xa32   : > { %v8747_v53 = vpop.f32.mrf.mxu0  ;;  %v8916_v57 = vpop.f32.mrf.mxu1 }
 0xa33   : > { %v8745_v36 = vadd.f32 %v8744_v20, %v8576_v62  ;;  %8964 = vmatmul.bf16.gmra.mxu2 %v10783_v60  ;;  %9133 = vmatmul.bf16.gmra.mxu3 %v10787_v4  ;;  %v10854_v20 = vld [vmem:[%s15786_s29 + $0x158] sm:$0xf]  ;;  %v13680_v60 = vld [vmem:[%s15786_s29 + $0x15c] sm:$0xf]  ;;  %v10864_v4 = vld [vmem:[%s15786_s29 + $0x1a8] sm:$0xf0] }
 0xa35   : > { %9302 = vmatmul.bf16.gmra.mxu0 %v10791_v13  ;;  %9471 = vmatmul.bf16.gmra.mxu1 %v10795_v49  ;;  %v17755_v9 = vadd.f32 %v8913_v15, %v8745_v36  ;;  %v18552_v49 = vld [vmem:[#allocation26_spill] sm:$0xff] }
 0xa36   : > { %v8409_v0 = vpop.f32.mrf.mxu2  ;;  %v8578_v38 = vpop.f32.mrf.mxu3 }
 0xa37   : > { %18549 = vst [vmem:[#allocation24_spill] sm:$0xff] %v17755_v9  ;;  %v8410_v5 = vadd.f32 %v8409_v0, %v18550_v18  ;;  %v10855_v9 = vor.u32 %v13689_v10, %v10854_v20  ;;  %v10859_v0 = vor.u32 %v13680_v60, %v10856_v55  ;;  %v10867_v18 = vor.u32 %v13681_v58, %v10864_v4  ;;  %v18554_v10 = vld [vmem:[#allocation27_spill] sm:$0xff]  ;;  %v13707_v4 = vld [vmem:[%s15786_s29 + $0x22c] sm:$0xf0] }
 0xa39   : > { %v8579_v44 = vadd.f32 %v8578_v38, %v8410_v5  ;;  %v10863_v38 = vor.u32 %v13690_v39, %v10862_v26 }
 0xa3a   : > { %v8749_v33 = vpop.f32.mrf.mxu0  ;;  %v8918_v7 = vpop.f32.mrf.mxu1 }
 0xa3b   : > { %v8748_v59 = vadd.f32 %v8747_v53, %v8579_v44 }
 0xa3d   : > { %v17766_v13 = vadd.f32 %v8916_v57, %v8748_v59 }
 0xa3e   : > { %v8411_v36 = vpop.f32.mrf.mxu2  ;;  %v8580_v15 = vpop.f32.mrf.mxu3 }
 0xa3f   : > { %18551 = vst [vmem:[#allocation25_spill] sm:$0xff] %v17766_v13  ;;  %v8412_v62 = vadd.f32 %v8411_v36, %v18552_v49  ;;  %v10928_v36 = vld [vmem:[%s15786_s29 + $0x230] sm:$0xf0]  ;;  %v13708_v49 = vld [vmem:[%s15786_s29 + $0x234] sm:$0xf0] }
 0xa41   : > { %v8581_v5 = vadd.f32 %v8580_v15, %v8412_v62  ;;  %v10934_v15 = vld [vmem:[%s15786_s29 + $0x1f0] sm:$0xf]  ;;  %v13699_v62 = vld [vmem:[%s15786_s29 + $0x1f4] sm:$0xf] }
 0xa42   : > { %v8752_v53 = vpop.f32.mrf.mxu0  ;;  %v8921_v44 = vpop.f32.mrf.mxu1 }
 0xa43   : > { %v8750_v43 = vadd.f32 %v8749_v33, %v8581_v5  ;;  %8969 = vmatmul.bf16.gmra.mxu2 %v10855_v9  ;;  %9138 = vmatmul.bf16.gmra.mxu3 %v10859_v0  ;;  %v10926_v33 = vld [vmem:[%s15786_s29 + $0x1e8] sm:$0xf]  ;;  %v13698_v9 = vld [vmem:[%s15786_s29 + $0x1ec] sm:$0xf]  ;;  %v10936_v0 = vld [vmem:[%s15786_s29 + $0x238] sm:$0xf0] }
 0xa45   : > { %9307 = vmatmul.bf16.gmra.mxu0 %v10863_v38  ;;  %9476 = vmatmul.bf16.gmra.mxu1 %v10867_v18  ;;  %v17769_v57 = vadd.f32 %v8918_v7, %v8750_v43  ;;  %v18556_v18 = vld [vmem:[#allocation28_spill] sm:$0xff] }
 0xa46   : > { %v8414_v59 = vpop.f32.mrf.mxu2  ;;  %v8583_v20 = vpop.f32.mrf.mxu3 }
 0xa47   : > { %18553 = vst [vmem:[#allocation26_spill] sm:$0xff] %v17769_v57  ;;  %v8415_v60 = vadd.f32 %v8414_v59, %v18554_v10  ;;  %v10927_v57 = vor.u32 %v13707_v4, %v10926_v33  ;;  %v10931_v59 = vor.u32 %v13698_v9, %v10928_v36  ;;  %v10939_v10 = vor.u32 %v13699_v62, %v10936_v0  ;;  %v18558_v4 = vld [vmem:[#allocation29_spill] sm:$0xff]  ;;  %v13725_v0 = vld [vmem:[%s15786_s29 + $0x2bc] sm:$0xf0] }
 0xa49   : > { %v8584_v55 = vadd.f32 %v8583_v20, %v8415_v60  ;;  %v10935_v20 = vor.u32 %v13708_v49, %v10934_v15 }
 0xa4a   : > { %v8754_v26 = vpop.f32.mrf.mxu0  ;;  %v8923_v39 = vpop.f32.mrf.mxu1 }
 0xa4b   : > { %v8753_v58 = vadd.f32 %v8752_v53, %v8584_v55 }
 0xa4d   : > { %v17780_v38 = vadd.f32 %v8921_v44, %v8753_v58 }
 0xa4e   : > { %v8416_v43 = vpop.f32.mrf.mxu2  ;;  %v8585_v7 = vpop.f32.mrf.mxu3 }
 0xa4f   : > { %18555 = vst [vmem:[#allocation27_spill] sm:$0xff] %v17780_v38  ;;  %v8417_v5 = vadd.f32 %v8416_v43, %v18556_v18  ;;  %v11000_v43 = vld [vmem:[%s15786_s29 + $0x2c0] sm:$0xf0]  ;;  %v13726_v18 = vld [vmem:[%s15786_s29 + $0x2c4] sm:$0xf0] }
 0xa51   : > { %v8586_v60 = vadd.f32 %v8585_v7, %v8417_v5  ;;  %v11006_v7 = vld [vmem:[%s15786_s29 + $0x280] sm:$0xf]  ;;  %v13717_v5 = vld [vmem:[%s15786_s29 + $0x284] sm:$0xf] }
 0xa52   : > { %v8757_v53 = vpop.f32.mrf.mxu0  ;;  %v8926_v55 = vpop.f32.mrf.mxu1 }
 0xa53   : > { %v8755_v13 = vadd.f32 %v8754_v26, %v8586_v60  ;;  %8974 = vmatmul.bf16.gmra.mxu2 %v10927_v57  ;;  %9143 = vmatmul.bf16.gmra.mxu3 %v10931_v59  ;;  %v10998_v26 = vld [vmem:[%s15786_s29 + $0x278] sm:$0xf]  ;;  %v13716_v57 = vld [vmem:[%s15786_s29 + $0x27c] sm:$0xf]  ;;  %v11008_v59 = vld [vmem:[%s15786_s29 + $0x2c8] sm:$0xf0] }
 0xa55   : > { %9312 = vmatmul.bf16.gmra.mxu0 %v10935_v20  ;;  %9481 = vmatmul.bf16.gmra.mxu1 %v10939_v10  ;;  %v17783_v44 = vadd.f32 %v8923_v39, %v8755_v13  ;;  %v18560_v10 = vld [vmem:[#allocation30_spill] sm:$0xff] }
 0xa56   : > { %v8419_v58 = vpop.f32.mrf.mxu2  ;;  %v8588_v33 = vpop.f32.mrf.mxu3 }
 0xa57   : > { %18557 = vst [vmem:[#allocation28_spill] sm:$0xff] %v17783_v44  ;;  %v8420_v9 = vadd.f32 %v8419_v58, %v18558_v4  ;;  %v10999_v44 = vor.u32 %v13725_v0, %v10998_v26  ;;  %v11003_v58 = vor.u32 %v13716_v57, %v11000_v43  ;;  %v11011_v4 = vor.u32 %v13717_v5, %v11008_v59  ;;  %v18562_v0 = vld [vmem:[#allocation31_spill] sm:$0xff]  ;;  %v13743_v59 = vld [vmem:[%s15786_s29 + $0x34c] sm:$0xf0] }
 0xa59   : > { %v8589_v36 = vadd.f32 %v8588_v33, %v8420_v9  ;;  %v11007_v33 = vor.u32 %v13726_v18, %v11006_v7 }
 0xa5a   : > { %v8759_v15 = vpop.f32.mrf.mxu0  ;;  %v8928_v49 = vpop.f32.mrf.mxu1 }
 0xa5b   : > { %v8758_v62 = vadd.f32 %v8757_v53, %v8589_v36 }
 0xa5d   : > { %v17794_v20 = vadd.f32 %v8926_v55, %v8758_v62 }
 0xa5e   : > { %v8421_v13 = vpop.f32.mrf.mxu2  ;;  %v8590_v39 = vpop.f32.mrf.mxu3 }
 0xa5f   : > { %18559 = vst [vmem:[#allocation29_spill] sm:$0xff] %v17794_v20  ;;  %v8422_v60 = vadd.f32 %v8421_v13, %v18560_v10  ;;  %v11072_v13 = vld [vmem:[%s15786_s29 + $0x350] sm:$0xf0]  ;;  %v13744_v10 = vld [vmem:[%s15786_s29 + $0x354] sm:$0xf0] }
 0xa61   : > { %v8591_v9 = vadd.f32 %v8590_v39, %v8422_v60  ;;  %v11078_v39 = vld [vmem:[%s15786_s29 + $0x310] sm:$0xf]  ;;  %v13735_v60 = vld [vmem:[%s15786_s29 + $0x314] sm:$0xf] }
 0xa62   : > { %v8762_v53 = vpop.f32.mrf.mxu0  ;;  %v8931_v36 = vpop.f32.mrf.mxu1 }
 0xa63   : > { %v8760_v38 = vadd.f32 %v8759_v15, %v8591_v9  ;;  %8979 = vmatmul.bf16.gmra.mxu2 %v10999_v44  ;;  %9148 = vmatmul.bf16.gmra.mxu3 %v11003_v58  ;;  %v11070_v15 = vld [vmem:[%s15786_s29 + $0x308] sm:$0xf]  ;;  %v13734_v44 = vld [vmem:[%s15786_s29 + $0x30c] sm:$0xf]  ;;  %v11080_v58 = vld [vmem:[%s15786_s29 + $0x358] sm:$0xf0] }
 0xa65   : > { %9317 = vmatmul.bf16.gmra.mxu0 %v11007_v33  ;;  %9486 = vmatmul.bf16.gmra.mxu1 %v11011_v4  ;;  %v17797_v55 = vadd.f32 %v8928_v49, %v8760_v38  ;;  %v18564_v4 = vld [vmem:[#allocation32_spill] sm:$0xff] }
 0xa66   : > { %v8424_v62 = vpop.f32.mrf.mxu2  ;;  %v8593_v26 = vpop.f32.mrf.mxu3 }
 0xa67   : > { %18561 = vst [vmem:[#allocation30_spill] sm:$0xff] %v17797_v55  ;;  %v8425_v57 = vadd.f32 %v8424_v62, %v18562_v0  ;;  %v11071_v55 = vor.u32 %v13743_v59, %v11070_v15  ;;  %v11075_v62 = vor.u32 %v13734_v44, %v11072_v13  ;;  %v11083_v0 = vor.u32 %v13735_v60, %v11080_v58  ;;  %v13761_v60 = vld [vmem:[%s15786_s29 + $0x3dc] sm:$0xf0]  ;;  %v11144_v58 = vld [vmem:[%s15786_s29 + $0x3e0] sm:$0xf0] }
 0xa69   : > { %v8594_v43 = vadd.f32 %v8593_v26, %v8425_v57  ;;  %v11079_v26 = vor.u32 %v13744_v10, %v11078_v39 }
 0xa6a   : > { %v8764_v7 = vpop.f32.mrf.mxu0  ;;  %v8933_v18 = vpop.f32.mrf.mxu1 }
 0xa6b   : > { %v8763_v5 = vadd.f32 %v8762_v53, %v8594_v43 }
 0xa6d   : > { %v17808_v33 = vadd.f32 %v8931_v36, %v8763_v5 }
 0xa6e   : > { %v8426_v38 = vpop.f32.mrf.mxu2  ;;  %v8595_v49 = vpop.f32.mrf.mxu3 }
 0xa6f   : > { %18563 = vst [vmem:[#allocation31_spill] sm:$0xff] %v17808_v33  ;;  %v8427_v9 = vadd.f32 %v8426_v38, %v18564_v4  ;;  %v11150_v38 = vld [vmem:[%s15786_s29 + $0x3a0] sm:$0xf]  ;;  %v13753_v4 = vld [vmem:[%s15786_s29 + $0x3a4] sm:$0xf] }
 0xa71   : > { %v8596_v57 = vadd.f32 %v8595_v49, %v8427_v9  ;;  %v13762_v49 = vld [vmem:[%s15786_s29 + $0x3e4] sm:$0xf0]  ;;  %v11152_v9 = vld [vmem:[%s15786_s29 + $0x3e8] sm:$0xf0] }
 0xa72   : > { %v8767_v53 = vpop.f32.mrf.mxu0  ;;  %v8936_v43 = vpop.f32.mrf.mxu1 }
 0xa73   : > { %v8765_v20 = vadd.f32 %v8764_v7, %v8596_v57  ;;  %8984 = vmatmul.bf16.gmra.mxu2 %v11071_v55  ;;  %9153 = vmatmul.bf16.gmra.mxu3 %v11075_v62  ;;  %v11142_v7 = vld [vmem:[%s15786_s29 + $0x398] sm:$0xf]  ;;  %v13752_v55 = vld [vmem:[%s15786_s29 + $0x39c] sm:$0xf] }
 0xa74   : > { %v11143_v57 = vor.u32 %v13761_v60, %v11142_v7 }
 0xa75   : > { %9322 = vmatmul.bf16.gmra.mxu0 %v11079_v26  ;;  %9491 = vmatmul.bf16.gmra.mxu1 %v11083_v0  ;;  %v17811_v36 = vadd.f32 %v8933_v18, %v8765_v20  ;;  %v18567_v26 = vld [vmem:[#allocation33_spill] sm:$0xff] }
 0xa76   : > { %v8429_v5 = vpop.f32.mrf.mxu2  ;;  %v8598_v15 = vpop.f32.mrf.mxu3 }
 0xa77   : > { %18565 = vst [vmem:[#allocation32_spill] sm:$0xff] %v17811_v36  ;;  %v8430_v59 = vadd.f32 %v8429_v5, %v17374_v11  ;;  %v11147_v11 = vor.u32 %v13752_v55, %v11144_v58  ;;  %v11151_v5 = vor.u32 %v13762_v49, %v11150_v38 }
 0xa79   : > { %v8599_v44 = vadd.f32 %v8598_v15, %v8430_v59  ;;  %v11155_v15 = vor.u32 %v13753_v4, %v11152_v9  ;;  %v13779_v4 = vld [vmem:[%s15786_s29 + $0x46c] sm:$0xf0]  ;;  %v13770_v9 = vld [vmem:[%s15786_s29 + $0x42c] sm:$0xf] }
 0xa7a   : > { %v8769_v13 = vpop.f32.mrf.mxu0  ;;  %v8938_v39 = vpop.f32.mrf.mxu1 }
 0xa7b   : > { %v8768_v10 = vadd.f32 %v8767_v53, %v8599_v44 }
 0xa7d   : > { %v17822_v62 = vadd.f32 %v8936_v43, %v8768_v10 }
 0xa7e   : > { %v8431_v20 = vpop.f32.mrf.mxu2  ;;  %v8600_v18 = vpop.f32.mrf.mxu3 }
 0xa7f   : > { %18566 = vst [vmem:[#allocation42_spill] sm:$0xff] %v17822_v62  ;;  %v8432_v0 = vadd.f32 %v8431_v20, %v18567_v26  ;;  %v11216_v20 = vld [vmem:[%s15786_s29 + $0x470] sm:$0xf0]  ;;  %v13780_v26 = vld [vmem:[%s15786_s29 + $0x474] sm:$0xf0] }
 0xa81   : > { %v8601_v59 = vadd.f32 %v8600_v18, %v8432_v0  ;;  %v11222_v18 = vld [vmem:[%s15786_s29 + $0x430] sm:$0xf]  ;;  %v13771_v0 = vld [vmem:[%s15786_s29 + $0x434] sm:$0xf] }
 0xa82   : > { %v8772_v53 = vpop.f32.mrf.mxu0  ;;  %v8941_v44 = vpop.f32.mrf.mxu1 }
 0xa83   : > { %v8770_v36 = vadd.f32 %v8769_v13, %v8601_v59  ;;  %8989 = vmatmul.bf16.gmra.mxu2 %v11143_v57  ;;  %9158 = vmatmul.bf16.gmra.mxu3 %v11147_v11  ;;  %v11214_v13 = vld [vmem:[%s15786_s29 + $0x428] sm:$0xf]  ;;  %v11224_v57 = vld [vmem:[%s15786_s29 + $0x478] sm:$0xf0]  ;;  %v11223_v59 = vor.u32 %v13780_v26, %v11222_v18  ;;  %v13797_v26 = vld [vmem:[%s15786_s29 + $0x4fc] sm:$0xf0] }
 0xa85   : > { %9327 = vmatmul.bf16.gmra.mxu0 %v11151_v5  ;;  %9496 = vmatmul.bf16.gmra.mxu1 %v11155_v15  ;;  %v17825_v43 = vadd.f32 %v8938_v39, %v8770_v36  ;;  %v11215_v15 = vor.u32 %v13779_v4, %v11214_v13 }
 0xa86   : > { %v8434_v10 = vpop.f32.mrf.mxu2  ;;  %v8603_v7 = vpop.f32.mrf.mxu3 }
 0xa87   : > { %18568 = vst [vmem:[#allocation33_spill] sm:$0xff] %v17825_v43  ;;  %v8435_v60 = vadd.f32 %v8434_v10, %v17388_v8  ;;  %v11219_v8 = vor.u32 %v13770_v9, %v11216_v20  ;;  %v11227_v10 = vor.u32 %v13771_v0, %v11224_v57  ;;  %v13788_v0 = vld [vmem:[%s15786_s29 + $0x4bc] sm:$0xf]  ;;  %v11288_v57 = vld [vmem:[%s15786_s29 + $0x500] sm:$0xf0] }
 0xa89   : > { %v8604_v55 = vadd.f32 %v8603_v7, %v8435_v60 }
 0xa8a   : > { %v8774_v58 = vpop.f32.mrf.mxu0  ;;  %v8943_v38 = vpop.f32.mrf.mxu1 }
 0xa8b   : > { %v8773_v49 = vadd.f32 %v8772_v53, %v8604_v55 }
 0xa8d   : > { %v17836_v11 = vadd.f32 %v8941_v44, %v8773_v49 }
 0xa8e   : > { %v8436_v36 = vpop.f32.mrf.mxu2  ;;  %v8605_v39 = vpop.f32.mrf.mxu3 }
 0xa8f   : > { %18569 = vst [vmem:[#allocation43_spill] sm:$0xff] %v17836_v11  ;;  %v8437_v5 = vadd.f32 %v8436_v36, %v17391_v3  ;;  %v11294_v36 = vld [vmem:[%s15786_s29 + $0x4c0] sm:$0xf] }
 0xa91   : > { %v8606_v7 = vadd.f32 %v8605_v39, %v8437_v5  ;;  %v13798_v39 = vld [vmem:[%s15786_s29 + $0x504] sm:$0xf0]  ;;  %v13789_v5 = vld [vmem:[%s15786_s29 + $0x4c4] sm:$0xf] }
 0xa92   : > { %v8777_v53 = vpop.f32.mrf.mxu0  ;;  %v8946_v60 = vpop.f32.mrf.mxu1 }
 0xa93   : > { %v8775_v55 = vadd.f32 %v8774_v58, %v8606_v7  ;;  %8994 = vmatmul.bf16.gmra.mxu2 %v11215_v15  ;;  %9163 = vmatmul.bf16.gmra.mxu3 %v11219_v8  ;;  %v11286_v58 = vld [vmem:[%s15786_s29 + $0x4b8] sm:$0xf]  ;;  %v11296_v15 = vld [vmem:[%s15786_s29 + $0x508] sm:$0xf0] }
 0xa95   : > { %9332 = vmatmul.bf16.gmra.mxu0 %v11223_v59  ;;  %9501 = vmatmul.bf16.gmra.mxu1 %v11227_v10  ;;  %v17839_v3 = vadd.f32 %v8943_v38, %v8775_v55  ;;  %v18572_v10 = vld [vmem:[#allocation34_spill] sm:$0xff]  ;;  %v11287_v55 = vor.u32 %v13797_v26, %v11286_v58 }
 0xa96   : > { %v8439_v44 = vpop.f32.mrf.mxu2  ;;  %v8608_v49 = vpop.f32.mrf.mxu3 }
 0xa97   : > { %18570 = vst [vmem:[#allocation44_spill] sm:$0xff] %v17839_v3  ;;  %v8440_v13 = vadd.f32 %v8439_v44, %v17402_v45  ;;  %v11291_v45 = vor.u32 %v13788_v0, %v11288_v57  ;;  %v11295_v44 = vor.u32 %v13798_v39, %v11294_v36  ;;  %v17859_v36 = vld [vmem:[%s18383_s3] ss:$0 sm:$0xff] }
 0xa99   : > { %v8609_v4 = vadd.f32 %v8608_v49, %v8440_v13  ;;  %v11299_v49 = vor.u32 %v13789_v5, %v11296_v15  ;;  %v13815_v5 = vld [vmem:[%s15786_s29 + $0x58c] sm:$0xf0]  ;;  %v13806_v15 = vld [vmem:[%s15786_s29 + $0x54c] sm:$0xf] }
 0xa9a   : > { %v8779_v9 = vpop.f32.mrf.mxu0  ;;  %v8948_v20 = vpop.f32.mrf.mxu1 }
 0xa9b   : > { %v8778_v18 = vadd.f32 %v8777_v53, %v8609_v4 }
 0xa9d   : > { %v17850_v8 = vadd.f32 %v8946_v60, %v8778_v18 }
 0xa9e   : > { %v8441_v38 = vpop.f32.mrf.mxu2  ;;  %v8610_v59 = vpop.f32.mrf.mxu3 }
 0xa9f   : > { %18571 = vst [vmem:[#allocation45_spill] sm:$0xff] %v17850_v8  ;;  %v8442_v7 = vadd.f32 %v8441_v38, %v18572_v10  ;;  %v11360_v38 = vld [vmem:[%s15786_s29 + $0x590] sm:$0xf0]  ;;  %v13816_v10 = vld [vmem:[%s15786_s29 + $0x594] sm:$0xf0] }
 0xaa1   : > { %v8611_v13 = vadd.f32 %v8610_v59, %v8442_v7  ;;  %v11366_v59 = vld [vmem:[%s15786_s29 + $0x550] sm:$0xf]  ;;  %v13807_v7 = vld [vmem:[%s15786_s29 + $0x554] sm:$0xf] }
 0xaa2   : > { %v9298_v53 = vpop.f32.mrf.mxu0  ;;  %v9467_v4 = vpop.f32.mrf.mxu1 }
 0xaa3   : > { %v8780_v3 = vadd.f32 %v8779_v9, %v8611_v13  ;;  %8999 = vmatmul.bf16.gmra.mxu2 %v11287_v55  ;;  %9168 = vmatmul.bf16.gmra.mxu3 %v11291_v45  ;;  %v11368_v55 = vld [vmem:[%s15786_s29 + $0x598] sm:$0xf0] }
 0xaa4   : > { %v18574_v13 = vld [vmem:[#allocation35_spill] sm:$0xff] }
 0xaa5   : > { %9337 = vmatmul.bf16.gmra.mxu0 %v11295_v44  ;;  %9506 = vmatmul.bf16.gmra.mxu1 %v11299_v49  ;;  %v17853_v60 = vadd.f32 %v8948_v20, %v8780_v3  ;;  %v17864_v3 = vld [vmem:[%s18384_s4] ss:$0 sm:$0xff]  ;;  %v11358_v20 = vld [vmem:[%s15786_s29 + $0x548] sm:$0xf] }
 0xaa6   : > { %v8960_v18 = vpop.f32.mrf.mxu2  ;;  %v9129_v58 = vpop.f32.mrf.mxu3 }
 0xaa7   : > { %18573 = vst [vmem:[#allocation34_spill] sm:$0xff] %v17853_v60  ;;  %v8961_v26 = vadd.f32 %v8960_v18, %v17416_v2  ;;  %v11359_v18 = vor.u32 %v13815_v5, %v11358_v20 }
 0xaa9   : > { %v9130_v0 = vadd.f32 %v9129_v58, %v8961_v26  ;;  %v11363_v58 = vor.u32 %v13806_v15, %v11360_v38  ;;  %v11367_v26 = vor.u32 %v13816_v10, %v11366_v59 }
 0xaaa   : > { %v9300_v57 = vpop.f32.mrf.mxu0  ;;  %v9469_v9 = vpop.f32.mrf.mxu1 }
 0xaab   : > { %v9299_v39 = vadd.f32 %v9298_v53, %v9130_v0  ;;  %v11371_v0 = vor.u32 %v13807_v7, %v11368_v55  ;;  %v11430_v7 = vld [vmem:[%s15786_s29 + $0x5d8] sm:$0xf] }
 0xaad   : > { %v9468_v2 = vadd.f32 %v9467_v4, %v9299_v39 }
 0xaae   : > { %v8962_v45 = vpop.f32.mrf.mxu2  ;;  %v9131_v44 = vpop.f32.mrf.mxu3 }
 0xaaf   : > { %v9631_v49 = vmul.f32 %v17859_v36, %v9468_v2  ;;  %v8963_v53 = vadd.f32 %v8962_v45, %v18574_v13  ;;  %v13824_v45 = vld [vmem:[%s15786_s29 + $0x5dc] sm:$0xf]  ;;  %v13834_v13 = vld [vmem:[%s15786_s29 + $0x624] sm:$0xf0] }
 0xab1   : > { %v9699_v60 = vadd.f32 %v17864_v3, %v9631_v49  ;;  %v9132_v8 = vadd.f32 %v9131_v44, %v8963_v53  ;;  %v11432_v44 = vld [vmem:[%s15786_s29 + $0x620] sm:$0xf0]  ;;  %v11438_v49 = vld [vmem:[%s15786_s29 + $0x5e0] sm:$0xf] }
 0xab2   : > { %v9303_v11 = vpop.f32.mrf.mxu0  ;;  %v9472_v43 = vpop.f32.mrf.mxu1 }
 0xab3   : > { %v9827_v62 = vmin.f32 %v9699_v60, 0.0  ;;  %v9301_v4 = vadd.f32 %v9300_v57, %v9132_v8  ;;  %9004 = vmatmul.bf16.gmra.mxu2 %v11359_v18  ;;  %9173 = vmatmul.bf16.gmra.mxu3 %v11363_v58  ;;  %vm9763_vm1 = vcmp.gt.f32.partialorder %v9699_v60, 0.0 }
 0xab5   : > { %9342 = vmatmul.bf16.gmra.mxu0 %v11367_v26  ;;  %9511 = vmatmul.bf16.gmra.mxu1 %v11371_v0  ;;  %v9891_v39 = vmul.f32 1.442695, %v9827_v62  ;;  %v9470_v20 = vadd.f32 %v9469_v9, %v9301_v4  ;;  %v13833_v62 = vld [vmem:[%s15786_s29 + $0x61c] sm:$0xf0]  ;;  %v11440_v26 = vld [vmem:[%s15786_s29 + $0x628] sm:$0xf0] }
 0xab6   : > { %v8965_v5 = vpop.f32.mrf.mxu2  ;;  %v9134_v15 = vpop.f32.mrf.mxu3 }
 0xab7   : > { %15357 = vpow2.f32 %v9891_v39  ;;  %v9632_v38 = vmul.f32 %v17859_v36, %v9470_v20  ;;  %v8966_v59 = vadd.f32 %v8965_v5, %v17430_v35  ;;  %v13825_v35 = vld [vmem:[%s15786_s29 + $0x5e4] sm:$0xf]  ;;  %v11431_v20 = vor.u32 %v13833_v62, %v11430_v7 }
 0xab8   : > { %v11435_v5 = vor.u32 %v13824_v45, %v11432_v44 }
 0xab9   : > { %v9700_v8 = vadd.f32 %v17864_v3, %v9632_v38  ;;  %v9135_v57 = vadd.f32 %v9134_v15, %v8966_v59  ;;  %v11439_v59 = vor.u32 %v13834_v13, %v11438_v49 }
 0xaba   : > { %v9305_v2 = vpop.f32.mrf.mxu0  ;;  %v9474_v10 = vpop.f32.mrf.mxu1 }
 0xabb   : > { %v9828_v55 = vmin.f32 %v9700_v8, 0.0  ;;  %v9304_v9 = vadd.f32 %v9303_v11, %v9135_v57  ;;  %v11443_v57 = vor.u32 %v13825_v35, %v11440_v26  ;;  %vm9764_vm2 = vcmp.gt.f32.partialorder %v9700_v8, 0.0  ;;  %v11502_v35 = vld [vmem:[%s15786_s29 + $0x668] sm:$0xf]  ;;  %v13851_v26 = vld [vmem:[%s15786_s29 + $0x6ac] sm:$0xf0] }
 0xabd   : > { %v15358_v53 = vpop.eup %15357  ;;  %v9893_v18 = vmul.f32 1.442695, %v9828_v55  ;;  %v9473_v58 = vadd.f32 %v9472_v43, %v9304_v9 }
 0xabe   : > { %v13532_v0 = vadd.f32 -1.0, %v15358_v53  ;;  %v8967_v4 = vpop.f32.mrf.mxu2  ;;  %v9136_v39 = vpop.f32.mrf.mxu3 }
 0xabf   : > { %15359 = vpow2.f32 %v9893_v18  ;;  %v9633_v15 = vmul.f32 %v17859_v36, %v9473_v58  ;;  %v8968_v11 = vadd.f32 %v8967_v4, %v17433_v56 }
 0xac0   : > { %v10083_v38 = vsel %vm9763_vm1, %v9699_v60, %v13532_v0 }
 0xac1   : > { %10147 = vst [vmem:[%s15802_s9] sm:$0xff] %v10083_v38  ;;  %v9701_v55 = vadd.f32 %v17864_v3, %v9633_v15  ;;  %v9137_v43 = vadd.f32 %v9136_v39, %v8968_v11  ;;  %v13842_v39 = vld [vmem:[%s15786_s29 + $0x66c] sm:$0xf]  ;;  %v13852_v15 = vld [vmem:[%s15786_s29 + $0x6b4] sm:$0xf0] }
 0xac2   : > { %v9308_v9 = vpop.f32.mrf.mxu0  ;;  %v9477_v33 = vpop.f32.mrf.mxu1 }
 0xac3   : > { %v9829_v53 = vmin.f32 %v9701_v55, 0.0  ;;  %v9306_v50 = vadd.f32 %v9305_v2, %v9137_v43  ;;  %9009 = vmatmul.bf16.gmra.mxu2 %v11431_v20  ;;  %9178 = vmatmul.bf16.gmra.mxu3 %v11435_v5  ;;  %v11504_v20 = vld [vmem:[%s15786_s29 + $0x6b0] sm:$0xf0]  ;;  %v11510_v5 = vld [vmem:[%s15786_s29 + $0x670] sm:$0xf]  ;;  %vm9765_vm3 = vcmp.gt.f32.partialorder %v9701_v55, 0.0 }
 0xac5   : > { %9347 = vmatmul.bf16.gmra.mxu0 %v11439_v59  ;;  %9516 = vmatmul.bf16.gmra.mxu1 %v11443_v57  ;;  %v15360_v7 = vpop.eup %15359  ;;  %v9895_v62 = vmul.f32 1.442695, %v9829_v53  ;;  %v9475_v56 = vadd.f32 %v9474_v10, %v9306_v50  ;;  %v11512_v59 = vld [vmem:[%s15786_s29 + $0x6b8] sm:$0xf0] }
 0xac6   : > { %v13533_v60 = vadd.f32 -1.0, %v15360_v7  ;;  %v8970_v45 = vpop.f32.mrf.mxu2  ;;  %v9139_v44 = vpop.f32.mrf.mxu3  ;;  %v11503_v7 = vor.u32 %v13851_v26, %v11502_v35 }
 0xac7   : > { %15361 = vpow2.f32 %v9895_v62  ;;  %v9634_v2 = vmul.f32 %v17859_v36, %v9475_v56  ;;  %v8971_v49 = vadd.f32 %v8970_v45, %v17444_v31  ;;  %v11507_v62 = vor.u32 %v13842_v39, %v11504_v20 }
 0xac8   : > { %v10084_v13 = vsel %vm9764_vm2, %v9700_v8, %v13533_v60  ;;  %v13843_v8 = vld [vmem:[%s15786_s29 + $0x674] sm:$0xf]  ;;  %v11511_v45 = vor.u32 %v13852_v15, %v11510_v5 }
 0xac9   : > { %10148 = vst [vmem:[%s15802_s9 + $0x8] sm:$0xff] %v10084_v13  ;;  %v9702_v18 = vadd.f32 %v17864_v3, %v9634_v2  ;;  %v9140_v50 = vadd.f32 %v9139_v44, %v8971_v49  ;;  %v11515_v44 = vor.u32 %v13843_v8, %v11512_v59  ;;  %v13869_v8 = vld [vmem:[%s15786_s29 + $0x73c] sm:$0xf0] }
 0xaca   : > { %v9310_v10 = vpop.f32.mrf.mxu0  ;;  %v9479_v58 = vpop.f32.mrf.mxu1 }
 0xacb   : > { %v9830_v0 = vmin.f32 %v9702_v18, 0.0  ;;  %v9309_v4 = vadd.f32 %v9308_v9, %v9140_v50  ;;  %vm9766_vm4 = vcmp.gt.f32.partialorder %v9702_v18, 0.0 }
 0xacd   : > { %v15362_v11 = vpop.eup %15361  ;;  %v9897_v38 = vmul.f32 1.442695, %v9830_v0  ;;  %v9478_v31 = vadd.f32 %v9477_v33, %v9309_v4 }
 0xace   : > { %v13534_v57 = vadd.f32 -1.0, %v15362_v11  ;;  %v8972_v43 = vpop.f32.mrf.mxu2  ;;  %v9141_v53 = vpop.f32.mrf.mxu3 }
 0xacf   : > { %15363 = vpow2.f32 %v9897_v38  ;;  %v9635_v56 = vmul.f32 %v17859_v36, %v9478_v31  ;;  %v8973_v9 = vadd.f32 %v8972_v43, %v17447_v24  ;;  %v11574_v31 = vld [vmem:[%s15786_s29 + $0x6f8] sm:$0xf]  ;;  %v13860_v43 = vld [vmem:[%s15786_s29 + $0x6fc] sm:$0xf] }
 0xad0   : > { %v10085_v60 = vsel %vm9765_vm3, %v9701_v55, %v13534_v57 }
 0xad1   : > { %10149 = vst [vmem:[%s15802_s9 + $0x10] sm:$0xff] %v10085_v60  ;;  %v9703_v2 = vadd.f32 %v17864_v3, %v9635_v56  ;;  %v9142_v33 = vadd.f32 %v9141_v53, %v8973_v9  ;;  %v11576_v53 = vld [vmem:[%s15786_s29 + $0x740] sm:$0xf0]  ;;  %v11584_v60 = vld [vmem:[%s15786_s29 + $0x748] sm:$0xf0] }
 0xad2   : > { %v9313_v49 = vpop.f32.mrf.mxu0  ;;  %v9482_v13 = vpop.f32.mrf.mxu1 }
 0xad3   : > { %v9831_v50 = vmin.f32 %v9703_v2, 0.0  ;;  %v9311_v0 = vadd.f32 %v9310_v10, %v9142_v33  ;;  %9014 = vmatmul.bf16.gmra.mxu2 %v11503_v7  ;;  %9183 = vmatmul.bf16.gmra.mxu3 %v11507_v62  ;;  %v11582_v7 = vld [vmem:[%s15786_s29 + $0x700] sm:$0xf]  ;;  %v13870_v62 = vld [vmem:[%s15786_s29 + $0x744] sm:$0xf0]  ;;  %vm9767_vm5 = vcmp.gt.f32.partialorder %v9703_v2, 0.0 }
 0xad5   : > { %9352 = vmatmul.bf16.gmra.mxu0 %v11511_v45  ;;  %9521 = vmatmul.bf16.gmra.mxu1 %v11515_v44  ;;  %v15364_v35 = vpop.eup %15363  ;;  %v9899_v26 = vmul.f32 1.442695, %v9831_v50  ;;  %v9480_v24 = vadd.f32 %v9479_v58, %v9311_v0  ;;  %v11575_v50 = vor.u32 %v13869_v8, %v11574_v31  ;;  %v11579_v0 = vor.u32 %v13860_v43, %v11576_v53 }
 0xad6   : > { %v13535_v55 = vadd.f32 -1.0, %v15364_v35  ;;  %v8975_v4 = vpop.f32.mrf.mxu2  ;;  %v9144_v39 = vpop.f32.mrf.mxu3 }
 0xad7   : > { %15365 = vpow2.f32 %v9899_v26  ;;  %v9636_v10 = vmul.f32 %v17859_v36, %v9480_v24  ;;  %v8976_v20 = vadd.f32 %v8975_v4, %v17458_v19  ;;  %v11583_v24 = vor.u32 %v13870_v62, %v11582_v7 }
 0xad8   : > { %v10086_v5 = vsel %vm9766_vm4, %v9702_v18, %v13535_v55  ;;  %v13861_v18 = vld [vmem:[%s15786_s29 + $0x704] sm:$0xf] }
 0xad9   : > { %10150 = vst [vmem:[%s15802_s9 + $0x18] sm:$0xff] %v10086_v5  ;;  %v9704_v15 = vadd.f32 %v17864_v3, %v9636_v10  ;;  %v9145_v58 = vadd.f32 %v9144_v39, %v8976_v20  ;;  %v11587_v55 = vor.u32 %v13861_v18, %v11584_v60  ;;  %v13878_v60 = vld [vmem:[%s15786_s29 + $0x78c] sm:$0xf] }
 0xada   : > { %v9315_v11 = vpop.f32.mrf.mxu0  ;;  %v9484_v38 = vpop.f32.mrf.mxu1 }
 0xadb   : > { %v9832_v59 = vmin.f32 %v9704_v15, 0.0  ;;  %v9314_v57 = vadd.f32 %v9313_v49, %v9145_v58  ;;  %vm9768_vm6 = vcmp.gt.f32.partialorder %v9704_v15, 0.0 }
 0xadd   : > { %v15366_v56 = vpop.eup %15365  ;;  %v9901_v9 = vmul.f32 1.442695, %v9832_v59  ;;  %v9483_v19 = vadd.f32 %v9482_v13, %v9314_v57 }
 0xade   : > { %v13536_v45 = vadd.f32 -1.0, %v15366_v56  ;;  %v8977_v44 = vpop.f32.mrf.mxu2  ;;  %v9146_v33 = vpop.f32.mrf.mxu3  ;;  %v11646_v56 = vld [vmem:[%s15786_s29 + $0x788] sm:$0xf] }
 0xadf   : > { %15367 = vpow2.f32 %v9901_v9  ;;  %v9637_v35 = vmul.f32 %v17859_v36, %v9483_v19  ;;  %v8978_v49 = vadd.f32 %v8977_v44, %v17461_v51  ;;  %v13887_v9 = vld [vmem:[%s15786_s29 + $0x7cc] sm:$0xf0] }
 0xae0   : > { %v10087_v26 = vsel %vm9767_vm5, %v9703_v2, %v13536_v45  ;;  %v11648_v45 = vld [vmem:[%s15786_s29 + $0x7d0] sm:$0xf0]  ;;  %v11654_v44 = vld [vmem:[%s15786_s29 + $0x790] sm:$0xf] }
 0xae1   : > { %10151 = vst [vmem:[%s15802_s9 + $0x20] sm:$0xff] %v10087_v26  ;;  %v9705_v4 = vadd.f32 %v17864_v3, %v9637_v35  ;;  %v9147_v13 = vadd.f32 %v9146_v33, %v8978_v49  ;;  %v13888_v33 = vld [vmem:[%s15786_s29 + $0x7d4] sm:$0xf0]  ;;  %v11656_v35 = vld [vmem:[%s15786_s29 + $0x7d8] sm:$0xf0] }
 0xae2   : > { %v9318_v39 = vpop.f32.mrf.mxu0  ;;  %v9487_v10 = vpop.f32.mrf.mxu1 }
 0xae3   : > { %v9833_v20 = vmin.f32 %v9705_v4, 0.0  ;;  %v9316_v5 = vadd.f32 %v9315_v11, %v9147_v13  ;;  %9019 = vmatmul.bf16.gmra.mxu2 %v11575_v50  ;;  %9188 = vmatmul.bf16.gmra.mxu3 %v11579_v0  ;;  %v11651_v13 = vor.u32 %v13878_v60, %v11648_v45  ;;  %vm9769_vm7 = vcmp.gt.f32.partialorder %v9705_v4, 0.0 }
 0xae5   : > { %9357 = vmatmul.bf16.gmra.mxu0 %v11583_v24  ;;  %9526 = vmatmul.bf16.gmra.mxu1 %v11587_v55  ;;  %v15368_v58 = vpop.eup %15367  ;;  %v9903_v31 = vmul.f32 1.442695, %v9833_v20  ;;  %v9485_v51 = vadd.f32 %v9484_v38, %v9316_v5  ;;  %v11647_v55 = vor.u32 %v13887_v9, %v11646_v56 }
 0xae6   : > { %v13537_v2 = vadd.f32 -1.0, %v15368_v58  ;;  %v8980_v8 = vpop.f32.mrf.mxu2  ;;  %v9149_v59 = vpop.f32.mrf.mxu3  ;;  %v11655_v58 = vor.u32 %v13888_v33, %v11654_v44  ;;  %v11718_v44 = vld [vmem:[%s15786_s29 + $0x818] sm:$0xf]  ;;  %v13905_v33 = vld [vmem:[%s15786_s29 + $0x85c] sm:$0xf0] }
 0xae7   : > { %15369 = vpow2.f32 %v9903_v31  ;;  %v9638_v11 = vmul.f32 %v17859_v36, %v9485_v51  ;;  %v8981_v57 = vadd.f32 %v8980_v8, %v17472_v21 }
 0xae8   : > { %v10088_v43 = vsel %vm9768_vm6, %v9704_v15, %v13537_v2  ;;  %v13879_v15 = vld [vmem:[%s15786_s29 + $0x794] sm:$0xf] }
 0xae9   : > { %10152 = vst [vmem:[%s15802_s9 + $0x28] sm:$0xff] %v10088_v43  ;;  %v9706_v53 = vadd.f32 %v17864_v3, %v9638_v11  ;;  %v9150_v38 = vadd.f32 %v9149_v59, %v8981_v57  ;;  %v11659_v31 = vor.u32 %v13879_v15, %v11656_v35  ;;  %v11720_v15 = vld [vmem:[%s15786_s29 + $0x860] sm:$0xf0]  ;;  %v11726_v35 = vld [vmem:[%s15786_s29 + $0x820] sm:$0xf] }
 0xaea   : > { %v9320_v7 = vpop.f32.mrf.mxu0  ;;  %v9489_v62 = vpop.f32.mrf.mxu1 }
 0xaeb   : > { %v9834_v19 = vmin.f32 %v9706_v53, 0.0  ;;  %v9319_v18 = vadd.f32 %v9318_v39, %v9150_v38  ;;  %vm9770_vm8 = vcmp.gt.f32.partialorder %v9706_v53, 0.0 }
 0xaed   : > { %v15370_v50 = vpop.eup %15369  ;;  %v9905_v0 = vmul.f32 1.442695, %v9834_v19  ;;  %v9488_v21 = vadd.f32 %v9487_v10, %v9319_v18 }
 0xaee   : > { %v13538_v49 = vadd.f32 -1.0, %v15370_v50  ;;  %v8982_v26 = vpop.f32.mrf.mxu2  ;;  %v9151_v24 = vpop.f32.mrf.mxu3 }
 0xaef   : > { %15371 = vpow2.f32 %v9905_v0  ;;  %v9639_v20 = vmul.f32 %v17859_v36, %v9488_v21  ;;  %v8983_v39 = vadd.f32 %v8982_v26, %v17475_v22  ;;  %v13896_v21 = vld [vmem:[%s15786_s29 + $0x81c] sm:$0xf] }
 0xaf0   : > { %v10089_v5 = vsel %vm9769_vm7, %v9705_v4, %v13538_v49  ;;  %v13906_v49 = vld [vmem:[%s15786_s29 + $0x864] sm:$0xf0] }
 0xaf1   : > { %10153 = vst [vmem:[%s15802_s9 + $0x30] sm:$0xff] %v10089_v5  ;;  %v9707_v51 = vadd.f32 %v17864_v3, %v9639_v20  ;;  %v9152_v10 = vadd.f32 %v9151_v24, %v8983_v39  ;;  %v11719_v5 = vor.u32 %v13905_v33, %v11718_v44 }
 0xaf2   : > { %v9323_v2 = vpop.f32.mrf.mxu0  ;;  %v9492_v8 = vpop.f32.mrf.mxu1 }
 0xaf3   : > { %v9835_v59 = vmin.f32 %v9707_v51, 0.0  ;;  %v9321_v11 = vadd.f32 %v9320_v7, %v9152_v10  ;;  %9024 = vmatmul.bf16.gmra.mxu2 %v11647_v55  ;;  %9193 = vmatmul.bf16.gmra.mxu3 %v11651_v13  ;;  %v11728_v55 = vld [vmem:[%s15786_s29 + $0x868] sm:$0xf0]  ;;  %vm9771_vm9 = vcmp.gt.f32.partialorder %v9707_v51, 0.0 }
 0xaf5   : > { %9362 = vmatmul.bf16.gmra.mxu0 %v11655_v58  ;;  %9531 = vmatmul.bf16.gmra.mxu1 %v11659_v31  ;;  %v15372_v57 = vpop.eup %15371  ;;  %v9907_v43 = vmul.f32 1.442695, %v9835_v59  ;;  %v9490_v22 = vadd.f32 %v9489_v62, %v9321_v11  ;;  %v11723_v58 = vor.u32 %v13896_v21, %v11720_v15  ;;  %v11727_v59 = vor.u32 %v13906_v49, %v11726_v35  ;;  %v11790_v21 = vld [vmem:[%s15786_s29 + $0x8a8] sm:$0xf]  ;;  %v13923_v15 = vld [vmem:[%s15786_s29 + $0x8ec] sm:$0xf0] }
 0xaf6   : > { %v13539_v4 = vadd.f32 -1.0, %v15372_v57  ;;  %v8985_v38 = vpop.f32.mrf.mxu2  ;;  %v9154_v56 = vpop.f32.mrf.mxu3 }
 0xaf7   : > { %15373 = vpow2.f32 %v9907_v43  ;;  %v9640_v7 = vmul.f32 %v17859_v36, %v9490_v22  ;;  %v8986_v9 = vadd.f32 %v8985_v38, %v17486_v29 }
 0xaf8   : > { %v10090_v19 = vsel %vm9770_vm8, %v9706_v53, %v13539_v4  ;;  %v13897_v53 = vld [vmem:[%s15786_s29 + $0x824] sm:$0xf] }
 0xaf9   : > { %10154 = vst [vmem:[%s15802_s9 + $0x38] sm:$0xff] %v10090_v19  ;;  %v9708_v18 = vadd.f32 %v17864_v3, %v9640_v7  ;;  %v9155_v62 = vadd.f32 %v9154_v56, %v8986_v9  ;;  %v11731_v11 = vor.u32 %v13897_v53, %v11728_v55  ;;  %v13924_v53 = vld [vmem:[%s15786_s29 + $0x8f4] sm:$0xf0] }
 0xafa   : > { %v9325_v60 = vpop.f32.mrf.mxu0  ;;  %v9494_v45 = vpop.f32.mrf.mxu1 }
 0xafb   : > { %v9836_v50 = vmin.f32 %v9708_v18, 0.0  ;;  %v9324_v0 = vadd.f32 %v9323_v2, %v9155_v62  ;;  %vm9772_vm10 = vcmp.gt.f32.partialorder %v9708_v18, 0.0 }
 0xafd   : > { %v15374_v26 = vpop.eup %15373  ;;  %v9909_v24 = vmul.f32 1.442695, %v9836_v50  ;;  %v9493_v29 = vadd.f32 %v9492_v8, %v9324_v0 }
 0xafe   : > { %v13540_v13 = vadd.f32 -1.0, %v15374_v26  ;;  %v8987_v20 = vpop.f32.mrf.mxu2  ;;  %v9156_v39 = vpop.f32.mrf.mxu3  ;;  %v13914_v26 = vld [vmem:[%s15786_s29 + $0x8ac] sm:$0xf] }
 0xaff   : > { %15375 = vpow2.f32 %v9909_v24  ;;  %v9641_v31 = vmul.f32 %v17859_v36, %v9493_v29  ;;  %v8988_v10 = vadd.f32 %v8987_v20, %v17489_v14  ;;  %v11792_v24 = vld [vmem:[%s15786_s29 + $0x8f0] sm:$0xf0]  ;;  %v11798_v29 = vld [vmem:[%s15786_s29 + $0x8b0] sm:$0xf]  ;;  %v11800_v20 = vld [vmem:[%s15786_s29 + $0x8f8] sm:$0xf0] }
 0xb00   : > { %v10091_v2 = vsel %vm9771_vm9, %v9707_v51, %v13540_v13 }
 0xb01   : > { %10155 = vst [vmem:[%s15802_s9 + $0x40] sm:$0xff] %v10091_v2  ;;  %v9709_v57 = vadd.f32 %v17864_v3, %v9641_v31  ;;  %v9157_v8 = vadd.f32 %v9156_v39, %v8988_v10  ;;  %v11791_v31 = vor.u32 %v13923_v15, %v11790_v21  ;;  %v11795_v10 = vor.u32 %v13914_v26, %v11792_v24 }
 0xb02   : > { %v9328_v43 = vpop.f32.mrf.mxu0  ;;  %v9497_v22 = vpop.f32.mrf.mxu1 }
 0xb03   : > { %v9837_v4 = vmin.f32 %v9709_v57, 0.0  ;;  %v9326_v38 = vadd.f32 %v9325_v60, %v9157_v8  ;;  %9029 = vmatmul.bf16.gmra.mxu2 %v11719_v5  ;;  %9198 = vmatmul.bf16.gmra.mxu3 %v11723_v58  ;;  %vm9773_vm11 = vcmp.gt.f32.partialorder %v9709_v57, 0.0  ;;  %v11799_v8 = vor.u32 %v13924_v53, %v11798_v29  ;;  %v13932_v29 = vld [vmem:[%s15786_s29 + $0x93c] sm:$0xf]  ;;  %v11864_v53 = vld [vmem:[%s15786_s29 + $0x980] sm:$0xf0] }
 0xb05   : > { %9367 = vmatmul.bf16.gmra.mxu0 %v11727_v59  ;;  %9536 = vmatmul.bf16.gmra.mxu1 %v11731_v11  ;;  %v15376_v56 = vpop.eup %15375  ;;  %v9911_v7 = vmul.f32 1.442695, %v9837_v4  ;;  %v9495_v14 = vadd.f32 %v9494_v45, %v9326_v38 }
 0xb06   : > { %v13541_v51 = vadd.f32 -1.0, %v15376_v56  ;;  %v8990_v9 = vpop.f32.mrf.mxu2  ;;  %v9159_v19 = vpop.f32.mrf.mxu3 }
 0xb07   : > { %15377 = vpow2.f32 %v9911_v7  ;;  %v9642_v62 = vmul.f32 %v17859_v36, %v9495_v14  ;;  %v8991_v60 = vadd.f32 %v8990_v9, %v17500_v48 }
 0xb08   : > { %v10092_v44 = vsel %vm9772_vm10, %v9708_v18, %v13541_v51  ;;  %v13915_v18 = vld [vmem:[%s15786_s29 + $0x8b4] sm:$0xf] }
 0xb09   : > { %10156 = vst [vmem:[%s15802_s9 + $0x48] sm:$0xff] %v10092_v44  ;;  %v9710_v33 = vadd.f32 %v17864_v3, %v9642_v62  ;;  %v9160_v45 = vadd.f32 %v9159_v19, %v8991_v60 }
 0xb0a   : > { %v9330_v50 = vpop.f32.mrf.mxu0  ;;  %v9499_v0 = vpop.f32.mrf.mxu1 }
 0xb0b   : > { %v9838_v35 = vmin.f32 %v9710_v33, 0.0  ;;  %v9329_v49 = vadd.f32 %v9328_v43, %v9160_v45  ;;  %v11803_v43 = vor.u32 %v13915_v18, %v11800_v20  ;;  %vm9774_vm12 = vcmp.gt.f32.partialorder %v9710_v33, 0.0  ;;  %v11872_v20 = vld [vmem:[%s15786_s29 + $0x988] sm:$0xf0] }
 0xb0d   : > { %v15378_v55 = vpop.eup %15377  ;;  %v9913_v13 = vmul.f32 1.442695, %v9838_v35  ;;  %v9498_v48 = vadd.f32 %v9497_v22, %v9329_v49  ;;  %v11862_v35 = vld [vmem:[%s15786_s29 + $0x938] sm:$0xf]  ;;  %v13941_v49 = vld [vmem:[%s15786_s29 + $0x97c] sm:$0xf0] }
 0xb0e   : > { %v13542_v39 = vadd.f32 -1.0, %v15378_v55  ;;  %v8992_v5 = vpop.f32.mrf.mxu2  ;;  %v9161_v58 = vpop.f32.mrf.mxu3  ;;  %v11870_v55 = vld [vmem:[%s15786_s29 + $0x940] sm:$0xf] }
 0xb0f   : > { %15379 = vpow2.f32 %v9913_v13  ;;  %v9643_v2 = vmul.f32 %v17859_v36, %v9498_v48  ;;  %v8993_v59 = vadd.f32 %v8992_v5, %v17503_v34  ;;  %v13942_v13 = vld [vmem:[%s15786_s29 + $0x984] sm:$0xf0] }
 0xb10   : > { %v10093_v11 = vsel %vm9773_vm11, %v9709_v57, %v13542_v39 }
 0xb11   : > { %10157 = vst [vmem:[%s15802_s9 + $0x50] sm:$0xff] %v10093_v11  ;;  %v9711_v4 = vadd.f32 %v17864_v3, %v9643_v2  ;;  %v9162_v22 = vadd.f32 %v9161_v58, %v8993_v59 }
 0xb12   : > { %v9333_v38 = vpop.f32.mrf.mxu0  ;;  %v9502_v56 = vpop.f32.mrf.mxu1 }
 0xb13   : > { %v9839_v7 = vmin.f32 %v9711_v4, 0.0  ;;  %v9331_v14 = vadd.f32 %v9330_v50, %v9162_v22  ;;  %9034 = vmatmul.bf16.gmra.mxu2 %v11791_v31  ;;  %9203 = vmatmul.bf16.gmra.mxu3 %v11795_v10  ;;  %v11863_v31 = vor.u32 %v13941_v49, %v11862_v35  ;;  %v11867_v10 = vor.u32 %v13932_v29, %v11864_v53  ;;  %v11934_v35 = vld [vmem:[%s15786_s29 + $0x9c8] sm:$0xf]  ;;  %v13959_v49 = vld [vmem:[%s15786_s29 + $0xa0c] sm:$0xf0] }
 0xb14   : > { %vm9775_vm13 = vcmp.gt.f32.partialorder %v9711_v4, 0.0  ;;  %v13950_v29 = vld [vmem:[%s15786_s29 + $0x9cc] sm:$0xf]  ;;  %v11936_v53 = vld [vmem:[%s15786_s29 + $0xa10] sm:$0xf0] }
 0xb15   : > { %9372 = vmatmul.bf16.gmra.mxu0 %v11799_v8  ;;  %9541 = vmatmul.bf16.gmra.mxu1 %v11803_v43  ;;  %v15380_v51 = vpop.eup %15379  ;;  %v9915_v9 = vmul.f32 1.442695, %v9839_v7  ;;  %v9500_v34 = vadd.f32 %v9499_v0, %v9331_v14  ;;  %v11871_v8 = vor.u32 %v13942_v13, %v11870_v55  ;;  %v11942_v55 = vld [vmem:[%s15786_s29 + $0x9d0] sm:$0xf]  ;;  %v13960_v13 = vld [vmem:[%s15786_s29 + $0xa14] sm:$0xf0] }
 0xb16   : > { %v13543_v57 = vadd.f32 -1.0, %v15380_v51  ;;  %v8995_v19 = vpop.f32.mrf.mxu2  ;;  %v9164_v62 = vpop.f32.mrf.mxu3 }
 0xb17   : > { %15381 = vpow2.f32 %v9915_v9  ;;  %v9644_v60 = vmul.f32 %v17859_v36, %v9500_v34  ;;  %v8996_v44 = vadd.f32 %v8995_v19, %v17514_v61 }
 0xb18   : > { %v10094_v45 = vsel %vm9774_vm12, %v9710_v33, %v13543_v57  ;;  %v13933_v33 = vld [vmem:[%s15786_s29 + $0x944] sm:$0xf] }
 0xb19   : > { %10158 = vst [vmem:[%s15802_s9 + $0x58] sm:$0xff] %v10094_v45  ;;  %v9712_v50 = vadd.f32 %v17864_v3, %v9644_v60  ;;  %v9165_v0 = vadd.f32 %v9164_v62, %v8996_v44  ;;  %v11875_v43 = vor.u32 %v13933_v33, %v11872_v20 }
 0xb1a   : > { %v9335_v21 = vpop.f32.mrf.mxu0  ;;  %v9504_v15 = vpop.f32.mrf.mxu1 }
 0xb1b   : > { %v9840_v26 = vmin.f32 %v9712_v50, 0.0  ;;  %v9334_v24 = vadd.f32 %v9333_v38, %v9165_v0  ;;  %vm9776_vm14 = vcmp.gt.f32.partialorder %v9712_v50, 0.0 }
 0xb1d   : > { %v15382_v48 = vpop.eup %15381  ;;  %v9917_v18 = vmul.f32 1.442695, %v9840_v26  ;;  %v9503_v61 = vadd.f32 %v9502_v56, %v9334_v24 }
 0xb1e   : > { %v13544_v39 = vadd.f32 -1.0, %v15382_v48  ;;  %v8997_v5 = vpop.f32.mrf.mxu2  ;;  %v9166_v58 = vpop.f32.mrf.mxu3 }
 0xb1f   : > { %15383 = vpow2.f32 %v9917_v18  ;;  %v9645_v2 = vmul.f32 %v17859_v36, %v9503_v61  ;;  %v8998_v59 = vadd.f32 %v8997_v5, %v17517_v1  ;;  %v11944_v61 = vld [vmem:[%s15786_s29 + $0xa18] sm:$0xf0]  ;;  %v11935_v5 = vor.u32 %v13959_v49, %v11934_v35 }
 0xb20   : > { %v10095_v11 = vsel %vm9775_vm13, %v9711_v4, %v13544_v39 }
 0xb21   : > { %10159 = vst [vmem:[%s15802_s9 + $0x60] sm:$0xff] %v10095_v11  ;;  %v9713_v22 = vadd.f32 %v17864_v3, %v9645_v2  ;;  %v9167_v38 = vadd.f32 %v9166_v58, %v8998_v59  ;;  %v11939_v58 = vor.u32 %v13950_v29, %v11936_v53  ;;  %v11943_v59 = vor.u32 %v13960_v13, %v11942_v55  ;;  %v12014_v29 = vld [vmem:[%s15786_s29 + $0xa60] sm:$0xf]  ;;  %v13978_v53 = vld [vmem:[%s15786_s29 + $0xaa4] sm:$0xf0] }
 0xb22   : > { %v9338_v56 = vpop.f32.mrf.mxu0  ;;  %v9507_v7 = vpop.f32.mrf.mxu1 }
 0xb23   : > { %v9841_v14 = vmin.f32 %v9713_v22, 0.0  ;;  %v9336_v51 = vadd.f32 %v9335_v21, %v9167_v38  ;;  %9039 = vmatmul.bf16.gmra.mxu2 %v11863_v31  ;;  %9208 = vmatmul.bf16.gmra.mxu3 %v11867_v10  ;;  %vm9777_vm15 = vcmp.gt.f32.partialorder %v9713_v22, 0.0 }
 0xb25   : > { %9377 = vmatmul.bf16.gmra.mxu0 %v11871_v8  ;;  %9546 = vmatmul.bf16.gmra.mxu1 %v11875_v43  ;;  %v15384_v9 = vpop.eup %15383  ;;  %v9919_v34 = vmul.f32 1.442695, %v9841_v14  ;;  %v9505_v1 = vadd.f32 %v9504_v15, %v9336_v51 }
 0xb26   : > { %v13545_v4 = vadd.f32 -1.0, %v15384_v9  ;;  %v9000_v57 = vpop.f32.mrf.mxu2  ;;  %v9169_v19 = vpop.f32.mrf.mxu3 }
 0xb27   : > { %15385 = vpow2.f32 %v9919_v34  ;;  %v9646_v62 = vmul.f32 %v17859_v36, %v9505_v1  ;;  %v9001_v60 = vadd.f32 %v9000_v57, %v17528_v32 }
 0xb28   : > { %v10096_v44 = vsel %vm9776_vm14, %v9712_v50, %v13545_v4  ;;  %v13951_v50 = vld [vmem:[%s15786_s29 + $0x9d4] sm:$0xf] }
 0xb29   : > { %10160 = vst [vmem:[%s15802_s9 + $0x68] sm:$0xff] %v10096_v44  ;;  %v9714_v45 = vadd.f32 %v17864_v3, %v9646_v62  ;;  %v9170_v0 = vadd.f32 %v9169_v19, %v9001_v60  ;;  %v11947_v11 = vor.u32 %v13951_v50, %v11944_v61 }
 0xb2a   : > { %v9340_v21 = vpop.f32.mrf.mxu0  ;;  %v9509_v15 = vpop.f32.mrf.mxu1 }
 0xb2b   : > { %v9842_v26 = vmin.f32 %v9714_v45, 0.0  ;;  %v9339_v24 = vadd.f32 %v9338_v56, %v9170_v0  ;;  %vm9778_vm0 = vcmp.gt.f32.partialorder %v9714_v45, 0.0 }
 0xb2d   : > { %v15386_v48 = vpop.eup %15385  ;;  %v9921_v18 = vmul.f32 1.442695, %v9842_v26  ;;  %v9508_v32 = vadd.f32 %v9507_v7, %v9339_v24  ;;  %v13968_v26 = vld [vmem:[%s15786_s29 + $0xa5c] sm:$0xf]  ;;  %v12008_v24 = vld [vmem:[%s15786_s29 + $0xaa0] sm:$0xf0] }
 0xb2e   : > { %v13546_v33 = vadd.f32 -1.0, %v15386_v48  ;;  %v9002_v20 = vpop.f32.mrf.mxu2  ;;  %v9171_v39 = vpop.f32.mrf.mxu3  ;;  %v12016_v48 = vld [vmem:[%s15786_s29 + $0xaa8] sm:$0xf0] }
 0xb2f   : > { %15387 = vpow2.f32 %v9921_v18  ;;  %v9647_v31 = vmul.f32 %v17859_v36, %v9508_v32  ;;  %v9003_v10 = vadd.f32 %v9002_v20, %v17531_v52 }
 0xb30   : > { %v10097_v2 = vsel %vm9777_vm15, %v9713_v22, %v13546_v33  ;;  %v12011_v33 = vor.u32 %v13968_v26, %v12008_v24  ;;  %v12088_v24 = vld [vmem:[%s15786_s29 + $0xb38] sm:$0xf0] }
 0xb31   : > { %10161 = vst [vmem:[%s15802_s9 + $0x70] sm:$0xff] %v10097_v2  ;;  %v9715_v8 = vadd.f32 %v17864_v3, %v9647_v31  ;;  %v9172_v43 = vadd.f32 %v9171_v39, %v9003_v10 }
 0xb32   : > { %v9343_v38 = vpop.f32.mrf.mxu0  ;;  %v9512_v56 = vpop.f32.mrf.mxu1 }
 0xb33   : > { %v9843_v7 = vmin.f32 %v9715_v8, 0.0  ;;  %v9341_v14 = vadd.f32 %v9340_v21, %v9172_v43  ;;  %9044 = vmatmul.bf16.gmra.mxu2 %v11935_v5  ;;  %9213 = vmatmul.bf16.gmra.mxu3 %v11939_v58  ;;  %v12006_v21 = vld [vmem:[%s15786_s29 + $0xa58] sm:$0xf]  ;;  %vm9779_vm1 = vcmp.gt.f32.partialorder %v9715_v8, 0.0  ;;  %v12015_v58 = vor.u32 %v13978_v53, %v12014_v29 }
 0xb35   : > { %9382 = vmatmul.bf16.gmra.mxu0 %v11943_v59  ;;  %9551 = vmatmul.bf16.gmra.mxu1 %v11947_v11  ;;  %v15388_v51 = vpop.eup %15387  ;;  %v9923_v9 = vmul.f32 1.442695, %v9843_v7  ;;  %v9510_v52 = vadd.f32 %v9509_v15, %v9341_v14  ;;  %v13977_v15 = vld [vmem:[%s15786_s29 + $0xa9c] sm:$0xf0] }
 0xb36   : > { %v13547_v22 = vadd.f32 -1.0, %v15388_v51  ;;  %v9005_v34 = vpop.f32.mrf.mxu2  ;;  %v9174_v1 = vpop.f32.mrf.mxu3  ;;  %v12007_v61 = vor.u32 %v13977_v15, %v12006_v21  ;;  %v13986_v21 = vld [vmem:[%s15786_s29 + $0xaec] sm:$0xf]  ;;  %v12080_v15 = vld [vmem:[%s15786_s29 + $0xb30] sm:$0xf0] }
 0xb37   : > { %15389 = vpow2.f32 %v9923_v9  ;;  %v9648_v4 = vmul.f32 %v17859_v36, %v9510_v52  ;;  %v9006_v57 = vadd.f32 %v9005_v34, %v17542_v27 }
 0xb38   : > { %v10098_v19 = vsel %vm9778_vm0, %v9714_v45, %v13547_v22  ;;  %v13969_v45 = vld [vmem:[%s15786_s29 + $0xa64] sm:$0xf] }
 0xb39   : > { %10162 = vst [vmem:[%s15802_s9 + $0x78] sm:$0xff] %v10098_v19  ;;  %v9716_v62 = vadd.f32 %v17864_v3, %v9648_v4  ;;  %v9175_v60 = vadd.f32 %v9174_v1, %v9006_v57  ;;  %v12019_v31 = vor.u32 %v13969_v45, %v12016_v48  ;;  %v12078_v19 = vld [vmem:[%s15786_s29 + $0xae8] sm:$0xf] }
 0xb3a   : > { %v9345_v44 = vpop.f32.mrf.mxu0  ;;  %v9514_v0 = vpop.f32.mrf.mxu1 }
 0xb3b   : > { %v9844_v35 = vmin.f32 %v9716_v62, 0.0  ;;  %v9344_v49 = vadd.f32 %v9343_v38, %v9175_v60  ;;  %vm9780_vm2 = vcmp.gt.f32.partialorder %v9716_v62, 0.0  ;;  %v13995_v60 = vld [vmem:[%s15786_s29 + $0xb2c] sm:$0xf0] }
 0xb3d   : > { %v15390_v55 = vpop.eup %15389  ;;  %v9925_v13 = vmul.f32 1.442695, %v9844_v35  ;;  %v9513_v27 = vadd.f32 %v9512_v56, %v9344_v49  ;;  %v12086_v35 = vld [vmem:[%s15786_s29 + $0xaf0] sm:$0xf]  ;;  %v13996_v49 = vld [vmem:[%s15786_s29 + $0xb34] sm:$0xf0] }
 0xb3e   : > { %v13548_v18 = vadd.f32 -1.0, %v15390_v55  ;;  %v9007_v32 = vpop.f32.mrf.mxu2  ;;  %v9176_v50 = vpop.f32.mrf.mxu3  ;;  %v12079_v55 = vor.u32 %v13995_v60, %v12078_v19  ;;  %v12158_v19 = vld [vmem:[%s15786_s29 + $0xb80] sm:$0xf]  ;;  %v14014_v60 = vld [vmem:[%s15786_s29 + $0xbc4] sm:$0xf0] }
 0xb3f   : > { %15391 = vpow2.f32 %v9925_v13  ;;  %v9649_v20 = vmul.f32 %v17859_v36, %v9513_v27  ;;  %v9008_v39 = vadd.f32 %v9007_v32, %v17545_v41  ;;  %v12083_v13 = vor.u32 %v13986_v21, %v12080_v15  ;;  %v18035_v27 = vld [vmem:[%s18383_s3] ss:$0 sm:$0xff]  ;;  %v12160_v21 = vld [vmem:[%s15786_s29 + $0xbc8] sm:$0xf0] }
 0xb40   : > { %v10099_v5 = vsel %vm9779_vm1, %v9715_v8, %v13548_v18  ;;  %v12087_v32 = vor.u32 %v13996_v49, %v12086_v35 }
 0xb41   : > { %10163 = vst [vmem:[%s15802_s9 + $0x80] sm:$0xff] %v10099_v5  ;;  %v9717_v10 = vadd.f32 %v17864_v3, %v9649_v20  ;;  %v9177_v2 = vadd.f32 %v9176_v50, %v9008_v39 }
 0xb42   : > { %v9348_v59 = vpop.f32.mrf.mxu0  ;;  %v9517_v11 = vpop.f32.mrf.mxu1 }
 0xb43   : > { %v9845_v43 = vmin.f32 %v9717_v10, 0.0  ;;  %v9346_v38 = vadd.f32 %v9345_v44, %v9177_v2  ;;  %9049 = vmatmul.bf16.gmra.mxu2 %v12007_v61  ;;  %9218 = vmatmul.bf16.gmra.mxu3 %v12011_v33  ;;  %vm9781_vm3 = vcmp.gt.f32.partialorder %v9717_v10, 0.0  ;;  %v18043_v61 = vld [vmem:[%s18384_s4] ss:$0 sm:$0xff] }
 0xb45   : > { %9387 = vmatmul.bf16.gmra.mxu0 %v12015_v58  ;;  %9556 = vmatmul.bf16.gmra.mxu1 %v12019_v31  ;;  %v15392_v56 = vpop.eup %15391  ;;  %v9927_v7 = vmul.f32 1.442695, %v9845_v43  ;;  %v9515_v41 = vadd.f32 %v9514_v0, %v9346_v38 }
 0xb46   : > { %v13549_v8 = vadd.f32 -1.0, %v15392_v56  ;;  %v9010_v14 = vpop.f32.mrf.mxu2  ;;  %v9179_v51 = vpop.f32.mrf.mxu3 }
 0xb47   : > { %15393 = vpow2.f32 %v9927_v7  ;;  %v9650_v9 = vmul.f32 %v17859_v36, %v9515_v41  ;;  %v9011_v52 = vadd.f32 %v9010_v14, %v17556_v54 }
 0xb48   : > { %v10100_v22 = vsel %vm9780_vm2, %v9716_v62, %v13549_v8  ;;  %v13987_v62 = vld [vmem:[%s15786_s29 + $0xaf4] sm:$0xf] }
 0xb49   : > { %10164 = vst [vmem:[%s15802_s9 + $0x88] sm:$0xff] %v10100_v22  ;;  %v9718_v34 = vadd.f32 %v17864_v3, %v9650_v9  ;;  %v9180_v1 = vadd.f32 %v9179_v51, %v9011_v52  ;;  %v12091_v50 = vor.u32 %v13987_v62, %v12088_v24  ;;  %v12150_v9 = vld [vmem:[%s15786_s29 + $0xb78] sm:$0xf]  ;;  %v14013_v52 = vld [vmem:[%s15786_s29 + $0xbbc] sm:$0xf0] }
 0xb4a   : > { %v9350_v4 = vpop.f32.mrf.mxu0  ;;  %v9519_v57 = vpop.f32.mrf.mxu1 }
 0xb4b   : > { %v9846_v44 = vmin.f32 %v9718_v34, 0.0  ;;  %v9349_v0 = vadd.f32 %v9348_v59, %v9180_v1  ;;  %vm9782_vm4 = vcmp.gt.f32.partialorder %v9718_v34, 0.0 }
 0xb4d   : > { %v15394_v36 = vpop.eup %15393  ;;  %v9929_v26 = vmul.f32 1.442695, %v9846_v44  ;;  %v9518_v54 = vadd.f32 %v9517_v11, %v9349_v0 }
 0xb4e   : > { %v13550_v29 = vadd.f32 -1.0, %v15394_v36  ;;  %v9012_v3 = vpop.f32.mrf.mxu2  ;;  %v9181_v53 = vpop.f32.mrf.mxu3  ;;  %v12151_v36 = vor.u32 %v14013_v52, %v12150_v9 }
 0xb4f   : > { %15395 = vpow2.f32 %v9929_v26  ;;  %v9651_v45 = vmul.f32 %v18035_v27, %v9518_v54  ;;  %v9013_v48 = vadd.f32 %v9012_v3, %v17559_v42 }
 0xb50   : > { %v10101_v18 = vsel %vm9781_vm3, %v9717_v10, %v13550_v29  ;;  %v12159_v29 = vor.u32 %v14014_v60, %v12158_v19 }
 0xb51   : > { %10165 = vst [vmem:[%s15802_s9 + $0x90] sm:$0xff] %v10101_v18  ;;  %v9719_v33 = vadd.f32 %v18043_v61, %v9651_v45  ;;  %v9182_v20 = vadd.f32 %v9181_v53, %v9013_v48 }
 0xb52   : > { %v9353_v39 = vpop.f32.mrf.mxu0  ;;  %v9522_v5 = vpop.f32.mrf.mxu1 }
 0xb53   : > { %v9847_v58 = vmin.f32 %v9719_v33, 0.0  ;;  %v9351_v31 = vadd.f32 %v9350_v4, %v9182_v20  ;;  %9054 = vmatmul.bf16.gmra.mxu2 %v12079_v55  ;;  %9223 = vmatmul.bf16.gmra.mxu3 %v12083_v13  ;;  %v14004_v4 = vld [vmem:[%s15786_s29 + $0xb7c] sm:$0xf]  ;;  %vm9783_vm5 = vcmp.gt.f32.partialorder %v9719_v33, 0.0 }
 0xb55   : > { %9392 = vmatmul.bf16.gmra.mxu0 %v12087_v32  ;;  %9561 = vmatmul.bf16.gmra.mxu1 %v12091_v50  ;;  %v15396_v42 = vpop.eup %15395  ;;  %v9931_v10 = vmul.f32 1.442695, %v9847_v58  ;;  %v9520_v2 = vadd.f32 %v9519_v57, %v9351_v31  ;;  %v12152_v57 = vld [vmem:[%s15786_s29 + $0xbc0] sm:$0xf0] }
 0xb56   : > { %v13551_v59 = vadd.f32 -1.0, %v15396_v42  ;;  %v9015_v11 = vpop.f32.mrf.mxu2  ;;  %v9184_v43 = vpop.f32.mrf.mxu3  ;;  %v12155_v26 = vor.u32 %v14004_v4, %v12152_v57 }
 0xb57   : > { %15397 = vpow2.f32 %v9931_v10  ;;  %v9652_v38 = vmul.f32 %v18035_v27, %v9520_v2  ;;  %v9016_v56 = vadd.f32 %v9015_v11, %v17570_v37  ;;  %v12222_v11 = vld [vmem:[%s15786_s29 + $0xc08] sm:$0xf] }
 0xb58   : > { %v10102_v7 = vsel %vm9782_vm4, %v9718_v34, %v13551_v59  ;;  %v14005_v34 = vld [vmem:[%s15786_s29 + $0xb84] sm:$0xf] }
 0xb59   : > { %10166 = vst [vmem:[%s15802_s9 + $0x98] sm:$0xff] %v10102_v7  ;;  %v9720_v41 = vadd.f32 %v18043_v61, %v9652_v38  ;;  %v9185_v8 = vadd.f32 %v9184_v43, %v9016_v56  ;;  %v12163_v3 = vor.u32 %v14005_v34, %v12160_v21  ;;  %v14031_v43 = vld [vmem:[%s15786_s29 + $0xc4c] sm:$0xf0]  ;;  %v14022_v7 = vld [vmem:[%s15786_s29 + $0xc0c] sm:$0xf] }
 0xb5a   : > { %v9355_v14 = vpop.f32.mrf.mxu0  ;;  %v9524_v51 = vpop.f32.mrf.mxu1  ;;  %v12223_v19 = vor.u32 %v14031_v43, %v12222_v11  ;;  %v12304_v11 = vld [vmem:[%s15786_s29 + $0xce8] sm:$0xf0] }
 0xb5b   : > { %v9848_v22 = vmin.f32 %v9720_v41, 0.0  ;;  %v9354_v1 = vadd.f32 %v9353_v39, %v9185_v8  ;;  %vm9784_vm6 = vcmp.gt.f32.partialorder %v9720_v41, 0.0  ;;  %v12224_v8 = vld [vmem:[%s15786_s29 + $0xc50] sm:$0xf0] }
 0xb5c   : > { %v12227_v60 = vor.u32 %v14022_v7, %v12224_v8 }
 0xb5d   : > { %v15398_v44 = vpop.eup %15397  ;;  %v9933_v0 = vmul.f32 1.442695, %v9848_v22  ;;  %v9523_v37 = vadd.f32 %v9522_v5, %v9354_v1  ;;  %v12232_v22 = vld [vmem:[%s15786_s29 + $0xc58] sm:$0xf0] }
 0xb5e   : > { %v13552_v15 = vadd.f32 -1.0, %v15398_v44  ;;  %v9017_v35 = vpop.f32.mrf.mxu2  ;;  %v9186_v49 = vpop.f32.mrf.mxu3 }
 0xb5f   : > { %15399 = vpow2.f32 %v9933_v0  ;;  %v9653_v54 = vmul.f32 %v18035_v27, %v9523_v37  ;;  %v9018_v62 = vadd.f32 %v9017_v35, %v17573_v28 }
 0xb60   : > { %v10103_v24 = vsel %vm9783_vm5, %v9719_v33, %v13552_v15 }
 0xb61   : > { %10167 = vst [vmem:[%s15802_s9 + $0xa0] sm:$0xff] %v10103_v24  ;;  %v9721_v53 = vadd.f32 %v18043_v61, %v9653_v54  ;;  %v9187_v55 = vadd.f32 %v9186_v49, %v9018_v62 }
 0xb62   : > { %v9358_v13 = vpop.f32.mrf.mxu0  ;;  %v9527_v45 = vpop.f32.mrf.mxu1 }
 0xb63   : > { %v9849_v48 = vmin.f32 %v9721_v53, 0.0  ;;  %v9356_v18 = vadd.f32 %v9355_v14, %v9187_v55  ;;  %9059 = vmatmul.bf16.gmra.mxu2 %v12151_v36  ;;  %9228 = vmatmul.bf16.gmra.mxu3 %v12155_v26  ;;  %v12230_v14 = vld [vmem:[%s15786_s29 + $0xc10] sm:$0xf]  ;;  %vm9785_vm7 = vcmp.gt.f32.partialorder %v9721_v53, 0.0 }
 0xb65   : > { %9397 = vmatmul.bf16.gmra.mxu0 %v12159_v29  ;;  %9566 = vmatmul.bf16.gmra.mxu1 %v12163_v3  ;;  %v15400_v32 = vpop.eup %15399  ;;  %v9935_v50 = vmul.f32 1.442695, %v9849_v48  ;;  %v9525_v28 = vadd.f32 %v9524_v51, %v9356_v18  ;;  %v14032_v51 = vld [vmem:[%s15786_s29 + $0xc54] sm:$0xf0] }
 0xb66   : > { %v13553_v33 = vadd.f32 -1.0, %v15400_v32  ;;  %v9020_v20 = vpop.f32.mrf.mxu2  ;;  %v9189_v39 = vpop.f32.mrf.mxu3  ;;  %v12231_v34 = vor.u32 %v14032_v51, %v12230_v14 }
 0xb67   : > { %15401 = vpow2.f32 %v9935_v50  ;;  %v9654_v5 = vmul.f32 %v18035_v27, %v9525_v28  ;;  %v9021_v58 = vadd.f32 %v9020_v20, %v17584_v12  ;;  %v12294_v28 = vld [vmem:[%s15786_s29 + $0xc98] sm:$0xf] }
 0xb68   : > { %v10104_v31 = vsel %vm9784_vm6, %v9720_v41, %v13553_v33  ;;  %v14023_v41 = vld [vmem:[%s15786_s29 + $0xc14] sm:$0xf]  ;;  %v14049_v33 = vld [vmem:[%s15786_s29 + $0xcdc] sm:$0xf0] }
 0xb69   : > { %10168 = vst [vmem:[%s15802_s9 + $0xa8] sm:$0xff] %v10104_v31  ;;  %v9722_v42 = vadd.f32 %v18043_v61, %v9654_v5  ;;  %v9190_v10 = vadd.f32 %v9189_v39, %v9021_v58  ;;  %v12235_v21 = vor.u32 %v14023_v41, %v12232_v22  ;;  %v14040_v5 = vld [vmem:[%s15786_s29 + $0xc9c] sm:$0xf]  ;;  %v12296_v58 = vld [vmem:[%s15786_s29 + $0xce0] sm:$0xf0]  ;;  %v12295_v7 = vor.u32 %v14049_v33, %v12294_v28 }
 0xb6a   : > { %v9360_v2 = vpop.f32.mrf.mxu0  ;;  %v9529_v59 = vpop.f32.mrf.mxu1  ;;  %v12302_v31 = vld [vmem:[%s15786_s29 + $0xca0] sm:$0xf]  ;;  %v12299_v8 = vor.u32 %v14040_v5, %v12296_v58 }
 0xb6b   : > { %v9850_v38 = vmin.f32 %v9722_v42, 0.0  ;;  %v9359_v56 = vadd.f32 %v9358_v13, %v9190_v10  ;;  %vm9786_vm8 = vcmp.gt.f32.partialorder %v9722_v42, 0.0  ;;  %v14050_v10 = vld [vmem:[%s15786_s29 + $0xce4] sm:$0xf0] }
 0xb6d   : > { %v15402_v9 = vpop.eup %15401  ;;  %v9937_v52 = vmul.f32 1.442695, %v9850_v38  ;;  %v9528_v12 = vadd.f32 %v9527_v45, %v9359_v56 }
 0xb6e   : > { %v13554_v1 = vadd.f32 -1.0, %v15402_v9  ;;  %v9022_v4 = vpop.f32.mrf.mxu2  ;;  %v9191_v57 = vpop.f32.mrf.mxu3 }
 0xb6f   : > { %15403 = vpow2.f32 %v9937_v52  ;;  %v9655_v44 = vmul.f32 %v18035_v27, %v9528_v12  ;;  %v9023_v0 = vadd.f32 %v9022_v4, %v17587_v63  ;;  %v12303_v52 = vor.u32 %v14050_v10, %v12302_v31 }
 0xb70   : > { %v10105_v37 = vsel %vm9785_vm7, %v9721_v53, %v13554_v1 }
 0xb71   : > { %10169 = vst [vmem:[%s15802_s9 + $0xb0] sm:$0xff] %v10105_v37  ;;  %v9723_v15 = vadd.f32 %v18043_v61, %v9655_v44  ;;  %v9192_v35 = vadd.f32 %v9191_v57, %v9023_v0 }
 0xb72   : > { %v9363_v49 = vpop.f32.mrf.mxu0  ;;  %v9532_v36 = vpop.f32.mrf.mxu1 }
 0xb73   : > { %v9851_v26 = vmin.f32 %v9723_v15, 0.0  ;;  %v9361_v54 = vadd.f32 %v9360_v2, %v9192_v35  ;;  %9064 = vmatmul.bf16.gmra.mxu2 %v12223_v19  ;;  %9233 = vmatmul.bf16.gmra.mxu3 %v12227_v60  ;;  %vm9787_vm9 = vcmp.gt.f32.partialorder %v9723_v15, 0.0 }
 0xb75   : > { %9402 = vmatmul.bf16.gmra.mxu0 %v12231_v34  ;;  %9571 = vmatmul.bf16.gmra.mxu1 %v12235_v21  ;;  %v15404_v62 = vpop.eup %15403  ;;  %v9939_v24 = vmul.f32 1.442695, %v9851_v26  ;;  %v9530_v63 = vadd.f32 %v9529_v59, %v9361_v54 }
 0xb76   : > { %v13555_v29 = vadd.f32 -1.0, %v15404_v62  ;;  %v9025_v3 = vpop.f32.mrf.mxu2  ;;  %v9194_v53 = vpop.f32.mrf.mxu3  ;;  %v12366_v62 = vld [vmem:[%s15786_s29 + $0xd28] sm:$0xf] }
 0xb77   : > { %15405 = vpow2.f32 %v9939_v24  ;;  %v9656_v55 = vmul.f32 %v18035_v27, %v9530_v63  ;;  %v9026_v13 = vadd.f32 %v9025_v3, %v17598_v40  ;;  %v14067_v24 = vld [vmem:[%s15786_s29 + $0xd6c] sm:$0xf0]  ;;  %v14058_v3 = vld [vmem:[%s15786_s29 + $0xd2c] sm:$0xf] }
 0xb78   : > { %v10106_v45 = vsel %vm9786_vm8, %v9722_v42, %v13555_v29  ;;  %v14041_v42 = vld [vmem:[%s15786_s29 + $0xca4] sm:$0xf] }
 0xb79   : > { %10170 = vst [vmem:[%s15802_s9 + $0xb8] sm:$0xff] %v10106_v45  ;;  %v9724_v48 = vadd.f32 %v18043_v61, %v9656_v55  ;;  %v9195_v18 = vadd.f32 %v9194_v53, %v9026_v13  ;;  %v12307_v12 = vor.u32 %v14041_v42, %v12304_v11  ;;  %v12368_v53 = vld [vmem:[%s15786_s29 + $0xd70] sm:$0xf0]  ;;  %v12374_v55 = vld [vmem:[%s15786_s29 + $0xd30] sm:$0xf] }
 0xb7a   : > { %v9365_v32 = vpop.f32.mrf.mxu0  ;;  %v9534_v50 = vpop.f32.mrf.mxu1  ;;  %v14068_v13 = vld [vmem:[%s15786_s29 + $0xd74] sm:$0xf0] }
 0xb7b   : > { %v9852_v20 = vmin.f32 %v9724_v48, 0.0  ;;  %v9364_v39 = vadd.f32 %v9363_v49, %v9195_v18  ;;  %vm9788_vm10 = vcmp.gt.f32.partialorder %v9724_v48, 0.0  ;;  %v12375_v10 = vor.u32 %v14068_v13, %v12374_v55 }
 0xb7d   : > { %v15406_v2 = vpop.eup %15405  ;;  %v9941_v59 = vmul.f32 1.442695, %v9852_v20  ;;  %v9533_v40 = vadd.f32 %v9532_v36, %v9364_v39  ;;  %v12367_v20 = vor.u32 %v14067_v24, %v12366_v62  ;;  %v12371_v39 = vor.u32 %v14058_v3, %v12368_v53 }
 0xb7e   : > { %v13556_v43 = vadd.f32 -1.0, %v15406_v2  ;;  %v9027_v38 = vpop.f32.mrf.mxu2  ;;  %v9196_v56 = vpop.f32.mrf.mxu3 }
 0xb7f   : > { %15407 = vpow2.f32 %v9941_v59  ;;  %v9657_v14 = vmul.f32 %v18035_v27, %v9533_v40  ;;  %v9028_v51 = vadd.f32 %v9027_v38, %v17601_v25 }
 0xb80   : > { %v10107_v9 = vsel %vm9787_vm9, %v9723_v15, %v13556_v43 }
 0xb81   : > { %10171 = vst [vmem:[%s15802_s9 + $0xc0] sm:$0xff] %v10107_v9  ;;  %v9725_v41 = vadd.f32 %v18043_v61, %v9657_v14  ;;  %v9197_v22 = vadd.f32 %v9196_v56, %v9028_v51 }
 0xb82   : > { %v9368_v1 = vpop.f32.mrf.mxu0  ;;  %v9537_v4 = vpop.f32.mrf.mxu1 }
 0xb83   : > { %v9853_v57 = vmin.f32 %v9725_v41, 0.0  ;;  %v9366_v19 = vadd.f32 %v9365_v32, %v9197_v22  ;;  %9069 = vmatmul.bf16.gmra.mxu2 %v12295_v7  ;;  %9238 = vmatmul.bf16.gmra.mxu3 %v12299_v8  ;;  %v12376_v32 = vld [vmem:[%s15786_s29 + $0xd78] sm:$0xf0]  ;;  %vm9789_vm11 = vcmp.gt.f32.partialorder %v9725_v41, 0.0 }
 0xb85   : > { %9407 = vmatmul.bf16.gmra.mxu0 %v12303_v52  ;;  %9576 = vmatmul.bf16.gmra.mxu1 %v12307_v12  ;;  %v15408_v60 = vpop.eup %15407  ;;  %v9943_v44 = vmul.f32 1.442695, %v9853_v57  ;;  %v9535_v25 = vadd.f32 %v9534_v50, %v9366_v19  ;;  %v12438_v57 = vld [vmem:[%s15786_s29 + $0xdb8] sm:$0xf]  ;;  %v14085_v19 = vld [vmem:[%s15786_s29 + $0xdfc] sm:$0xf0] }
 0xb86   : > { %v13557_v0 = vadd.f32 -1.0, %v15408_v60  ;;  %v9030_v37 = vpop.f32.mrf.mxu2  ;;  %v9199_v34 = vpop.f32.mrf.mxu3  ;;  %v12439_v62 = vor.u32 %v14085_v19, %v12438_v57 }
 0xb87   : > { %15409 = vpow2.f32 %v9943_v44  ;;  %v9658_v21 = vmul.f32 %v18035_v27, %v9535_v25  ;;  %v9031_v15 = vadd.f32 %v9030_v37, %v17612_v6  ;;  %v14076_v25 = vld [vmem:[%s15786_s29 + $0xdbc] sm:$0xf]  ;;  %v12446_v37 = vld [vmem:[%s15786_s29 + $0xdc0] sm:$0xf] }
 0xb88   : > { %v10108_v35 = vsel %vm9788_vm10, %v9724_v48, %v13557_v0  ;;  %v14059_v48 = vld [vmem:[%s15786_s29 + $0xd34] sm:$0xf]  ;;  %v12440_v0 = vld [vmem:[%s15786_s29 + $0xe00] sm:$0xf0] }
 0xb89   : > { %10172 = vst [vmem:[%s15802_s9 + $0xc8] sm:$0xff] %v10108_v35  ;;  %v9726_v49 = vadd.f32 %v18043_v61, %v9658_v21  ;;  %v9200_v36 = vadd.f32 %v9199_v34, %v9031_v15  ;;  %v12379_v2 = vor.u32 %v14059_v48, %v12376_v32  ;;  %v14086_v34 = vld [vmem:[%s15786_s29 + $0xe04] sm:$0xf0]  ;;  %v14077_v35 = vld [vmem:[%s15786_s29 + $0xdc4] sm:$0xf]  ;;  %v12443_v24 = vor.u32 %v14076_v25, %v12440_v0 }
 0xb8a   : > { %v9370_v26 = vpop.f32.mrf.mxu0  ;;  %v9539_v54 = vpop.f32.mrf.mxu1  ;;  %v12447_v53 = vor.u32 %v14086_v34, %v12446_v37 }
 0xb8b   : > { %v9854_v63 = vmin.f32 %v9726_v49, 0.0  ;;  %v9369_v29 = vadd.f32 %v9368_v1, %v9200_v36  ;;  %vm9790_vm12 = vcmp.gt.f32.partialorder %v9726_v49, 0.0 }
 0xb8d   : > { %v15410_v45 = vpop.eup %15409  ;;  %v9945_v18 = vmul.f32 1.442695, %v9854_v63  ;;  %v9538_v6 = vadd.f32 %v9537_v4, %v9369_v29 }
 0xb8e   : > { %v13558_v50 = vadd.f32 -1.0, %v15410_v45  ;;  %v9032_v28 = vpop.f32.mrf.mxu2  ;;  %v9201_v33 = vpop.f32.mrf.mxu3 }
 0xb8f   : > { %15411 = vpow2.f32 %v9945_v18  ;;  %v9659_v5 = vmul.f32 %v18035_v27, %v9538_v6  ;;  %v9033_v58 = vadd.f32 %v9032_v28, %v17615_v23 }
 0xb90   : > { %v10109_v31 = vsel %vm9789_vm11, %v9725_v41, %v13558_v50 }
 0xb91   : > { %10173 = vst [vmem:[%s15802_s9 + $0xd0] sm:$0xff] %v10109_v31  ;;  %v9727_v59 = vadd.f32 %v18043_v61, %v9659_v5  ;;  %v9202_v40 = vadd.f32 %v9201_v33, %v9033_v58 }
 0xb92   : > { %v9373_v42 = vpop.f32.mrf.mxu0  ;;  %v9542_v11 = vpop.f32.mrf.mxu1 }
 0xb93   : > { %v9855_v43 = vmin.f32 %v9727_v59, 0.0  ;;  %v9371_v38 = vadd.f32 %v9370_v26, %v9202_v40  ;;  %9074 = vmatmul.bf16.gmra.mxu2 %v12367_v20  ;;  %9243 = vmatmul.bf16.gmra.mxu3 %v12371_v39  ;;  %vm9791_vm13 = vcmp.gt.f32.partialorder %v9727_v59, 0.0 }
 0xb95   : > { %9412 = vmatmul.bf16.gmra.mxu0 %v12375_v10  ;;  %9581 = vmatmul.bf16.gmra.mxu1 %v12379_v2  ;;  %v15412_v56 = vpop.eup %15411  ;;  %v9947_v7 = vmul.f32 1.442695, %v9855_v43  ;;  %v9540_v23 = vadd.f32 %v9539_v54, %v9371_v38 }
 0xb96   : > { %v13559_v8 = vadd.f32 -1.0, %v15412_v56  ;;  %v9035_v14 = vpop.f32.mrf.mxu2  ;;  %v9204_v51 = vpop.f32.mrf.mxu3  ;;  %v14094_v56 = vld [vmem:[%s15786_s29 + $0xe4c] sm:$0xf] }
 0xb97   : > { %15413 = vpow2.f32 %v9947_v7  ;;  %v9660_v9 = vmul.f32 %v18035_v27, %v9540_v23  ;;  %v9036_v52 = vadd.f32 %v9035_v14, %v17626_v30  ;;  %v12512_v7 = vld [vmem:[%s15786_s29 + $0xe90] sm:$0xf0]  ;;  %v12518_v23 = vld [vmem:[%s15786_s29 + $0xe50] sm:$0xf] }
 0xb98   : > { %v10110_v12 = vsel %vm9790_vm12, %v9726_v49, %v13559_v8  ;;  %v12448_v49 = vld [vmem:[%s15786_s29 + $0xe08] sm:$0xf0]  ;;  %v14104_v8 = vld [vmem:[%s15786_s29 + $0xe94] sm:$0xf0] }
 0xb99   : > { %10174 = vst [vmem:[%s15802_s9 + $0xd8] sm:$0xff] %v10110_v12  ;;  %v9728_v41 = vadd.f32 %v18043_v61, %v9660_v9  ;;  %v9205_v22 = vadd.f32 %v9204_v51, %v9036_v52  ;;  %v12451_v55 = vor.u32 %v14077_v35, %v12448_v49  ;;  %v14095_v9 = vld [vmem:[%s15786_s29 + $0xe54] sm:$0xf]  ;;  %v12520_v52 = vld [vmem:[%s15786_s29 + $0xe98] sm:$0xf0] }
 0xb9a   : > { %v9375_v1 = vpop.f32.mrf.mxu0  ;;  %v9544_v4 = vpop.f32.mrf.mxu1  ;;  %v12523_v25 = vor.u32 %v14095_v9, %v12520_v52 }
 0xb9b   : > { %v9856_v60 = vmin.f32 %v9728_v41, 0.0  ;;  %v9374_v44 = vadd.f32 %v9373_v42, %v9205_v22  ;;  %vm9792_vm14 = vcmp.gt.f32.partialorder %v9728_v41, 0.0  ;;  %v12510_v42 = vld [vmem:[%s15786_s29 + $0xe48] sm:$0xf] }
 0xb9d   : > { %v15414_v21 = vpop.eup %15413  ;;  %v9949_v15 = vmul.f32 1.442695, %v9856_v60  ;;  %v9543_v30 = vadd.f32 %v9542_v11, %v9374_v44  ;;  %v14103_v11 = vld [vmem:[%s15786_s29 + $0xe8c] sm:$0xf0]  ;;  %v12519_v44 = vor.u32 %v14104_v8, %v12518_v23 }
 0xb9e   : > { %v13560_v36 = vadd.f32 -1.0, %v15414_v21  ;;  %v9037_v26 = vpop.f32.mrf.mxu2  ;;  %v9206_v54 = vpop.f32.mrf.mxu3 }
 0xb9f   : > { %15415 = vpow2.f32 %v9949_v15  ;;  %v9661_v63 = vmul.f32 %v18035_v27, %v9543_v30  ;;  %v9038_v29 = vadd.f32 %v9037_v26, %v17629_v16 }
 0xba0   : > { %v10111_v3 = vsel %vm9791_vm13, %v9727_v59, %v13560_v36 }
 0xba1   : > { %10175 = vst [vmem:[%s15802_s9 + $0xe0] sm:$0xff] %v10111_v3  ;;  %v9729_v13 = vadd.f32 %v18043_v61, %v9661_v63  ;;  %v9207_v45 = vadd.f32 %v9206_v54, %v9038_v29 }
 0xba2   : > { %v9378_v18 = vpop.f32.mrf.mxu0  ;;  %v9547_v6 = vpop.f32.mrf.mxu1 }
 0xba3   : > { %v9857_v48 = vmin.f32 %v9729_v13, 0.0  ;;  %v9376_v32 = vadd.f32 %v9375_v1, %v9207_v45  ;;  %9079 = vmatmul.bf16.gmra.mxu2 %v12439_v62  ;;  %9248 = vmatmul.bf16.gmra.mxu3 %v12443_v24  ;;  %v12511_v1 = vor.u32 %v14103_v11, %v12510_v42  ;;  %vm9793_vm15 = vcmp.gt.f32.partialorder %v9729_v13, 0.0  ;;  %v14121_v45 = vld [vmem:[%s15786_s29 + $0xf1c] sm:$0xf0] }
 0xba5   : > { %9417 = vmatmul.bf16.gmra.mxu0 %v12447_v53  ;;  %9586 = vmatmul.bf16.gmra.mxu1 %v12451_v55  ;;  %v15416_v50 = vpop.eup %15415  ;;  %v9951_v28 = vmul.f32 1.442695, %v9857_v48  ;;  %v9545_v16 = vadd.f32 %v9544_v4, %v9376_v32  ;;  %v12515_v4 = vor.u32 %v14094_v56, %v12512_v7  ;;  %v14112_v48 = vld [vmem:[%s15786_s29 + $0xedc] sm:$0xf]  ;;  %v12584_v32 = vld [vmem:[%s15786_s29 + $0xf20] sm:$0xf0] }
 0xba6   : > { %v13561_v33 = vadd.f32 -1.0, %v15416_v50  ;;  %v9040_v20 = vpop.f32.mrf.mxu2  ;;  %v9209_v39 = vpop.f32.mrf.mxu3  ;;  %v12590_v50 = vld [vmem:[%s15786_s29 + $0xee0] sm:$0xf] }
 0xba7   : > { %15417 = vpow2.f32 %v9951_v28  ;;  %v9662_v5 = vmul.f32 %v18035_v27, %v9545_v16  ;;  %v9041_v58 = vadd.f32 %v9040_v20, %v17640_v17  ;;  %v14122_v28 = vld [vmem:[%s15786_s29 + $0xf24] sm:$0xf0]  ;;  %v14113_v20 = vld [vmem:[%s15786_s29 + $0xee4] sm:$0xf] }
 0xba8   : > { %v10112_v31 = vsel %vm9792_vm14, %v9728_v41, %v13561_v33 }
 0xba9   : > { %10176 = vst [vmem:[%s15802_s9 + $0xe8] sm:$0xff] %v10112_v31  ;;  %v9730_v10 = vadd.f32 %v18043_v61, %v9662_v5  ;;  %v9210_v2 = vadd.f32 %v9209_v39, %v9041_v58  ;;  %v12592_v39 = vld [vmem:[%s15786_s29 + $0xf28] sm:$0xf0] }
 0xbaa   : > { %v9380_v59 = vpop.f32.mrf.mxu0  ;;  %v9549_v40 = vpop.f32.mrf.mxu1 }
 0xbab   : > { %v9858_v43 = vmin.f32 %v9730_v10, 0.0  ;;  %v9379_v38 = vadd.f32 %v9378_v18, %v9210_v2  ;;  %vm9794_vm0 = vcmp.gt.f32.partialorder %v9730_v10, 0.0  ;;  %v12587_v2 = vor.u32 %v14112_v48, %v12584_v32 }
 0xbad   : > { %v15418_v14 = vpop.eup %15417  ;;  %v9953_v51 = vmul.f32 1.442695, %v9858_v43  ;;  %v9548_v17 = vadd.f32 %v9547_v6, %v9379_v38  ;;  %v12591_v43 = vor.u32 %v14122_v28, %v12590_v50  ;;  %v12595_v38 = vor.u32 %v14113_v20, %v12592_v39 }
 0xbae   : > { %v13562_v12 = vadd.f32 -1.0, %v15418_v14  ;;  %v9042_v41 = vpop.f32.mrf.mxu2  ;;  %v9211_v22 = vpop.f32.mrf.mxu3 }
 0xbaf   : > { %15419 = vpow2.f32 %v9953_v51  ;;  %v9663_v57 = vmul.f32 %v18035_v27, %v9548_v17  ;;  %v9043_v19 = vadd.f32 %v9042_v41, %v17643_v46 }
 0xbb0   : > { %v10113_v60 = vsel %vm9793_vm15, %v9729_v13, %v13562_v12  ;;  %v12582_v13 = vld [vmem:[%s15786_s29 + $0xed8] sm:$0xf] }
 0xbb1   : > { %10177 = vst [vmem:[%s15802_s9 + $0xf0] sm:$0xff] %v10113_v60  ;;  %v9731_v0 = vadd.f32 %v18043_v61, %v9663_v57  ;;  %v9212_v37 = vadd.f32 %v9211_v22, %v9043_v19 }
 0xbb2   : > { %v9383_v34 = vpop.f32.mrf.mxu0  ;;  %v9552_v21 = vpop.f32.mrf.mxu1 }
 0xbb3   : > { %v9859_v15 = vmin.f32 %v9731_v0, 0.0  ;;  %v9381_v30 = vadd.f32 %v9380_v59, %v9212_v37  ;;  %9084 = vmatmul.bf16.gmra.mxu2 %v12511_v1  ;;  %9253 = vmatmul.bf16.gmra.mxu3 %v12515_v4  ;;  %vm9795_vm1 = vcmp.gt.f32.partialorder %v9731_v0, 0.0  ;;  %v18576_v4 = vld [vmem:[#allocation37_spill] sm:$0xff] }
 0xbb4   : > { %v12654_v37 = vld [vmem:[%s15786_s29 + $0xf68] sm:$0xf] }
 0xbb5   : > { %9422 = vmatmul.bf16.gmra.mxu0 %v12519_v44  ;;  %9591 = vmatmul.bf16.gmra.mxu1 %v12523_v25  ;;  %v15420_v35 = vpop.eup %15419  ;;  %v9955_v49 = vmul.f32 1.442695, %v9859_v15  ;;  %v9550_v46 = vadd.f32 %v9549_v40, %v9381_v30  ;;  %v18575_v40 = vld [vmem:[#allocation36_spill] sm:$0xff]  ;;  %v14130_v30 = vld [vmem:[%s15786_s29 + $0xf6c] sm:$0xf] }
 0xbb6   : > { %v13563_v36 = vadd.f32 -1.0, %v15420_v35  ;;  %v9045_v26 = vpop.f32.mrf.mxu2  ;;  %v9214_v54 = vpop.f32.mrf.mxu3  ;;  %v12656_v35 = vld [vmem:[%s15786_s29 + $0xfb0] sm:$0xf0] }
 0xbb7   : > { %15421 = vpow2.f32 %v9955_v49  ;;  %v9664_v62 = vmul.f32 %v18035_v27, %v9550_v46  ;;  %v9046_v24 = vadd.f32 %v9045_v26, %v17654_v47  ;;  %v12662_v49 = vld [vmem:[%s15786_s29 + $0xf70] sm:$0xf]  ;;  %v14140_v46 = vld [vmem:[%s15786_s29 + $0xfb4] sm:$0xf0] }
 0xbb8   : > { %v10114_v63 = vsel %vm9794_vm0, %v9730_v10, %v13563_v36  ;;  %v12583_v10 = vor.u32 %v14121_v45, %v12582_v13  ;;  %v18577_v45 = vld [vmem:[#allocation38_spill] sm:$0xff]  ;;  %v12663_v48 = vor.u32 %v14140_v46, %v12662_v49 }
 0xbb9   : > { %10178 = vst [vmem:[%s15802_s9 + $0xf8] sm:$0xff] %v10114_v63  ;;  %v9732_v29 = vadd.f32 %v18043_v61, %v9664_v62  ;;  %v9215_v3 = vadd.f32 %v9214_v54, %v9046_v24  ;;  %v14131_v62 = vld [vmem:[%s15786_s29 + $0xf74] sm:$0xf]  ;;  %v12664_v24 = vld [vmem:[%s15786_s29 + $0xfb8] sm:$0xf0] }
 0xbba   : > { %v9385_v53 = vpop.f32.mrf.mxu0  ;;  %v9554_v55 = vpop.f32.mrf.mxu1  ;;  %v12667_v32 = vor.u32 %v14131_v62, %v12664_v24 }
 0xbbb   : > { %v9860_v18 = vmin.f32 %v9732_v29, 0.0  ;;  %v9384_v6 = vadd.f32 %v9383_v34, %v9215_v3  ;;  %vm9796_vm2 = vcmp.gt.f32.partialorder %v9732_v29, 0.0  ;;  %v14139_v34 = vld [vmem:[%s15786_s29 + $0xfac] sm:$0xf0] }
 0xbbd   : > { %v15422_v16 = vpop.eup %15421  ;;  %v9957_v33 = vmul.f32 1.442695, %v9860_v18  ;;  %v9553_v47 = vadd.f32 %v9552_v21, %v9384_v6 }
 0xbbe   : > { %v13564_v5 = vadd.f32 -1.0, %v15422_v16  ;;  %v9047_v58 = vpop.f32.mrf.mxu2  ;;  %v9216_v31 = vpop.f32.mrf.mxu3 }
 0xbbf   : > { %15423 = vpow2.f32 %v9957_v33  ;;  %v9665_v59 = vmul.f32 %v18035_v27, %v9553_v47  ;;  %v9048_v42 = vadd.f32 %v9047_v58, %v18575_v40  ;;  %v18578_v40 = vld [vmem:[#allocation39_spill] sm:$0xff] }
 0xbc0   : > { %v10115_v11 = vsel %vm9795_vm1, %v9731_v0, %v13564_v5 }
 0xbc1   : > { %10179 = vst [vmem:[%s15802_s9 + $0x100] sm:$0xff] %v10115_v11  ;;  %v9733_v56 = vadd.f32 %v18043_v61, %v9665_v59  ;;  %v9217_v7 = vadd.f32 %v9216_v31, %v9048_v42 }
 0xbc2   : > { %v9388_v23 = vpop.f32.mrf.mxu0  ;;  %v9557_v8 = vpop.f32.mrf.mxu1 }
 0xbc3   : > { %v9861_v14 = vmin.f32 %v9733_v56, 0.0  ;;  %v9386_v51 = vadd.f32 %v9385_v53, %v9217_v7  ;;  %9089 = vmatmul.bf16.gmra.mxu2 %v12583_v10  ;;  %9258 = vmatmul.bf16.gmra.mxu3 %v12587_v2  ;;  %v12655_v53 = vor.u32 %v14139_v34, %v12654_v37  ;;  %vm9797_vm3 = vcmp.gt.f32.partialorder %v9733_v56, 0.0  ;;  %v18579_v34 = vld [vmem:[#allocation40_spill] sm:$0xff] }
 0xbc5   : > { %9427 = vmatmul.bf16.gmra.mxu0 %v12591_v43  ;;  %9596 = vmatmul.bf16.gmra.mxu1 %v12595_v38  ;;  %v15424_v17 = vpop.eup %15423  ;;  %v9959_v9 = vmul.f32 1.442695, %v9861_v14  ;;  %v9555_v52 = vadd.f32 %v9554_v55, %v9386_v51  ;;  %v12659_v55 = vor.u32 %v14130_v30, %v12656_v35 }
 0xbc6   : > { %v13565_v12 = vadd.f32 -1.0, %v15424_v17  ;;  %v9050_v41 = vpop.f32.mrf.mxu2  ;;  %v9219_v22 = vpop.f32.mrf.mxu3  ;;  %v14148_v17 = vld [vmem:[%s15786_s29 + $0xffc] sm:$0xf] }
 0xbc7   : > { %15425 = vpow2.f32 %v9959_v9  ;;  %v9666_v1 = vmul.f32 %v18035_v27, %v9555_v52  ;;  %v9051_v57 = vadd.f32 %v9050_v41, %v18576_v4  ;;  %v12728_v9 = vld [vmem:[%s15786_s29 + $0x1040] sm:$0xf0]  ;;  %v12734_v52 = vld [vmem:[%s15786_s29 + $0x1000] sm:$0xf] }
 0xbc8   : > { %v10116_v19 = vsel %vm9796_vm2, %v9732_v29, %v13565_v12  ;;  %v14158_v12 = vld [vmem:[%s15786_s29 + $0x1044] sm:$0xf0]  ;;  %v14149_v4 = vld [vmem:[%s15786_s29 + $0x1004] sm:$0xf] }
 0xbc9   : > { %10180 = vst [vmem:[%s15802_s9 + $0x108] sm:$0xff] %v10116_v19  ;;  %v9734_v60 = vadd.f32 %v18043_v61, %v9666_v1  ;;  %v9220_v44 = vadd.f32 %v9219_v22, %v9051_v57  ;;  %v12736_v57 = vld [vmem:[%s15786_s29 + $0x1048] sm:$0xf0]  ;;  %v12735_v30 = vor.u32 %v14158_v12, %v12734_v52 }
 0xbca   : > { %v9390_v25 = vpop.f32.mrf.mxu0  ;;  %v9559_v0 = vpop.f32.mrf.mxu1  ;;  %v12739_v35 = vor.u32 %v14149_v4, %v12736_v57 }
 0xbcb   : > { %v9862_v21 = vmin.f32 %v9734_v60, 0.0  ;;  %v9389_v15 = vadd.f32 %v9388_v23, %v9220_v44  ;;  %vm9798_vm4 = vcmp.gt.f32.partialorder %v9734_v60, 0.0  ;;  %v12726_v23 = vld [vmem:[%s15786_s29 + $0xff8] sm:$0xf] }
 0xbcd   : > { %v15426_v36 = vpop.eup %15425  ;;  %v9961_v26 = vmul.f32 1.442695, %v9862_v21  ;;  %v9558_v54 = vadd.f32 %v9557_v8, %v9389_v15  ;;  %v14157_v8 = vld [vmem:[%s15786_s29 + $0x103c] sm:$0xf0] }
 0xbce   : > { %v13566_v63 = vadd.f32 -1.0, %v15426_v36  ;;  %v9052_v29 = vpop.f32.mrf.mxu2  ;;  %v9221_v3 = vpop.f32.mrf.mxu3 }
 0xbcf   : > { %15427 = vpow2.f32 %v9961_v26  ;;  %v9667_v13 = vmul.f32 %v18035_v27, %v9558_v54  ;;  %v9053_v18 = vadd.f32 %v9052_v29, %v18577_v45  ;;  %v18580_v45 = vld [vmem:[#allocation41_spill] sm:$0xff] }
 0xbd0   : > { %v10117_v6 = vsel %vm9797_vm3, %v9733_v56, %v13566_v63 }
 0xbd1   : > { %10181 = vst [vmem:[%s15802_s9 + $0x110] sm:$0xff] %v10117_v6  ;;  %v9735_v50 = vadd.f32 %v18043_v61, %v9667_v13  ;;  %v9222_v28 = vadd.f32 %v9221_v3, %v9053_v18 }
 0xbd2   : > { %v9393_v16 = vpop.f32.mrf.mxu0  ;;  %v9562_v33 = vpop.f32.mrf.mxu1 }
 0xbd3   : > { %v9863_v47 = vmin.f32 %v9735_v50, 0.0  ;;  %v9391_v20 = vadd.f32 %v9390_v25, %v9222_v28  ;;  %9094 = vmatmul.bf16.gmra.mxu2 %v12655_v53  ;;  %9263 = vmatmul.bf16.gmra.mxu3 %v12659_v55  ;;  %v12727_v25 = vor.u32 %v14157_v8, %v12726_v23  ;;  %vm9799_vm5 = vcmp.gt.f32.partialorder %v9735_v50, 0.0  ;;  %v18581_v23 = vld [vmem:[#allocation16_spill] sm:$0xff] }
 0xbd5   : > { %9432 = vmatmul.bf16.gmra.mxu0 %v12663_v48  ;;  %9601 = vmatmul.bf16.gmra.mxu1 %v12667_v32  ;;  %v15428_v39 = vpop.eup %15427  ;;  %v9963_v5 = vmul.f32 1.442695, %v9863_v47  ;;  %v9560_v58 = vadd.f32 %v9559_v0, %v9391_v20  ;;  %v12731_v0 = vor.u32 %v14148_v17, %v12728_v9  ;;  %v18213_v9 = vld [vmem:[%s18384_s4] ss:$0 sm:$0xff] }
 0xbd6   : > { %v13567_v31 = vadd.f32 -1.0, %v15428_v39  ;;  %v9055_v10 = vpop.f32.mrf.mxu2  ;;  %v9224_v2 = vpop.f32.mrf.mxu3  ;;  %v14166_v39 = vld [vmem:[%s15786_s29 + $0x108c] sm:$0xf] }
 0xbd7   : > { %15429 = vpow2.f32 %v9963_v5  ;;  %v9668_v59 = vmul.f32 %v18035_v27, %v9560_v58  ;;  %v9056_v42 = vadd.f32 %v9055_v10, %v18578_v40  ;;  %v12800_v5 = vld [vmem:[%s15786_s29 + $0x10d0] sm:$0xf0]  ;;  %v12806_v58 = vld [vmem:[%s15786_s29 + $0x1090] sm:$0xf]  ;;  %v12808_v40 = vld [vmem:[%s15786_s29 + $0x10d8] sm:$0xf0] }
 0xbd8   : > { %v10118_v11 = vsel %vm9798_vm4, %v9734_v60, %v13567_v31  ;;  %v14176_v31 = vld [vmem:[%s15786_s29 + $0x10d4] sm:$0xf0] }
 0xbd9   : > { %10182 = vst [vmem:[%s15802_s9 + $0x118] sm:$0xff] %v10118_v11  ;;  %v9736_v43 = vadd.f32 %v18043_v61, %v9668_v59  ;;  %v9225_v38 = vadd.f32 %v9224_v2, %v9056_v42  ;;  %v14167_v59 = vld [vmem:[%s15786_s29 + $0x1094] sm:$0xf] }
 0xbda   : > { %v9395_v56 = vpop.f32.mrf.mxu0  ;;  %v9564_v7 = vpop.f32.mrf.mxu1  ;;  %v12811_v17 = vor.u32 %v14167_v59, %v12808_v40 }
 0xbdb   : > { %v9864_v14 = vmin.f32 %v9736_v43, 0.0  ;;  %v9394_v51 = vadd.f32 %v9393_v16, %v9225_v38  ;;  %vm9800_vm6 = vcmp.gt.f32.partialorder %v9736_v43, 0.0  ;;  %v12798_v16 = vld [vmem:[%s15786_s29 + $0x1088] sm:$0xf]  ;;  %v12803_v38 = vor.u32 %v14166_v39, %v12800_v5 }
 0xbdd   : > { %v15430_v41 = vpop.eup %15429  ;;  %v9965_v22 = vmul.f32 1.442695, %v9864_v14  ;;  %v9563_v1 = vadd.f32 %v9562_v33, %v9394_v51  ;;  %v14175_v33 = vld [vmem:[%s15786_s29 + $0x10cc] sm:$0xf0]  ;;  %v12807_v51 = vor.u32 %v14176_v31, %v12806_v58 }
 0xbde   : > { %v13568_v19 = vadd.f32 -1.0, %v15430_v41  ;;  %v9057_v60 = vpop.f32.mrf.mxu2  ;;  %v9226_v44 = vpop.f32.mrf.mxu3 }
 0xbdf   : > { %15431 = vpow2.f32 %v9965_v22  ;;  %v9669_v37 = vmul.f32 %v18035_v27, %v9563_v1  ;;  %v9058_v21 = vadd.f32 %v9057_v60, %v18579_v34  ;;  %v18582_v34 = vld [vmem:[#allocation17_spill] sm:$0xff] }
 0xbe0   : > { %v10119_v15 = vsel %vm9799_vm5, %v9735_v50, %v13568_v19 }
 0xbe1   : > { %10183 = vst [vmem:[%s15802_s9 + $0x120] sm:$0xff] %v10119_v15  ;;  %v9737_v49 = vadd.f32 %v18043_v61, %v9669_v37  ;;  %v9227_v46 = vadd.f32 %v9226_v44, %v9058_v21 }
 0xbe2   : > { %v9398_v36 = vpop.f32.mrf.mxu0  ;;  %v9567_v26 = vpop.f32.mrf.mxu1 }
 0xbe3   : > { %v9865_v54 = vmin.f32 %v9737_v49, 0.0  ;;  %v9396_v62 = vadd.f32 %v9395_v56, %v9227_v46  ;;  %9099 = vmatmul.bf16.gmra.mxu2 %v12727_v25  ;;  %9268 = vmatmul.bf16.gmra.mxu3 %v12731_v0  ;;  %vm9801_vm7 = vcmp.gt.f32.partialorder %v9737_v49, 0.0  ;;  %v18205_v56 = vld [vmem:[%s18383_s3] ss:$0 sm:$0xff] }
 0xbe5   : > { %9437 = vmatmul.bf16.gmra.mxu0 %v12735_v30  ;;  %9606 = vmatmul.bf16.gmra.mxu1 %v12739_v35  ;;  %v15432_v24 = vpop.eup %15431  ;;  %v9967_v63 = vmul.f32 1.442695, %v9865_v54  ;;  %v9565_v29 = vadd.f32 %v9564_v7, %v9396_v62 }
 0xbe6   : > { %v13569_v3 = vadd.f32 -1.0, %v15432_v24  ;;  %v9060_v53 = vpop.f32.mrf.mxu2  ;;  %v9229_v55 = vpop.f32.mrf.mxu3  ;;  %v14184_v24 = vld [vmem:[%s15786_s29 + $0x111c] sm:$0xf] }
 0xbe7   : > { %15433 = vpow2.f32 %v9967_v63  ;;  %v9670_v13 = vmul.f32 %v18035_v27, %v9565_v29  ;;  %v9061_v18 = vadd.f32 %v9060_v53, %v18580_v45  ;;  %v12872_v63 = vld [vmem:[%s15786_s29 + $0x1160] sm:$0xf0]  ;;  %v12878_v29 = vld [vmem:[%s15786_s29 + $0x1120] sm:$0xf] }
 0xbe8   : > { %v10120_v6 = vsel %vm9800_vm6, %v9736_v43, %v13569_v3  ;;  %v12799_v43 = vor.u32 %v14175_v33, %v12798_v16  ;;  %v14194_v3 = vld [vmem:[%s15786_s29 + $0x1164] sm:$0xf0]  ;;  %v14185_v45 = vld [vmem:[%s15786_s29 + $0x1124] sm:$0xf]  ;;  %v18583_v33 = vld [vmem:[#allocation18_spill] sm:$0xff] }
 0xbe9   : > { %10184 = vst [vmem:[%s15802_s9 + $0x128] sm:$0xff] %v10120_v6  ;;  %v9738_v48 = vadd.f32 %v18043_v61, %v9670_v13  ;;  %v9230_v32 = vadd.f32 %v9229_v55, %v9061_v18  ;;  %v12880_v18 = vld [vmem:[%s15786_s29 + $0x1168] sm:$0xf0]  ;;  %v12879_v39 = vor.u32 %v14194_v3, %v12878_v29 }
 0xbea   : > { %v9400_v50 = vpop.f32.mrf.mxu0  ;;  %v9569_v28 = vpop.f32.mrf.mxu1  ;;  %v12883_v5 = vor.u32 %v14185_v45, %v12880_v18 }
 0xbeb   : > { %v9866_v47 = vmin.f32 %v9738_v48, 0.0  ;;  %v9399_v20 = vadd.f32 %v9398_v36, %v9230_v32  ;;  %vm9802_vm8 = vcmp.gt.f32.partialorder %v9738_v48, 0.0  ;;  %v12870_v36 = vld [vmem:[%s15786_s29 + $0x1118] sm:$0xf] }
 0xbed   : > { %v15434_v27 = vpop.eup %15433  ;;  %v9969_v10 = vmul.f32 1.442695, %v9866_v47  ;;  %v9568_v2 = vadd.f32 %v9567_v26, %v9399_v20  ;;  %v14193_v26 = vld [vmem:[%s15786_s29 + $0x115c] sm:$0xf0] }
 0xbee   : > { %v13570_v42 = vadd.f32 -1.0, %v15434_v27  ;;  %v9062_v61 = vpop.f32.mrf.mxu2  ;;  %v9231_v11 = vpop.f32.mrf.mxu3 }
 0xbef   : > { %15435 = vpow2.f32 %v9969_v10  ;;  %v9671_v7 = vmul.f32 %v18205_v56, %v9568_v2  ;;  %v9063_v8 = vadd.f32 %v9062_v61, %v18581_v23  ;;  %v18584_v23 = vld [vmem:[#allocation19_spill] sm:$0xff] }
 0xbf0   : > { %v10121_v14 = vsel %vm9801_vm7, %v9737_v49, %v13570_v42 }
 0xbf1   : > { %10185 = vst [vmem:[%s15802_s9 + $0x130] sm:$0xff] %v10121_v14  ;;  %v9739_v52 = vadd.f32 %v18213_v9, %v9671_v7  ;;  %v9232_v12 = vadd.f32 %v9231_v11, %v9063_v8 }
 0xbf2   : > { %v9403_v41 = vpop.f32.mrf.mxu0  ;;  %v9572_v22 = vpop.f32.mrf.mxu1 }
 0xbf3   : > { %v9867_v1 = vmin.f32 %v9739_v52, 0.0  ;;  %v9401_v4 = vadd.f32 %v9400_v50, %v9232_v12  ;;  %9104 = vmatmul.bf16.gmra.mxu2 %v12799_v43  ;;  %9273 = vmatmul.bf16.gmra.mxu3 %v12803_v38  ;;  %v12871_v50 = vor.u32 %v14193_v26, %v12870_v36  ;;  %vm9803_vm9 = vcmp.gt.f32.partialorder %v9739_v52, 0.0  ;;  %v18585_v26 = vld [vmem:[#allocation20_spill] sm:$0xff] }
 0xbf5   : > { %9442 = vmatmul.bf16.gmra.mxu0 %v12807_v51  ;;  %9611 = vmatmul.bf16.gmra.mxu1 %v12811_v17  ;;  %v15436_v57 = vpop.eup %15435  ;;  %v9971_v19 = vmul.f32 1.442695, %v9867_v1  ;;  %v9570_v60 = vadd.f32 %v9569_v28, %v9401_v4  ;;  %v12875_v28 = vor.u32 %v14184_v24, %v12872_v63 }
 0xbf6   : > { %v13571_v44 = vadd.f32 -1.0, %v15436_v57  ;;  %v9065_v25 = vpop.f32.mrf.mxu2  ;;  %v9234_v0 = vpop.f32.mrf.mxu3  ;;  %v14202_v57 = vld [vmem:[%s15786_s29 + $0x11ac] sm:$0xf] }
 0xbf7   : > { %15437 = vpow2.f32 %v9971_v19  ;;  %v9672_v37 = vmul.f32 %v18205_v56, %v9570_v60  ;;  %v9066_v21 = vadd.f32 %v9065_v25, %v18582_v34  ;;  %v12944_v19 = vld [vmem:[%s15786_s29 + $0x11f0] sm:$0xf0]  ;;  %v12950_v60 = vld [vmem:[%s15786_s29 + $0x11b0] sm:$0xf] }
 0xbf8   : > { %v10122_v15 = vsel %vm9802_vm8, %v9738_v48, %v13571_v44  ;;  %v14212_v44 = vld [vmem:[%s15786_s29 + $0x11f4] sm:$0xf0]  ;;  %v14203_v34 = vld [vmem:[%s15786_s29 + $0x11b4] sm:$0xf] }
 0xbf9   : > { %10186 = vst [vmem:[%s15802_s9 + $0x138] sm:$0xff] %v10122_v15  ;;  %v9740_v30 = vadd.f32 %v18213_v9, %v9672_v37  ;;  %v9235_v35 = vadd.f32 %v9234_v0, %v9066_v21  ;;  %v12952_v21 = vld [vmem:[%s15786_s29 + $0x11f8] sm:$0xf0]  ;;  %v12951_v24 = vor.u32 %v14212_v44, %v12950_v60 }
 0xbfa   : > { %v9405_v49 = vpop.f32.mrf.mxu0  ;;  %v9574_v46 = vpop.f32.mrf.mxu1  ;;  %v12955_v63 = vor.u32 %v14203_v34, %v12952_v21  ;;  %v18588_v44 = vld [vmem:[#allocation23_spill] sm:$0xff] }
 0xbfb   : > { %v9868_v54 = vmin.f32 %v9740_v30, 0.0  ;;  %v9404_v62 = vadd.f32 %v9403_v41, %v9235_v35  ;;  %vm9804_vm10 = vcmp.gt.f32.partialorder %v9740_v30, 0.0  ;;  %v12942_v41 = vld [vmem:[%s15786_s29 + $0x11a8] sm:$0xf] }
 0xbfd   : > { %v15438_v53 = vpop.eup %15437  ;;  %v9973_v55 = vmul.f32 1.442695, %v9868_v54  ;;  %v9573_v13 = vadd.f32 %v9572_v22, %v9404_v62  ;;  %v14211_v22 = vld [vmem:[%s15786_s29 + $0x11ec] sm:$0xf0]  ;;  %s13597_s29 = sshll.u32 %s15625_s24, 6 }
 0xbfe   : > { %v13572_v6 = vadd.f32 -1.0, %v15438_v53  ;;  %v9067_v48 = vpop.f32.mrf.mxu2  ;;  %v9236_v32 = vpop.f32.mrf.mxu3  ;;  %s10223_s26 = sadd.s32 %s13598_s8, %s13597_s29 }
 0xbff   : > { %15439 = vpow2.f32 %v9973_v55  ;;  %v9673_v16 = vmul.f32 %v18205_v56, %v9573_v13  ;;  %v9068_v47 = vadd.f32 %v9067_v48, %v18583_v33  ;;  %v18586_v33 = vld [vmem:[#allocation21_spill] sm:$0xff]  ;;  %s13599_s23 = sshll.u32 %s10223_s26, 3 }
 0xc00   : > { %v10123_v20 = vsel %vm9803_vm9, %v9739_v52, %v13572_v6  ;;  %s10225_s24 = scalar_lea.hbm %s18385_s5, %s13599_s23 }
 0xc01   : > { %10187 = vst [vmem:[%s15802_s9 + $0x140] sm:$0xff] %v10123_v20  ;;  %v9741_v58 = vadd.f32 %v18213_v9, %v9673_v16  ;;  %v9237_v31 = vadd.f32 %v9236_v32, %v9068_v47  ;;  %s10228_s14 = sshll.u32 %s10225_s24, 4  ;;  %s10229_s14 = int_to_ptr.hbm [resolvable:$true] %s10228_s14 }
 0xc02   : > { %v9408_v27 = vpop.f32.mrf.mxu0  ;;  %v9577_v10 = vpop.f32.mrf.mxu1  ;;  %s15533_s30 = sshra.s32 %s10229_s14, 4  ;;  %s15534_s30 = int_to_ptr.hbm [resolvable:$true] %s15533_s30 }
 0xc03   : > { %v9869_v2 = vmin.f32 %v9741_v58, 0.0  ;;  %v9406_v59 = vadd.f32 %v9405_v49, %v9237_v31  ;;  %9109 = vmatmul.bf16.gmra.mxu2 %v12871_v50  ;;  %9278 = vmatmul.bf16.gmra.mxu3 %v12875_v28  ;;  %v12943_v49 = vor.u32 %v14211_v22, %v12942_v41  ;;  %vm9805_vm11 = vcmp.gt.f32.partialorder %v9741_v58, 0.0  ;;  %s15535_s10 = scalar_lea.hbm %s15534_s30, 512  ;;  %p15540_p12 = scmp.lt.s32.totalorder %s15534_s30, %s18385_s5 }
 0xc04   : > { %p15536_p8 = scmp.ne.s32.totalorder %s15534_s30, %s15535_s10  ;;  %p15541_p0 = scmp.lt.s32.totalorder %s15539_s11, %s15535_s10 }
 0xc05   : > { %9447 = vmatmul.bf16.gmra.mxu0 %v12879_v39  ;;  %9616 = vmatmul.bf16.gmra.mxu1 %v12883_v5  ;;  %v15440_v40 = vpop.eup %15439  ;;  %v9975_v42 = vmul.f32 1.442695, %v9869_v2  ;;  %v9575_v61 = vadd.f32 %v9574_v46, %v9406_v59  ;;  %v12947_v46 = vor.u32 %v14202_v57, %v12944_v19 }
 0xc06   : > { %v13573_v11 = vadd.f32 -1.0, %v15440_v40  ;;  %v9070_v43 = vpop.f32.mrf.mxu2  ;;  %v9239_v38 = vpop.f32.mrf.mxu3  ;;  %p15537_p10 = pnand %p15536_p8, %p15767_p13  ;;  %p15542_p1 = por %p15541_p0, %p15540_p12 }
 0xc07   : > { %15441 = vpow2.f32 %v9975_v42  ;;  %v9674_v7 = vmul.f32 %v18205_v56, %v9575_v61  ;;  %v9071_v8 = vadd.f32 %v9070_v43, %v18584_v23 }
 0xc08   : > { %v10124_v14 = vsel %vm9804_vm10, %v9740_v30, %v13573_v11  ;;  %p15538_p11 = pneg %p15537_p10 }
 0xc09   : > { %10188 = vst [vmem:[%s15802_s9 + $0x148] sm:$0xff] %v10124_v14  ;;  %v9742_v51 = vadd.f32 %v18213_v9, %v9674_v7  ;;  %v9240_v17 = vadd.f32 %v9239_v38, %v9071_v8  ;;  %v18587_v38 = vld [vmem:[#allocation22_spill] sm:$0xff] }
 0xc0a   : > { %v9410_v52 = vpop.f32.mrf.mxu0  ;;  %v9579_v12 = vpop.f32.mrf.mxu1  ;;  %p15543_p4 = pnand %p15542_p1, %p15538_p11 }
 0xc0b   : > { %v9870_v1 = vmin.f32 %v9742_v51, 0.0  ;;  %v9409_v4 = vadd.f32 %v9408_v27, %v9240_v17  ;;  %vm9806_vm12 = vcmp.gt.f32.partialorder %v9742_v51, 0.0 }
 0xc0d   : > { %v15442_v25 = vpop.eup %15441  ;;  %v9977_v0 = vmul.f32 1.442695, %v9870_v1  ;;  %v9578_v37 = vadd.f32 %v9577_v10, %v9409_v4 }
 0xc0e   : > { %v13574_v15 = vadd.f32 -1.0, %v15442_v25  ;;  %v9072_v30 = vpop.f32.mrf.mxu2  ;;  %v9241_v35 = vpop.f32.mrf.mxu3 }
 0xc0f   : > { %15443 = vpow2.f32 %v9977_v0  ;;  %v9675_v36 = vmul.f32 %v18205_v56, %v9578_v37  ;;  %v9073_v54 = vadd.f32 %v9072_v30, %v18585_v26 }
 0xc10   : > { %v10125_v62 = vsel %vm9805_vm11, %v9741_v58, %v13574_v15 }
 0xc11   : > { %10189 = vst [vmem:[%s15802_s9 + $0x150] sm:$0xff] %v10125_v62  ;;  %v9743_v29 = vadd.f32 %v18213_v9, %v9675_v36  ;;  %v9242_v3 = vadd.f32 %v9241_v35, %v9073_v54 }
 0xc12   : > { %v9413_v53 = vpop.f32.mrf.mxu0  ;;  %v9582_v55 = vpop.f32.mrf.mxu1 }
 0xc13   : > { %v9871_v13 = vmin.f32 %v9743_v29, 0.0  ;;  %v9411_v45 = vadd.f32 %v9410_v52, %v9242_v3  ;;  %9114 = vmatmul.bf16.gmra.mxu2 %v12943_v49  ;;  %9283 = vmatmul.bf16.gmra.mxu3 %v12947_v46  ;;  %vm9807_vm13 = vcmp.gt.f32.partialorder %v9743_v29, 0.0 }
 0xc15   : > { %9452 = vmatmul.bf16.gmra.mxu0 %v12951_v24  ;;  %9621 = vmatmul.bf16.gmra.mxu1 %v12955_v63  ;;  %v15444_v18 = vpop.eup %15443  ;;  %v9979_v6 = vmul.f32 1.442695, %v9871_v13  ;;  %v9580_v48 = vadd.f32 %v9579_v12, %v9411_v45  ;;  %v18589_v63 = vld [vmem:[#allocation24_spill] sm:$0xff] }
 0xc16   : > { %v13575_v32 = vadd.f32 -1.0, %v15444_v18  ;;  %v9075_v50 = vpop.f32.mrf.mxu2  ;;  %v9244_v28 = vpop.f32.mrf.mxu3 }
 0xc17   : > { %15445 = vpow2.f32 %v9979_v6  ;;  %v9676_v16 = vmul.f32 %v18205_v56, %v9580_v48  ;;  %v9076_v47 = vadd.f32 %v9075_v50, %v18586_v33 }
 0xc18   : > { %v10126_v20 = vsel %vm9806_vm12, %v9742_v51, %v13575_v32 }
 0xc19   : > { %10190 = vst [vmem:[%s15802_s9 + $0x158] sm:$0xff] %v10126_v20  ;;  %v9744_v39 = vadd.f32 %v18213_v9, %v9676_v16  ;;  %v9245_v5 = vadd.f32 %v9244_v28, %v9076_v47  ;;  %v18590_v20 = vld [vmem:[#allocation25_spill] sm:$0xff] }
 0xc1a   : > { %v9415_v58 = vpop.f32.mrf.mxu0  ;;  %v9584_v31 = vpop.f32.mrf.mxu1 }
 0xc1b   : > { %v9872_v27 = vmin.f32 %v9744_v39, 0.0  ;;  %v9414_v10 = vadd.f32 %v9413_v53, %v9245_v5  ;;  %vm9808_vm14 = vcmp.gt.f32.partialorder %v9744_v39, 0.0 }
 0xc1d   : > { %v15446_v2 = vpop.eup %15445  ;;  %v9981_v59 = vmul.f32 1.442695, %v9872_v27  ;;  %v9583_v40 = vadd.f32 %v9582_v55, %v9414_v10 }
 0xc1e   : > { %v13576_v42 = vadd.f32 -1.0, %v15446_v2  ;;  %v9077_v61 = vpop.f32.mrf.mxu2  ;;  %v9246_v11 = vpop.f32.mrf.mxu3 }
 0xc1f   : > { %15447 = vpow2.f32 %v9981_v59  ;;  %v9677_v43 = vmul.f32 %v18205_v56, %v9583_v40  ;;  %v9078_v7 = vadd.f32 %v9077_v61, %v18587_v38 }
 0xc20   : > { %v10127_v23 = vsel %vm9807_vm13, %v9743_v29, %v13576_v42 }
 0xc21   : > { %10191 = vst [vmem:[%s15802_s9 + $0x160] sm:$0xff] %v10127_v23  ;;  %v9745_v8 = vadd.f32 %v18213_v9, %v9677_v43  ;;  %v9247_v14 = vadd.f32 %v9246_v11, %v9078_v7  ;;  %v18591_v23 = vld [vmem:[#allocation26_spill] sm:$0xff] }
 0xc22   : > { %v9418_v51 = vpop.f32.mrf.mxu0  ;;  %v9587_v17 = vpop.f32.mrf.mxu1 }
 0xc23   : > { %v9873_v52 = vmin.f32 %v9745_v8, 0.0  ;;  %v9416_v12 = vadd.f32 %v9415_v58, %v9247_v14  ;;  %vm9809_vm15 = vcmp.gt.f32.partialorder %v9745_v8, 0.0 }
 0xc25   : > { %v15448_v41 = vpop.eup %15447  ;;  %v9983_v22 = vmul.f32 1.442695, %v9873_v52  ;;  %v9585_v1 = vadd.f32 %v9584_v31, %v9416_v12 }
 0xc26   : > { %v13577_v4 = vadd.f32 -1.0, %v15448_v41  ;;  %v9080_v57 = vpop.f32.mrf.mxu2  ;;  %v9249_v19 = vpop.f32.mrf.mxu3 }
 0xc27   : > { %15449 = vpow2.f32 %v9983_v22  ;;  %v9678_v60 = vmul.f32 %v18205_v56, %v9585_v1  ;;  %v9081_v25 = vadd.f32 %v9080_v57, %v18588_v44 }
 0xc28   : > { %v10128_v0 = vsel %vm9808_vm14, %v9744_v39, %v13577_v4 }
 0xc29   : > { %10192 = vst [vmem:[%s15802_s9 + $0x168] sm:$0xff] %v10128_v0  ;;  %v9746_v37 = vadd.f32 %v18213_v9, %v9678_v60  ;;  %v9250_v34 = vadd.f32 %v9249_v19, %v9081_v25  ;;  %v18592_v0 = vld [vmem:[#allocation27_spill] sm:$0xff] }
 0xc2a   : > { %v9420_v21 = vpop.f32.mrf.mxu0  ;;  %v9589_v15 = vpop.f32.mrf.mxu1 }
 0xc2b   : > { %v9874_v30 = vmin.f32 %v9746_v37, 0.0  ;;  %v9419_v35 = vadd.f32 %v9418_v51, %v9250_v34  ;;  %vm9810_vm0 = vcmp.gt.f32.partialorder %v9746_v37, 0.0 }
 0xc2d   : > { %v15450_v49 = vpop.eup %15449  ;;  %v9985_v46 = vmul.f32 1.442695, %v9874_v30  ;;  %v9588_v36 = vadd.f32 %v9587_v17, %v9419_v35 }
 0xc2e   : > { %v13578_v26 = vadd.f32 -1.0, %v15450_v49  ;;  %v9082_v54 = vpop.f32.mrf.mxu2  ;;  %v9251_v62 = vpop.f32.mrf.mxu3 }
 0xc2f   : > { %15451 = vpow2.f32 %v9985_v46  ;;  %v9679_v24 = vmul.f32 %v18205_v56, %v9588_v36  ;;  %v9083_v29 = vadd.f32 %v9082_v54, %v18589_v63 }
 0xc30   : > { %v10129_v3 = vsel %vm9809_vm15, %v9745_v8, %v13578_v26 }
 0xc31   : > { %10193 = vst [vmem:[%s15802_s9 + $0x170] sm:$0xff] %v10129_v3  ;;  %v9747_v53 = vadd.f32 %v18213_v9, %v9679_v24  ;;  %v9252_v55 = vadd.f32 %v9251_v62, %v9083_v29  ;;  %v18593_v3 = vld [vmem:[#allocation28_spill] sm:$0xff] }
 0xc32   : > { %v9423_v13 = vpop.f32.mrf.mxu0  ;;  %v9592_v45 = vpop.f32.mrf.mxu1 }
 0xc33   : > { %v9875_v18 = vmin.f32 %v9747_v53, 0.0  ;;  %v9421_v6 = vadd.f32 %v9420_v21, %v9252_v55  ;;  %vm9811_vm1 = vcmp.gt.f32.partialorder %v9747_v53, 0.0 }
 0xc35   : > { %v15452_v48 = vpop.eup %15451  ;;  %v9987_v32 = vmul.f32 1.442695, %v9875_v18  ;;  %v9590_v50 = vadd.f32 %v9589_v15, %v9421_v6 }
 0xc36   : > { %v13579_v28 = vadd.f32 -1.0, %v15452_v48  ;;  %v9085_v16 = vpop.f32.mrf.mxu2  ;;  %v9254_v33 = vpop.f32.mrf.mxu3 }
 0xc37   : > { %15453 = vpow2.f32 %v9987_v32  ;;  %v9680_v47 = vmul.f32 %v18205_v56, %v9590_v50  ;;  %v9086_v39 = vadd.f32 %v9085_v16, %v18590_v20 }
 0xc38   : > { %v10130_v5 = vsel %vm9810_vm0, %v9746_v37, %v13579_v28 }
 0xc39   : > { %10194 = vst [vmem:[%s15802_s9 + $0x178] sm:$0xff] %v10130_v5  ;;  %v9748_v58 = vadd.f32 %v18213_v9, %v9680_v47  ;;  %v9255_v31 = vadd.f32 %v9254_v33, %v9086_v39  ;;  %v18594_v5 = vld [vmem:[#allocation29_spill] sm:$0xff] }
 0xc3a   : > { %v9425_v27 = vpop.f32.mrf.mxu0  ;;  %v9594_v10 = vpop.f32.mrf.mxu1 }
 0xc3b   : > { %v9876_v2 = vmin.f32 %v9748_v58, 0.0  ;;  %v9424_v59 = vadd.f32 %v9423_v13, %v9255_v31  ;;  %vm9812_vm2 = vcmp.gt.f32.partialorder %v9748_v58, 0.0 }
 0xc3d   : > { %v15454_v40 = vpop.eup %15453  ;;  %v9989_v42 = vmul.f32 1.442695, %v9876_v2  ;;  %v9593_v61 = vadd.f32 %v9592_v45, %v9424_v59 }
 0xc3e   : > { %v13580_v11 = vadd.f32 -1.0, %v15454_v40  ;;  %v9087_v43 = vpop.f32.mrf.mxu2  ;;  %v9256_v38 = vpop.f32.mrf.mxu3 }
 0xc3f   : > { %15455 = vpow2.f32 %v9989_v42  ;;  %v9681_v7 = vmul.f32 %v18205_v56, %v9593_v61  ;;  %v9088_v8 = vadd.f32 %v9087_v43, %v18591_v23 }
 0xc40   : > { %v10131_v14 = vsel %vm9811_vm1, %v9747_v53, %v13580_v11 }
 0xc41   : > { %10195 = vst [vmem:[%s15802_s9 + $0x180] sm:$0xff] %v10131_v14  ;;  %v9749_v51 = vadd.f32 %v18213_v9, %v9681_v7  ;;  %v9257_v17 = vadd.f32 %v9256_v38, %v9088_v8  ;;  %v18595_v14 = vld [vmem:[#allocation30_spill] sm:$0xff] }
 0xc42   : > { %v9428_v52 = vpop.f32.mrf.mxu0  ;;  %v9597_v12 = vpop.f32.mrf.mxu1 }
 0xc43   : > { %v9877_v41 = vmin.f32 %v9749_v51, 0.0  ;;  %v9426_v22 = vadd.f32 %v9425_v27, %v9257_v17  ;;  %vm9813_vm3 = vcmp.gt.f32.partialorder %v9749_v51, 0.0 }
 0xc45   : > { %v15456_v1 = vpop.eup %15455  ;;  %v9991_v4 = vmul.f32 1.442695, %v9877_v41  ;;  %v9595_v57 = vadd.f32 %v9594_v10, %v9426_v22 }
 0xc46   : > { %v13581_v19 = vadd.f32 -1.0, %v15456_v1  ;;  %v9090_v60 = vpop.f32.mrf.mxu2  ;;  %v9259_v44 = vpop.f32.mrf.mxu3 }
 0xc47   : > { %15457 = vpow2.f32 %v9991_v4  ;;  %v9682_v25 = vmul.f32 %v18205_v56, %v9595_v57  ;;  %v9091_v37 = vadd.f32 %v9090_v60, %v18592_v0 }
 0xc48   : > { %v10132_v34 = vsel %vm9812_vm2, %v9748_v58, %v13581_v19 }
 0xc49   : > { %10196 = vst [vmem:[%s15802_s9 + $0x188] sm:$0xff] %v10132_v34  ;;  %v9750_v21 = vadd.f32 %v18213_v9, %v9682_v25  ;;  %v9260_v15 = vadd.f32 %v9259_v44, %v9091_v37  ;;  %v18596_v34 = vld [vmem:[#allocation31_spill] sm:$0xff] }
 0xc4a   : > { %v9430_v30 = vpop.f32.mrf.mxu0  ;;  %v9599_v35 = vpop.f32.mrf.mxu1 }
 0xc4b   : > { %v9878_v49 = vmin.f32 %v9750_v21, 0.0  ;;  %v9429_v46 = vadd.f32 %v9428_v52, %v9260_v15  ;;  %vm9814_vm4 = vcmp.gt.f32.partialorder %v9750_v21, 0.0 }
 0xc4d   : > { %v15458_v36 = vpop.eup %15457  ;;  %v9993_v26 = vmul.f32 1.442695, %v9878_v49  ;;  %v9598_v54 = vadd.f32 %v9597_v12, %v9429_v46 }
 0xc4e   : > { %v13582_v62 = vadd.f32 -1.0, %v15458_v36  ;;  %v9092_v24 = vpop.f32.mrf.mxu2  ;;  %v9261_v63 = vpop.f32.mrf.mxu3 }
 0xc4f   : > { %15459 = vpow2.f32 %v9993_v26  ;;  %v9683_v29 = vmul.f32 %v18205_v56, %v9598_v54  ;;  %v9093_v53 = vadd.f32 %v9092_v24, %v18593_v3 }
 0xc50   : > { %v10133_v55 = vsel %vm9813_vm3, %v9749_v51, %v13582_v62 }
 0xc51   : > { %10197 = vst [vmem:[%s15802_s9 + $0x190] sm:$0xff] %v10133_v55  ;;  %v9751_v13 = vadd.f32 %v18213_v9, %v9683_v29  ;;  %v9262_v45 = vadd.f32 %v9261_v63, %v9093_v53  ;;  %v18597_v55 = vld [vmem:[#allocation32_spill] sm:$0xff] }
 0xc52   : > { %v9433_v18 = vpop.f32.mrf.mxu0  ;;  %v9602_v6 = vpop.f32.mrf.mxu1 }
 0xc53   : > { %v9879_v48 = vmin.f32 %v9751_v13, 0.0  ;;  %v9431_v32 = vadd.f32 %v9430_v30, %v9262_v45  ;;  %vm9815_vm5 = vcmp.gt.f32.partialorder %v9751_v13, 0.0 }
 0xc55   : > { %v15460_v50 = vpop.eup %15459  ;;  %v9995_v28 = vmul.f32 1.442695, %v9879_v48  ;;  %v9600_v16 = vadd.f32 %v9599_v35, %v9431_v32 }
 0xc56   : > { %v13583_v33 = vadd.f32 -1.0, %v15460_v50  ;;  %v9095_v47 = vpop.f32.mrf.mxu2  ;;  %v9264_v20 = vpop.f32.mrf.mxu3 }
 0xc57   : > { %15461 = vpow2.f32 %v9995_v28  ;;  %v9684_v39 = vmul.f32 %v18205_v56, %v9600_v16  ;;  %v9096_v58 = vadd.f32 %v9095_v47, %v18594_v5 }
 0xc58   : > { %v10134_v31 = vsel %vm9814_vm4, %v9750_v21, %v13583_v33 }
 0xc59   : > { %10198 = vst [vmem:[%s15802_s9 + $0x198] sm:$0xff] %v10134_v31  ;;  %v9752_v27 = vadd.f32 %v18213_v9, %v9684_v39  ;;  %v9265_v10 = vadd.f32 %v9264_v20, %v9096_v58  ;;  %v18598_v31 = vld [vmem:[#allocation42_spill] sm:$0xff] }
 0xc5a   : > { %v9435_v2 = vpop.f32.mrf.mxu0  ;;  %v9604_v59 = vpop.f32.mrf.mxu1 }
 0xc5b   : > { %v9880_v40 = vmin.f32 %v9752_v27, 0.0  ;;  %v9434_v42 = vadd.f32 %v9433_v18, %v9265_v10  ;;  %vm9816_vm6 = vcmp.gt.f32.partialorder %v9752_v27, 0.0 }
 0xc5d   : > { %v15462_v61 = vpop.eup %15461  ;;  %v9997_v11 = vmul.f32 1.442695, %v9880_v40  ;;  %v9603_v43 = vadd.f32 %v9602_v6, %v9434_v42 }
 0xc5e   : > { %v13584_v38 = vadd.f32 -1.0, %v15462_v61  ;;  %v9097_v7 = vpop.f32.mrf.mxu2  ;;  %v9266_v23 = vpop.f32.mrf.mxu3 }
 0xc5f   : > { %15463 = vpow2.f32 %v9997_v11  ;;  %v9685_v8 = vmul.f32 %v18205_v56, %v9603_v43  ;;  %v9098_v51 = vadd.f32 %v9097_v7, %v18595_v14 }
 0xc60   : > { %v10135_v17 = vsel %vm9815_vm5, %v9751_v13, %v13584_v38 }
 0xc61   : > { %10199 = vst [vmem:[%s15802_s9 + $0x1a0] sm:$0xff] %v10135_v17  ;;  %v9753_v52 = vadd.f32 %v18213_v9, %v9685_v8  ;;  %v9267_v12 = vadd.f32 %v9266_v23, %v9098_v51  ;;  %v18599_v17 = vld [vmem:[#allocation33_spill] sm:$0xff] }
 0xc62   : > { %v9438_v41 = vpop.f32.mrf.mxu0  ;;  %v9607_v22 = vpop.f32.mrf.mxu1 }
 0xc63   : > { %v9881_v1 = vmin.f32 %v9753_v52, 0.0  ;;  %v9436_v4 = vadd.f32 %v9435_v2, %v9267_v12  ;;  %vm9817_vm7 = vcmp.gt.f32.partialorder %v9753_v52, 0.0 }
 0xc65   : > { %v15464_v57 = vpop.eup %15463  ;;  %v9999_v19 = vmul.f32 1.442695, %v9881_v1  ;;  %v9605_v60 = vadd.f32 %v9604_v59, %v9436_v4 }
 0xc66   : > { %v13585_v44 = vadd.f32 -1.0, %v15464_v57  ;;  %v9100_v25 = vpop.f32.mrf.mxu2  ;;  %v9269_v0 = vpop.f32.mrf.mxu3 }
 0xc67   : > { %15465 = vpow2.f32 %v9999_v19  ;;  %v9686_v37 = vmul.f32 %v18205_v56, %v9605_v60  ;;  %v9101_v21 = vadd.f32 %v9100_v25, %v18596_v34 }
 0xc68   : > { %v10136_v15 = vsel %vm9816_vm6, %v9752_v27, %v13585_v44 }
 0xc69   : > { %10200 = vst [vmem:[%s15802_s9 + $0x1a8] sm:$0xff] %v10136_v15  ;;  %v9754_v30 = vadd.f32 %v18213_v9, %v9686_v37  ;;  %v9270_v35 = vadd.f32 %v9269_v0, %v9101_v21  ;;  %v18600_v15 = vld [vmem:[#allocation43_spill] sm:$0xff] }
 0xc6a   : > { %v9440_v49 = vpop.f32.mrf.mxu0  ;;  %v9609_v46 = vpop.f32.mrf.mxu1 }
 0xc6b   : > { %v9882_v36 = vmin.f32 %v9754_v30, 0.0  ;;  %v9439_v26 = vadd.f32 %v9438_v41, %v9270_v35  ;;  %vm9818_vm8 = vcmp.gt.f32.partialorder %v9754_v30, 0.0 }
 0xc6d   : > { %v15466_v54 = vpop.eup %15465  ;;  %v10001_v62 = vmul.f32 1.442695, %v9882_v36  ;;  %v9608_v24 = vadd.f32 %v9607_v22, %v9439_v26 }
 0xc6e   : > { %v13586_v63 = vadd.f32 -1.0, %v15466_v54  ;;  %v9102_v29 = vpop.f32.mrf.mxu2  ;;  %v9271_v3 = vpop.f32.mrf.mxu3 }
 0xc6f   : > { %15467 = vpow2.f32 %v10001_v62  ;;  %v9687_v53 = vmul.f32 %v18205_v56, %v9608_v24  ;;  %v9103_v13 = vadd.f32 %v9102_v29, %v18597_v55 }
 0xc70   : > { %v10137_v45 = vsel %vm9817_vm7, %v9753_v52, %v13586_v63 }
 0xc71   : > { %10201 = vst [vmem:[%s15802_s9 + $0x1b0] sm:$0xff] %v10137_v45  ;;  %v9755_v18 = vadd.f32 %v18213_v9, %v9687_v53  ;;  %v9272_v6 = vadd.f32 %v9271_v3, %v9103_v13  ;;  %v18601_v13 = vld [vmem:[#allocation44_spill] sm:$0xff] }
 0xc72   : > { %v9443_v48 = vpop.f32.mrf.mxu0  ;;  %v9612_v32 = vpop.f32.mrf.mxu1 }
 0xc73   : > { %v9883_v50 = vmin.f32 %v9755_v18, 0.0  ;;  %v9441_v28 = vadd.f32 %v9440_v49, %v9272_v6  ;;  %vm9819_vm9 = vcmp.gt.f32.partialorder %v9755_v18, 0.0 }
 0xc75   : > { %v15468_v16 = vpop.eup %15467  ;;  %v10003_v33 = vmul.f32 1.442695, %v9883_v50  ;;  %v9610_v47 = vadd.f32 %v9609_v46, %v9441_v28 }
 0xc76   : > { %v13587_v20 = vadd.f32 -1.0, %v15468_v16  ;;  %v9105_v39 = vpop.f32.mrf.mxu2  ;;  %v9274_v5 = vpop.f32.mrf.mxu3 }
 0xc77   : > { %15469 = vpow2.f32 %v10003_v33  ;;  %v9688_v58 = vmul.f32 %v18205_v56, %v9610_v47  ;;  %v9106_v27 = vadd.f32 %v9105_v39, %v18598_v31  ;;  %v18602_v31 = vld [vmem:[#allocation45_spill] sm:$0xff] }
 0xc78   : > { %v10138_v10 = vsel %vm9818_vm8, %v9754_v30, %v13587_v20 }
 0xc79   : > { %10202 = vst [vmem:[%s15802_s9 + $0x1b8] sm:$0xff] %v10138_v10  ;;  %v9756_v2 = vadd.f32 %v18213_v9, %v9688_v58  ;;  %v9275_v59 = vadd.f32 %v9274_v5, %v9106_v27 }
 0xc7a   : > { %v9445_v40 = vpop.f32.mrf.mxu0  ;;  %v9614_v11 = vpop.f32.mrf.mxu1 }
 0xc7b   : > { %v9884_v42 = vmin.f32 %v9756_v2, 0.0  ;;  %v9444_v61 = vadd.f32 %v9443_v48, %v9275_v59  ;;  %vm9820_vm10 = vcmp.gt.f32.partialorder %v9756_v2, 0.0 }
 0xc7d   : > { %v15470_v43 = vpop.eup %15469  ;;  %v10005_v38 = vmul.f32 1.442695, %v9884_v42  ;;  %v9613_v7 = vadd.f32 %v9612_v32, %v9444_v61 }
 0xc7e   : > { %v13588_v23 = vadd.f32 -1.0, %v15470_v43  ;;  %v9107_v8 = vpop.f32.mrf.mxu2  ;;  %v9276_v14 = vpop.f32.mrf.mxu3 }
 0xc7f   : > { %15471 = vpow2.f32 %v10005_v38  ;;  %v9689_v51 = vmul.f32 %v18205_v56, %v9613_v7  ;;  %v9108_v52 = vadd.f32 %v9107_v8, %v18599_v17 }
 0xc80   : > { %v10139_v12 = vsel %vm9819_vm9, %v9755_v18, %v13588_v23 }
 0xc81   : > { %10203 = vst [vmem:[%s15802_s9 + $0x1c0] sm:$0xff] %v10139_v12  ;;  %v9757_v41 = vadd.f32 %v18213_v9, %v9689_v51  ;;  %v9277_v22 = vadd.f32 %v9276_v14, %v9108_v52  ;;  %v18603_v51 = vld [vmem:[#allocation34_spill] sm:$0xff] }
 0xc82   : > { %v9448_v57 = vpop.f32.mrf.mxu0  ;;  %v9617_v25 = vpop.f32.mrf.mxu1 }
 0xc83   : > { %v9885_v1 = vmin.f32 %v9757_v41, 0.0  ;;  %v9446_v4 = vadd.f32 %v9445_v40, %v9277_v22  ;;  %vm9821_vm11 = vcmp.gt.f32.partialorder %v9757_v41, 0.0 }
 0xc85   : > { %v15472_v19 = vpop.eup %15471  ;;  %v10007_v60 = vmul.f32 1.442695, %v9885_v1  ;;  %v9615_v44 = vadd.f32 %v9614_v11, %v9446_v4 }
 0xc86   : > { %v13589_v0 = vadd.f32 -1.0, %v15472_v19  ;;  %v9110_v37 = vpop.f32.mrf.mxu2  ;;  %v9279_v34 = vpop.f32.mrf.mxu3 }
 0xc87   : > { %15473 = vpow2.f32 %v10007_v60  ;;  %v9690_v21 = vmul.f32 %v18205_v56, %v9615_v44  ;;  %v9111_v30 = vadd.f32 %v9110_v37, %v18600_v15 }
 0xc88   : > { %v10140_v35 = vsel %vm9820_vm10, %v9756_v2, %v13589_v0 }
 0xc89   : > { %10204 = vst [vmem:[%s15802_s9 + $0x1c8] sm:$0xff] %v10140_v35  ;;  %v9758_v49 = vadd.f32 %v18213_v9, %v9690_v21  ;;  %v9280_v46 = vadd.f32 %v9279_v34, %v9111_v30 }
 0xc8a   : > { %v9450_v63 = vpop.f32.mrf.mxu0  ;;  %v9619_v6 = vpop.f32.mrf.mxu1 }
 0xc8b   : > { %v9886_v36 = vmin.f32 %v9758_v49, 0.0  ;;  %v9449_v26 = vadd.f32 %v9448_v57, %v9280_v46  ;;  %vm9822_vm12 = vcmp.gt.f32.partialorder %v9758_v49, 0.0 }
 0xc8d   : > { %v15474_v54 = vpop.eup %15473  ;;  %v10009_v62 = vmul.f32 1.442695, %v9886_v36  ;;  %v9618_v24 = vadd.f32 %v9617_v25, %v9449_v26 }
 0xc8e   : > { %v13590_v29 = vadd.f32 -1.0, %v15474_v54  ;;  %v9112_v3 = vpop.f32.mrf.mxu2  ;;  %v9281_v53 = vpop.f32.mrf.mxu3 }
 0xc8f   : > { %15475 = vpow2.f32 %v10009_v62  ;;  %v9691_v55 = vmul.f32 %v18205_v56, %v9618_v24  ;;  %v9113_v45 = vadd.f32 %v9112_v3, %v18601_v13 }
 0xc90   : > { %v10141_v18 = vsel %vm9821_vm11, %v9757_v41, %v13590_v29 }
 0xc91   : > { %10205 = vst [vmem:[%s15802_s9 + $0x1d0] sm:$0xff] %v10141_v18  ;;  %v9759_v48 = vadd.f32 %v18213_v9, %v9691_v55  ;;  %v9282_v32 = vadd.f32 %v9281_v53, %v9113_v45 }
 0xc92   : > { %v9453_v2 = vpop.f32.mrf.mxu0  ;;  %v9622_v42 = vpop.f32.mrf.mxu1 }
 0xc93   : > { %v9887_v50 = vmin.f32 %v9759_v48, 0.0  ;;  %v9451_v28 = vadd.f32 %v9450_v63, %v9282_v32  ;;  %vm9823_vm13 = vcmp.gt.f32.partialorder %v9759_v48, 0.0 }
 0xc95   : > { %v15476_v16 = vpop.eup %15475  ;;  %v10011_v33 = vmul.f32 1.442695, %v9887_v50  ;;  %v9620_v47 = vadd.f32 %v9619_v6, %v9451_v28 }
 0xc96   : > { %v13591_v20 = vadd.f32 -1.0, %v15476_v16  ;;  %v9115_v39 = vpop.f32.mrf.mxu2  ;;  %v9284_v5 = vpop.f32.mrf.mxu3 }
 0xc97   : > { %15477 = vpow2.f32 %v10011_v33  ;;  %v9692_v58 = vmul.f32 %v18205_v56, %v9620_v47  ;;  %v9116_v27 = vadd.f32 %v9115_v39, %v18602_v31 }
 0xc98   : > { %v10142_v10 = vsel %vm9822_vm12, %v9758_v49, %v13591_v20 }
 0xc99   : > { %10206 = vst [vmem:[%s15802_s9 + $0x1d8] sm:$0xff] %v10142_v10  ;;  %v9760_v59 = vadd.f32 %v18213_v9, %v9692_v58  ;;  %v9285_v40 = vadd.f32 %v9284_v5, %v9116_v27 }
 0xc9a   : > { %v9455_v1 = vpop.f32.mrf.mxu0  ;;  %v9624_v19 = vpop.f32.mrf.mxu1 }
 0xc9b   : > { %v9888_v61 = vmin.f32 %v9760_v59, 0.0  ;;  %v9454_v11 = vadd.f32 %v9453_v2, %v9285_v40  ;;  %vm9824_vm14 = vcmp.gt.f32.partialorder %v9760_v59, 0.0 }
 0xc9d   : > { %v15478_v43 = vpop.eup %15477  ;;  %v10013_v38 = vmul.f32 1.442695, %v9888_v61  ;;  %v9623_v7 = vadd.f32 %v9622_v42, %v9454_v11 }
 0xc9e   : > { %v13592_v23 = vadd.f32 -1.0, %v15478_v43  ;;  %v9117_v8 = vpop.f32.mrf.mxu2  ;;  %v9286_v12 = vpop.f32.mrf.mxu3 }
 0xc9f   : > { %15479 = vpow2.f32 %v10013_v38  ;;  %v9693_v14 = vmul.f32 %v18205_v56, %v9623_v7  ;;  %v9118_v17 = vadd.f32 %v9117_v8, %v18603_v51 }
 0xca0   : > { %v10143_v52 = vsel %vm9823_vm13, %v9759_v48, %v13592_v23 }
 0xca1   : > { %10207 = vst [vmem:[%s15802_s9 + $0x1e0] sm:$0xff] %v10143_v52  ;;  %v9761_v41 = vadd.f32 %v18213_v9, %v9693_v14  ;;  %v9287_v22 = vadd.f32 %v9286_v12, %v9118_v17 }
 0xca3   : > { %v9889_v4 = vmin.f32 %v9761_v41, 0.0  ;;  %v9456_v57 = vadd.f32 %v9455_v1, %v9287_v22  ;;  %vm9825_vm15 = vcmp.gt.f32.partialorder %v9761_v41, 0.0 }
 0xca5   : > { %v15480_v60 = vpop.eup %15479  ;;  %v10015_v44 = vmul.f32 1.442695, %v9889_v4  ;;  %v9625_v25 = vadd.f32 %v9624_v19, %v9456_v57 }
 0xca6   : > { %v13593_v0 = vadd.f32 -1.0, %v15480_v60 }
 0xca7   : > { %15481 = vpow2.f32 %v10015_v44  ;;  %v9694_v37 = vmul.f32 %v18205_v56, %v9625_v25 }
 0xca8   : > { %v10144_v34 = vsel %vm9824_vm14, %v9760_v59, %v13593_v0 }
 0xca9   : > { %10208 = vst [vmem:[%s15802_s9 + $0x1e8] sm:$0xff] %v10144_v34  ;;  %v9762_v21 = vadd.f32 %v18213_v9, %v9694_v37 }
 0xcab   : > { %v9890_v15 = vmin.f32 %v9762_v21, 0.0  ;;  %vm9826_vm0 = vcmp.gt.f32.partialorder %v9762_v21, 0.0 }
 0xcad   : > { %v15482_v30 = vpop.eup %15481  ;;  %v10017_v35 = vmul.f32 1.442695, %v9890_v15 }
 0xcae   : > { %v13594_v49 = vadd.f32 -1.0, %v15482_v30 }
 0xcaf   : > { %15483 = vpow2.f32 %v10017_v35 }
 0xcb0   : > { %v10145_v46 = vsel %vm9825_vm15, %v9761_v41, %v13594_v49 }
 0xcb1   : > { %10209 = vst [vmem:[%s15802_s9 + $0x1f0] sm:$0xff] %v10145_v46 }
 0xcb5   : > { %v15484_v56 = vpop.eup %15483 }
 0xcb6   : > { %v13595_v9 = vadd.f32 -1.0, %v15484_v56 }
 0xcb8   : > { %v10146_v36 = vsel %vm9826_vm0, %v9762_v21, %v13595_v9 }
 0xcb9   : > { %10210 = vst [vmem:[%s15802_s9 + $0x1f8] sm:$0xff] %v10146_v36 }
 0xcba   : > { %15546 = shalt.err (!%p15543_p4)
}
 0xcbb   : > { %s15645_s27 = smov 128   ;;  %s15646_s9 = smov 8  }
 0xcbc   : > { %15247 = dma.vmem_to_hbm [thread:$0]  (%p15767_p13), %s10227_s25, 8192, %s10229_s14, %s10212_s15, %s15645_s27, %s15645_s27, %s15646_s9  }
 0xcbd PF: > { %p15258_p5 = scmp.ge.s32.totalorder %s15641_s28, 2  ;;  %s10243_s8 = sand.u32 1, %s15601_s18  }
 0xcbe   : > { %s10244_s26 = scalar_lea.sflag [#allocation5], %s10243_s8 }
 0xcbf   : > { %p15254_p6 = pnand %p15258_p5, %p15772_p2 }
 0xcc1   : > { %p15255_p7 = pneg %p15254_p6 }
 0xcc3   : > { %15596 = dma.done.wait (%p15255_p7), %s10244_s26, 8192  }
 0xcc4   : > { %15598 = vsyncadd (%p15255_p7), %s10244_s26, 4294959104  ;;  %s21_s28 = sadd.s32 1, %s15641_s28   ;;  %s18604_s23 = sld [smem:[#allocation15_spill]] }
 0xcc5   : > { %p18_p3 = scmp.ge.s32.totalorder %s21_s28, 6   ;;  %s18605_s17 = sld [smem:[#allocation9_spill]] }
 0xcc6   : > { %s18606_s12 = sld [smem:[#allocation14_spill]]  ;;  %s18611_s18 = smov %s15605_s19 }
 0xcc7   : > { %s18607_s24 = sld [smem:[#allocation10_spill]]  ;;  %s18612_s19 = smov %s15609_s20 }
 0xcc8   : > { %s18608_s25 = sld [smem:[#allocation11_spill]]  ;;  %s18614_s21 = smov %s15617_s22 }
 0xcc9   : > { %s18609_s26 = sld [smem:[#allocation12_spill]]  ;;  %20 = sbr.rel (!%p18_p3) target bundleno = 9 (0x9), region = 100 }
 0xcca   : > { %s18610_s27 = sld [smem:[#allocation13_spill]]  ;;  %s18613_s20 = smov %s18604_s23 }
 0xccb   : > { %s18615_s22 = smov %s18605_s17 }
 0xccc   : > { %s18616_s23 = smov %s18606_s12 }
 0xcce   :  { %10250 = vsyncpa [#allocation4], 1 }
 0xccf   :  { %10252 = vsyncpa [#allocation4 + $0x1], 1 }
 0xcd0   :  { %10253 = vsyncpa [#allocation5], 1 }
 0xcd1   :  { %10255 = vsyncpa [#allocation5 + $0x1], 1 }

</bundles_post_ra>
